<compile_context>
chip_gen: v6e
topology: v6e:2x2x1
jax: 0.10.0
libtpu: 0.0.40
codegen_flags: <defaults>
</compile_context>

<pallas_src>
import functools

import numpy as np

import jax
import jax.numpy as jnp
from jax.experimental import pallas as pl
from jax.experimental.pallas import tpu as pltpu

# ----------------------------- configuration --------------------------------
B = 2
IMG_H = IMG_W = 7
IMG_C = 3
IMAGE_DIM = 128
MEMORY_DIM = 128
INSTR_DIM = 128
HIDDEN = 64
N_ACTIONS = 7
NUM_MODULES = 2
VOCAB = 16
SEQ = 8
GRU_ROWS = 8          # batch padded to one full sublane tile for the recurrence
BN_EPS = 1e-5
F32 = jnp.float32
BF16 = jnp.bfloat16

# 3x3 conv tap order (matches weight.reshape(9*Cin, Cout) with (kh, kw) major)
_TAPS = tuple((di, dj) for di in (-1, 0, 1) for dj in (-1, 0, 1))


# --------------------------- pallas_call plumbing ---------------------------
def _full_spec_shape(shape):
    n = len(shape)
    return pl.BlockSpec(tuple(shape), lambda i: (0,) * n)


def _full_spec(a):
    return _full_spec_shape(a.shape)


def _pallas_apply(kernel, out_shapes, *inputs):
    """Single-step pallas_call: every operand is one whole VMEM block."""
    single = not isinstance(out_shapes, tuple)
    outs = (out_shapes,) if single else out_shapes
    result = pl.pallas_call(
        kernel,
        out_shape=outs,
        grid=(1,),
        in_specs=[_full_spec(x) for x in inputs],
        out_specs=tuple(_full_spec_shape(o.shape) for o in outs),
        compiler_params=pltpu.CompilerParams(
            dimension_semantics=("arbitrary",)),
    )(*inputs)
    return result[0] if single else result


# ----------------------------- Pallas kernels -------------------------------
def _gru_film_kernel(idx_ref, x_ref, wih_ref, whh_ref, bih_ref, bhh_ref,
                     wf_ref, bf_ref, out_ref, *, seq_len, rows, batch):
    """nn.GRU over the padded instruction in one invocation.

    x_ref is time-major with the batch padded to `rows`(=8) rows per step so
    the per-step slice of the hoisted input projection is a sublane-aligned
    slab.  The hidden state at step (lengths-1) is selected in-kernel and
    pushed through the concatenated (BN2-folded) FiLM weight/bias Linears of
    all controllers."""
    H = whh_ref.shape[0]
    gi_all = jnp.dot(x_ref[...], wih_ref[...],
                     preferred_element_type=jnp.float32) + bih_ref[...]
    whh = whh_ref[...]
    bhh = bhh_ref[...]
    idx = idx_ref[...]                                   # (rows, 1) int32
    h = jnp.zeros((rows, H), jnp.float32)
    sel = jnp.zeros((rows, H), jnp.float32)
    for t in range(seq_len):                             # static, fully unrolled
        gi = gi_all[t * rows:(t + 1) * rows, :]          # aligned 8-row slab
        gh = jnp.dot(h, whh, preferred_element_type=jnp.float32) + bhh
        r = jax.nn.sigmoid(gi[:, :H] + gh[:, :H])
        z = jax.nn.sigmoid(gi[:, H:2 * H] + gh[:, H:2 * H])
        n = jnp.tanh(gi[:, 2 * H:] + r * gh[:, 2 * H:])
        h = (1.0 - z) * n + z * h
        sel = jnp.where(idx == t, h, sel)
    film = jnp.dot(sel[:batch, :], wf_ref[...],
                   preferred_element_type=jnp.float32) + bf_ref[...]
    out_ref[...] = film                                  # (batch, 512)


def _trunk_tail_kernel(patches_ref, film_ref, mem_ref,
                       mask4_ref, mask2_ref, sel1_ref, sel2_ref, sel3_ref,
                       rep_ref,
                       w1_ref, b1_ref, w2_ref, b2_ref,
                       wa0_ref, ba0_ref, wb0_ref, bb0_ref,
                       wa1_ref, ba1_ref, wb1_ref, bb1_ref,
                       wl_ref, bl_ref,
                       hw1_ref, hb1_ref, hw2_ref, hb2_ref, hw3_ref, hb3_ref,
                       out_mem_ref, out_head_ref):
    """Whole image trunk + FiLM modules + film_pool + LSTMCell + merged heads.

    Activations are kept as 2-D (rows=(n,h,w) row-major, lanes=channels).
    3x3 "same" convs are built in-kernel from 9 sublane-rolled, boundary-masked
    copies concatenated along lanes (one matmul per conv); 2x2 max-pools are
    rolls + elementwise max + a 0/1 selection matmul; FiLM per-sample
    scale/shift is broadcast to rows via a tiny replication matmul.
    Eval-BatchNorm is already folded into the conv weights."""

    def conv3x3(x, w_r, b_r, mask_r, width):
        # x: (R, 128) f32 on an (width x width) grid per sample
        R = x.shape[0]
        mask = mask_r[...]                               # (R, 9) 0/1 f32
        cols = []
        for t, (di, dj) in enumerate(_TAPS):
            off = di * width + dj
            if off == 0:
                cols.append(x.astype(jnp.bfloat16))
            else:
                shifted = pltpu.roll(x, shift=(-off) % R, axis=0)
                cols.append((shifted * mask[:, t:t + 1]).astype(jnp.bfloat16))
        patches = jnp.concatenate(cols, axis=1)          # (R, 1152) bf16
        return jnp.dot(patches, w_r[...],
                       preferred_element_type=jnp.float32) + b_r[...]

    def pool2x2(x, sel_r, width):
        R = x.shape[0]
        m = x
        for off in (1, width, width + 1):
            m = jnp.maximum(m, pltpu.roll(x, shift=(-off) % R, axis=0))
        # compact the 2x2-window corner rows with a 0/1 selection matmul
        return jnp.dot(sel_r[...], m, preferred_element_type=jnp.float32)

    # ---- trunk: Conv(2x2,p1)+BN+ReLU -> pool -> Conv(3x3,p1)+BN+ReLU -> pool
    x = jnp.dot(patches_ref[...], w1_ref[...],
                preferred_element_type=jnp.float32) + b1_ref[...]
    x = jnp.maximum(x, 0.0)                              # (128,128) rows=(n,8,8)
    x = pool2x2(x, sel1_ref, 8)                          # (32,128)  rows=(n,4,4)
    x = jnp.maximum(conv3x3(x, w2_ref, b2_ref, mask4_ref, 4), 0.0)
    x = pool2x2(x, sel2_ref, 4)                          # (8,128)   rows=(n,2,2)

    # ---- FiLM controllers (res=False); bn2 already folded into film linears
    film = film_ref[...]                                 # (B, 512)
    rep = rep_ref[...]                                   # (8, B) 0/1
    film_mods = ((wa0_ref, ba0_ref, wb0_ref, bb0_ref),
                 (wa1_ref, ba1_ref, wb1_ref, bb1_ref))
    for m_idx, (wa_r, ba_r, wb_r, bb_r) in enumerate(film_mods):
        h_mid = jnp.maximum(conv3x3(x, wa_r, ba_r, mask2_ref, 2), 0.0)
        y = conv3x3(h_mid, wb_r, bb_r, mask2_ref, 2)
        fwfb = jnp.dot(rep, film[:, m_idx * 256:(m_idx + 1) * 256],
                       preferred_element_type=jnp.float32)   # (8, 256)
        x = jnp.maximum(y * fwfb[:, :128] + fwfb[:, 128:], 0.0)

    # ---- x = relu(film_pool(x)); flatten to (B, 128)
    x = jnp.maximum(pool2x2(x, sel3_ref, 2), 0.0)        # (B, 128)

    # ---- LSTMCell (gate order i, f, g, o)
    mem = mem_ref[...]
    H = x.shape[1]
    h0 = mem[:, :H]
    c0 = mem[:, H:]
    cat = jnp.concatenate([x, h0], axis=1)               # (B, 256)
    g = jnp.dot(cat, wl_ref[...],
                preferred_element_type=jnp.float32) + bl_ref[...]
    i_g = jax.nn.sigmoid(g[:, :H])
    f_g = jax.nn.sigmoid(g[:, H:2 * H])
    g_g = jnp.tanh(g[:, 2 * H:3 * H])
    o_g = jax.nn.sigmoid(g[:, 3 * H:])
    c_new = f_g * c0 + i_g * g_g
    h_new = o_g * jnp.tanh(c_new)
    out_mem_ref[...] = jnp.concatenate([h_new, c_new], axis=1)   # lane-dense

    # ---- merged actor/critic heads (block-diagonal), lane-dense (B,128) out:
    #      lanes 0..6 = actor logits, lane 7 = critic value, rest = 0
    hdn = jnp.tanh(jnp.dot(h_new, hw1_ref[...],
                           preferred_element_type=jnp.float32) + hb1_ref[...])
    hdn = jnp.tanh(jnp.dot(hdn, hw2_ref[...],
                           preferred_element_type=jnp.float32) + hb2_ref[...])
    out_head_ref[...] = jnp.dot(hdn, hw3_ref[...],
                                preferred_element_type=jnp.float32) + hb3_ref[...]


# ------------------------------ plain-JAX glue ------------------------------
def _im2col(x, kh, kw, pad):
    """Glue (raw observation only): extract conv patches; row order
    n*Ho*Wo + ho*Wo + wo, feature order (kh, kw, cin)."""
    N, H, W, C = x.shape
    xp = jnp.pad(x, ((0, 0), (pad, pad), (pad, pad), (0, 0)))
    Ho = H + 2 * pad - kh + 1
    Wo = W + 2 * pad - kw + 1
    cols = [xp[:, i:i + Ho, j:j + Wo, :] for i in range(kh) for j in range(kw)]
    patches = jnp.concatenate(cols, axis=-1).reshape(N * Ho * Wo, kh * kw * C)
    return patches, Ho, Wo


# ------------------------------- parameters ---------------------------------
def _linear_params(key, din, dout):
    # initialize_parameters(): normal(0,1) rows, L2-row-normalized, bias 0
    w = jax.random.normal(key, (dout, din), F32)
    w = w / jnp.sqrt(jnp.sum(w ** 2, axis=1, keepdims=True))
    return w.T, jnp.zeros((dout,), F32)


def _conv_params(key, kh, kw, cin, cout):
    fan_in = kh * kw * cin
    bound = 1.0 / jnp.sqrt(jnp.asarray(fan_in, F32))
    kw_, kb_ = jax.random.split(key)
    w = jax.random.uniform(kw_, (kh, kw, cin, cout), F32, -bound, bound)
    b = jax.random.uniform(kb_, (cout,), F32, -bound, bound)
    return w, b


def _rnn_mat(key, shape, hidden):
    bound = 1.0 / jnp.sqrt(jnp.asarray(hidden, F32))
    return jax.random.uniform(key, shape, F32, -bound, bound)


def _bn_eval(c):
    # eval-mode BatchNorm with init running stats: gamma=1, beta=0, mu=0, var=1
    scale = jnp.full((c,), 1.0 / jnp.sqrt(1.0 + BN_EPS), F32)
    shift = jnp.zeros((c,), F32)
    return scale, shift


def init_params(key):
    keys = jax.random.split(key, 32)
    p = {}
    p["word_emb"] = jax.random.normal(keys[0], (VOCAB, INSTR_DIM), F32)
    p["gru_wih"] = _rnn_mat(keys[1], (INSTR_DIM, 3 * INSTR_DIM), INSTR_DIM)
    p["gru_whh"] = _rnn_mat(keys[2], (INSTR_DIM, 3 * INSTR_DIM), INSTR_DIM)
    p["gru_bih"] = _rnn_mat(keys[3], (3 * INSTR_DIM,), INSTR_DIM)
    p["gru_bhh"] = _rnn_mat(keys[4], (3 * INSTR_DIM,), INSTR_DIM)
    p["conv1_w"], p["conv1_b"] = _conv_params(keys[5], 2, 2, IMG_C, 128)
    p["bn1_scale"], p["bn1_shift"] = _bn_eval(128)
    p["conv2_w"], p["conv2_b"] = _conv_params(keys[6], 3, 3, 128, 128)
    p["bn2_scale"], p["bn2_shift"] = _bn_eval(128)
    p["film"] = []
    k = 7
    for ni in range(NUM_MODULES):
        cout = 128 if ni < NUM_MODULES - 1 else IMAGE_DIM
        fp = {}
        fp["conv1_w"], fp["conv1_b"] = _conv_params(keys[k], 3, 3, 128, 128); k += 1
        fp["bn1_scale"], fp["bn1_shift"] = _bn_eval(128)
        fp["conv2_w"], fp["conv2_b"] = _conv_params(keys[k], 3, 3, 128, cout); k += 1
        fp["bn2_scale"], fp["bn2_shift"] = _bn_eval(cout)
        fp["film_w_w"], fp["film_w_b"] = _linear_params(keys[k], INSTR_DIM, cout); k += 1
        fp["film_b_w"], fp["film_b_b"] = _linear_params(keys[k], INSTR_DIM, cout); k += 1
        p["film"].append(fp)
    p["lstm_wih"] = _rnn_mat(keys[k], (IMAGE_DIM, 4 * MEMORY_DIM), MEMORY_DIM); k += 1
    p["lstm_whh"] = _rnn_mat(keys[k], (MEMORY_DIM, 4 * MEMORY_DIM), MEMORY_DIM); k += 1
    p["lstm_b"] = (_rnn_mat(keys[k], (4 * MEMORY_DIM,), MEMORY_DIM)
                   + _rnn_mat(keys[k + 1], (4 * MEMORY_DIM,), MEMORY_DIM)); k += 2

    def head(key3, dout):
        k1, k2, k3 = jax.random.split(key3, 3)
        w1, b1 = _linear_params(k1, MEMORY_DIM, HIDDEN)
        w2, b2 = _linear_params(k2, HIDDEN, HIDDEN)
        w3, b3 = _linear_params(k3, HIDDEN, dout)
        return {"w1": w1, "b1": b1, "w2": w2, "b2": b2, "w3": w3, "b3": b3}

    p["actor"] = head(keys[k], N_ACTIONS); k += 1
    p["critic"] = head(keys[k], 1); k += 1
    return p


# ------------------ one-time parameter / constant preparation ----------------
def _tap_mask_np(n, h, w):
    r = np.arange(n * h * w)
    hh = (r // w) % h
    ww = r % w
    cols = []
    for di, dj in _TAPS:
        ok = (hh + di >= 0) & (hh + di < h) & (ww + dj >= 0) & (ww + dj < w)
        cols.append(ok.astype(np.float32))
    return np.stack(cols, axis=1)                        # (n*h*w, 9)


def _pool_sel_np(n, h, w):
    ho, wo = h // 2, w // 2
    s = np.zeros((n * ho * wo, n * h * w), np.float32)
    k = 0
    for ni in range(n):
        for po in range(ho):
            for pw in range(wo):
                s[k, ni * h * w + 2 * po * w + 2 * pw] = 1.0
                k += 1
    return s


def _rep_np(n, rows_per_sample):
    r = np.zeros((n * rows_per_sample, n), np.float32)
    for i in range(n * rows_per_sample):
        r[i, i // rows_per_sample] = 1.0
    return r


def prepare_params(p, batch=B):
    """Bake all per-step weight preprocessing: BN folds, concats, reshapes,
    bf16 casts, merged heads, pooling/mask constants."""
    q = {}
    # instruction pipeline
    q["word_emb"] = p["word_emb"]
    q["gru_wih"] = p["gru_wih"]
    q["gru_whh"] = p["gru_whh"]
    q["gru_bih"] = p["gru_bih"].reshape(1, -1)
    q["gru_bhh"] = p["gru_bhh"].reshape(1, -1)

    # fused FiLM weight/bias Linears with each module's BN2 folded in:
    # relu(bn2(conv*fw + fb)) == relu(conv*(fw*s2) + (fb*s2 + t2))
    wf_parts, bf_parts = [], []
    for fp in p["film"]:
        s2, t2 = fp["bn2_scale"], fp["bn2_shift"]
        w_w = fp["film_w_w"] * s2[None, :]
        b_w = fp["film_w_b"] * s2
        w_b = fp["film_b_w"] * s2[None, :]
        b_b = fp["film_b_b"] * s2 + t2
        wf_parts.append(jnp.concatenate([w_w, w_b], axis=1))
        bf_parts.append(jnp.concatenate([b_w, b_b], axis=0))
    q["wf_cat"] = jnp.concatenate(wf_parts, axis=1)      # (128, 512)
    q["bf_cat"] = jnp.concatenate(bf_parts, axis=0).reshape(1, -1)

    def fold(w, b, scale, shift):                        # eval-BN into conv
        return w * scale, b * scale + shift

    w1, b1 = fold(p["conv1_w"], p["conv1_b"], p["bn1_scale"], p["bn1_shift"])
    q["w1"] = w1.reshape(2 * 2 * IMG_C, 128).astype(BF16)
    q["b1"] = b1.reshape(1, 128)
    w2, b2 = fold(p["conv2_w"], p["conv2_b"], p["bn2_scale"], p["bn2_shift"])
    q["w2"] = w2.reshape(9 * 128, 128).astype(BF16)
    q["b2"] = b2.reshape(1, 128)

    for m, fp in enumerate(p["film"]):
        wa, ba = fold(fp["conv1_w"], fp["conv1_b"],
                      fp["bn1_scale"], fp["bn1_shift"])
        q[f"wa{m}"] = wa.reshape(9 * 128, 128).astype(BF16)
        q[f"ba{m}"] = ba.reshape(1, -1)
        q[f"wb{m}"] = fp["conv2_w"].reshape(9 * 128, -1).astype(BF16)
        q[f"bb{m}"] = fp["conv2_b"].reshape(1, -1)

    # LSTM cell: one (256, 512) weight for [x | h]
    q["wl"] = jnp.concatenate([p["lstm_wih"], p["lstm_whh"]], axis=0)
    q["bl"] = p["lstm_b"].reshape(1, -1)

    # merged actor/critic heads (block-diagonal), final layer lane-padded
    a, c = p["actor"], p["critic"]
    q["hw1"] = jnp.concatenate([a["w1"], c["w1"]], axis=1)          # (128,128)
    q["hb1"] = jnp.concatenate([a["b1"], c["b1"]], axis=0).reshape(1, -1)
    hw2 = jnp.zeros((2 * HIDDEN, 2 * HIDDEN), F32)
    hw2 = hw2.at[:HIDDEN, :HIDDEN].set(a["w2"]).at[HIDDEN:, HIDDEN:].set(c["w2"])
    q["hw2"] = hw2
    q["hb2"] = jnp.concatenate([a["b2"], c["b2"]], axis=0).reshape(1, -1)
    hw3 = jnp.zeros((2 * HIDDEN, 128), F32)
    hw3 = hw3.at[:HIDDEN, :N_ACTIONS].set(a["w3"])
    hw3 = hw3.at[HIDDEN:, N_ACTIONS:N_ACTIONS + 1].set(c["w3"])
    q["hw3"] = hw3
    hb3 = jnp.zeros((1, 128), F32)
    hb3 = hb3.at[0, :N_ACTIONS].set(a["b3"]).at[0, N_ACTIONS].set(c["b3"][0])
    q["hb3"] = hb3

    # shape-only constants: conv tap masks, pool corner selectors, FiLM rep
    q["mask4"] = jnp.asarray(_tap_mask_np(batch, 4, 4))             # (32, 9)
    q["mask2"] = jnp.asarray(_tap_mask_np(batch, 2, 2))             # (8, 9)
    q["sel1"] = jnp.asarray(_pool_sel_np(batch, 8, 8))              # (32, 128)
    q["sel2"] = jnp.asarray(_pool_sel_np(batch, 4, 4))              # (8, 32)
    q["sel3"] = jnp.asarray(_pool_sel_np(batch, 2, 2))              # (2, 8)
    q["rep"] = jnp.asarray(_rep_np(batch, 4))                       # (8, 2)
    return q


# --------------------------------- forward ----------------------------------
def ac_model_forward(prep, obs_img, obs_instr, memory):
    N = obs_img.shape[0]
    L = obs_instr.shape[1]

    # --- glue: embedding lookup, time-major rows, batch padded to 8 rows ---
    emb = jnp.take(prep["word_emb"], obs_instr, axis=0)             # (N, L, E)
    xt = jnp.transpose(emb, (1, 0, 2))                              # (L, N, E)
    xt = jnp.pad(xt, ((0, 0), (0, GRU_ROWS - N), (0, 0)))
    x_gru = xt.reshape(L * GRU_ROWS, INSTR_DIM)
    lengths = jnp.sum((obs_instr != 0).astype(jnp.int32), axis=1)
    idx = ((lengths - 1) % L).astype(jnp.int32)        # torch's -1 index wrap
    idx_pad = jnp.pad(idx, (0, GRU_ROWS - N),
                      constant_values=-1).reshape(GRU_ROWS, 1)

    # kernel 1: GRU + all FiLM weight/bias Linears (BN2-folded)
    film_all = _pallas_apply(
        functools.partial(_gru_film_kernel, seq_len=L, rows=GRU_ROWS, batch=N),
        jax.ShapeDtypeStruct((N, prep["wf_cat"].shape[1]), F32),
        idx_pad, x_gru, prep["gru_wih"], prep["gru_whh"],
        prep["gru_bih"], prep["gru_bhh"], prep["wf_cat"], prep["bf_cat"])

    # --- glue: 2x2 patches of the (padded) raw observation for conv1 ---
    patches, _, _ = _im2col(obs_img.astype(F32), 2, 2, 1)           # (128, 12)
    patches = patches.astype(BF16)

    # kernel 2: image trunk + FiLM modules + film_pool + LSTM + merged heads
    out_mem, out_head = _pallas_apply(
        _trunk_tail_kernel,
        (jax.ShapeDtypeStruct((N, 2 * MEMORY_DIM), F32),
         jax.ShapeDtypeStruct((N, 128), F32)),
        patches, film_all, memory,
        prep["mask4"], prep["mask2"], prep["sel1"], prep["sel2"],
        prep["sel3"], prep["rep"],
        prep["w1"], prep["b1"], prep["w2"], prep["b2"],
        prep["wa0"], prep["ba0"], prep["wb0"], prep["bb0"],
        prep["wa1"], prep["ba1"], prep["wb1"], prep["bb1"],
        prep["wl"], prep["bl"],
        prep["hw1"], prep["hb1"], prep["hw2"], prep["hb2"],
        prep["hw3"], prep["hb3"])

    actor_out = out_head[:, :N_ACTIONS]                 # lanes 0..6
    value = out_head[:, N_ACTIONS]                      # lane 7
    logits = jax.nn.log_softmax(actor_out, axis=-1)     # glue: 14 elements
    embedding = out_mem[:, :MEMORY_DIM]
    kl = jnp.zeros((1,), F32)                           # info_bot=False
    reconstruction_embedding = jnp.concatenate([embedding, actor_out], axis=1)

    return {"logits": logits, "value": value, "memory": out_mem,
            "kl": kl, "reconstruction_embedding": reconstruction_embedding}


# ----------------------------------- main ------------------------------------
if __name__ == "__main__":
    key = jax.random.PRNGKey(0)
    pkey, ikey, tkey = jax.random.split(key, 3)
    params = init_params(pkey)
    prep = prepare_params(params)          # one-time weight prep (outside jit)
    jax.block_until_ready(prep)

    obs_img = jax.random.uniform(ikey, (B, IMG_H, IMG_W, IMG_C), F32, 0.0, 10.0)
    tokens = jax.random.randint(tkey, (B, SEQ), 1, VOCAB).astype(jnp.int32)
    # zero-pad tails so the two rows have different instruction lengths
    pad_mask = jnp.arange(SEQ)[None, :] < jnp.array([[SEQ], [SEQ - 3]])
    tokens = jnp.where(pad_mask, tokens, 0)
    memory = jnp.zeros((B, 2 * MEMORY_DIM), F32)        # ACModel.reset()

    fwd = jax.jit(ac_model_forward)
    out = fwd(prep, obs_img, tokens, memory)
    jax.block_until_ready(out)

    assert out["logits"].shape == (B, N_ACTIONS)
    assert out["value"].shape == (B,)
    assert out["memory"].shape == (B, 2 * MEMORY_DIM)
    assert out["kl"].shape == (1,)
    assert out["reconstruction_embedding"].shape == (B, MEMORY_DIM + N_ACTIONS)
    assert bool(jnp.all(jnp.isfinite(out["logits"])))
    assert bool(jnp.all(jnp.isfinite(out["memory"])))
    print("KERNEL_OK")
</pallas_src>

<mosaic_0001>
module attributes {stable_mosaic.version = 11 : i64} {
  func.func @_trunk_tail_kernel(%arg0: i32, %arg1: memref<128x12xbf16, #tpu.memory_space<vmem>>, %arg2: memref<2x512xf32, #tpu.memory_space<vmem>>, %arg3: memref<2x256xf32, #tpu.memory_space<vmem>>, %arg4: memref<32x9xf32, #tpu.memory_space<vmem>>, %arg5: memref<8x9xf32, #tpu.memory_space<vmem>>, %arg6: memref<32x128xf32, #tpu.memory_space<vmem>>, %arg7: memref<8x32xf32, #tpu.memory_space<vmem>>, %arg8: memref<2x8xf32, #tpu.memory_space<vmem>>, %arg9: memref<8x2xf32, #tpu.memory_space<vmem>>, %arg10: memref<12x128xbf16, #tpu.memory_space<vmem>>, %arg11: memref<1x128xf32, #tpu.memory_space<vmem>>, %arg12: memref<1152x128xbf16, #tpu.memory_space<vmem>>, %arg13: memref<1x128xf32, #tpu.memory_space<vmem>>, %arg14: memref<1152x128xbf16, #tpu.memory_space<vmem>>, %arg15: memref<1x128xf32, #tpu.memory_space<vmem>>, %arg16: memref<1152x128xbf16, #tpu.memory_space<vmem>>, %arg17: memref<1x128xf32, #tpu.memory_space<vmem>>, %arg18: memref<1152x128xbf16, #tpu.memory_space<vmem>>, %arg19: memref<1x128xf32, #tpu.memory_space<vmem>>, %arg20: memref<1152x128xbf16, #tpu.memory_space<vmem>>, %arg21: memref<1x128xf32, #tpu.memory_space<vmem>>, %arg22: memref<256x512xf32, #tpu.memory_space<vmem>>, %arg23: memref<1x512xf32, #tpu.memory_space<vmem>>, %arg24: memref<128x128xf32, #tpu.memory_space<vmem>>, %arg25: memref<1x128xf32, #tpu.memory_space<vmem>>, %arg26: memref<128x128xf32, #tpu.memory_space<vmem>>, %arg27: memref<1x128xf32, #tpu.memory_space<vmem>>, %arg28: memref<128x128xf32, #tpu.memory_space<vmem>>, %arg29: memref<1x128xf32, #tpu.memory_space<vmem>>, %arg30: memref<2x256xf32, #tpu.memory_space<vmem>>, %arg31: memref<2x128xf32, #tpu.memory_space<vmem>>) attributes {dimension_semantics = [#tpu.dimension_semantics<arbitrary>], iteration_bounds = array<i64: 1>, scalar_prefetch = 0 : i64, scratch_operands = 0 : i64, tpu.core_type = #tpu.core_type<tc>, window_params = [{pipeline_mode = #tpu.pipeline_mode<synchronous>, transform_indices = @transform_0, window_bounds = array<i64: 128, 12>}, {pipeline_mode = #tpu.pipeline_mode<synchronous>, transform_indices = @transform_1, window_bounds = array<i64: 2, 512>}, {pipeline_mode = #tpu.pipeline_mode<synchronous>, transform_indices = @transform_2, window_bounds = array<i64: 2, 256>}, {pipeline_mode = #tpu.pipeline_mode<synchronous>, transform_indices = @transform_3, window_bounds = array<i64: 32, 9>}, {pipeline_mode = #tpu.pipeline_mode<synchronous>, transform_indices = @transform_4, window_bounds = array<i64: 8, 9>}, {pipeline_mode = #tpu.pipeline_mode<synchronous>, transform_indices = @transform_5, window_bounds = array<i64: 32, 128>}, {pipeline_mode = #tpu.pipeline_mode<synchronous>, transform_indices = @transform_6, window_bounds = array<i64: 8, 32>}, {pipeline_mode = #tpu.pipeline_mode<synchronous>, transform_indices = @transform_7, window_bounds = array<i64: 2, 8>}, {pipeline_mode = #tpu.pipeline_mode<synchronous>, transform_indices = @transform_8, window_bounds = array<i64: 8, 2>}, {pipeline_mode = #tpu.pipeline_mode<synchronous>, transform_indices = @transform_9, window_bounds = array<i64: 12, 128>}, {pipeline_mode = #tpu.pipeline_mode<synchronous>, transform_indices = @transform_10, window_bounds = array<i64: 1, 128>}, {pipeline_mode = #tpu.pipeline_mode<synchronous>, transform_indices = @transform_11, window_bounds = array<i64: 1152, 128>}, {pipeline_mode = #tpu.pipeline_mode<synchronous>, transform_indices = @transform_12, window_bounds = array<i64: 1, 128>}, {pipeline_mode = #tpu.pipeline_mode<synchronous>, transform_indices = @transform_13, window_bounds = array<i64: 1152, 128>}, {pipeline_mode = #tpu.pipeline_mode<synchronous>, transform_indices = @transform_14, window_bounds = array<i64: 1, 128>}, {pipeline_mode = #tpu.pipeline_mode<synchronous>, transform_indices = @transform_15, window_bounds = array<i64: 1152, 128>}, {pipeline_mode = #tpu.pipeline_mode<synchronous>, transform_indices = @transform_16, window_bounds = array<i64: 1, 128>}, {pipeline_mode = #tpu.pipeline_mode<synchronous>, transform_indices = @transform_17, window_bounds = array<i64: 1152, 128>}, {pipeline_mode = #tpu.pipeline_mode<synchronous>, transform_indices = @transform_18, window_bounds = array<i64: 1, 128>}, {pipeline_mode = #tpu.pipeline_mode<synchronous>, transform_indices = @transform_19, window_bounds = array<i64: 1152, 128>}, {pipeline_mode = #tpu.pipeline_mode<synchronous>, transform_indices = @transform_20, window_bounds = array<i64: 1, 128>}, {pipeline_mode = #tpu.pipeline_mode<synchronous>, transform_indices = @transform_21, window_bounds = array<i64: 256, 512>}, {pipeline_mode = #tpu.pipeline_mode<synchronous>, transform_indices = @transform_22, window_bounds = array<i64: 1, 512>}, {pipeline_mode = #tpu.pipeline_mode<synchronous>, transform_indices = @transform_23, window_bounds = array<i64: 128, 128>}, {pipeline_mode = #tpu.pipeline_mode<synchronous>, transform_indices = @transform_24, window_bounds = array<i64: 1, 128>}, {pipeline_mode = #tpu.pipeline_mode<synchronous>, transform_indices = @transform_25, window_bounds = array<i64: 128, 128>}, {pipeline_mode = #tpu.pipeline_mode<synchronous>, transform_indices = @transform_26, window_bounds = array<i64: 1, 128>}, {pipeline_mode = #tpu.pipeline_mode<synchronous>, transform_indices = @transform_27, window_bounds = array<i64: 128, 128>}, {pipeline_mode = #tpu.pipeline_mode<synchronous>, transform_indices = @transform_28, window_bounds = array<i64: 1, 128>}, {pipeline_mode = #tpu.pipeline_mode<synchronous>, transform_indices = @transform_29, window_bounds = array<i64: 2, 256>}, {pipeline_mode = #tpu.pipeline_mode<synchronous>, transform_indices = @transform_30, window_bounds = array<i64: 2, 128>}]} {
    %c0 = arith.constant 0 : index
    %c0_0 = arith.constant 0 : index
    %0 = vector.load %arg1[%c0, %c0_0] : memref<128x12xbf16, #tpu.memory_space<vmem>>, vector<128x12xbf16>
    %c0_1 = arith.constant 0 : index
    %c0_2 = arith.constant 0 : index
    %1 = vector.load %arg10[%c0_1, %c0_2] : memref<12x128xbf16, #tpu.memory_space<vmem>>, vector<12x128xbf16>
    %cst = arith.constant dense<0.000000e+00> : vector<128x128xf32>
    %2 = tpu.matmul %0, %1, %cst {dimension_numbers = #tpu.dot_dimension_numbers<[1], [0], [0], [1], [0, 0, 1, 1], [], []>} : vector<128x12xbf16>, vector<12x128xbf16>, vector<128x128xf32> -> vector<128x128xf32>
    %c0_3 = arith.constant 0 : index
    %c0_4 = arith.constant 0 : index
    %3 = vector.load %arg11[%c0_3, %c0_4] : memref<1x128xf32, #tpu.memory_space<vmem>>, vector<1x128xf32>
    %4 = vector.broadcast %3 : vector<1x128xf32> to vector<128x128xf32>
    %5 = arith.addf %2, %4 : vector<128x128xf32>
    %cst_5 = arith.constant 0.000000e+00 : f32
    %6 = vector.broadcast %cst_5 : f32 to vector<128x128xf32>
    %7 = arith.maximumf %5, %6 : vector<128x128xf32>
    %c127_i32 = arith.constant 127 : i32
    %8 = tpu.dynamic_rotate %7 by %c127_i32 dim 0 : vector<128x128xf32>, i32 -> vector<128x128xf32>
    %9 = arith.maximumf %7, %8 : vector<128x128xf32>
    %c120_i32 = arith.constant 120 : i32
    %10 = tpu.dynamic_rotate %7 by %c120_i32 dim 0 : vector<128x128xf32>, i32 -> vector<128x128xf32>
    %11 = arith.maximumf %9, %10 : vector<128x128xf32>
    %c119_i32 = arith.constant 119 : i32
    %12 = tpu.dynamic_rotate %7 by %c119_i32 dim 0 : vector<128x128xf32>, i32 -> vector<128x128xf32>
    %13 = arith.maximumf %11, %12 : vector<128x128xf32>
    %c0_6 = arith.constant 0 : index
    %c0_7 = arith.constant 0 : index
    %14 = vector.load %arg6[%c0_6, %c0_7] : memref<32x128xf32, #tpu.memory_space<vmem>>, vector<32x128xf32>
    %cst_8 = arith.constant dense<0.000000e+00> : vector<32x128xf32>
    %15 = tpu.matmul %14, %13, %cst_8 {dimension_numbers = #tpu.dot_dimension_numbers<[1], [0], [0], [1], [0, 0, 1, 1], [], []>} : vector<32x128xf32>, vector<128x128xf32>, vector<32x128xf32> -> vector<32x128xf32>
    %c0_9 = arith.constant 0 : index
    %c0_10 = arith.constant 0 : index
    %16 = vector.load %arg4[%c0_9, %c0_10] : memref<32x9xf32, #tpu.memory_space<vmem>>, vector<32x9xf32>
    %c5_i32 = arith.constant 5 : i32
    %17 = tpu.dynamic_rotate %15 by %c5_i32 dim 0 : vector<32x128xf32>, i32 -> vector<32x128xf32>
    %18 = vector.extract_strided_slice %16 {offsets = [0, 0], sizes = [32, 1], strides = [1, 1]} : vector<32x9xf32> to vector<32x1xf32>
    %19 = vector.broadcast %18 : vector<32x1xf32> to vector<32x128xf32>
    %20 = arith.mulf %17, %19 : vector<32x128xf32>
    %21 = arith.truncf %20 : vector<32x128xf32> to vector<32x128xbf16>
    %c4_i32 = arith.constant 4 : i32
    %22 = tpu.dynamic_rotate %15 by %c4_i32 dim 0 : vector<32x128xf32>, i32 -> vector<32x128xf32>
    %23 = vector.extract_strided_slice %16 {offsets = [0, 1], sizes = [32, 1], strides = [1, 1]} : vector<32x9xf32> to vector<32x1xf32>
    %24 = vector.broadcast %23 : vector<32x1xf32> to vector<32x128xf32>
    %25 = arith.mulf %22, %24 : vector<32x128xf32>
    %26 = arith.truncf %25 : vector<32x128xf32> to vector<32x128xbf16>
    %c3_i32 = arith.constant 3 : i32
    %27 = tpu.dynamic_rotate %15 by %c3_i32 dim 0 : vector<32x128xf32>, i32 -> vector<32x128xf32>
    %28 = vector.extract_strided_slice %16 {offsets = [0, 2], sizes = [32, 1], strides = [1, 1]} : vector<32x9xf32> to vector<32x1xf32>
    %29 = vector.broadcast %28 : vector<32x1xf32> to vector<32x128xf32>
    %30 = arith.mulf %27, %29 : vector<32x128xf32>
    %31 = arith.truncf %30 : vector<32x128xf32> to vector<32x128xbf16>
    %c1_i32 = arith.constant 1 : i32
    %32 = tpu.dynamic_rotate %15 by %c1_i32 dim 0 : vector<32x128xf32>, i32 -> vector<32x128xf32>
    %33 = vector.extract_strided_slice %16 {offsets = [0, 3], sizes = [32, 1], strides = [1, 1]} : vector<32x9xf32> to vector<32x1xf32>
    %34 = vector.broadcast %33 : vector<32x1xf32> to vector<32x128xf32>
    %35 = arith.mulf %32, %34 : vector<32x128xf32>
    %36 = arith.truncf %35 : vector<32x128xf32> to vector<32x128xbf16>
    %37 = arith.truncf %15 : vector<32x128xf32> to vector<32x128xbf16>
    %c31_i32 = arith.constant 31 : i32
    %38 = tpu.dynamic_rotate %15 by %c31_i32 dim 0 : vector<32x128xf32>, i32 -> vector<32x128xf32>
    %39 = vector.extract_strided_slice %16 {offsets = [0, 5], sizes = [32, 1], strides = [1, 1]} : vector<32x9xf32> to vector<32x1xf32>
    %40 = vector.broadcast %39 : vector<32x1xf32> to vector<32x128xf32>
    %41 = arith.mulf %38, %40 : vector<32x128xf32>
    %42 = arith.truncf %41 : vector<32x128xf32> to vector<32x128xbf16>
    %c29_i32 = arith.constant 29 : i32
    %43 = tpu.dynamic_rotate %15 by %c29_i32 dim 0 : vector<32x128xf32>, i32 -> vector<32x128xf32>
    %44 = vector.extract_strided_slice %16 {offsets = [0, 6], sizes = [32, 1], strides = [1, 1]} : vector<32x9xf32> to vector<32x1xf32>
    %45 = vector.broadcast %44 : vector<32x1xf32> to vector<32x128xf32>
    %46 = arith.mulf %43, %45 : vector<32x128xf32>
    %47 = arith.truncf %46 : vector<32x128xf32> to vector<32x128xbf16>
    %c28_i32 = arith.constant 28 : i32
    %48 = tpu.dynamic_rotate %15 by %c28_i32 dim 0 : vector<32x128xf32>, i32 -> vector<32x128xf32>
    %49 = vector.extract_strided_slice %16 {offsets = [0, 7], sizes = [32, 1], strides = [1, 1]} : vector<32x9xf32> to vector<32x1xf32>
    %50 = vector.broadcast %49 : vector<32x1xf32> to vector<32x128xf32>
    %51 = arith.mulf %48, %50 : vector<32x128xf32>
    %52 = arith.truncf %51 : vector<32x128xf32> to vector<32x128xbf16>
    %c27_i32 = arith.constant 27 : i32
    %53 = tpu.dynamic_rotate %15 by %c27_i32 dim 0 : vector<32x128xf32>, i32 -> vector<32x128xf32>
    %54 = vector.extract_strided_slice %16 {offsets = [0, 8], sizes = [32, 1], strides = [1, 1]} : vector<32x9xf32> to vector<32x1xf32>
    %55 = vector.broadcast %54 : vector<32x1xf32> to vector<32x128xf32>
    %56 = arith.mulf %53, %55 : vector<32x128xf32>
    %57 = arith.truncf %56 : vector<32x128xf32> to vector<32x128xbf16>
    %58 = tpu.concatenate %21, %26, %31, %36, %37, %42, %47, %52, %57 in 1 : vector<32x128xbf16>, vector<32x128xbf16>, vector<32x128xbf16>, vector<32x128xbf16>, vector<32x128xbf16>, vector<32x128xbf16>, vector<32x128xbf16>, vector<32x128xbf16>, vector<32x128xbf16> -> vector<32x1152xbf16>
    %c0_11 = arith.constant 0 : index
    %c0_12 = arith.constant 0 : index
    %59 = vector.load %arg12[%c0_11, %c0_12] : memref<1152x128xbf16, #tpu.memory_space<vmem>>, vector<1152x128xbf16>
    %cst_13 = arith.constant dense<0.000000e+00> : vector<32x128xf32>
    %60 = tpu.matmul %58, %59, %cst_13 {dimension_numbers = #tpu.dot_dimension_numbers<[1], [0], [0], [1], [0, 0, 1, 1], [], []>} : vector<32x1152xbf16>, vector<1152x128xbf16>, vector<32x128xf32> -> vector<32x128xf32>
    %c0_14 = arith.constant 0 : index
    %c0_15 = arith.constant 0 : index
    %61 = vector.load %arg13[%c0_14, %c0_15] : memref<1x128xf32, #tpu.memory_space<vmem>>, vector<1x128xf32>
    %62 = vector.broadcast %61 : vector<1x128xf32> to vector<32x128xf32>
    %63 = arith.addf %60, %62 : vector<32x128xf32>
    %cst_16 = arith.constant 0.000000e+00 : f32
    %64 = vector.broadcast %cst_16 : f32 to vector<32x128xf32>
    %65 = arith.maximumf %63, %64 : vector<32x128xf32>
    %c31_i32_17 = arith.constant 31 : i32
    %66 = tpu.dynamic_rotate %65 by %c31_i32_17 dim 0 : vector<32x128xf32>, i32 -> vector<32x128xf32>
    %67 = arith.maximumf %65, %66 : vector<32x128xf32>
    %c28_i32_18 = arith.constant 28 : i32
    %68 = tpu.dynamic_rotate %65 by %c28_i32_18 dim 0 : vector<32x128xf32>, i32 -> vector<32x128xf32>
    %69 = arith.maximumf %67, %68 : vector<32x128xf32>
    %c27_i32_19 = arith.constant 27 : i32
    %70 = tpu.dynamic_rotate %65 by %c27_i32_19 dim 0 : vector<32x128xf32>, i32 -> vector<32x128xf32>
    %71 = arith.maximumf %69, %70 : vector<32x128xf32>
    %c0_20 = arith.constant 0 : index
    %c0_21 = arith.constant 0 : index
    %72 = vector.load %arg7[%c0_20, %c0_21] : memref<8x32xf32, #tpu.memory_space<vmem>>, vector<8x32xf32>
    %cst_22 = arith.constant dense<0.000000e+00> : vector<8x128xf32>
    %73 = tpu.matmul %72, %71, %cst_22 {dimension_numbers = #tpu.dot_dimension_numbers<[1], [0], [0], [1], [0, 0, 1, 1], [], []>} : vector<8x32xf32>, vector<32x128xf32>, vector<8x128xf32> -> vector<8x128xf32>
    %c0_23 = arith.constant 0 : index
    %c0_24 = arith.constant 0 : index
    %74 = vector.load %arg2[%c0_23, %c0_24] : memref<2x512xf32, #tpu.memory_space<vmem>>, vector<2x512xf32>
    %c0_25 = arith.constant 0 : index
    %c0_26 = arith.constant 0 : index
    %75 = vector.load %arg9[%c0_25, %c0_26] : memref<8x2xf32, #tpu.memory_space<vmem>>, vector<8x2xf32>
    %c0_27 = arith.constant 0 : index
    %c0_28 = arith.constant 0 : index
    %76 = vector.load %arg5[%c0_27, %c0_28] : memref<8x9xf32, #tpu.memory_space<vmem>>, vector<8x9xf32>
    %c3_i32_29 = arith.constant 3 : i32
    %77 = tpu.dynamic_rotate %73 by %c3_i32_29 dim 0 : vector<8x128xf32>, i32 -> vector<8x128xf32>
    %78 = vector.extract_strided_slice %76 {offsets = [0, 0], sizes = [8, 1], strides = [1, 1]} : vector<8x9xf32> to vector<8x1xf32>
    %79 = vector.broadcast %78 : vector<8x1xf32> to vector<8x128xf32>
    %80 = arith.mulf %77, %79 : vector<8x128xf32>
    %81 = arith.truncf %80 : vector<8x128xf32> to vector<8x128xbf16>
    %c2_i32 = arith.constant 2 : i32
    %82 = tpu.dynamic_rotate %73 by %c2_i32 dim 0 : vector<8x128xf32>, i32 -> vector<8x128xf32>
    %83 = vector.extract_strided_slice %76 {offsets = [0, 1], sizes = [8, 1], strides = [1, 1]} : vector<8x9xf32> to vector<8x1xf32>
    %84 = vector.broadcast %83 : vector<8x1xf32> to vector<8x128xf32>
    %85 = arith.mulf %82, %84 : vector<8x128xf32>
    %86 = arith.truncf %85 : vector<8x128xf32> to vector<8x128xbf16>
    %c1_i32_30 = arith.constant 1 : i32
    %87 = tpu.dynamic_rotate %73 by %c1_i32_30 dim 0 : vector<8x128xf32>, i32 -> vector<8x128xf32>
    %88 = vector.extract_strided_slice %76 {offsets = [0, 2], sizes = [8, 1], strides = [1, 1]} : vector<8x9xf32> to vector<8x1xf32>
    %89 = vector.broadcast %88 : vector<8x1xf32> to vector<8x128xf32>
    %90 = arith.mulf %87, %89 : vector<8x128xf32>
    %91 = arith.truncf %90 : vector<8x128xf32> to vector<8x128xbf16>
    %c1_i32_31 = arith.constant 1 : i32
    %92 = tpu.dynamic_rotate %73 by %c1_i32_31 dim 0 : vector<8x128xf32>, i32 -> vector<8x128xf32>
    %93 = vector.extract_strided_slice %76 {offsets = [0, 3], sizes = [8, 1], strides = [1, 1]} : vector<8x9xf32> to vector<8x1xf32>
    %94 = vector.broadcast %93 : vector<8x1xf32> to vector<8x128xf32>
    %95 = arith.mulf %92, %94 : vector<8x128xf32>
    %96 = arith.truncf %95 : vector<8x128xf32> to vector<8x128xbf16>
    %97 = arith.truncf %73 : vector<8x128xf32> to vector<8x128xbf16>
    %c7_i32 = arith.constant 7 : i32
    %98 = tpu.dynamic_rotate %73 by %c7_i32 dim 0 : vector<8x128xf32>, i32 -> vector<8x128xf32>
    %99 = vector.extract_strided_slice %76 {offsets = [0, 5], sizes = [8, 1], strides = [1, 1]} : vector<8x9xf32> to vector<8x1xf32>
    %100 = vector.broadcast %99 : vector<8x1xf32> to vector<8x128xf32>
    %101 = arith.mulf %98, %100 : vector<8x128xf32>
    %102 = arith.truncf %101 : vector<8x128xf32> to vector<8x128xbf16>
    %c7_i32_32 = arith.constant 7 : i32
    %103 = tpu.dynamic_rotate %73 by %c7_i32_32 dim 0 : vector<8x128xf32>, i32 -> vector<8x128xf32>
    %104 = vector.extract_strided_slice %76 {offsets = [0, 6], sizes = [8, 1], strides = [1, 1]} : vector<8x9xf32> to vector<8x1xf32>
    %105 = vector.broadcast %104 : vector<8x1xf32> to vector<8x128xf32>
    %106 = arith.mulf %103, %105 : vector<8x128xf32>
    %107 = arith.truncf %106 : vector<8x128xf32> to vector<8x128xbf16>
    %c6_i32 = arith.constant 6 : i32
    %108 = tpu.dynamic_rotate %73 by %c6_i32 dim 0 : vector<8x128xf32>, i32 -> vector<8x128xf32>
    %109 = vector.extract_strided_slice %76 {offsets = [0, 7], sizes = [8, 1], strides = [1, 1]} : vector<8x9xf32> to vector<8x1xf32>
    %110 = vector.broadcast %109 : vector<8x1xf32> to vector<8x128xf32>
    %111 = arith.mulf %108, %110 : vector<8x128xf32>
    %112 = arith.truncf %111 : vector<8x128xf32> to vector<8x128xbf16>
    %c5_i32_33 = arith.constant 5 : i32
    %113 = tpu.dynamic_rotate %73 by %c5_i32_33 dim 0 : vector<8x128xf32>, i32 -> vector<8x128xf32>
    %114 = vector.extract_strided_slice %76 {offsets = [0, 8], sizes = [8, 1], strides = [1, 1]} : vector<8x9xf32> to vector<8x1xf32>
    %115 = vector.broadcast %114 : vector<8x1xf32> to vector<8x128xf32>
    %116 = arith.mulf %113, %115 : vector<8x128xf32>
    %117 = arith.truncf %116 : vector<8x128xf32> to vector<8x128xbf16>
    %118 = tpu.concatenate %81, %86, %91, %96, %97, %102, %107, %112, %117 in 1 : vector<8x128xbf16>, vector<8x128xbf16>, vector<8x128xbf16>, vector<8x128xbf16>, vector<8x128xbf16>, vector<8x128xbf16>, vector<8x128xbf16>, vector<8x128xbf16>, vector<8x128xbf16> -> vector<8x1152xbf16>
    %c0_34 = arith.constant 0 : index
    %c0_35 = arith.constant 0 : index
    %119 = vector.load %arg14[%c0_34, %c0_35] : memref<1152x128xbf16, #tpu.memory_space<vmem>>, vector<1152x128xbf16>
    %cst_36 = arith.constant dense<0.000000e+00> : vector<8x128xf32>
    %120 = tpu.matmul %118, %119, %cst_36 {dimension_numbers = #tpu.dot_dimension_numbers<[1], [0], [0], [1], [0, 0, 1, 1], [], []>} : vector<8x1152xbf16>, vector<1152x128xbf16>, vector<8x128xf32> -> vector<8x128xf32>
    %c0_37 = arith.constant 0 : index
    %c0_38 = arith.constant 0 : index
    %121 = vector.load %arg15[%c0_37, %c0_38] : memref<1x128xf32, #tpu.memory_space<vmem>>, vector<1x128xf32>
    %122 = vector.broadcast %121 : vector<1x128xf32> to vector<8x128xf32>
    %123 = arith.addf %120, %122 : vector<8x128xf32>
    %cst_39 = arith.constant 0.000000e+00 : f32
    %124 = vector.broadcast %cst_39 : f32 to vector<8x128xf32>
    %125 = arith.maximumf %123, %124 : vector<8x128xf32>
    %c0_40 = arith.constant 0 : index
    %c0_41 = arith.constant 0 : index
    %126 = vector.load %arg5[%c0_40, %c0_41] : memref<8x9xf32, #tpu.memory_space<vmem>>, vector<8x9xf32>
    %c3_i32_42 = arith.constant 3 : i32
    %127 = tpu.dynamic_rotate %125 by %c3_i32_42 dim 0 : vector<8x128xf32>, i32 -> vector<8x128xf32>
    %128 = vector.extract_strided_slice %126 {offsets = [0, 0], sizes = [8, 1], strides = [1, 1]} : vector<8x9xf32> to vector<8x1xf32>
    %129 = vector.broadcast %128 : vector<8x1xf32> to vector<8x128xf32>
    %130 = arith.mulf %127, %129 : vector<8x128xf32>
    %131 = arith.truncf %130 : vector<8x128xf32> to vector<8x128xbf16>
    %c2_i32_43 = arith.constant 2 : i32
    %132 = tpu.dynamic_rotate %125 by %c2_i32_43 dim 0 : vector<8x128xf32>, i32 -> vector<8x128xf32>
    %133 = vector.extract_strided_slice %126 {offsets = [0, 1], sizes = [8, 1], strides = [1, 1]} : vector<8x9xf32> to vector<8x1xf32>
    %134 = vector.broadcast %133 : vector<8x1xf32> to vector<8x128xf32>
    %135 = arith.mulf %132, %134 : vector<8x128xf32>
    %136 = arith.truncf %135 : vector<8x128xf32> to vector<8x128xbf16>
    %c1_i32_44 = arith.constant 1 : i32
    %137 = tpu.dynamic_rotate %125 by %c1_i32_44 dim 0 : vector<8x128xf32>, i32 -> vector<8x128xf32>
    %138 = vector.extract_strided_slice %126 {offsets = [0, 2], sizes = [8, 1], strides = [1, 1]} : vector<8x9xf32> to vector<8x1xf32>
    %139 = vector.broadcast %138 : vector<8x1xf32> to vector<8x128xf32>
    %140 = arith.mulf %137, %139 : vector<8x128xf32>
    %141 = arith.truncf %140 : vector<8x128xf32> to vector<8x128xbf16>
    %c1_i32_45 = arith.constant 1 : i32
    %142 = tpu.dynamic_rotate %125 by %c1_i32_45 dim 0 : vector<8x128xf32>, i32 -> vector<8x128xf32>
    %143 = vector.extract_strided_slice %126 {offsets = [0, 3], sizes = [8, 1], strides = [1, 1]} : vector<8x9xf32> to vector<8x1xf32>
    %144 = vector.broadcast %143 : vector<8x1xf32> to vector<8x128xf32>
    %145 = arith.mulf %142, %144 : vector<8x128xf32>
    %146 = arith.truncf %145 : vector<8x128xf32> to vector<8x128xbf16>
    %147 = arith.truncf %125 : vector<8x128xf32> to vector<8x128xbf16>
    %c7_i32_46 = arith.constant 7 : i32
    %148 = tpu.dynamic_rotate %125 by %c7_i32_46 dim 0 : vector<8x128xf32>, i32 -> vector<8x128xf32>
    %149 = vector.extract_strided_slice %126 {offsets = [0, 5], sizes = [8, 1], strides = [1, 1]} : vector<8x9xf32> to vector<8x1xf32>
    %150 = vector.broadcast %149 : vector<8x1xf32> to vector<8x128xf32>
    %151 = arith.mulf %148, %150 : vector<8x128xf32>
    %152 = arith.truncf %151 : vector<8x128xf32> to vector<8x128xbf16>
    %c7_i32_47 = arith.constant 7 : i32
    %153 = tpu.dynamic_rotate %125 by %c7_i32_47 dim 0 : vector<8x128xf32>, i32 -> vector<8x128xf32>
    %154 = vector.extract_strided_slice %126 {offsets = [0, 6], sizes = [8, 1], strides = [1, 1]} : vector<8x9xf32> to vector<8x1xf32>
    %155 = vector.broadcast %154 : vector<8x1xf32> to vector<8x128xf32>
    %156 = arith.mulf %153, %155 : vector<8x128xf32>
    %157 = arith.truncf %156 : vector<8x128xf32> to vector<8x128xbf16>
    %c6_i32_48 = arith.constant 6 : i32
    %158 = tpu.dynamic_rotate %125 by %c6_i32_48 dim 0 : vector<8x128xf32>, i32 -> vector<8x128xf32>
    %159 = vector.extract_strided_slice %126 {offsets = [0, 7], sizes = [8, 1], strides = [1, 1]} : vector<8x9xf32> to vector<8x1xf32>
    %160 = vector.broadcast %159 : vector<8x1xf32> to vector<8x128xf32>
    %161 = arith.mulf %158, %160 : vector<8x128xf32>
    %162 = arith.truncf %161 : vector<8x128xf32> to vector<8x128xbf16>
    %c5_i32_49 = arith.constant 5 : i32
    %163 = tpu.dynamic_rotate %125 by %c5_i32_49 dim 0 : vector<8x128xf32>, i32 -> vector<8x128xf32>
    %164 = vector.extract_strided_slice %126 {offsets = [0, 8], sizes = [8, 1], strides = [1, 1]} : vector<8x9xf32> to vector<8x1xf32>
    %165 = vector.broadcast %164 : vector<8x1xf32> to vector<8x128xf32>
    %166 = arith.mulf %163, %165 : vector<8x128xf32>
    %167 = arith.truncf %166 : vector<8x128xf32> to vector<8x128xbf16>
    %168 = tpu.concatenate %131, %136, %141, %146, %147, %152, %157, %162, %167 in 1 : vector<8x128xbf16>, vector<8x128xbf16>, vector<8x128xbf16>, vector<8x128xbf16>, vector<8x128xbf16>, vector<8x128xbf16>, vector<8x128xbf16>, vector<8x128xbf16>, vector<8x128xbf16> -> vector<8x1152xbf16>
    %c0_50 = arith.constant 0 : index
    %c0_51 = arith.constant 0 : index
    %169 = vector.load %arg16[%c0_50, %c0_51] : memref<1152x128xbf16, #tpu.memory_space<vmem>>, vector<1152x128xbf16>
    %cst_52 = arith.constant dense<0.000000e+00> : vector<8x128xf32>
    %170 = tpu.matmul %168, %169, %cst_52 {dimension_numbers = #tpu.dot_dimension_numbers<[1], [0], [0], [1], [0, 0, 1, 1], [], []>} : vector<8x1152xbf16>, vector<1152x128xbf16>, vector<8x128xf32> -> vector<8x128xf32>
    %c0_53 = arith.constant 0 : index
    %c0_54 = arith.constant 0 : index
    %171 = vector.load %arg17[%c0_53, %c0_54] : memref<1x128xf32, #tpu.memory_space<vmem>>, vector<1x128xf32>
    %172 = vector.broadcast %171 : vector<1x128xf32> to vector<8x128xf32>
    %173 = arith.addf %170, %172 : vector<8x128xf32>
    %174 = vector.extract_strided_slice %74 {offsets = [0, 0], sizes = [2, 256], strides = [1, 1]} : vector<2x512xf32> to vector<2x256xf32>
    %cst_55 = arith.constant dense<0.000000e+00> : vector<8x256xf32>
    %175 = tpu.matmul %75, %174, %cst_55 {dimension_numbers = #tpu.dot_dimension_numbers<[1], [0], [0], [1], [0, 0, 1, 1], [], []>} : vector<8x2xf32>, vector<2x256xf32>, vector<8x256xf32> -> vector<8x256xf32>
    %176 = vector.extract_strided_slice %175 {offsets = [0, 0], sizes = [8, 128], strides = [1, 1]} : vector<8x256xf32> to vector<8x128xf32>
    %177 = arith.mulf %173, %176 : vector<8x128xf32>
    %178 = vector.extract_strided_slice %175 {offsets = [0, 128], sizes = [8, 128], strides = [1, 1]} : vector<8x256xf32> to vector<8x128xf32>
    %179 = arith.addf %177, %178 : vector<8x128xf32>
    %cst_56 = arith.constant 0.000000e+00 : f32
    %180 = vector.broadcast %cst_56 : f32 to vector<8x128xf32>
    %181 = arith.maximumf %179, %180 : vector<8x128xf32>
    %c0_57 = arith.constant 0 : index
    %c0_58 = arith.constant 0 : index
    %182 = vector.load %arg5[%c0_57, %c0_58] : memref<8x9xf32, #tpu.memory_space<vmem>>, vector<8x9xf32>
    %c3_i32_59 = arith.constant 3 : i32
    %183 = tpu.dynamic_rotate %181 by %c3_i32_59 dim 0 : vector<8x128xf32>, i32 -> vector<8x128xf32>
    %184 = vector.extract_strided_slice %182 {offsets = [0, 0], sizes = [8, 1], strides = [1, 1]} : vector<8x9xf32> to vector<8x1xf32>
    %185 = vector.broadcast %184 : vector<8x1xf32> to vector<8x128xf32>
    %186 = arith.mulf %183, %185 : vector<8x128xf32>
    %187 = arith.truncf %186 : vector<8x128xf32> to vector<8x128xbf16>
    %c2_i32_60 = arith.constant 2 : i32
    %188 = tpu.dynamic_rotate %181 by %c2_i32_60 dim 0 : vector<8x128xf32>, i32 -> vector<8x128xf32>
    %189 = vector.extract_strided_slice %182 {offsets = [0, 1], sizes = [8, 1], strides = [1, 1]} : vector<8x9xf32> to vector<8x1xf32>
    %190 = vector.broadcast %189 : vector<8x1xf32> to vector<8x128xf32>
    %191 = arith.mulf %188, %190 : vector<8x128xf32>
    %192 = arith.truncf %191 : vector<8x128xf32> to vector<8x128xbf16>
    %c1_i32_61 = arith.constant 1 : i32
    %193 = tpu.dynamic_rotate %181 by %c1_i32_61 dim 0 : vector<8x128xf32>, i32 -> vector<8x128xf32>
    %194 = vector.extract_strided_slice %182 {offsets = [0, 2], sizes = [8, 1], strides = [1, 1]} : vector<8x9xf32> to vector<8x1xf32>
    %195 = vector.broadcast %194 : vector<8x1xf32> to vector<8x128xf32>
    %196 = arith.mulf %193, %195 : vector<8x128xf32>
    %197 = arith.truncf %196 : vector<8x128xf32> to vector<8x128xbf16>
    %c1_i32_62 = arith.constant 1 : i32
    %198 = tpu.dynamic_rotate %181 by %c1_i32_62 dim 0 : vector<8x128xf32>, i32 -> vector<8x128xf32>
    %199 = vector.extract_strided_slice %182 {offsets = [0, 3], sizes = [8, 1], strides = [1, 1]} : vector<8x9xf32> to vector<8x1xf32>
    %200 = vector.broadcast %199 : vector<8x1xf32> to vector<8x128xf32>
    %201 = arith.mulf %198, %200 : vector<8x128xf32>
    %202 = arith.truncf %201 : vector<8x128xf32> to vector<8x128xbf16>
    %203 = arith.truncf %181 : vector<8x128xf32> to vector<8x128xbf16>
    %c7_i32_63 = arith.constant 7 : i32
    %204 = tpu.dynamic_rotate %181 by %c7_i32_63 dim 0 : vector<8x128xf32>, i32 -> vector<8x128xf32>
    %205 = vector.extract_strided_slice %182 {offsets = [0, 5], sizes = [8, 1], strides = [1, 1]} : vector<8x9xf32> to vector<8x1xf32>
    %206 = vector.broadcast %205 : vector<8x1xf32> to vector<8x128xf32>
    %207 = arith.mulf %204, %206 : vector<8x128xf32>
    %208 = arith.truncf %207 : vector<8x128xf32> to vector<8x128xbf16>
    %c7_i32_64 = arith.constant 7 : i32
    %209 = tpu.dynamic_rotate %181 by %c7_i32_64 dim 0 : vector<8x128xf32>, i32 -> vector<8x128xf32>
    %210 = vector.extract_strided_slice %182 {offsets = [0, 6], sizes = [8, 1], strides = [1, 1]} : vector<8x9xf32> to vector<8x1xf32>
    %211 = vector.broadcast %210 : vector<8x1xf32> to vector<8x128xf32>
    %212 = arith.mulf %209, %211 : vector<8x128xf32>
    %213 = arith.truncf %212 : vector<8x128xf32> to vector<8x128xbf16>
    %c6_i32_65 = arith.constant 6 : i32
    %214 = tpu.dynamic_rotate %181 by %c6_i32_65 dim 0 : vector<8x128xf32>, i32 -> vector<8x128xf32>
    %215 = vector.extract_strided_slice %182 {offsets = [0, 7], sizes = [8, 1], strides = [1, 1]} : vector<8x9xf32> to vector<8x1xf32>
    %216 = vector.broadcast %215 : vector<8x1xf32> to vector<8x128xf32>
    %217 = arith.mulf %214, %216 : vector<8x128xf32>
    %218 = arith.truncf %217 : vector<8x128xf32> to vector<8x128xbf16>
    %c5_i32_66 = arith.constant 5 : i32
    %219 = tpu.dynamic_rotate %181 by %c5_i32_66 dim 0 : vector<8x128xf32>, i32 -> vector<8x128xf32>
    %220 = vector.extract_strided_slice %182 {offsets = [0, 8], sizes = [8, 1], strides = [1, 1]} : vector<8x9xf32> to vector<8x1xf32>
    %221 = vector.broadcast %220 : vector<8x1xf32> to vector<8x128xf32>
    %222 = arith.mulf %219, %221 : vector<8x128xf32>
    %223 = arith.truncf %222 : vector<8x128xf32> to vector<8x128xbf16>
    %224 = tpu.concatenate %187, %192, %197, %202, %203, %208, %213, %218, %223 in 1 : vector<8x128xbf16>, vector<8x128xbf16>, vector<8x128xbf16>, vector<8x128xbf16>, vector<8x128xbf16>, vector<8x128xbf16>, vector<8x128xbf16>, vector<8x128xbf16>, vector<8x128xbf16> -> vector<8x1152xbf16>
    %c0_67 = arith.constant 0 : index
    %c0_68 = arith.constant 0 : index
    %225 = vector.load %arg18[%c0_67, %c0_68] : memref<1152x128xbf16, #tpu.memory_space<vmem>>, vector<1152x128xbf16>
    %cst_69 = arith.constant dense<0.000000e+00> : vector<8x128xf32>
    %226 = tpu.matmul %224, %225, %cst_69 {dimension_numbers = #tpu.dot_dimension_numbers<[1], [0], [0], [1], [0, 0, 1, 1], [], []>} : vector<8x1152xbf16>, vector<1152x128xbf16>, vector<8x128xf32> -> vector<8x128xf32>
    %c0_70 = arith.constant 0 : index
    %c0_71 = arith.constant 0 : index
    %227 = vector.load %arg19[%c0_70, %c0_71] : memref<1x128xf32, #tpu.memory_space<vmem>>, vector<1x128xf32>
    %228 = vector.broadcast %227 : vector<1x128xf32> to vector<8x128xf32>
    %229 = arith.addf %226, %228 : vector<8x128xf32>
    %cst_72 = arith.constant 0.000000e+00 : f32
    %230 = vector.broadcast %cst_72 : f32 to vector<8x128xf32>
    %231 = arith.maximumf %229, %230 : vector<8x128xf32>
    %c0_73 = arith.constant 0 : index
    %c0_74 = arith.constant 0 : index
    %232 = vector.load %arg5[%c0_73, %c0_74] : memref<8x9xf32, #tpu.memory_space<vmem>>, vector<8x9xf32>
    %c3_i32_75 = arith.constant 3 : i32
    %233 = tpu.dynamic_rotate %231 by %c3_i32_75 dim 0 : vector<8x128xf32>, i32 -> vector<8x128xf32>
    %234 = vector.extract_strided_slice %232 {offsets = [0, 0], sizes = [8, 1], strides = [1, 1]} : vector<8x9xf32> to vector<8x1xf32>
    %235 = vector.broadcast %234 : vector<8x1xf32> to vector<8x128xf32>
    %236 = arith.mulf %233, %235 : vector<8x128xf32>
    %237 = arith.truncf %236 : vector<8x128xf32> to vector<8x128xbf16>
    %c2_i32_76 = arith.constant 2 : i32
    %238 = tpu.dynamic_rotate %231 by %c2_i32_76 dim 0 : vector<8x128xf32>, i32 -> vector<8x128xf32>
    %239 = vector.extract_strided_slice %232 {offsets = [0, 1], sizes = [8, 1], strides = [1, 1]} : vector<8x9xf32> to vector<8x1xf32>
    %240 = vector.broadcast %239 : vector<8x1xf32> to vector<8x128xf32>
    %241 = arith.mulf %238, %240 : vector<8x128xf32>
    %242 = arith.truncf %241 : vector<8x128xf32> to vector<8x128xbf16>
    %c1_i32_77 = arith.constant 1 : i32
    %243 = tpu.dynamic_rotate %231 by %c1_i32_77 dim 0 : vector<8x128xf32>, i32 -> vector<8x128xf32>
    %244 = vector.extract_strided_slice %232 {offsets = [0, 2], sizes = [8, 1], strides = [1, 1]} : vector<8x9xf32> to vector<8x1xf32>
    %245 = vector.broadcast %244 : vector<8x1xf32> to vector<8x128xf32>
    %246 = arith.mulf %243, %245 : vector<8x128xf32>
    %247 = arith.truncf %246 : vector<8x128xf32> to vector<8x128xbf16>
    %c1_i32_78 = arith.constant 1 : i32
    %248 = tpu.dynamic_rotate %231 by %c1_i32_78 dim 0 : vector<8x128xf32>, i32 -> vector<8x128xf32>
    %249 = vector.extract_strided_slice %232 {offsets = [0, 3], sizes = [8, 1], strides = [1, 1]} : vector<8x9xf32> to vector<8x1xf32>
    %250 = vector.broadcast %249 : vector<8x1xf32> to vector<8x128xf32>
    %251 = arith.mulf %248, %250 : vector<8x128xf32>
    %252 = arith.truncf %251 : vector<8x128xf32> to vector<8x128xbf16>
    %253 = arith.truncf %231 : vector<8x128xf32> to vector<8x128xbf16>
    %c7_i32_79 = arith.constant 7 : i32
    %254 = tpu.dynamic_rotate %231 by %c7_i32_79 dim 0 : vector<8x128xf32>, i32 -> vector<8x128xf32>
    %255 = vector.extract_strided_slice %232 {offsets = [0, 5], sizes = [8, 1], strides = [1, 1]} : vector<8x9xf32> to vector<8x1xf32>
    %256 = vector.broadcast %255 : vector<8x1xf32> to vector<8x128xf32>
    %257 = arith.mulf %254, %256 : vector<8x128xf32>
    %258 = arith.truncf %257 : vector<8x128xf32> to vector<8x128xbf16>
    %c7_i32_80 = arith.constant 7 : i32
    %259 = tpu.dynamic_rotate %231 by %c7_i32_80 dim 0 : vector<8x128xf32>, i32 -> vector<8x128xf32>
    %260 = vector.extract_strided_slice %232 {offsets = [0, 6], sizes = [8, 1], strides = [1, 1]} : vector<8x9xf32> to vector<8x1xf32>
    %261 = vector.broadcast %260 : vector<8x1xf32> to vector<8x128xf32>
    %262 = arith.mulf %259, %261 : vector<8x128xf32>
    %263 = arith.truncf %262 : vector<8x128xf32> to vector<8x128xbf16>
    %c6_i32_81 = arith.constant 6 : i32
    %264 = tpu.dynamic_rotate %231 by %c6_i32_81 dim 0 : vector<8x128xf32>, i32 -> vector<8x128xf32>
    %265 = vector.extract_strided_slice %232 {offsets = [0, 7], sizes = [8, 1], strides = [1, 1]} : vector<8x9xf32> to vector<8x1xf32>
    %266 = vector.broadcast %265 : vector<8x1xf32> to vector<8x128xf32>
    %267 = arith.mulf %264, %266 : vector<8x128xf32>
    %268 = arith.truncf %267 : vector<8x128xf32> to vector<8x128xbf16>
    %c5_i32_82 = arith.constant 5 : i32
    %269 = tpu.dynamic_rotate %231 by %c5_i32_82 dim 0 : vector<8x128xf32>, i32 -> vector<8x128xf32>
    %270 = vector.extract_strided_slice %232 {offsets = [0, 8], sizes = [8, 1], strides = [1, 1]} : vector<8x9xf32> to vector<8x1xf32>
    %271 = vector.broadcast %270 : vector<8x1xf32> to vector<8x128xf32>
    %272 = arith.mulf %269, %271 : vector<8x128xf32>
    %273 = arith.truncf %272 : vector<8x128xf32> to vector<8x128xbf16>
    %274 = tpu.concatenate %237, %242, %247, %252, %253, %258, %263, %268, %273 in 1 : vector<8x128xbf16>, vector<8x128xbf16>, vector<8x128xbf16>, vector<8x128xbf16>, vector<8x128xbf16>, vector<8x128xbf16>, vector<8x128xbf16>, vector<8x128xbf16>, vector<8x128xbf16> -> vector<8x1152xbf16>
    %c0_83 = arith.constant 0 : index
    %c0_84 = arith.constant 0 : index
    %275 = vector.load %arg20[%c0_83, %c0_84] : memref<1152x128xbf16, #tpu.memory_space<vmem>>, vector<1152x128xbf16>
    %cst_85 = arith.constant dense<0.000000e+00> : vector<8x128xf32>
    %276 = tpu.matmul %274, %275, %cst_85 {dimension_numbers = #tpu.dot_dimension_numbers<[1], [0], [0], [1], [0, 0, 1, 1], [], []>} : vector<8x1152xbf16>, vector<1152x128xbf16>, vector<8x128xf32> -> vector<8x128xf32>
    %c0_86 = arith.constant 0 : index
    %c0_87 = arith.constant 0 : index
    %277 = vector.load %arg21[%c0_86, %c0_87] : memref<1x128xf32, #tpu.memory_space<vmem>>, vector<1x128xf32>
    %278 = vector.broadcast %277 : vector<1x128xf32> to vector<8x128xf32>
    %279 = arith.addf %276, %278 : vector<8x128xf32>
    %280 = vector.extract_strided_slice %74 {offsets = [0, 256], sizes = [2, 256], strides = [1, 1]} : vector<2x512xf32> to vector<2x256xf32>
    %cst_88 = arith.constant dense<0.000000e+00> : vector<8x256xf32>
    %281 = tpu.matmul %75, %280, %cst_88 {dimension_numbers = #tpu.dot_dimension_numbers<[1], [0], [0], [1], [0, 0, 1, 1], [], []>} : vector<8x2xf32>, vector<2x256xf32>, vector<8x256xf32> -> vector<8x256xf32>
    %282 = vector.extract_strided_slice %281 {offsets = [0, 0], sizes = [8, 128], strides = [1, 1]} : vector<8x256xf32> to vector<8x128xf32>
    %283 = arith.mulf %279, %282 : vector<8x128xf32>
    %284 = vector.extract_strided_slice %281 {offsets = [0, 128], sizes = [8, 128], strides = [1, 1]} : vector<8x256xf32> to vector<8x128xf32>
    %285 = arith.addf %283, %284 : vector<8x128xf32>
    %cst_89 = arith.constant 0.000000e+00 : f32
    %286 = vector.broadcast %cst_89 : f32 to vector<8x128xf32>
    %287 = arith.maximumf %285, %286 : vector<8x128xf32>
    %c7_i32_90 = arith.constant 7 : i32
    %288 = tpu.dynamic_rotate %287 by %c7_i32_90 dim 0 : vector<8x128xf32>, i32 -> vector<8x128xf32>
    %289 = arith.maximumf %287, %288 : vector<8x128xf32>
    %c6_i32_91 = arith.constant 6 : i32
    %290 = tpu.dynamic_rotate %287 by %c6_i32_91 dim 0 : vector<8x128xf32>, i32 -> vector<8x128xf32>
    %291 = arith.maximumf %289, %290 : vector<8x128xf32>
    %c5_i32_92 = arith.constant 5 : i32
    %292 = tpu.dynamic_rotate %287 by %c5_i32_92 dim 0 : vector<8x128xf32>, i32 -> vector<8x128xf32>
    %293 = arith.maximumf %291, %292 : vector<8x128xf32>
    %c0_93 = arith.constant 0 : index
    %c0_94 = arith.constant 0 : index
    %294 = vector.load %arg8[%c0_93, %c0_94] : memref<2x8xf32, #tpu.memory_space<vmem>>, vector<2x8xf32>
    %cst_95 = arith.constant dense<0.000000e+00> : vector<2x128xf32>
    %295 = tpu.matmul %294, %293, %cst_95 {dimension_numbers = #tpu.dot_dimension_numbers<[1], [0], [0], [1], [0, 0, 1, 1], [], []>} : vector<2x8xf32>, vector<8x128xf32>, vector<2x128xf32> -> vector<2x128xf32>
    %cst_96 = arith.constant 0.000000e+00 : f32
    %296 = vector.broadcast %cst_96 : f32 to vector<2x128xf32>
    %297 = arith.maximumf %295, %296 : vector<2x128xf32>
    %c0_97 = arith.constant 0 : index
    %c0_98 = arith.constant 0 : index
    %298 = vector.load %arg3[%c0_97, %c0_98] : memref<2x256xf32, #tpu.memory_space<vmem>>, vector<2x256xf32>
    %299 = vector.extract_strided_slice %298 {offsets = [0, 0], sizes = [2, 128], strides = [1, 1]} : vector<2x256xf32> to vector<2x128xf32>
    %300 = vector.extract_strided_slice %298 {offsets = [0, 128], sizes = [2, 128], strides = [1, 1]} : vector<2x256xf32> to vector<2x128xf32>
    %301 = tpu.concatenate %297, %299 in 1 : vector<2x128xf32>, vector<2x128xf32> -> vector<2x256xf32>
    %c0_99 = arith.constant 0 : index
    %c0_100 = arith.constant 0 : index
    %302 = vector.load %arg22[%c0_99, %c0_100] : memref<256x512xf32, #tpu.memory_space<vmem>>, vector<256x512xf32>
    %cst_101 = arith.constant dense<0.000000e+00> : vector<2x512xf32>
    %303 = tpu.matmul %301, %302, %cst_101 {dimension_numbers = #tpu.dot_dimension_numbers<[1], [0], [0], [1], [0, 0, 1, 1], [], []>} : vector<2x256xf32>, vector<256x512xf32>, vector<2x512xf32> -> vector<2x512xf32>
    %c0_102 = arith.constant 0 : index
    %c0_103 = arith.constant 0 : index
    %304 = vector.load %arg23[%c0_102, %c0_103] : memref<1x512xf32, #tpu.memory_space<vmem>>, vector<1x512xf32>
    %305 = vector.broadcast %304 : vector<1x512xf32> to vector<2x512xf32>
    %306 = arith.addf %303, %305 : vector<2x512xf32>
    %307 = vector.extract_strided_slice %306 {offsets = [0, 0], sizes = [2, 128], strides = [1, 1]} : vector<2x512xf32> to vector<2x128xf32>
    %308 = arith.negf %307 : vector<2x128xf32>
    %309 = math.exp %308 : vector<2x128xf32>
    %cst_104 = arith.constant 1.000000e+00 : f32
    %310 = vector.broadcast %cst_104 : f32 to vector<2x128xf32>
    %311 = arith.addf %310, %309 : vector<2x128xf32>
    %312 = arith.divf %310, %311 : vector<2x128xf32>
    %313 = vector.extract_strided_slice %306 {offsets = [0, 128], sizes = [2, 128], strides = [1, 1]} : vector<2x512xf32> to vector<2x128xf32>
    %314 = arith.negf %313 : vector<2x128xf32>
    %315 = math.exp %314 : vector<2x128xf32>
    %cst_105 = arith.constant 1.000000e+00 : f32
    %316 = vector.broadcast %cst_105 : f32 to vector<2x128xf32>
    %317 = arith.addf %316, %315 : vector<2x128xf32>
    %318 = arith.divf %316, %317 : vector<2x128xf32>
    %319 = vector.extract_strided_slice %306 {offsets = [0, 256], sizes = [2, 128], strides = [1, 1]} : vector<2x512xf32> to vector<2x128xf32>
    %320 = math.tanh %319 : vector<2x128xf32>
    %321 = vector.extract_strided_slice %306 {offsets = [0, 384], sizes = [2, 128], strides = [1, 1]} : vector<2x512xf32> to vector<2x128xf32>
    %322 = arith.negf %321 : vector<2x128xf32>
    %323 = math.exp %322 : vector<2x128xf32>
    %cst_106 = arith.constant 1.000000e+00 : f32
    %324 = vector.broadcast %cst_106 : f32 to vector<2x128xf32>
    %325 = arith.addf %324, %323 : vector<2x128xf32>
    %326 = arith.divf %324, %325 : vector<2x128xf32>
    %327 = arith.mulf %318, %300 : vector<2x128xf32>
    %328 = arith.mulf %312, %320 : vector<2x128xf32>
    %329 = arith.addf %327, %328 : vector<2x128xf32>
    %330 = math.tanh %329 : vector<2x128xf32>
    %331 = arith.mulf %326, %330 : vector<2x128xf32>
    %332 = tpu.concatenate %331, %329 in 1 : vector<2x128xf32>, vector<2x128xf32> -> vector<2x256xf32>
    %c0_107 = arith.constant 0 : index
    %c0_108 = arith.constant 0 : index
    %333 = vector.load %arg30[%c0_107, %c0_108] : memref<2x256xf32, #tpu.memory_space<vmem>>, vector<2x256xf32>
    tpu.vector_store %arg30[%c0_107, %c0_108], %332 {strides = array<i32>} : memref<2x256xf32, #tpu.memory_space<vmem>>, vector<2x256xf32>,
    %c0_109 = arith.constant 0 : index
    %c0_110 = arith.constant 0 : index
    %334 = vector.load %arg24[%c0_109, %c0_110] : memref<128x128xf32, #tpu.memory_space<vmem>>, vector<128x128xf32>
    %cst_111 = arith.constant dense<0.000000e+00> : vector<2x128xf32>
    %335 = tpu.matmul %331, %334, %cst_111 {dimension_numbers = #tpu.dot_dimension_numbers<[1], [0], [0], [1], [0, 0, 1, 1], [], []>} : vector<2x128xf32>, vector<128x128xf32>, vector<2x128xf32> -> vector<2x128xf32>
    %c0_112 = arith.constant 0 : index
    %c0_113 = arith.constant 0 : index
    %336 = vector.load %arg25[%c0_112, %c0_113] : memref<1x128xf32, #tpu.memory_space<vmem>>, vector<1x128xf32>
    %337 = vector.broadcast %336 : vector<1x128xf32> to vector<2x128xf32>
    %338 = arith.addf %335, %337 : vector<2x128xf32>
    %339 = math.tanh %338 : vector<2x128xf32>
    %c0_114 = arith.constant 0 : index
    %c0_115 = arith.constant 0 : index
    %340 = vector.load %arg26[%c0_114, %c0_115] : memref<128x128xf32, #tpu.memory_space<vmem>>, vector<128x128xf32>
    %cst_116 = arith.constant dense<0.000000e+00> : vector<2x128xf32>
    %341 = tpu.matmul %339, %340, %cst_116 {dimension_numbers = #tpu.dot_dimension_numbers<[1], [0], [0], [1], [0, 0, 1, 1], [], []>} : vector<2x128xf32>, vector<128x128xf32>, vector<2x128xf32> -> vector<2x128xf32>
    %c0_117 = arith.constant 0 : index
    %c0_118 = arith.constant 0 : index
    %342 = vector.load %arg27[%c0_117, %c0_118] : memref<1x128xf32, #tpu.memory_space<vmem>>, vector<1x128xf32>
    %343 = vector.broadcast %342 : vector<1x128xf32> to vector<2x128xf32>
    %344 = arith.addf %341, %343 : vector<2x128xf32>
    %345 = math.tanh %344 : vector<2x128xf32>
    %c0_119 = arith.constant 0 : index
    %c0_120 = arith.constant 0 : index
    %346 = vector.load %arg28[%c0_119, %c0_120] : memref<128x128xf32, #tpu.memory_space<vmem>>, vector<128x128xf32>
    %cst_121 = arith.constant dense<0.000000e+00> : vector<2x128xf32>
    %347 = tpu.matmul %345, %346, %cst_121 {dimension_numbers = #tpu.dot_dimension_numbers<[1], [0], [0], [1], [0, 0, 1, 1], [], []>} : vector<2x128xf32>, vector<128x128xf32>, vector<2x128xf32> -> vector<2x128xf32>
    %c0_122 = arith.constant 0 : index
    %c0_123 = arith.constant 0 : index
    %348 = vector.load %arg29[%c0_122, %c0_123] : memref<1x128xf32, #tpu.memory_space<vmem>>, vector<1x128xf32>
    %349 = vector.broadcast %348 : vector<1x128xf32> to vector<2x128xf32>
    %350 = arith.addf %347, %349 : vector<2x128xf32>
    %c0_124 = arith.constant 0 : index
    %c0_125 = arith.constant 0 : index
    %351 = vector.load %arg31[%c0_124, %c0_125] : memref<2x128xf32, #tpu.memory_space<vmem>>, vector<2x128xf32>
    tpu.vector_store %arg31[%c0_124, %c0_125], %350 {strides = array<i32>} : memref<2x128xf32, #tpu.memory_space<vmem>>, vector<2x128xf32>,
    return
  }
  func.func @transform_0(%arg0: i32) -> (i32, i32) {
    %c0_i32 = arith.constant 0 : i32
    %c0_i32_0 = arith.constant 0 : i32
    %c0_i32_1 = arith.constant 0 : i32
    return %c0_i32, %c0_i32_0 : i32, i32
  }
  func.func @transform_1(%arg0: i32) -> (i32, i32) {
    %c0_i32 = arith.constant 0 : i32
    %c0_i32_0 = arith.constant 0 : i32
    %c0_i32_1 = arith.constant 0 : i32
    return %c0_i32, %c0_i32_0 : i32, i32
  }
  func.func @transform_2(%arg0: i32) -> (i32, i32) {
    %c0_i32 = arith.constant 0 : i32
    %c0_i32_0 = arith.constant 0 : i32
    %c0_i32_1 = arith.constant 0 : i32
    return %c0_i32, %c0_i32_0 : i32, i32
  }
  func.func @transform_3(%arg0: i32) -> (i32, i32) {
    %c0_i32 = arith.constant 0 : i32
    %c0_i32_0 = arith.constant 0 : i32
    %c0_i32_1 = arith.constant 0 : i32
    return %c0_i32, %c0_i32_0 : i32, i32
  }
  func.func @transform_4(%arg0: i32) -> (i32, i32) {
    %c0_i32 = arith.constant 0 : i32
    %c0_i32_0 = arith.constant 0 : i32
    %c0_i32_1 = arith.constant 0 : i32
    return %c0_i32, %c0_i32_0 : i32, i32
  }
  func.func @transform_5(%arg0: i32) -> (i32, i32) {
    %c0_i32 = arith.constant 0 : i32
    %c0_i32_0 = arith.constant 0 : i32
    %c0_i32_1 = arith.constant 0 : i32
    return %c0_i32, %c0_i32_0 : i32, i32
  }
  func.func @transform_6(%arg0: i32) -> (i32, i32) {
    %c0_i32 = arith.constant 0 : i32
    %c0_i32_0 = arith.constant 0 : i32
    %c0_i32_1 = arith.constant 0 : i32
    return %c0_i32, %c0_i32_0 : i32, i32
  }
  func.func @transform_7(%arg0: i32) -> (i32, i32) {
    %c0_i32 = arith.constant 0 : i32
    %c0_i32_0 = arith.constant 0 : i32
    %c0_i32_1 = arith.constant 0 : i32
    return %c0_i32, %c0_i32_0 : i32, i32
  }
  func.func @transform_8(%arg0: i32) -> (i32, i32) {
    %c0_i32 = arith.constant 0 : i32
    %c0_i32_0 = arith.constant 0 : i32
    %c0_i32_1 = arith.constant 0 : i32
    return %c0_i32, %c0_i32_0 : i32, i32
  }
  func.func @transform_9(%arg0: i32) -> (i32, i32) {
    %c0_i32 = arith.constant 0 : i32
    %c0_i32_0 = arith.constant 0 : i32
    %c0_i32_1 = arith.constant 0 : i32
    return %c0_i32, %c0_i32_0 : i32, i32
  }
  func.func @transform_10(%arg0: i32) -> (i32, i32) {
    %c0_i32 = arith.constant 0 : i32
    %c0_i32_0 = arith.constant 0 : i32
    %c0_i32_1 = arith.constant 0 : i32
    return %c0_i32, %c0_i32_0 : i32, i32
  }
  func.func @transform_11(%arg0: i32) -> (i32, i32) {
    %c0_i32 = arith.constant 0 : i32
    %c0_i32_0 = arith.constant 0 : i32
    %c0_i32_1 = arith.constant 0 : i32
    return %c0_i32, %c0_i32_0 : i32, i32
  }
  func.func @transform_12(%arg0: i32) -> (i32, i32) {
    %c0_i32 = arith.constant 0 : i32
    %c0_i32_0 = arith.constant 0 : i32
    %c0_i32_1 = arith.constant 0 : i32
    return %c0_i32, %c0_i32_0 : i32, i32
  }
  func.func @transform_13(%arg0: i32) -> (i32, i32) {
    %c0_i32 = arith.constant 0 : i32
    %c0_i32_0 = arith.constant 0 : i32
    %c0_i32_1 = arith.constant 0 : i32
    return %c0_i32, %c0_i32_0 : i32, i32
  }
  func.func @transform_14(%arg0: i32) -> (i32, i32) {
    %c0_i32 = arith.constant 0 : i32
    %c0_i32_0 = arith.constant 0 : i32
    %c0_i32_1 = arith.constant 0 : i32
    return %c0_i32, %c0_i32_0 : i32, i32
  }
  func.func @transform_15(%arg0: i32) -> (i32, i32) {
    %c0_i32 = arith.constant 0 : i32
    %c0_i32_0 = arith.constant 0 : i32
    %c0_i32_1 = arith.constant 0 : i32
    return %c0_i32, %c0_i32_0 : i32, i32
  }
  func.func @transform_16(%arg0: i32) -> (i32, i32) {
    %c0_i32 = arith.constant 0 : i32
    %c0_i32_0 = arith.constant 0 : i32
    %c0_i32_1 = arith.constant 0 : i32
    return %c0_i32, %c0_i32_0 : i32, i32
  }
  func.func @transform_17(%arg0: i32) -> (i32, i32) {
    %c0_i32 = arith.constant 0 : i32
    %c0_i32_0 = arith.constant 0 : i32
    %c0_i32_1 = arith.constant 0 : i32
    return %c0_i32, %c0_i32_0 : i32, i32
  }
  func.func @transform_18(%arg0: i32) -> (i32, i32) {
    %c0_i32 = arith.constant 0 : i32
    %c0_i32_0 = arith.constant 0 : i32
    %c0_i32_1 = arith.constant 0 : i32
    return %c0_i32, %c0_i32_0 : i32, i32
  }
  func.func @transform_19(%arg0: i32) -> (i32, i32) {
    %c0_i32 = arith.constant 0 : i32
    %c0_i32_0 = arith.constant 0 : i32
    %c0_i32_1 = arith.constant 0 : i32
    return %c0_i32, %c0_i32_0 : i32, i32
  }
  func.func @transform_20(%arg0: i32) -> (i32, i32) {
    %c0_i32 = arith.constant 0 : i32
    %c0_i32_0 = arith.constant 0 : i32
    %c0_i32_1 = arith.constant 0 : i32
    return %c0_i32, %c0_i32_0 : i32, i32
  }
  func.func @transform_21(%arg0: i32) -> (i32, i32) {
    %c0_i32 = arith.constant 0 : i32
    %c0_i32_0 = arith.constant 0 : i32
    %c0_i32_1 = arith.constant 0 : i32
    return %c0_i32, %c0_i32_0 : i32, i32
  }
  func.func @transform_22(%arg0: i32) -> (i32, i32) {
    %c0_i32 = arith.constant 0 : i32
    %c0_i32_0 = arith.constant 0 : i32
    %c0_i32_1 = arith.constant 0 : i32
    return %c0_i32, %c0_i32_0 : i32, i32
  }
  func.func @transform_23(%arg0: i32) -> (i32, i32) {
    %c0_i32 = arith.constant 0 : i32
    %c0_i32_0 = arith.constant 0 : i32
    %c0_i32_1 = arith.constant 0 : i32
    return %c0_i32, %c0_i32_0 : i32, i32
  }
  func.func @transform_24(%arg0: i32) -> (i32, i32) {
    %c0_i32 = arith.constant 0 : i32
    %c0_i32_0 = arith.constant 0 : i32
    %c0_i32_1 = arith.constant 0 : i32
    return %c0_i32, %c0_i32_0 : i32, i32
  }
  func.func @transform_25(%arg0: i32) -> (i32, i32) {
    %c0_i32 = arith.constant 0 : i32
    %c0_i32_0 = arith.constant 0 : i32
    %c0_i32_1 = arith.constant 0 : i32
    return %c0_i32, %c0_i32_0 : i32, i32
  }
  func.func @transform_26(%arg0: i32) -> (i32, i32) {
    %c0_i32 = arith.constant 0 : i32
    %c0_i32_0 = arith.constant 0 : i32
    %c0_i32_1 = arith.constant 0 : i32
    return %c0_i32, %c0_i32_0 : i32, i32
  }
  func.func @transform_27(%arg0: i32) -> (i32, i32) {
    %c0_i32 = arith.constant 0 : i32
    %c0_i32_0 = arith.constant 0 : i32
    %c0_i32_1 = arith.constant 0 : i32
    return %c0_i32, %c0_i32_0 : i32, i32
  }
  func.func @transform_28(%arg0: i32) -> (i32, i32) {
    %c0_i32 = arith.constant 0 : i32
    %c0_i32_0 = arith.constant 0 : i32
    %c0_i32_1 = arith.constant 0 : i32
    return %c0_i32, %c0_i32_0 : i32, i32
  }
  func.func @transform_29(%arg0: i32) -> (i32, i32) {
    %c0_i32 = arith.constant 0 : i32
    %c0_i32_0 = arith.constant 0 : i32
    %c0_i32_1 = arith.constant 0 : i32
    return %c0_i32, %c0_i32_0 : i32, i32
  }
  func.func @transform_30(%arg0: i32) -> (i32, i32) {
    %c0_i32 = arith.constant 0 : i32
    %c0_i32_0 = arith.constant 0 : i32
    %c0_i32_1 = arith.constant 0 : i32
    return %c0_i32, %c0_i32_0 : i32, i32
  }
}

module attributes {stable_mosaic.version = 11 : i64} {
  func.func @_gru_film_kernel(%arg0: i32, %arg1: memref<8x1xi32, #tpu.memory_space<vmem>>, %arg2: memref<64x128xf32, #tpu.memory_space<vmem>>, %arg3: memref<128x384xf32, #tpu.memory_space<vmem>>, %arg4: memref<128x384xf32, #tpu.memory_space<vmem>>, %arg5: memref<1x384xf32, #tpu.memory_space<vmem>>, %arg6: memref<1x384xf32, #tpu.memory_space<vmem>>, %arg7: memref<128x512xf32, #tpu.memory_space<vmem>>, %arg8: memref<1x512xf32, #tpu.memory_space<vmem>>, %arg9: memref<2x512xf32, #tpu.memory_space<vmem>>) attributes {dimension_semantics = [#tpu.dimension_semantics<arbitrary>], iteration_bounds = array<i64: 1>, scalar_prefetch = 0 : i64, scratch_operands = 0 : i64, tpu.core_type = #tpu.core_type<tc>, window_params = [{pipeline_mode = #tpu.pipeline_mode<synchronous>, transform_indices = @transform_0, window_bounds = array<i64: 8, 1>}, {pipeline_mode = #tpu.pipeline_mode<synchronous>, transform_indices = @transform_1, window_bounds = array<i64: 64, 128>}, {pipeline_mode = #tpu.pipeline_mode<synchronous>, transform_indices = @transform_2, window_bounds = array<i64: 128, 384>}, {pipeline_mode = #tpu.pipeline_mode<synchronous>, transform_indices = @transform_3, window_bounds = array<i64: 128, 384>}, {pipeline_mode = #tpu.pipeline_mode<synchronous>, transform_indices = @transform_4, window_bounds = array<i64: 1, 384>}, {pipeline_mode = #tpu.pipeline_mode<synchronous>, transform_indices = @transform_5, window_bounds = array<i64: 1, 384>}, {pipeline_mode = #tpu.pipeline_mode<synchronous>, transform_indices = @transform_6, window_bounds = array<i64: 128, 512>}, {pipeline_mode = #tpu.pipeline_mode<synchronous>, transform_indices = @transform_7, window_bounds = array<i64: 1, 512>}, {pipeline_mode = #tpu.pipeline_mode<synchronous>, transform_indices = @transform_8, window_bounds = array<i64: 2, 512>}]} {
    %c0 = arith.constant 0 : index
    %c0_0 = arith.constant 0 : index
    %0 = vector.load %arg2[%c0, %c0_0] : memref<64x128xf32, #tpu.memory_space<vmem>>, vector<64x128xf32>
    %c0_1 = arith.constant 0 : index
    %c0_2 = arith.constant 0 : index
    %1 = vector.load %arg3[%c0_1, %c0_2] : memref<128x384xf32, #tpu.memory_space<vmem>>, vector<128x384xf32>
    %cst = arith.constant dense<0.000000e+00> : vector<64x384xf32>
    %2 = tpu.matmul %0, %1, %cst {dimension_numbers = #tpu.dot_dimension_numbers<[1], [0], [0], [1], [0, 0, 1, 1], [], []>} : vector<64x128xf32>, vector<128x384xf32>, vector<64x384xf32> -> vector<64x384xf32>
    %c0_3 = arith.constant 0 : index
    %c0_4 = arith.constant 0 : index
    %3 = vector.load %arg5[%c0_3, %c0_4] : memref<1x384xf32, #tpu.memory_space<vmem>>, vector<1x384xf32>
    %4 = vector.broadcast %3 : vector<1x384xf32> to vector<64x384xf32>
    %5 = arith.addf %2, %4 : vector<64x384xf32>
    %c0_5 = arith.constant 0 : index
    %c0_6 = arith.constant 0 : index
    %6 = vector.load %arg4[%c0_5, %c0_6] : memref<128x384xf32, #tpu.memory_space<vmem>>, vector<128x384xf32>
    %c0_7 = arith.constant 0 : index
    %c0_8 = arith.constant 0 : index
    %7 = vector.load %arg6[%c0_7, %c0_8] : memref<1x384xf32, #tpu.memory_space<vmem>>, vector<1x384xf32>
    %c0_9 = arith.constant 0 : index
    %c0_10 = arith.constant 0 : index
    %8 = vector.load %arg1[%c0_9, %c0_10] : memref<8x1xi32, #tpu.memory_space<vmem>>, vector<8x1xi32>
    %cst_11 = arith.constant 0.000000e+00 : f32
    %9 = vector.broadcast %cst_11 : f32 to vector<8x128xf32>
    %cst_12 = arith.constant 0.000000e+00 : f32
    %10 = vector.broadcast %cst_12 : f32 to vector<8x128xf32>
    %11 = vector.extract_strided_slice %5 {offsets = [0, 0], sizes = [8, 384], strides = [1, 1]} : vector<64x384xf32> to vector<8x384xf32>
    %cst_13 = arith.constant dense<0.000000e+00> : vector<8x384xf32>
    %12 = tpu.matmul %9, %6, %cst_13 {dimension_numbers = #tpu.dot_dimension_numbers<[1], [0], [0], [1], [0, 0, 1, 1], [], []>} : vector<8x128xf32>, vector<128x384xf32>, vector<8x384xf32> -> vector<8x384xf32>
    %13 = vector.broadcast %7 : vector<1x384xf32> to vector<8x384xf32>
    %14 = arith.addf %12, %13 : vector<8x384xf32>
    %15 = vector.extract_strided_slice %11 {offsets = [0, 0], sizes = [8, 128], strides = [1, 1]} : vector<8x384xf32> to vector<8x128xf32>
    %16 = vector.extract_strided_slice %14 {offsets = [0, 0], sizes = [8, 128], strides = [1, 1]} : vector<8x384xf32> to vector<8x128xf32>
    %17 = arith.addf %15, %16 : vector<8x128xf32>
    %18 = arith.negf %17 : vector<8x128xf32>
    %19 = math.exp %18 : vector<8x128xf32>
    %cst_14 = arith.constant 1.000000e+00 : f32
    %20 = vector.broadcast %cst_14 : f32 to vector<8x128xf32>
    %21 = arith.addf %20, %19 : vector<8x128xf32>
    %22 = arith.divf %20, %21 : vector<8x128xf32>
    %23 = vector.extract_strided_slice %11 {offsets = [0, 128], sizes = [8, 128], strides = [1, 1]} : vector<8x384xf32> to vector<8x128xf32>
    %24 = vector.extract_strided_slice %14 {offsets = [0, 128], sizes = [8, 128], strides = [1, 1]} : vector<8x384xf32> to vector<8x128xf32>
    %25 = arith.addf %23, %24 : vector<8x128xf32>
    %26 = arith.negf %25 : vector<8x128xf32>
    %27 = math.exp %26 : vector<8x128xf32>
    %cst_15 = arith.constant 1.000000e+00 : f32
    %28 = vector.broadcast %cst_15 : f32 to vector<8x128xf32>
    %29 = arith.addf %28, %27 : vector<8x128xf32>
    %30 = arith.divf %28, %29 : vector<8x128xf32>
    %31 = vector.extract_strided_slice %11 {offsets = [0, 256], sizes = [8, 128], strides = [1, 1]} : vector<8x384xf32> to vector<8x128xf32>
    %32 = vector.extract_strided_slice %14 {offsets = [0, 256], sizes = [8, 128], strides = [1, 1]} : vector<8x384xf32> to vector<8x128xf32>
    %33 = arith.mulf %22, %32 : vector<8x128xf32>
    %34 = arith.addf %31, %33 : vector<8x128xf32>
    %35 = math.tanh %34 : vector<8x128xf32>
    %cst_16 = arith.constant 1.000000e+00 : f32
    %36 = vector.broadcast %cst_16 : f32 to vector<8x128xf32>
    %37 = arith.subf %36, %30 : vector<8x128xf32>
    %38 = arith.mulf %37, %35 : vector<8x128xf32>
    %39 = arith.mulf %30, %9 : vector<8x128xf32>
    %40 = arith.addf %38, %39 : vector<8x128xf32>
    %c0_i32 = arith.constant 0 : i32
    %41 = vector.broadcast %c0_i32 : i32 to vector<8x1xi32>
    %42 = arith.cmpi eq, %8, %41 : vector<8x1xi32>
    %43 = vector.shape_cast %42 : vector<8x1xi1> to vector<8x1xi1>
    %44 = vector.broadcast %43 : vector<8x1xi1> to vector<8x128xi1>
    %45 = arith.select %44, %40, %10 : vector<8x128xi1>, vector<8x128xf32>
    %46 = vector.extract_strided_slice %5 {offsets = [8, 0], sizes = [8, 384], strides = [1, 1]} : vector<64x384xf32> to vector<8x384xf32>
    %cst_17 = arith.constant dense<0.000000e+00> : vector<8x384xf32>
    %47 = tpu.matmul %40, %6, %cst_17 {dimension_numbers = #tpu.dot_dimension_numbers<[1], [0], [0], [1], [0, 0, 1, 1], [], []>} : vector<8x128xf32>, vector<128x384xf32>, vector<8x384xf32> -> vector<8x384xf32>
    %48 = vector.broadcast %7 : vector<1x384xf32> to vector<8x384xf32>
    %49 = arith.addf %47, %48 : vector<8x384xf32>
    %50 = vector.extract_strided_slice %46 {offsets = [0, 0], sizes = [8, 128], strides = [1, 1]} : vector<8x384xf32> to vector<8x128xf32>
    %51 = vector.extract_strided_slice %49 {offsets = [0, 0], sizes = [8, 128], strides = [1, 1]} : vector<8x384xf32> to vector<8x128xf32>
    %52 = arith.addf %50, %51 : vector<8x128xf32>
    %53 = arith.negf %52 : vector<8x128xf32>
    %54 = math.exp %53 : vector<8x128xf32>
    %cst_18 = arith.constant 1.000000e+00 : f32
    %55 = vector.broadcast %cst_18 : f32 to vector<8x128xf32>
    %56 = arith.addf %55, %54 : vector<8x128xf32>
    %57 = arith.divf %55, %56 : vector<8x128xf32>
    %58 = vector.extract_strided_slice %46 {offsets = [0, 128], sizes = [8, 128], strides = [1, 1]} : vector<8x384xf32> to vector<8x128xf32>
    %59 = vector.extract_strided_slice %49 {offsets = [0, 128], sizes = [8, 128], strides = [1, 1]} : vector<8x384xf32> to vector<8x128xf32>
    %60 = arith.addf %58, %59 : vector<8x128xf32>
    %61 = arith.negf %60 : vector<8x128xf32>
    %62 = math.exp %61 : vector<8x128xf32>
    %cst_19 = arith.constant 1.000000e+00 : f32
    %63 = vector.broadcast %cst_19 : f32 to vector<8x128xf32>
    %64 = arith.addf %63, %62 : vector<8x128xf32>
    %65 = arith.divf %63, %64 : vector<8x128xf32>
    %66 = vector.extract_strided_slice %46 {offsets = [0, 256], sizes = [8, 128], strides = [1, 1]} : vector<8x384xf32> to vector<8x128xf32>
    %67 = vector.extract_strided_slice %49 {offsets = [0, 256], sizes = [8, 128], strides = [1, 1]} : vector<8x384xf32> to vector<8x128xf32>
    %68 = arith.mulf %57, %67 : vector<8x128xf32>
    %69 = arith.addf %66, %68 : vector<8x128xf32>
    %70 = math.tanh %69 : vector<8x128xf32>
    %cst_20 = arith.constant 1.000000e+00 : f32
    %71 = vector.broadcast %cst_20 : f32 to vector<8x128xf32>
    %72 = arith.subf %71, %65 : vector<8x128xf32>
    %73 = arith.mulf %72, %70 : vector<8x128xf32>
    %74 = arith.mulf %65, %40 : vector<8x128xf32>
    %75 = arith.addf %73, %74 : vector<8x128xf32>
    %c1_i32 = arith.constant 1 : i32
    %76 = vector.broadcast %c1_i32 : i32 to vector<8x1xi32>
    %77 = arith.cmpi eq, %8, %76 : vector<8x1xi32>
    %78 = vector.shape_cast %77 : vector<8x1xi1> to vector<8x1xi1>
    %79 = vector.broadcast %78 : vector<8x1xi1> to vector<8x128xi1>
    %80 = arith.select %79, %75, %45 : vector<8x128xi1>, vector<8x128xf32>
    %81 = vector.extract_strided_slice %5 {offsets = [16, 0], sizes = [8, 384], strides = [1, 1]} : vector<64x384xf32> to vector<8x384xf32>
    %cst_21 = arith.constant dense<0.000000e+00> : vector<8x384xf32>
    %82 = tpu.matmul %75, %6, %cst_21 {dimension_numbers = #tpu.dot_dimension_numbers<[1], [0], [0], [1], [0, 0, 1, 1], [], []>} : vector<8x128xf32>, vector<128x384xf32>, vector<8x384xf32> -> vector<8x384xf32>
    %83 = vector.broadcast %7 : vector<1x384xf32> to vector<8x384xf32>
    %84 = arith.addf %82, %83 : vector<8x384xf32>
    %85 = vector.extract_strided_slice %81 {offsets = [0, 0], sizes = [8, 128], strides = [1, 1]} : vector<8x384xf32> to vector<8x128xf32>
    %86 = vector.extract_strided_slice %84 {offsets = [0, 0], sizes = [8, 128], strides = [1, 1]} : vector<8x384xf32> to vector<8x128xf32>
    %87 = arith.addf %85, %86 : vector<8x128xf32>
    %88 = arith.negf %87 : vector<8x128xf32>
    %89 = math.exp %88 : vector<8x128xf32>
    %cst_22 = arith.constant 1.000000e+00 : f32
    %90 = vector.broadcast %cst_22 : f32 to vector<8x128xf32>
    %91 = arith.addf %90, %89 : vector<8x128xf32>
    %92 = arith.divf %90, %91 : vector<8x128xf32>
    %93 = vector.extract_strided_slice %81 {offsets = [0, 128], sizes = [8, 128], strides = [1, 1]} : vector<8x384xf32> to vector<8x128xf32>
    %94 = vector.extract_strided_slice %84 {offsets = [0, 128], sizes = [8, 128], strides = [1, 1]} : vector<8x384xf32> to vector<8x128xf32>
    %95 = arith.addf %93, %94 : vector<8x128xf32>
    %96 = arith.negf %95 : vector<8x128xf32>
    %97 = math.exp %96 : vector<8x128xf32>
    %cst_23 = arith.constant 1.000000e+00 : f32
    %98 = vector.broadcast %cst_23 : f32 to vector<8x128xf32>
    %99 = arith.addf %98, %97 : vector<8x128xf32>
    %100 = arith.divf %98, %99 : vector<8x128xf32>
    %101 = vector.extract_strided_slice %81 {offsets = [0, 256], sizes = [8, 128], strides = [1, 1]} : vector<8x384xf32> to vector<8x128xf32>
    %102 = vector.extract_strided_slice %84 {offsets = [0, 256], sizes = [8, 128], strides = [1, 1]} : vector<8x384xf32> to vector<8x128xf32>
    %103 = arith.mulf %92, %102 : vector<8x128xf32>
    %104 = arith.addf %101, %103 : vector<8x128xf32>
    %105 = math.tanh %104 : vector<8x128xf32>
    %cst_24 = arith.constant 1.000000e+00 : f32
    %106 = vector.broadcast %cst_24 : f32 to vector<8x128xf32>
    %107 = arith.subf %106, %100 : vector<8x128xf32>
    %108 = arith.mulf %107, %105 : vector<8x128xf32>
    %109 = arith.mulf %100, %75 : vector<8x128xf32>
    %110 = arith.addf %108, %109 : vector<8x128xf32>
    %c2_i32 = arith.constant 2 : i32
    %111 = vector.broadcast %c2_i32 : i32 to vector<8x1xi32>
    %112 = arith.cmpi eq, %8, %111 : vector<8x1xi32>
    %113 = vector.shape_cast %112 : vector<8x1xi1> to vector<8x1xi1>
    %114 = vector.broadcast %113 : vector<8x1xi1> to vector<8x128xi1>
    %115 = arith.select %114, %110, %80 : vector<8x128xi1>, vector<8x128xf32>
    %116 = vector.extract_strided_slice %5 {offsets = [24, 0], sizes = [8, 384], strides = [1, 1]} : vector<64x384xf32> to vector<8x384xf32>
    %cst_25 = arith.constant dense<0.000000e+00> : vector<8x384xf32>
    %117 = tpu.matmul %110, %6, %cst_25 {dimension_numbers = #tpu.dot_dimension_numbers<[1], [0], [0], [1], [0, 0, 1, 1], [], []>} : vector<8x128xf32>, vector<128x384xf32>, vector<8x384xf32> -> vector<8x384xf32>
    %118 = vector.broadcast %7 : vector<1x384xf32> to vector<8x384xf32>
    %119 = arith.addf %117, %118 : vector<8x384xf32>
    %120 = vector.extract_strided_slice %116 {offsets = [0, 0], sizes = [8, 128], strides = [1, 1]} : vector<8x384xf32> to vector<8x128xf32>
    %121 = vector.extract_strided_slice %119 {offsets = [0, 0], sizes = [8, 128], strides = [1, 1]} : vector<8x384xf32> to vector<8x128xf32>
    %122 = arith.addf %120, %121 : vector<8x128xf32>
    %123 = arith.negf %122 : vector<8x128xf32>
    %124 = math.exp %123 : vector<8x128xf32>
    %cst_26 = arith.constant 1.000000e+00 : f32
    %125 = vector.broadcast %cst_26 : f32 to vector<8x128xf32>
    %126 = arith.addf %125, %124 : vector<8x128xf32>
    %127 = arith.divf %125, %126 : vector<8x128xf32>
    %128 = vector.extract_strided_slice %116 {offsets = [0, 128], sizes = [8, 128], strides = [1, 1]} : vector<8x384xf32> to vector<8x128xf32>
    %129 = vector.extract_strided_slice %119 {offsets = [0, 128], sizes = [8, 128], strides = [1, 1]} : vector<8x384xf32> to vector<8x128xf32>
    %130 = arith.addf %128, %129 : vector<8x128xf32>
    %131 = arith.negf %130 : vector<8x128xf32>
    %132 = math.exp %131 : vector<8x128xf32>
    %cst_27 = arith.constant 1.000000e+00 : f32
    %133 = vector.broadcast %cst_27 : f32 to vector<8x128xf32>
    %134 = arith.addf %133, %132 : vector<8x128xf32>
    %135 = arith.divf %133, %134 : vector<8x128xf32>
    %136 = vector.extract_strided_slice %116 {offsets = [0, 256], sizes = [8, 128], strides = [1, 1]} : vector<8x384xf32> to vector<8x128xf32>
    %137 = vector.extract_strided_slice %119 {offsets = [0, 256], sizes = [8, 128], strides = [1, 1]} : vector<8x384xf32> to vector<8x128xf32>
    %138 = arith.mulf %127, %137 : vector<8x128xf32>
    %139 = arith.addf %136, %138 : vector<8x128xf32>
    %140 = math.tanh %139 : vector<8x128xf32>
    %cst_28 = arith.constant 1.000000e+00 : f32
    %141 = vector.broadcast %cst_28 : f32 to vector<8x128xf32>
    %142 = arith.subf %141, %135 : vector<8x128xf32>
    %143 = arith.mulf %142, %140 : vector<8x128xf32>
    %144 = arith.mulf %135, %110 : vector<8x128xf32>
    %145 = arith.addf %143, %144 : vector<8x128xf32>
    %c3_i32 = arith.constant 3 : i32
    %146 = vector.broadcast %c3_i32 : i32 to vector<8x1xi32>
    %147 = arith.cmpi eq, %8, %146 : vector<8x1xi32>
    %148 = vector.shape_cast %147 : vector<8x1xi1> to vector<8x1xi1>
    %149 = vector.broadcast %148 : vector<8x1xi1> to vector<8x128xi1>
    %150 = arith.select %149, %145, %115 : vector<8x128xi1>, vector<8x128xf32>
    %151 = vector.extract_strided_slice %5 {offsets = [32, 0], sizes = [8, 384], strides = [1, 1]} : vector<64x384xf32> to vector<8x384xf32>
    %cst_29 = arith.constant dense<0.000000e+00> : vector<8x384xf32>
    %152 = tpu.matmul %145, %6, %cst_29 {dimension_numbers = #tpu.dot_dimension_numbers<[1], [0], [0], [1], [0, 0, 1, 1], [], []>} : vector<8x128xf32>, vector<128x384xf32>, vector<8x384xf32> -> vector<8x384xf32>
    %153 = vector.broadcast %7 : vector<1x384xf32> to vector<8x384xf32>
    %154 = arith.addf %152, %153 : vector<8x384xf32>
    %155 = vector.extract_strided_slice %151 {offsets = [0, 0], sizes = [8, 128], strides = [1, 1]} : vector<8x384xf32> to vector<8x128xf32>
    %156 = vector.extract_strided_slice %154 {offsets = [0, 0], sizes = [8, 128], strides = [1, 1]} : vector<8x384xf32> to vector<8x128xf32>
    %157 = arith.addf %155, %156 : vector<8x128xf32>
    %158 = arith.negf %157 : vector<8x128xf32>
    %159 = math.exp %158 : vector<8x128xf32>
    %cst_30 = arith.constant 1.000000e+00 : f32
    %160 = vector.broadcast %cst_30 : f32 to vector<8x128xf32>
    %161 = arith.addf %160, %159 : vector<8x128xf32>
    %162 = arith.divf %160, %161 : vector<8x128xf32>
    %163 = vector.extract_strided_slice %151 {offsets = [0, 128], sizes = [8, 128], strides = [1, 1]} : vector<8x384xf32> to vector<8x128xf32>
    %164 = vector.extract_strided_slice %154 {offsets = [0, 128], sizes = [8, 128], strides = [1, 1]} : vector<8x384xf32> to vector<8x128xf32>
    %165 = arith.addf %163, %164 : vector<8x128xf32>
    %166 = arith.negf %165 : vector<8x128xf32>
    %167 = math.exp %166 : vector<8x128xf32>
    %cst_31 = arith.constant 1.000000e+00 : f32
    %168 = vector.broadcast %cst_31 : f32 to vector<8x128xf32>
    %169 = arith.addf %168, %167 : vector<8x128xf32>
    %170 = arith.divf %168, %169 : vector<8x128xf32>
    %171 = vector.extract_strided_slice %151 {offsets = [0, 256], sizes = [8, 128], strides = [1, 1]} : vector<8x384xf32> to vector<8x128xf32>
    %172 = vector.extract_strided_slice %154 {offsets = [0, 256], sizes = [8, 128], strides = [1, 1]} : vector<8x384xf32> to vector<8x128xf32>
    %173 = arith.mulf %162, %172 : vector<8x128xf32>
    %174 = arith.addf %171, %173 : vector<8x128xf32>
    %175 = math.tanh %174 : vector<8x128xf32>
    %cst_32 = arith.constant 1.000000e+00 : f32
    %176 = vector.broadcast %cst_32 : f32 to vector<8x128xf32>
    %177 = arith.subf %176, %170 : vector<8x128xf32>
    %178 = arith.mulf %177, %175 : vector<8x128xf32>
    %179 = arith.mulf %170, %145 : vector<8x128xf32>
    %180 = arith.addf %178, %179 : vector<8x128xf32>
    %c4_i32 = arith.constant 4 : i32
    %181 = vector.broadcast %c4_i32 : i32 to vector<8x1xi32>
    %182 = arith.cmpi eq, %8, %181 : vector<8x1xi32>
    %183 = vector.shape_cast %182 : vector<8x1xi1> to vector<8x1xi1>
    %184 = vector.broadcast %183 : vector<8x1xi1> to vector<8x128xi1>
    %185 = arith.select %184, %180, %150 : vector<8x128xi1>, vector<8x128xf32>
    %186 = vector.extract_strided_slice %5 {offsets = [40, 0], sizes = [8, 384], strides = [1, 1]} : vector<64x384xf32> to vector<8x384xf32>
    %cst_33 = arith.constant dense<0.000000e+00> : vector<8x384xf32>
    %187 = tpu.matmul %180, %6, %cst_33 {dimension_numbers = #tpu.dot_dimension_numbers<[1], [0], [0], [1], [0, 0, 1, 1], [], []>} : vector<8x128xf32>, vector<128x384xf32>, vector<8x384xf32> -> vector<8x384xf32>
    %188 = vector.broadcast %7 : vector<1x384xf32> to vector<8x384xf32>
    %189 = arith.addf %187, %188 : vector<8x384xf32>
    %190 = vector.extract_strided_slice %186 {offsets = [0, 0], sizes = [8, 128], strides = [1, 1]} : vector<8x384xf32> to vector<8x128xf32>
    %191 = vector.extract_strided_slice %189 {offsets = [0, 0], sizes = [8, 128], strides = [1, 1]} : vector<8x384xf32> to vector<8x128xf32>
    %192 = arith.addf %190, %191 : vector<8x128xf32>
    %193 = arith.negf %192 : vector<8x128xf32>
    %194 = math.exp %193 : vector<8x128xf32>
    %cst_34 = arith.constant 1.000000e+00 : f32
    %195 = vector.broadcast %cst_34 : f32 to vector<8x128xf32>
    %196 = arith.addf %195, %194 : vector<8x128xf32>
    %197 = arith.divf %195, %196 : vector<8x128xf32>
    %198 = vector.extract_strided_slice %186 {offsets = [0, 128], sizes = [8, 128], strides = [1, 1]} : vector<8x384xf32> to vector<8x128xf32>
    %199 = vector.extract_strided_slice %189 {offsets = [0, 128], sizes = [8, 128], strides = [1, 1]} : vector<8x384xf32> to vector<8x128xf32>
    %200 = arith.addf %198, %199 : vector<8x128xf32>
    %201 = arith.negf %200 : vector<8x128xf32>
    %202 = math.exp %201 : vector<8x128xf32>
    %cst_35 = arith.constant 1.000000e+00 : f32
    %203 = vector.broadcast %cst_35 : f32 to vector<8x128xf32>
    %204 = arith.addf %203, %202 : vector<8x128xf32>
    %205 = arith.divf %203, %204 : vector<8x128xf32>
    %206 = vector.extract_strided_slice %186 {offsets = [0, 256], sizes = [8, 128], strides = [1, 1]} : vector<8x384xf32> to vector<8x128xf32>
    %207 = vector.extract_strided_slice %189 {offsets = [0, 256], sizes = [8, 128], strides = [1, 1]} : vector<8x384xf32> to vector<8x128xf32>
    %208 = arith.mulf %197, %207 : vector<8x128xf32>
    %209 = arith.addf %206, %208 : vector<8x128xf32>
    %210 = math.tanh %209 : vector<8x128xf32>
    %cst_36 = arith.constant 1.000000e+00 : f32
    %211 = vector.broadcast %cst_36 : f32 to vector<8x128xf32>
    %212 = arith.subf %211, %205 : vector<8x128xf32>
    %213 = arith.mulf %212, %210 : vector<8x128xf32>
    %214 = arith.mulf %205, %180 : vector<8x128xf32>
    %215 = arith.addf %213, %214 : vector<8x128xf32>
    %c5_i32 = arith.constant 5 : i32
    %216 = vector.broadcast %c5_i32 : i32 to vector<8x1xi32>
    %217 = arith.cmpi eq, %8, %216 : vector<8x1xi32>
    %218 = vector.shape_cast %217 : vector<8x1xi1> to vector<8x1xi1>
    %219 = vector.broadcast %218 : vector<8x1xi1> to vector<8x128xi1>
    %220 = arith.select %219, %215, %185 : vector<8x128xi1>, vector<8x128xf32>
    %221 = vector.extract_strided_slice %5 {offsets = [48, 0], sizes = [8, 384], strides = [1, 1]} : vector<64x384xf32> to vector<8x384xf32>
    %cst_37 = arith.constant dense<0.000000e+00> : vector<8x384xf32>
    %222 = tpu.matmul %215, %6, %cst_37 {dimension_numbers = #tpu.dot_dimension_numbers<[1], [0], [0], [1], [0, 0, 1, 1], [], []>} : vector<8x128xf32>, vector<128x384xf32>, vector<8x384xf32> -> vector<8x384xf32>
    %223 = vector.broadcast %7 : vector<1x384xf32> to vector<8x384xf32>
    %224 = arith.addf %222, %223 : vector<8x384xf32>
    %225 = vector.extract_strided_slice %221 {offsets = [0, 0], sizes = [8, 128], strides = [1, 1]} : vector<8x384xf32> to vector<8x128xf32>
    %226 = vector.extract_strided_slice %224 {offsets = [0, 0], sizes = [8, 128], strides = [1, 1]} : vector<8x384xf32> to vector<8x128xf32>
    %227 = arith.addf %225, %226 : vector<8x128xf32>
    %228 = arith.negf %227 : vector<8x128xf32>
    %229 = math.exp %228 : vector<8x128xf32>
    %cst_38 = arith.constant 1.000000e+00 : f32
    %230 = vector.broadcast %cst_38 : f32 to vector<8x128xf32>
    %231 = arith.addf %230, %229 : vector<8x128xf32>
    %232 = arith.divf %230, %231 : vector<8x128xf32>
    %233 = vector.extract_strided_slice %221 {offsets = [0, 128], sizes = [8, 128], strides = [1, 1]} : vector<8x384xf32> to vector<8x128xf32>
    %234 = vector.extract_strided_slice %224 {offsets = [0, 128], sizes = [8, 128], strides = [1, 1]} : vector<8x384xf32> to vector<8x128xf32>
    %235 = arith.addf %233, %234 : vector<8x128xf32>
    %236 = arith.negf %235 : vector<8x128xf32>
    %237 = math.exp %236 : vector<8x128xf32>
    %cst_39 = arith.constant 1.000000e+00 : f32
    %238 = vector.broadcast %cst_39 : f32 to vector<8x128xf32>
    %239 = arith.addf %238, %237 : vector<8x128xf32>
    %240 = arith.divf %238, %239 : vector<8x128xf32>
    %241 = vector.extract_strided_slice %221 {offsets = [0, 256], sizes = [8, 128], strides = [1, 1]} : vector<8x384xf32> to vector<8x128xf32>
    %242 = vector.extract_strided_slice %224 {offsets = [0, 256], sizes = [8, 128], strides = [1, 1]} : vector<8x384xf32> to vector<8x128xf32>
    %243 = arith.mulf %232, %242 : vector<8x128xf32>
    %244 = arith.addf %241, %243 : vector<8x128xf32>
    %245 = math.tanh %244 : vector<8x128xf32>
    %cst_40 = arith.constant 1.000000e+00 : f32
    %246 = vector.broadcast %cst_40 : f32 to vector<8x128xf32>
    %247 = arith.subf %246, %240 : vector<8x128xf32>
    %248 = arith.mulf %247, %245 : vector<8x128xf32>
    %249 = arith.mulf %240, %215 : vector<8x128xf32>
    %250 = arith.addf %248, %249 : vector<8x128xf32>
    %c6_i32 = arith.constant 6 : i32
    %251 = vector.broadcast %c6_i32 : i32 to vector<8x1xi32>
    %252 = arith.cmpi eq, %8, %251 : vector<8x1xi32>
    %253 = vector.shape_cast %252 : vector<8x1xi1> to vector<8x1xi1>
    %254 = vector.broadcast %253 : vector<8x1xi1> to vector<8x128xi1>
    %255 = arith.select %254, %250, %220 : vector<8x128xi1>, vector<8x128xf32>
    %256 = vector.extract_strided_slice %5 {offsets = [56, 0], sizes = [8, 384], strides = [1, 1]} : vector<64x384xf32> to vector<8x384xf32>
    %cst_41 = arith.constant dense<0.000000e+00> : vector<8x384xf32>
    %257 = tpu.matmul %250, %6, %cst_41 {dimension_numbers = #tpu.dot_dimension_numbers<[1], [0], [0], [1], [0, 0, 1, 1], [], []>} : vector<8x128xf32>, vector<128x384xf32>, vector<8x384xf32> -> vector<8x384xf32>
    %258 = vector.broadcast %7 : vector<1x384xf32> to vector<8x384xf32>
    %259 = arith.addf %257, %258 : vector<8x384xf32>
    %260 = vector.extract_strided_slice %256 {offsets = [0, 0], sizes = [8, 128], strides = [1, 1]} : vector<8x384xf32> to vector<8x128xf32>
    %261 = vector.extract_strided_slice %259 {offsets = [0, 0], sizes = [8, 128], strides = [1, 1]} : vector<8x384xf32> to vector<8x128xf32>
    %262 = arith.addf %260, %261 : vector<8x128xf32>
    %263 = arith.negf %262 : vector<8x128xf32>
    %264 = math.exp %263 : vector<8x128xf32>
    %cst_42 = arith.constant 1.000000e+00 : f32
    %265 = vector.broadcast %cst_42 : f32 to vector<8x128xf32>
    %266 = arith.addf %265, %264 : vector<8x128xf32>
    %267 = arith.divf %265, %266 : vector<8x128xf32>
    %268 = vector.extract_strided_slice %256 {offsets = [0, 128], sizes = [8, 128], strides = [1, 1]} : vector<8x384xf32> to vector<8x128xf32>
    %269 = vector.extract_strided_slice %259 {offsets = [0, 128], sizes = [8, 128], strides = [1, 1]} : vector<8x384xf32> to vector<8x128xf32>
    %270 = arith.addf %268, %269 : vector<8x128xf32>
    %271 = arith.negf %270 : vector<8x128xf32>
    %272 = math.exp %271 : vector<8x128xf32>
    %cst_43 = arith.constant 1.000000e+00 : f32
    %273 = vector.broadcast %cst_43 : f32 to vector<8x128xf32>
    %274 = arith.addf %273, %272 : vector<8x128xf32>
    %275 = arith.divf %273, %274 : vector<8x128xf32>
    %276 = vector.extract_strided_slice %256 {offsets = [0, 256], sizes = [8, 128], strides = [1, 1]} : vector<8x384xf32> to vector<8x128xf32>
    %277 = vector.extract_strided_slice %259 {offsets = [0, 256], sizes = [8, 128], strides = [1, 1]} : vector<8x384xf32> to vector<8x128xf32>
    %278 = arith.mulf %267, %277 : vector<8x128xf32>
    %279 = arith.addf %276, %278 : vector<8x128xf32>
    %280 = math.tanh %279 : vector<8x128xf32>
    %cst_44 = arith.constant 1.000000e+00 : f32
    %281 = vector.broadcast %cst_44 : f32 to vector<8x128xf32>
    %282 = arith.subf %281, %275 : vector<8x128xf32>
    %283 = arith.mulf %282, %280 : vector<8x128xf32>
    %284 = arith.mulf %275, %250 : vector<8x128xf32>
    %285 = arith.addf %283, %284 : vector<8x128xf32>
    %c7_i32 = arith.constant 7 : i32
    %286 = vector.broadcast %c7_i32 : i32 to vector<8x1xi32>
    %287 = arith.cmpi eq, %8, %286 : vector<8x1xi32>
    %288 = vector.shape_cast %287 : vector<8x1xi1> to vector<8x1xi1>
    %289 = vector.broadcast %288 : vector<8x1xi1> to vector<8x128xi1>
    %290 = arith.select %289, %285, %255 : vector<8x128xi1>, vector<8x128xf32>
    %291 = vector.extract_strided_slice %290 {offsets = [0, 0], sizes = [2, 128], strides = [1, 1]} : vector<8x128xf32> to vector<2x128xf32>
    %c0_45 = arith.constant 0 : index
    %c0_46 = arith.constant 0 : index
    %292 = vector.load %arg7[%c0_45, %c0_46] : memref<128x512xf32, #tpu.memory_space<vmem>>, vector<128x512xf32>
    %cst_47 = arith.constant dense<0.000000e+00> : vector<2x512xf32>
    %293 = tpu.matmul %291, %292, %cst_47 {dimension_numbers = #tpu.dot_dimension_numbers<[1], [0], [0], [1], [0, 0, 1, 1], [], []>} : vector<2x128xf32>, vector<128x512xf32>, vector<2x512xf32> -> vector<2x512xf32>
    %c0_48 = arith.constant 0 : index
    %c0_49 = arith.constant 0 : index
    %294 = vector.load %arg8[%c0_48, %c0_49] : memref<1x512xf32, #tpu.memory_space<vmem>>, vector<1x512xf32>
    %295 = vector.broadcast %294 : vector<1x512xf32> to vector<2x512xf32>
    %296 = arith.addf %293, %295 : vector<2x512xf32>
    %c0_50 = arith.constant 0 : index
    %c0_51 = arith.constant 0 : index
    %297 = vector.load %arg9[%c0_50, %c0_51] : memref<2x512xf32, #tpu.memory_space<vmem>>, vector<2x512xf32>
    tpu.vector_store %arg9[%c0_50, %c0_51], %296 {strides = array<i32>} : memref<2x512xf32, #tpu.memory_space<vmem>>, vector<2x512xf32>,
    return
  }
  func.func @transform_0(%arg0: i32) -> (i32, i32) {
    %c0_i32 = arith.constant 0 : i32
    %c0_i32_0 = arith.constant 0 : i32
    %c0_i32_1 = arith.constant 0 : i32
    return %c0_i32, %c0_i32_0 : i32, i32
  }
  func.func @transform_1(%arg0: i32) -> (i32, i32) {
    %c0_i32 = arith.constant 0 : i32
    %c0_i32_0 = arith.constant 0 : i32
    %c0_i32_1 = arith.constant 0 : i32
    return %c0_i32, %c0_i32_0 : i32, i32
  }
  func.func @transform_2(%arg0: i32) -> (i32, i32) {
    %c0_i32 = arith.constant 0 : i32
    %c0_i32_0 = arith.constant 0 : i32
    %c0_i32_1 = arith.constant 0 : i32
    return %c0_i32, %c0_i32_0 : i32, i32
  }
  func.func @transform_3(%arg0: i32) -> (i32, i32) {
    %c0_i32 = arith.constant 0 : i32
    %c0_i32_0 = arith.constant 0 : i32
    %c0_i32_1 = arith.constant 0 : i32
    return %c0_i32, %c0_i32_0 : i32, i32
  }
  func.func @transform_4(%arg0: i32) -> (i32, i32) {
    %c0_i32 = arith.constant 0 : i32
    %c0_i32_0 = arith.constant 0 : i32
    %c0_i32_1 = arith.constant 0 : i32
    return %c0_i32, %c0_i32_0 : i32, i32
  }
  func.func @transform_5(%arg0: i32) -> (i32, i32) {
    %c0_i32 = arith.constant 0 : i32
    %c0_i32_0 = arith.constant 0 : i32
    %c0_i32_1 = arith.constant 0 : i32
    return %c0_i32, %c0_i32_0 : i32, i32
  }
  func.func @transform_6(%arg0: i32) -> (i32, i32) {
    %c0_i32 = arith.constant 0 : i32
    %c0_i32_0 = arith.constant 0 : i32
    %c0_i32_1 = arith.constant 0 : i32
    return %c0_i32, %c0_i32_0 : i32, i32
  }
  func.func @transform_7(%arg0: i32) -> (i32, i32) {
    %c0_i32 = arith.constant 0 : i32
    %c0_i32_0 = arith.constant 0 : i32
    %c0_i32_1 = arith.constant 0 : i32
    return %c0_i32, %c0_i32_0 : i32, i32
  }
  func.func @transform_8(%arg0: i32) -> (i32, i32) {
    %c0_i32 = arith.constant 0 : i32
    %c0_i32_0 = arith.constant 0 : i32
    %c0_i32_1 = arith.constant 0 : i32
    return %c0_i32, %c0_i32_0 : i32, i32
  }
}

</mosaic_0001>

<bundles_post_ra>
// kernel: ac_model_forward.2
= control target key start
LH: loop header
LB: loop body
LE: loop exit
PB: predicated region body
PF: predicated region fallthrough
CT: control target
= control target key end

     0   :  { %13 = vsyncpa [#allocation3], 0  ;;  %s3862_s0 = inlined_call_operand.vmem [shape: s32[8,1], index: 0, kind: input, shape index: {}]   ;;  %s3863_s1 = inlined_call_operand.vmem [shape: f32[64,128], index: 1, kind: input, shape index: {}]   ;;  %s3864_s2 = inlined_call_operand.hbm [shape: f32[128,384], index: 2, kind: input, shape index: {}]   ;;  %s3865_s3 = inlined_call_operand.hbm [shape: f32[128,384], index: 3, kind: input, shape index: {}]   ;;  %s3866_s4 = inlined_call_operand.vmem [shape: f32[1,384], index: 4, kind: input, shape index: {}]   ;;  %s3867_s5 = inlined_call_operand.hbm [shape: f32[1,384], index: 5, kind: input, shape index: {}]   ;;  %s3868_s6 = inlined_call_operand.hbm [shape: f32[128,512], index: 6, kind: input, shape index: {}]   ;;  %s3869_s7 = inlined_call_operand.hbm [shape: f32[1,512], index: 7, kind: input, shape index: {}]   ;;  %s3870_s8 = inlined_call_operand.vmem [shape: f32[2,512], index: 8, kind: output, shape index: {}]  }
   0x1   :  { %14 = vsyncpa [#allocation5], 0 }
   0x2   :  { %15 = vsyncpa [#allocation8], 0  ;;  %s2810_s27 = smov [#allocation4]   ;;  %s2811_s29 = smov [#allocation7]  }
   0x3   :  { %s37_s28 = sshll.u32 %s2810_s27, 4  ;;  %s61_s30 = sshll.u32 %s2811_s29, 4  ;;  %s38_s28 = int_to_ptr.vmem [resolvable:$true] %s37_s28  ;;  %s62_s30 = int_to_ptr.vmem [resolvable:$true] %s61_s30 }
   0x4   :  { %s2712_s9 = scalar_lea.vmem %s38_s28, 6144  ;;  %p2717_p1 = scmp.lt.s32.totalorder %s38_s28, %s38_s28 }
   0x5   :  { %p2713_p0 = scmp.ne.s32.totalorder %s38_s28, %s2712_s9  ;;  %p2718_p2 = scmp.lt.s32.totalorder %s2712_s9, %s2712_s9 }
   0x7   :  { %p2719_p3 = por %p2718_p2, %p2717_p1 }
   0x9   :  { %p2720_p4 = pnand %p2719_p3, %p2713_p0 }
   0xb   :  { %2723 = shalt.err (!%p2720_p4)
}
   0xc   :  { %s2812_s10 = smov 384   ;;  %s2813_s11 = smov 24  }
   0xd   :  { %43 = dma.hbm_to_vmem [thread:$0]  %s3865_s3, 6144, %s38_s28, [#allocation5], %s2812_s10, %s2812_s10, %s2813_s11  }
   0xe   :  { %s2732_s14 = scalar_lea.vmem %s62_s30, 8192  ;;  %p2737_p6 = scmp.lt.s32.totalorder %s62_s30, %s62_s30 }
   0xf   :  { %p2733_p5 = scmp.ne.s32.totalorder %s62_s30, %s2732_s14  ;;  %p2738_p7 = scmp.lt.s32.totalorder %s2732_s14, %s2732_s14 }
  0x11   :  { %p2739_p8 = por %p2738_p7, %p2737_p6 }
  0x13   :  { %p2740_p9 = pnand %p2739_p8, %p2733_p5 }
  0x15   :  { %2743 = shalt.err (!%p2740_p9)
}
  0x16   :  { %s2814_s15 = smov 512   ;;  %s2815_s16 = smov 32  }
  0x17   :  { %67 = dma.hbm_to_vmem [thread:$0]  %s3868_s6, 8192, %s62_s30, [#allocation8], %s2814_s15, %s2814_s15, %s2815_s16  }
  0x18   :  { %s2816_s19 = smov [#allocation2]   ;;  %s2817_s21 = smov [#allocation6]  }
  0x19   :  { %s25_s20 = sshll.u32 %s2816_s19, 4  ;;  %s52_s22 = sshll.u32 %s2817_s21, 4  ;;  %s26_s20 = int_to_ptr.vmem [resolvable:$true] %s25_s20  ;;  %s53_s22 = int_to_ptr.vmem [resolvable:$true] %s52_s22 }
  0x1a   :  { %s2752_s3 = scalar_lea.vmem %s26_s20, 6144  ;;  %p2757_p11 = scmp.lt.s32.totalorder %s26_s20, %s26_s20 }
  0x1b   :  { %p2753_p10 = scmp.ne.s32.totalorder %s26_s20, %s2752_s3  ;;  %p2758_p12 = scmp.lt.s32.totalorder %s2752_s3, %s2752_s3 }
  0x1d   :  { %p2759_p13 = por %p2758_p12, %p2757_p11 }
  0x1f   :  { %p2760_p0 = pnand %p2759_p13, %p2753_p10 }
  0x21   :  { %2763 = shalt.err (!%p2760_p0)
}
  0x22   :  { %31 = dma.hbm_to_vmem [thread:$0]  %s3864_s2, 6144, %s26_s20, [#allocation3], %s2812_s10, %s2812_s10, %s2813_s11  }
  0x23   :  { %s2772_s25 = scalar_lea.vmem %s53_s22, 48  ;;  %s2776_s6 = scalar_lea.vmem %s53_s22, 64 }
  0x24   :  { %p2773_p1 = scmp.ne.s32.totalorder %s53_s22, %s2772_s25  ;;  %p2777_p2 = scmp.lt.s32.totalorder %s53_s22, %s53_s22 }
  0x25   :  { %p2778_p3 = scmp.lt.s32.totalorder %s2776_s6, %s2772_s25 }
  0x27   :  { %p2779_p4 = por %p2778_p3, %p2777_p2 }
  0x29   :  { %p2780_p5 = pnand %p2779_p4, %p2773_p1 }
  0x2b   :  { %2783 = shalt.err (!%p2780_p5)
}
  0x2c   :  { %55 = dma.hbm_to_vmem [thread:$0]  %s3867_s5, 48, %s53_s22, [#allocation5]  }
  0x2d   :  { %s2818_s28 = smov [#allocation9]  }
  0x2e   :  { %s74_s29 = sshll.u32 %s2818_s28, 4  ;;  %s75_s29 = int_to_ptr.vmem [resolvable:$true] %s74_s29 }
  0x2f   :  { %s2792_s30 = scalar_lea.vmem %s75_s29, 64  ;;  %p2797_p7 = scmp.lt.s32.totalorder %s75_s29, %s75_s29 }
  0x30   :  { %p2793_p6 = scmp.ne.s32.totalorder %s75_s29, %s2792_s30  ;;  %p2798_p8 = scmp.lt.s32.totalorder %s2792_s30, %s2792_s30 }
  0x32   :  { %p2799_p9 = por %p2798_p8, %p2797_p7 }
  0x34   :  { %p2800_p10 = pnand %p2799_p9, %p2793_p6 }
  0x36   :  { %2803 = shalt.err (!%p2800_p10)
}
  0x37   :  { %77 = dma.hbm_to_vmem [thread:$0]  %s3869_s7, 64, %s75_s29, [#allocation8]  }
  0x38   :  { %2804 = dma.done.wait [#allocation3], 6144  }
  0x39   :  { %2805 = vsyncadd [#allocation3], 4294961152 }
  0x3a   :  { %2806 = dma.done.wait [#allocation5], 6192  }
  0x3b   :  { %2807 = vsyncadd [#allocation5], 4294961104 }
  0x3c   :  { %2808 = dma.done.wait [#allocation8], 8256  }
  0x3d   :  { %2809 = vsyncadd [#allocation8], 4294959040  ;;  %v3873_v0 = vmov 0.0   ;;  %v3871_v1 = vmov 0   ;;  %v147_v2 = vld [vmem:[#allocation2 + $0x170] sm:$0xff]  ;;  %v146_v3 = vld [vmem:[#allocation2 + $0x168] sm:$0xff] }
  0x3e   :  { %230 = vmatprep.mubr.f32.mxu0 %v3873_v0  ;;  %2573 = vset.pattern.permute.xlu0 %v3871_v1  ;;  %v144_v4 = vld [vmem:[#allocation2 + $0x158] sm:$0xff]  ;;  %v143_v5 = vld [vmem:[#allocation2 + $0x150] sm:$0xff]  ;;  %v141_v6 = vld [vmem:[#allocation2 + $0x140] sm:$0xff]  ;;  %vm2821_vm1 = vmmov 0  }
  0x3f   :  { %2574 = vset.pattern.permute.xlu1 %v3871_v1  ;;  %166 = vmatprep.subr.mxu0 %v147_v2  ;;  %v140_v7 = vld [vmem:[#allocation2 + $0x138] sm:$0xff]  ;;  %v138_v8 = vld [vmem:[#allocation2 + $0x128] sm:$0xff]  ;;  %v137_v9 = vld [vmem:[#allocation2 + $0x120] sm:$0xff] }
  0x40   :  { %167 = vmatpush1.msra.mxu0 %v146_v3  ;;  %v135_v10 = vld [vmem:[#allocation2 + $0x110] sm:$0xff]  ;;  %v134_v11 = vld [vmem:[#allocation2 + $0x108] sm:$0xff]  ;;  %v132_v12 = vld [vmem:[#allocation2 + $0xf8] sm:$0xff] }
  0x41   :  { %168 = vmatprep.subr.mxu0 %v144_v4  ;;  %v131_v13 = vld [vmem:[#allocation2 + $0xf0] sm:$0xff]  ;;  %v129_v14 = vld [vmem:[#allocation2 + $0xe0] sm:$0xff]  ;;  %v128_v16 = vld [vmem:[#allocation2 + $0xd8] sm:$0xff] }
  0x42   :  { %169 = vmatpush1.msra.mxu0 %v143_v5  ;;  %v2889_v15 = vld [vmem:[%s3863_s1] sm:$0xff]  ;;  %v148_v17 = vld [vmem:[#allocation2 + $0x178] sm:$0xff]  ;;  %v126_v18 = vld [vmem:[#allocation2 + $0xc8] sm:$0xff] }
  0x43   :  { %170 = vmatprep.subr.mxu0 %v141_v6  ;;  %2268 = vmatprep.mubr.f32.mxu1 %v2889_v15  ;;  %v145_v19 = vld [vmem:[#allocation2 + $0x160] sm:$0xff]  ;;  %v142_v21 = vld [vmem:[#allocation2 + $0x148] sm:$0xff]  ;;  %v123_v22 = vld [vmem:[#allocation2 + $0xb0] sm:$0xff] }
  0x44   :  { %171 = vmatpush1.msra.mxu0 %v140_v7  ;;  %2236 = vmatprep.subr.mxu1 %v148_v17  ;;  %v125_v20 = vld [vmem:[#allocation2 + $0xc0] sm:$0xff]  ;;  %v122_v23 = vld [vmem:[#allocation2 + $0xa8] sm:$0xff]  ;;  %v139_v24 = vld [vmem:[#allocation2 + $0x130] sm:$0xff] }
  0x45   :  { %172 = vmatprep.subr.mxu0 %v138_v8  ;;  %2237 = vmatpush3.msra.mxu1 %v148_v17  ;;  %v120_v25 = vld [vmem:[#allocation2 + $0x98] sm:$0xff]  ;;  %v119_v26 = vld [vmem:[#allocation2 + $0x90] sm:$0xff]  ;;  %v117_v28 = vld [vmem:[#allocation2 + $0x80] sm:$0xff] }
  0x46   :  { %173 = vmatpush1.msra.mxu0 %v137_v9  ;;  %2238 = vmatprep.subr.mxu1 %v145_v19  ;;  %v136_v27 = vld [vmem:[#allocation2 + $0x118] sm:$0xff]  ;;  %v133_v30 = vld [vmem:[#allocation2 + $0x100] sm:$0xff]  ;;  %v114_v31 = vld [vmem:[#allocation2 + $0x68] sm:$0xff] }
  0x47   :  { %174 = vmatprep.subr.mxu0 %v135_v10  ;;  %2239 = vmatpush3.msra.mxu1 %v145_v19  ;;  %v116_v29 = vld [vmem:[#allocation2 + $0x78] sm:$0xff]  ;;  %v113_v32 = vld [vmem:[#allocation2 + $0x60] sm:$0xff]  ;;  %v130_v33 = vld [vmem:[#allocation2 + $0xe8] sm:$0xff] }
  0x48   :  { %175 = vmatpush1.msra.mxu0 %v134_v11  ;;  %2240 = vmatprep.subr.mxu1 %v142_v21  ;;  %v111_v34 = vld [vmem:[#allocation2 + $0x50] sm:$0xff]  ;;  %v110_v35 = vld [vmem:[#allocation2 + $0x48] sm:$0xff]  ;;  %v108_v37 = vld [vmem:[#allocation2 + $0x38] sm:$0xff] }
  0x49   :  { %176 = vmatprep.subr.mxu0 %v132_v12  ;;  %2241 = vmatpush3.msra.mxu1 %v142_v21  ;;  %v127_v36 = vld [vmem:[#allocation2 + $0xd0] sm:$0xff]  ;;  %v124_v39 = vld [vmem:[#allocation2 + $0xb8] sm:$0xff]  ;;  %v105_v40 = vld [vmem:[#allocation2 + $0x20] sm:$0xff] }
  0x4a   :  { %177 = vmatpush1.msra.mxu0 %v131_v13  ;;  %2242 = vmatprep.subr.mxu1 %v139_v24  ;;  %v107_v38 = vld [vmem:[#allocation2 + $0x30] sm:$0xff]  ;;  %v104_v41 = vld [vmem:[#allocation2 + $0x18] sm:$0xff]  ;;  %v121_v42 = vld [vmem:[#allocation2 + $0xa0] sm:$0xff] }
  0x4b   :  { %178 = vmatprep.subr.mxu0 %v129_v14  ;;  %2243 = vmatpush3.msra.mxu1 %v139_v24  ;;  %v102_v43 = vld [vmem:[#allocation2 + $0x8] sm:$0xff]  ;;  %v101_v44 = vld [vmem:[#allocation2] sm:$0xff]  ;;  %v2892_v46 = vld [vmem:[#allocation4 + $0x170] sm:$0xff] }
  0x4c   :  { %179 = vmatpush1.msra.mxu0 %v128_v16  ;;  %2244 = vmatprep.subr.mxu1 %v136_v27  ;;  %v118_v45 = vld [vmem:[#allocation2 + $0x88] sm:$0xff]  ;;  %3921 = vst [vmem:[#allocation13_spill] sm:$0xff] %v2892_v46  ;;  %v2896_v48 = vld [vmem:[#allocation4 + $0x158] sm:$0xff]  ;;  %v2900_v49 = vld [vmem:[#allocation4 + $0x150] sm:$0xff] }
  0x4d   :  { %180 = vmatprep.subr.mxu0 %v126_v18  ;;  %2245 = vmatpush3.msra.mxu1 %v136_v27  ;;  %v2894_v47 = vld [vmem:[#allocation4 + $0x168] sm:$0xff]  ;;  %v115_v50 = vld [vmem:[#allocation2 + $0x70] sm:$0xff]  ;;  %v2909_v52 = vld [vmem:[#allocation4 + $0x140] sm:$0xff] }
  0x4e   :  { %181 = vmatpush1.msra.mxu0 %v125_v20  ;;  %2246 = vmatprep.subr.mxu1 %v133_v30  ;;  %v2907_v51 = vld [vmem:[%s3863_s1 + $0x8] sm:$0xff]  ;;  %v2912_v53 = vld [vmem:[#allocation4 + $0x138] sm:$0xff]  ;;  %v2919_v55 = vld [vmem:[#allocation4 + $0x120] sm:$0xff] }
  0x4f   :  { %182 = vmatprep.subr.mxu0 %v123_v22  ;;  %2247 = vmatpush3.msra.mxu1 %v133_v30  ;;  %v2915_v54 = vld [vmem:[#allocation4 + $0x128] sm:$0xff]  ;;  %v112_v56 = vld [vmem:[#allocation2 + $0x58] sm:$0xff]  ;;  %v2926_v57 = vld [vmem:[%s3863_s1 + $0x10] sm:$0xff] }
  0x50   :  { %183 = vmatpush1.msra.mxu0 %v122_v23  ;;  %2248 = vmatprep.subr.mxu1 %v130_v33  ;;  %v2928_v58 = vld [vmem:[#allocation4 + $0x110] sm:$0xff]  ;;  %v2931_v59 = vld [vmem:[#allocation4 + $0x108] sm:$0xff]  ;;  %v2934_v60 = vld [vmem:[#allocation4 + $0xf8] sm:$0xff] }
  0x51   :  { %184 = vmatprep.subr.mxu0 %v120_v25  ;;  %2249 = vmatpush3.msra.mxu1 %v130_v33  ;;  %v2938_v61 = vld [vmem:[#allocation4 + $0xf0] sm:$0xff]  ;;  %v109_v62 = vld [vmem:[#allocation2 + $0x40] sm:$0xff]  ;;  %v2945_v63 = vld [vmem:[%s3863_s1 + $0x18] sm:$0xff] }
  0x52   :  { %185 = vmatpush1.msra.mxu0 %v119_v26  ;;  %2250 = vmatprep.subr.mxu1 %v127_v36  ;;  %v2947_v2 = vld [vmem:[#allocation4 + $0xe0] sm:$0xff]  ;;  %v2950_v3 = vld [vmem:[#allocation4 + $0xd8] sm:$0xff]  ;;  %v2953_v4 = vld [vmem:[#allocation4 + $0xc8] sm:$0xff] }
  0x53   :  { %186 = vmatprep.subr.mxu0 %v117_v28  ;;  %2251 = vmatpush3.msra.mxu1 %v127_v36  ;;  %v2957_v5 = vld [vmem:[#allocation4 + $0xc0] sm:$0xff]  ;;  %v106_v6 = vld [vmem:[#allocation2 + $0x28] sm:$0xff]  ;;  %v2966_v8 = vld [vmem:[#allocation4 + $0xb0] sm:$0xff] }
  0x54   :  { %187 = vmatpush1.msra.mxu0 %v116_v29  ;;  %2252 = vmatprep.subr.mxu1 %v124_v39  ;;  %v2964_v7 = vld [vmem:[%s3863_s1 + $0x20] sm:$0xff]  ;;  %v2969_v9 = vld [vmem:[#allocation4 + $0xa8] sm:$0xff]  ;;  %v2972_v10 = vld [vmem:[#allocation4 + $0x98] sm:$0xff] }
  0x55   :  { %188 = vmatprep.subr.mxu0 %v114_v31  ;;  %2253 = vmatpush3.msra.mxu1 %v124_v39  ;;  %v2976_v11 = vld [vmem:[#allocation4 + $0x90] sm:$0xff]  ;;  %v2983_v13 = vld [vmem:[%s3863_s1 + $0x28] sm:$0xff]  ;;  %v2985_v14 = vld [vmem:[#allocation4 + $0x80] sm:$0xff] }
  0x56   :  { %189 = vmatpush1.msra.mxu0 %v113_v32  ;;  %2254 = vmatprep.subr.mxu1 %v121_v42  ;;  %v103_v12 = vld [vmem:[#allocation2 + $0x10] sm:$0xff]  ;;  %v2991_v16 = vld [vmem:[#allocation4 + $0x68] sm:$0xff]  ;;  %v2995_v17 = vld [vmem:[#allocation4 + $0x60] sm:$0xff] }
  0x57   :  { %190 = vmatprep.subr.mxu0 %v111_v34  ;;  %2255 = vmatpush3.msra.mxu1 %v121_v42  ;;  %v99_v18 = vld [vmem:[%s3863_s1 + $0x30] sm:$0xff]  ;;  %v3005_v20 = vld [vmem:[#allocation4 + $0x48] sm:$0xff]  ;;  %v3008_v21 = vld [vmem:[#allocation4 + $0x38] sm:$0xff] }
  0x58   :  { %191 = vmatpush1.msra.mxu0 %v110_v35  ;;  %2256 = vmatprep.subr.mxu1 %v118_v45  ;;  %v3002_v19 = vld [vmem:[#allocation4 + $0x50] sm:$0xff]  ;;  %v3014_v23 = vld [vmem:[#allocation4 + $0x178] sm:$0xff]  ;;  %v3021_v25 = vld [vmem:[#allocation4 + $0x20] sm:$0xff] }
  0x59   :  { %192 = vmatprep.subr.mxu0 %v108_v37  ;;  %2257 = vmatpush3.msra.mxu1 %v118_v45  ;;  %v3012_v22 = vld [vmem:[#allocation4 + $0x30] sm:$0xff]  ;;  %v100_v24 = vld [vmem:[%s3863_s1 + $0x38] sm:$0xff]  ;;  %3923 = vst [vmem:[#allocation15_spill] sm:$0xff] %v3021_v25  ;;  %v3028_v27 = vld [vmem:[#allocation4 + $0x8] sm:$0xff] }
  0x5a   :  { %193 = vmatpush1.msra.mxu0 %v107_v38  ;;  %2258 = vmatprep.subr.mxu1 %v115_v50  ;;  %3922 = vst [vmem:[#allocation14_spill] sm:$0xff] %v3012_v22  ;;  %v3024_v26 = vld [vmem:[#allocation4 + $0x18] sm:$0xff]  ;;  %3925 = vst [vmem:[#allocation17_spill] sm:$0xff] %v3028_v27  ;;  %v3034_v28 = vld [vmem:[%s3862_s0] sm:$0xff] }
  0x5b   :  { %194 = vmatprep.subr.mxu0 %v105_v40  ;;  %2259 = vmatpush3.msra.mxu1 %v115_v50  ;;  %3924 = vst [vmem:[#allocation16_spill] sm:$0xff] %v3024_v26  ;;  %3926 = vst [vmem:[#allocation18_spill] sm:$0xff] %v3034_v28  ;;  %v3037_v29 = vld [vmem:[#allocation4] sm:$0xff]  ;;  %v3045_v31 = vld [vmem:[#allocation4 + $0x148] sm:$0xff]  ;;  %vm612_vm0 = vcmp.eq.s32.totalorder %v3034_v28, 0  ;;  %vm781_vm2 = vcmp.eq.s32.totalorder %v3034_v28, 1 }
  0x5c   :  { %195 = vmatpush1.msra.mxu0 %v104_v41  ;;  %2260 = vmatprep.subr.mxu1 %v112_v56  ;;  %3927 = vst [vmem:[#allocation19_spill] sm:$0xff] %v3037_v29  ;;  %v3039_v30 = vld [vmem:[#allocation4 + $0x160] sm:$0xff]  ;;  %v3052_v32 = vld [vmem:[#allocation4 + $0x130] sm:$0xff]  ;;  %v613_v33 = vsel %vm612_vm0, 1, %v3871_v1  ;;  %v3058_v34 = vld [vmem:[#allocation4 + $0x118] sm:$0xff]  ;;  %v782_v50 = vsel %vm781_vm2, 1, %v3871_v1 }
  0x5d   :  { %196 = vmatprep.subr.mxu0 %v102_v43  ;;  %2261 = vmatpush3.msra.mxu1 %v112_v56  ;;  %v3064_v35 = vld [vmem:[#allocation4 + $0x100] sm:$0xff]  ;;  %v3069_v36 = vld [vmem:[#allocation4 + $0xe8] sm:$0xff]  ;;  %v3074_v37 = vld [vmem:[#allocation4 + $0xd0] sm:$0xff] }
  0x5e   :  { %197 = vmatpush1.msra.mxu0 %v101_v44  ;;  %2262 = vmatprep.subr.mxu1 %v109_v62  ;;  %v3080_v38 = vld [vmem:[#allocation4 + $0xb8] sm:$0xff]  ;;  %v3086_v39 = vld [vmem:[#allocation4 + $0xa0] sm:$0xff]  ;;  %v3092_v40 = vld [vmem:[#allocation4 + $0x88] sm:$0xff] }
  0x5f   :  { %231 = vmatmul.mubr.f32.vlgmr.msra.gmra.mxu0 %v2889_v15  ;;  %450 = vmatprep.subr.mxu0 %v2892_v46  ;;  %v2988_v15 = vld [vmem:[#allocation4 + $0x78] sm:$0xff]  ;;  %v3098_v41 = vld [vmem:[#allocation4 + $0x70] sm:$0xff]  ;;  %v3110_v43 = vld [vmem:[#allocation4 + $0x40] sm:$0xff] }
  0x60   :  { %451 = vmatpush1.msra.mxu0 %v2894_v47  ;;  %236 = vmatprep.mubr.f32.mxu0 %v3873_v0  ;;  %v3104_v42 = vld [vmem:[#allocation4 + $0x58] sm:$0xff]  ;;  %3928 = vst [vmem:[#allocation20_spill] sm:$0xff] %v3110_v43  ;;  %v3116_v44 = vld [vmem:[#allocation4 + $0x28] sm:$0xff]  ;;  %v3122_v45 = vld [vmem:[#allocation4 + $0x10] sm:$0xff] }
  0x61   :  { %452 = vmatprep.subr.mxu0 %v2896_v48  ;;  %2263 = vmatpush3.msra.mxu1 %v109_v62  ;;  %3929 = vst [vmem:[#allocation21_spill] sm:$0xff] %v3116_v44  ;;  %3930 = vst [vmem:[#allocation22_spill] sm:$0xff] %v3122_v45  ;;  %v149_v62 = vld [vmem:[%s3866_s4] sm:$0x7] }
  0x62   :  { %453 = vmatpush1.msra.mxu0 %v2900_v49  ;;  %2264 = vmatprep.subr.mxu1 %v106_v6 }
  0x63   :  { %237 = vmatmul.mubr.f32.gmra.mxu0 %v2907_v51  ;;  %454 = vmatprep.subr.mxu0 %v2909_v52 }
  0x64   :  { %455 = vmatpush1.msra.mxu0 %v2912_v53  ;;  %242 = vmatprep.mubr.f32.mxu0 %v3873_v0 }
  0x65   :  { %456 = vmatprep.subr.mxu0 %v2915_v54  ;;  %2265 = vmatpush3.msra.mxu1 %v106_v6 }
  0x66   :  { %457 = vmatpush1.msra.mxu0 %v2919_v55  ;;  %2266 = vmatprep.subr.mxu1 %v103_v12 }
  0x67   :  { %243 = vmatmul.mubr.f32.gmra.mxu0 %v2926_v57  ;;  %458 = vmatprep.subr.mxu0 %v2928_v58 }
  0x68   :  { %459 = vmatpush1.msra.mxu0 %v2931_v59  ;;  %248 = vmatprep.mubr.f32.mxu0 %v3873_v0 }
  0x69   :  { %460 = vmatprep.subr.mxu0 %v2934_v60  ;;  %2267 = vmatpush3.msra.mxu1 %v103_v12 }
  0x6a   :  { %461 = vmatpush1.msra.mxu0 %v2938_v61  ;;  %2280 = vmatprep.subr.mxu1 %v3873_v0 }
  0x6b   :  { %249 = vmatmul.mubr.f32.gmra.mxu0 %v2945_v63  ;;  %462 = vmatprep.subr.mxu0 %v2947_v2 }
  0x6c   :  { %463 = vmatpush1.msra.mxu0 %v2950_v3  ;;  %254 = vmatprep.mubr.f32.mxu0 %v3873_v0 }
  0x6d   :  { %464 = vmatprep.subr.mxu0 %v2953_v4  ;;  %2269 = vmatmul.mubr.f32.vlgmr.msra.gmra.mxu1 %v2907_v51  ;;  %v151_v51 = vlaneseq }
  0x6e   :  { %465 = vmatpush1.msra.mxu0 %v2957_v5  ;;  %2281 = vmatpush3.msra.mxu1 %v3014_v23 }
  0x6f   :  { %255 = vmatmul.mubr.f32.gmra.mxu0 %v2964_v7  ;;  %466 = vmatprep.subr.mxu0 %v2966_v8  ;;  %v3184_v56 = vshrl.u32 %v151_v51, 7 }
  0x70   :  { %467 = vmatpush1.msra.mxu0 %v2969_v9  ;;  %260 = vmatprep.mubr.f32.mxu0 %v3873_v0 }
  0x71   :  { %468 = vmatprep.subr.mxu0 %v2972_v10  ;;  %2282 = vmatprep.subr.mxu1 %v3873_v0  ;;  %3931 = vst [vmem:[#allocation23_spill] sm:$0xff] %v3184_v56  ;;  %v3193_v6 = vsub.s32 1, %v3184_v56 }
  0x72   :  { %469 = vmatpush1.msra.mxu0 %v2976_v11  ;;  %2283 = vmatpush3.msra.mxu1 %v3039_v30 }
  0x73   :  { %261 = vmatmul.mubr.f32.gmra.mxu0 %v2983_v13  ;;  %470 = vmatprep.subr.mxu0 %v2985_v14  ;;  %3933 = vst [vmem:[#allocation25_spill] sm:$0xff] %v3193_v6 }
  0x74   :  { %471 = vmatpush1.msra.mxu0 %v2988_v15  ;;  %266 = vmatprep.mubr.f32.mxu0 %v3873_v0 }
  0x75   :  { %472 = vmatprep.subr.mxu0 %v2991_v16  ;;  %2284 = vmatprep.subr.mxu1 %v3873_v0 }
  0x76   :  { %473 = vmatpush1.msra.mxu0 %v2995_v17  ;;  %2285 = vmatpush3.msra.mxu1 %v3045_v31 }
  0x77   :  { %267 = vmatmul.mubr.f32.gmra.mxu0 %v99_v18  ;;  %474 = vmatprep.subr.mxu0 %v3002_v19 }
  0x78   :  { %475 = vmatpush1.msra.mxu0 %v3005_v20  ;;  %272 = vmatprep.mubr.f32.mxu0 %v3873_v0 }
  0x79   :  { %476 = vmatprep.subr.mxu0 %v3008_v21  ;;  %2271 = vmatprep.mubr.f32.mxu1 %v2926_v57  ;;  %v3187_v57 = vsub.s32 0, %v3184_v56 }
  0x7a   :  { %477 = vmatpush1.msra.mxu0 %v3012_v22  ;;  %2286 = vmatprep.subr.mxu1 %v3873_v0 }
  0x7b   :  { %273 = vmatmul.mubr.f32.gmra.mxu0 %v100_v24  ;;  %478 = vmatprep.subr.mxu0 %v3021_v25  ;;  %3932 = vst [vmem:[#allocation24_spill] sm:$0xff] %v3187_v57  ;;  %v154_v12 = vrot.slane %v149_v62, %v3187_v57 }
  0x7c   :  { %479 = vmatpush1.msra.mxu0 %v3024_v26  ;;  %514 = vmatprep.mubr.f32.mxu0 %v3873_v0 }
  0x7d   :  { %480 = vmatprep.subr.mxu0 %v3028_v27  ;;  %2272 = vmatmul.mubr.f32.gmra.mxu1 %v2945_v63 }
  0x7e   :  { %481 = vmatpush1.msra.mxu0 %v3037_v29  ;;  %2287 = vmatpush3.msra.mxu1 %v3052_v32 }
  0x7f   :  { %515 = vmatmul.mubr.f32.vlgmr.msra.gmra.mxu0 %v3873_v0  ;;  %2274 = vmatprep.mubr.f32.mxu1 %v2964_v7 }
  0x80   :  { %2288 = vmatprep.subr.mxu1 %v3873_v0  ;;  %615 = vperm.xlu0 %2573, %v613_v33  }
  0x81   :  { %2289 = vmatpush3.msra.mxu1 %v3058_v34  ;;  %619 = vmatprep.subr.mxu0 %v2892_v46 }
  0x82   :  { %2290 = vmatprep.subr.mxu1 %v3873_v0  ;;  %2275 = vmatmul.mubr.f32.gmra.mxu1 %v2983_v13 }
  0x83   :  { %2291 = vmatpush3.msra.mxu1 %v3064_v35  ;;  %2277 = vmatprep.mubr.f32.mxu1 %v99_v18  ;;  %v158_v18 = vrot.slane %v149_v62, %v3193_v6 }
  0x84   :  { %2292 = vmatprep.subr.mxu1 %v3873_v0  ;;  %620 = vmatpush1.msra.mxu0 %v2894_v47 }
  0x85   :  { %2293 = vmatpush3.msra.mxu1 %v3069_v36  ;;  %621 = vmatprep.subr.mxu0 %v2896_v48 }
  0x86   :  { %2294 = vmatprep.subr.mxu1 %v3873_v0  ;;  %2278 = vmatmul.mubr.f32.gmra.mxu1 %v100_v24 }
  0x87   :  { %2295 = vmatpush3.msra.mxu1 %v3074_v37  ;;  %2312 = vmatprep.mubr.msk.f32.mxu1 %vm2821_vm1, %v3873_v0 }
  0x88   :  { %2296 = vmatprep.subr.mxu1 %v3873_v0  ;;  %622 = vmatpush1.msra.mxu0 %v2900_v49 }
  0x89   :  { %2297 = vmatpush3.msra.mxu1 %v3080_v38  ;;  %623 = vmatprep.subr.mxu0 %v2909_v52 }
  0x8a   :  { %2298 = vmatprep.subr.mxu1 %v3873_v0  ;;  %624 = vmatpush1.msra.mxu0 %v2912_v53 }
  0x8b   :  { %2299 = vmatpush3.msra.mxu1 %v3086_v39  ;;  %625 = vmatprep.subr.mxu0 %v2915_v54 }
  0x8c   :  { %2300 = vmatprep.subr.mxu1 %v3873_v0  ;;  %626 = vmatpush1.msra.mxu0 %v2919_v55 }
  0x8d   :  { %2301 = vmatpush3.msra.mxu1 %v3092_v40  ;;  %627 = vmatprep.subr.mxu0 %v2928_v58 }
  0x8e   :  { %2302 = vmatprep.subr.mxu1 %v3873_v0  ;;  %628 = vmatpush1.msra.mxu0 %v2931_v59 }
  0x8f   :  { %2303 = vmatpush3.msra.mxu1 %v3098_v41  ;;  %629 = vmatprep.subr.mxu0 %v2934_v60 }
  0x90   :  { %2304 = vmatprep.subr.mxu1 %v3873_v0  ;;  %630 = vmatpush1.msra.mxu0 %v2938_v61 }
  0x91   :  { %2305 = vmatpush3.msra.mxu1 %v3104_v42  ;;  %631 = vmatprep.subr.mxu0 %v2947_v2 }
  0x92   :  { %2306 = vmatprep.subr.mxu1 %v3873_v0  ;;  %632 = vmatpush1.msra.mxu0 %v2950_v3 }
  0x93   :  { %2307 = vmatpush3.msra.mxu1 %v3110_v43  ;;  %633 = vmatprep.subr.mxu0 %v2953_v4 }
  0x94   :  { %2308 = vmatprep.subr.mxu1 %v3873_v0  ;;  %634 = vmatpush1.msra.mxu0 %v2957_v5 }
  0x95   :  { %2309 = vmatpush3.msra.mxu1 %v3116_v44  ;;  %635 = vmatprep.subr.mxu0 %v2966_v8 }
  0x96   :  { %2310 = vmatprep.subr.mxu1 %v3873_v0  ;;  %636 = vmatpush1.msra.mxu0 %v2969_v9 }
  0x97   :  { %2311 = vmatpush3.msra.mxu1 %v3122_v45  ;;  %637 = vmatprep.subr.mxu0 %v2972_v10 }
  0x98   :  { %2313 = vmatmul.mubr.f32.vlgmr.msra.gmra.mxu1 %v3873_v0  ;;  %2315 = vmatprep.subr.mxu1 %v3873_v0 }
  0x99   :  { %2316 = vmatpush3.msra.mxu1 %v3014_v23  ;;  %638 = vmatpush1.msra.mxu0 %v2976_v11 }
  0x9a   :  { %2317 = vmatprep.subr.mxu1 %v3873_v0  ;;  %639 = vmatprep.subr.mxu0 %v2985_v14 }
  0x9b   :  { %2318 = vmatpush3.msra.mxu1 %v3039_v30  ;;  %640 = vmatpush1.msra.mxu0 %v2988_v15 }
  0x9c   :  { %2319 = vmatprep.subr.mxu1 %v3873_v0  ;;  %641 = vmatprep.subr.mxu0 %v2991_v16 }
  0x9d   :  { %2320 = vmatpush3.msra.mxu1 %v3045_v31  ;;  %642 = vmatpush1.msra.mxu0 %v2995_v17 }
  0x9e   :  { %2321 = vmatprep.subr.mxu1 %v3873_v0  ;;  %643 = vmatprep.subr.mxu0 %v3002_v19 }
  0x9f   :  { %2322 = vmatpush3.msra.mxu1 %v3052_v32  ;;  %644 = vmatpush1.msra.mxu0 %v3005_v20 }
  0xa0   :  { %2323 = vmatprep.subr.mxu1 %v3873_v0  ;;  %645 = vmatprep.subr.mxu0 %v3008_v21 }
  0xa1   :  { %2324 = vmatpush3.msra.mxu1 %v3058_v34  ;;  %646 = vmatpush1.msra.mxu0 %v3012_v22 }
  0xa2   :  { %2325 = vmatprep.subr.mxu1 %v3873_v0  ;;  %647 = vmatprep.subr.mxu0 %v3021_v25 }
  0xa3   :  { %2326 = vmatpush3.msra.mxu1 %v3064_v35  ;;  %648 = vmatpush1.msra.mxu0 %v3024_v26 }
  0xa4   :  { %2327 = vmatprep.subr.mxu1 %v3873_v0  ;;  %649 = vmatprep.subr.mxu0 %v3028_v27 }
  0xa5   :  { %2328 = vmatpush3.msra.mxu1 %v3069_v36  ;;  %650 = vmatpush1.msra.mxu0 %v3037_v29 }
  0xa6   :  { %2329 = vmatprep.subr.mxu1 %v3873_v0  ;;  %683 = vmatprep.mubr.f32.mxu0 %v3873_v0 }
  0xa7   :  { %2330 = vmatpush3.msra.mxu1 %v3074_v37  ;;  %2347 = vmatprep.mubr.msk.f32.mxu1 %vm2821_vm1, %v3873_v0 }
  0xa8   :  { %2331 = vmatprep.subr.mxu1 %v3873_v0  ;;  %788 = vmatprep.subr.mxu0 %v2892_v46 }
  0xa9   :  { %2332 = vmatpush3.msra.mxu1 %v3080_v38  ;;  %784 = vperm.xlu0 %2573, %v782_v50  }
  0xaa   :  { %2333 = vmatprep.subr.mxu1 %v3873_v0 }
  0xab   :  { %2334 = vmatpush3.msra.mxu1 %v3086_v39 }
  0xac   :  { %2335 = vmatprep.subr.mxu1 %v3873_v0 }
  0xad   :  { %2336 = vmatpush3.msra.mxu1 %v3092_v40 }
  0xae   :  { %2337 = vmatprep.subr.mxu1 %v3873_v0 }
  0xaf   :  { %2338 = vmatpush3.msra.mxu1 %v3098_v41 }
  0xb0   :  { %2339 = vmatprep.subr.mxu1 %v3873_v0 }
  0xb1   :  { %2340 = vmatpush3.msra.mxu1 %v3104_v42 }
  0xb2   :  { %2341 = vmatprep.subr.mxu1 %v3873_v0 }
  0xb3   :  { %2342 = vmatpush3.msra.mxu1 %v3110_v43 }
  0xb4   :  { %2343 = vmatprep.subr.mxu1 %v3873_v0 }
  0xb5   :  { %2344 = vmatpush3.msra.mxu1 %v3116_v44 }
  0xb6   :  { %2345 = vmatprep.subr.mxu1 %v3873_v0 }
  0xb7   :  { %2346 = vmatpush3.msra.mxu1 %v3122_v45 }
  0xb8   :  { %2350 = vmatprep.subr.mxu1 %v3873_v0 }
 0x11f   :  { %v232_v63 = vpop.f32.mrf.mxu0 }
 0x121   :  { %v234_v7 = vpop.f32.mrf.mxu0 }
 0x123   :  { %v238_v13 = vpop.f32.mrf.mxu0 }
 0x124   :  { %v3197_v24 = vadd.f32 %v238_v13, %v154_v12 }
 0x125   :  { %v240_v33 = vpop.f32.mrf.mxu0 }
 0x126   :  { %3934 = vst [vmem:[#allocation26_spill] sm:$0xff] %v3197_v24  ;;  %v3199_v50 = vadd.f32 %v240_v33, %v158_v18  ;;  %v3214_v33 = vsub.s32 2, %v3184_v56 }
 0x127   :  { %v244_v51 = vpop.f32.mrf.mxu0 }
 0x128   :  { %3935 = vst [vmem:[#allocation27_spill] sm:$0xff] %v3199_v50  ;;  %v3201_v1 = vadd.f32 %v244_v51, %v154_v12  ;;  %3942 = vst [vmem:[#allocation34_spill] sm:$0xff] %v3214_v33 }
 0x129   :  { %v246_v0 = vpop.f32.mrf.mxu0 }
 0x12a   :  { %3936 = vst [vmem:[#allocation28_spill] sm:$0xff] %v3201_v1  ;;  %v3203_v28 = vadd.f32 %v246_v0, %v158_v18 }
 0x12b   :  { %v250_v46 = vpop.f32.mrf.mxu0 }
 0x12c   :  { %3937 = vst [vmem:[#allocation29_spill] sm:$0xff] %v3203_v28  ;;  %v3205_v45 = vadd.f32 %v250_v46, %v154_v12  ;;  %v162_v46 = vrot.slane %v149_v62, %v3214_v33 }
 0x12d   :  { %v252_v29 = vpop.f32.mrf.mxu0 }
 0x12e   :  { %3938 = vst [vmem:[#allocation30_spill] sm:$0xff] %v3205_v45  ;;  %v3207_v27 = vadd.f32 %v252_v29, %v158_v18 }
 0x12f   :  { %v256_v44 = vpop.f32.mrf.mxu0 }
 0x130   :  { %3939 = vst [vmem:[#allocation31_spill] sm:$0xff] %v3207_v27  ;;  %v3209_v26 = vadd.f32 %v256_v44, %v154_v12  ;;  %v432_v44 = vld [vmem:[#allocation6] sm:$0x7] }
 0x131   :  { %v258_v13 = vpop.f32.mrf.mxu0  ;;  %v3236_v25 = vrot.slane %v432_v44, %v3193_v6 }
 0x132   :  { %3940 = vst [vmem:[#allocation32_spill] sm:$0xff] %v3209_v26  ;;  %v3211_v24 = vadd.f32 %v258_v13, %v158_v18  ;;  %v2270_v26 = vpop.f32.mrf.mxu1 }
 0x133   :  { %v262_v51 = vpop.f32.mrf.mxu0  ;;  %v3225_v13 = vadd.f32 %v2270_v26, %v162_v46 }
 0x134   :  { %3941 = vst [vmem:[#allocation33_spill] sm:$0xff] %v3211_v24  ;;  %v3216_v1 = vadd.f32 %v262_v51, %v154_v12  ;;  %v3230_v51 = vrot.slane %v432_v44, %v3187_v57 }
 0x135   :  { %v264_v0 = vpop.f32.mrf.mxu0  ;;  %3947 = vst [vmem:[#allocation39_spill] sm:$0xff] %v3225_v13 }
 0x136   :  { %3943 = vst [vmem:[#allocation35_spill] sm:$0xff] %v3216_v1  ;;  %v3218_v28 = vadd.f32 %v264_v0, %v158_v18  ;;  %3949 = vst [vmem:[#allocation41_spill] sm:$0xff] %v3230_v51  ;;  %v345_v1 = vpop.f32.mrf.mxu1 }
 0x137   :  { %v268_v45 = vpop.f32.mrf.mxu0 }
 0x138   :  { %3944 = vst [vmem:[#allocation36_spill] sm:$0xff] %v3218_v28  ;;  %v3221_v29 = vadd.f32 %v268_v45, %v154_v12  ;;  %v233_v45 = vadd.f32 %v232_v63, %v154_v12 }
 0x139   :  { %v270_v27 = vpop.f32.mrf.mxu0 }
 0x13a   :  { %3945 = vst [vmem:[#allocation37_spill] sm:$0xff] %v3221_v29  ;;  %v3223_v50 = vadd.f32 %v270_v27, %v158_v18 }
 0x13b   :  { %v274_v56 = vpop.f32.mrf.mxu0 }
 0x13c   :  { %3946 = vst [vmem:[#allocation38_spill] sm:$0xff] %v3223_v50  ;;  %v3227_v24 = vadd.f32 %v274_v56, %v154_v12 }
 0x13d   :  { %v276_v0 = vpop.f32.mrf.mxu0  ;;  %v2273_v26 = vpop.f32.mrf.mxu1 }
 0x13e   :  { %3948 = vst [vmem:[#allocation40_spill] sm:$0xff] %v3227_v24  ;;  %v3232_v28 = vadd.f32 %v276_v0, %v158_v18  ;;  %v3238_v13 = vadd.f32 %v2273_v26, %v162_v46 }
 0x13f   :  { %v516_v62 = vpop.f32.mrf.mxu0  ;;  %v355_v56 = vpop.f32.mrf.mxu1 }
 0x140   :  { %3950 = vst [vmem:[#allocation42_spill] sm:$0xff] %v3232_v28  ;;  %v517_v29 = vadd.f32 %v516_v62, %v3230_v51  ;;  %3951 = vst [vmem:[#allocation43_spill] sm:$0xff] %v3238_v13  ;;  %v3241_v43 = vadd.f32 %v355_v56, %v162_v46  ;;  %v235_v28 = vadd.f32 %v234_v7, %v158_v18 }
 0x141   :  { %v518_v27 = vpop.f32.mrf.mxu0  ;;  %v3252_v7 = vrot.slane %v432_v44, %v3214_v33  ;;  %v3961_v44 = vld [vmem:[#allocation15_spill] sm:$0xff] }
 0x142   :  { %v591_v50 = vadd.f32 %v517_v29, %v233_v45  ;;  %v519_v57 = vadd.f32 %v518_v27, %v3236_v25  ;;  %3952 = vst [vmem:[#allocation44_spill] sm:$0xff] %v3241_v43  ;;  %v2276_v0 = vpop.f32.mrf.mxu1 }
 0x143   :  { %v3243_v63 = vadd.f32 %v2276_v0, %v162_v46 }
 0x144   :  { %v2060_v24 = vmul.f32 -1.442695, %v591_v50  ;;  %v365_v12 = vpop.f32.mrf.mxu1  ;;  %v598_v62 = vadd.f32 %v519_v57, %v235_v28 }
 0x145   :  { %3953 = vst [vmem:[#allocation45_spill] sm:$0xff] %v3243_v63  ;;  %v3245_v6 = vadd.f32 %v365_v12, %v162_v46 }
 0x146   :  { %2575 = vpow2.f32 %v2060_v24  ;;  %v2279_v51 = vpop.f32.mrf.mxu1  ;;  %v2061_v45 = vmul.f32 -1.442695, %v598_v62 }
 0x147   :  { %3954 = vst [vmem:[#allocation46_spill] sm:$0xff] %v3245_v6  ;;  %v3247_v22 = vadd.f32 %v2279_v51, %v162_v46  ;;  %v346_v51 = vadd.f32 %v345_v1, %v162_v46  ;;  %v3958_v1 = vmov 0.0   ;;  %v3971_v6 = vld [vmem:[#allocation26_spill] sm:$0xff] }
 0x148   :  { %v375_v29 = vpop.f32.mrf.mxu1  ;;  %2577 = vpow2.f32 %v2061_v45 }
 0x149   :  { %3955 = vst [vmem:[#allocation47_spill] sm:$0xff] %v3247_v22  ;;  %v3249_v26 = vadd.f32 %v375_v29, %v162_v46  ;;  %v3960_v46 = vld [vmem:[#allocation20_spill] sm:$0xff] }
 0x14b   :  { %3956 = vst [vmem:[#allocation48_spill] sm:$0xff] %v3249_v26 }
 0x153   :  { %v2576_v50 = vpop.eup %2575 }
 0x154   :  { %v595_v27 = vadd.f32 1.0, %v2576_v50 }
 0x155   :  { %v2578_v18 = vpop.eup %2577 }
 0x156   :  { %2579 = vrcp.f32 %v595_v27  ;;  %v602_v28 = vadd.f32 1.0, %v2578_v18  ;;  %v3963_v18 = vld [vmem:[#allocation21_spill] sm:$0xff] }
 0x158   :  { %v587_v56 = vpop.f32.mrf.mxu1  ;;  %2581 = vrcp.f32 %v602_v28  ;;  %v3965_v28 = vld [vmem:[#allocation19_spill] sm:$0xff] }
 0x159   :  { %v588_v57 = vadd.f32 %v587_v56, %v3252_v7  ;;  %v3962_v56 = vld [vmem:[#allocation16_spill] sm:$0xff] }
 0x15a   :  { %v2314_v24 = vpop.f32.mrf.mxu1 }
 0x15b   :  { %v3964_v24 = vld [vmem:[#allocation17_spill] sm:$0xff] }
 0x163   :  { %v2580_v0 = vpop.eup %2579 }
 0x164   :  { %v605_v12 = vmul.f32 %v2580_v0, %v588_v57  ;;  %v3966_v57 = vld [vmem:[#allocation22_spill] sm:$0xff]  ;;  %v3967_v0 = vld [vmem:[#allocation13_spill] sm:$0xff] }
 0x165   :  { %v2582_v29 = vpop.eup %2581 }
 0x166   :  { %v606_v62 = vadd.f32 %v605_v12, %v346_v51  ;;  %v608_v45 = vsub.f32 1.0, %v2582_v29  ;;  %v610_v27 = vmul.f32 0.0, %v2582_v29  ;;  %v3968_v51 = vld [vmem:[#allocation18_spill] sm:$0xff]  ;;  %v3969_v12 = vmov 0  }
 0x167   :  { %vm950_vm3 = vcmp.eq.s32.totalorder %v3968_v51, 2 }
 0x168   :  { %2583 = vtanh.f32 %v606_v62  ;;  %v951_v62 = vsel %vm950_vm3, 1, %v3969_v12 }
 0x169   :  { %953 = vperm.xlu1 %2574, %v951_v62  }
 0x175   :  { %v2584_v22 = vpop.eup %2583 }
 0x176   :  { %v609_v50 = vmul.f32 %v2584_v22, %v608_v45  ;;  %v3959_v22 = vld [vmem:[#allocation14_spill] sm:$0xff] }
 0x178   :  { %v3255_v26 = vadd.f32 %v610_v27, %v609_v50  ;;  %v3970_v50 = vld [vmem:[#allocation41_spill] sm:$0xff] }
 0x17a   :  { %3957 = vst [vmem:[#allocation49_spill] sm:$0xff] %v3255_v26  ;;  %684 = vmatmul.mubr.f32.vlgmr.msra.gmra.mxu0 %v3255_v26  ;;  %2348 = vmatmul.mubr.f32.vlgmr.msra.gmra.mxu1 %v3255_v26 }
 0x17b   :  { %789 = vmatpush1.msra.mxu0 %v2894_v47  ;;  %2351 = vmatpush3.msra.mxu1 %v3014_v23 }
 0x17c   :  { %790 = vmatprep.subr.mxu0 %v2896_v48  ;;  %2352 = vmatprep.subr.mxu1 %v3958_v1 }
 0x17d   :  { %791 = vmatpush1.msra.mxu0 %v2900_v49  ;;  %2353 = vmatpush3.msra.mxu1 %v3039_v30 }
 0x17e   :  { %792 = vmatprep.subr.mxu0 %v2909_v52  ;;  %2354 = vmatprep.subr.mxu1 %v3958_v1 }
 0x17f   :  { %793 = vmatpush1.msra.mxu0 %v2912_v53  ;;  %2355 = vmatpush3.msra.mxu1 %v3045_v31 }
 0x180   :  { %794 = vmatprep.subr.mxu0 %v2915_v54  ;;  %2356 = vmatprep.subr.mxu1 %v3958_v1 }
 0x181   :  { %795 = vmatpush1.msra.mxu0 %v2919_v55  ;;  %2357 = vmatpush3.msra.mxu1 %v3052_v32 }
 0x182   :  { %796 = vmatprep.subr.mxu0 %v2928_v58  ;;  %2358 = vmatprep.subr.mxu1 %v3958_v1 }
 0x183   :  { %797 = vmatpush1.msra.mxu0 %v2931_v59  ;;  %2359 = vmatpush3.msra.mxu1 %v3058_v34 }
 0x184   :  { %798 = vmatprep.subr.mxu0 %v2934_v60  ;;  %2360 = vmatprep.subr.mxu1 %v3958_v1 }
 0x185   :  { %799 = vmatpush1.msra.mxu0 %v2938_v61  ;;  %2361 = vmatpush3.msra.mxu1 %v3064_v35 }
 0x186   :  { %800 = vmatprep.subr.mxu0 %v2947_v2  ;;  %2362 = vmatprep.subr.mxu1 %v3958_v1 }
 0x187   :  { %801 = vmatpush1.msra.mxu0 %v2950_v3  ;;  %2363 = vmatpush3.msra.mxu1 %v3069_v36 }
 0x188   :  { %802 = vmatprep.subr.mxu0 %v2953_v4  ;;  %2364 = vmatprep.subr.mxu1 %v3958_v1 }
 0x189   :  { %803 = vmatpush1.msra.mxu0 %v2957_v5  ;;  %2365 = vmatpush3.msra.mxu1 %v3074_v37 }
 0x18a   :  { %804 = vmatprep.subr.mxu0 %v2966_v8  ;;  %2366 = vmatprep.subr.mxu1 %v3958_v1 }
 0x18b   :  { %805 = vmatpush1.msra.mxu0 %v2969_v9  ;;  %2367 = vmatpush3.msra.mxu1 %v3080_v38 }
 0x18c   :  { %806 = vmatprep.subr.mxu0 %v2972_v10  ;;  %2368 = vmatprep.subr.mxu1 %v3958_v1 }
 0x18d   :  { %807 = vmatpush1.msra.mxu0 %v2976_v11  ;;  %2369 = vmatpush3.msra.mxu1 %v3086_v39 }
 0x18e   :  { %808 = vmatprep.subr.mxu0 %v2985_v14  ;;  %2370 = vmatprep.subr.mxu1 %v3958_v1 }
 0x18f   :  { %809 = vmatpush1.msra.mxu0 %v2988_v15  ;;  %2371 = vmatpush3.msra.mxu1 %v3092_v40 }
 0x190   :  { %810 = vmatprep.subr.mxu0 %v2991_v16  ;;  %2372 = vmatprep.subr.mxu1 %v3958_v1 }
 0x191   :  { %811 = vmatpush1.msra.mxu0 %v2995_v17  ;;  %2373 = vmatpush3.msra.mxu1 %v3098_v41 }
 0x192   :  { %812 = vmatprep.subr.mxu0 %v3002_v19  ;;  %2374 = vmatprep.subr.mxu1 %v3958_v1 }
 0x193   :  { %813 = vmatpush1.msra.mxu0 %v3005_v20  ;;  %2375 = vmatpush3.msra.mxu1 %v3104_v42 }
 0x194   :  { %814 = vmatprep.subr.mxu0 %v3008_v21  ;;  %2376 = vmatprep.subr.mxu1 %v3958_v1 }
 0x195   :  { %815 = vmatpush1.msra.mxu0 %v3959_v22  ;;  %2377 = vmatpush3.msra.mxu1 %v3960_v46 }
 0x196   :  { %816 = vmatprep.subr.mxu0 %v3961_v44  ;;  %2378 = vmatprep.subr.mxu1 %v3958_v1 }
 0x197   :  { %817 = vmatpush1.msra.mxu0 %v3962_v56  ;;  %2379 = vmatpush3.msra.mxu1 %v3963_v18 }
 0x198   :  { %818 = vmatprep.subr.mxu0 %v3964_v24  ;;  %2380 = vmatprep.subr.mxu1 %v3958_v1 }
 0x199   :  { %819 = vmatpush1.msra.mxu0 %v3965_v28  ;;  %852 = vmatprep.mubr.f32.mxu0 %v3958_v1 }
 0x19a   :  { %2381 = vmatpush3.msra.mxu1 %v3966_v57  ;;  %2382 = vmatprep.mubr.msk.f32.mxu1 %vm2821_vm1, %v3958_v1 }
 0x19b   :  { %957 = vmatprep.subr.mxu0 %v3967_v0  ;;  %2385 = vmatprep.subr.mxu1 %v3958_v1  ;;  %v3972_v0 = vld [vmem:[#allocation27_spill] sm:$0xff] }
 0x23a   :  { %v685_v29 = vpop.f32.mrf.mxu0  ;;  %v756_v45 = vpop.f32.mrf.mxu1 }
 0x23b   :  { %v686_v27 = vadd.f32 %v685_v29, %v3970_v50  ;;  %v757_v56 = vadd.f32 %v756_v45, %v3252_v7 }
 0x23c   :  { %v687_v33 = vpop.f32.mrf.mxu0  ;;  %v2349_v63 = vpop.f32.mrf.mxu1 }
 0x23d   :  { %v760_v13 = vadd.f32 %v686_v27, %v3971_v6  ;;  %v688_v57 = vadd.f32 %v687_v33, %v3236_v25  ;;  %v3973_v63 = vld [vmem:[#allocation39_spill] sm:$0xff] }
 0x23f   :  { %v2062_v43 = vmul.f32 -1.442695, %v760_v13  ;;  %v767_v28 = vadd.f32 %v688_v57, %v3972_v0 }
 0x241   :  { %2585 = vpow2.f32 %v2062_v43  ;;  %v2063_v24 = vmul.f32 -1.442695, %v767_v28 }
 0x243   :  { %2587 = vpow2.f32 %v2063_v24 }
 0x24e   :  { %v2586_v51 = vpop.eup %2585 }
 0x24f   :  { %v764_v18 = vadd.f32 1.0, %v2586_v51 }
 0x250   :  { %v2588_v62 = vpop.eup %2587 }
 0x251   :  { %2589 = vrcp.f32 %v764_v18  ;;  %v771_v12 = vadd.f32 1.0, %v2588_v62  ;;  %v3984_v18 = vld [vmem:[#allocation28_spill] sm:$0xff] }
 0x253   :  { %2591 = vrcp.f32 %v771_v12  ;;  %v3985_v12 = vld [vmem:[#allocation29_spill] sm:$0xff] }
 0x25e   :  { %v2590_v29 = vpop.eup %2589 }
 0x25f   :  { %v774_v50 = vmul.f32 %v2590_v29, %v757_v56 }
 0x260   :  { %v2592_v13 = vpop.eup %2591 }
 0x261   :  { %v775_v6 = vadd.f32 %v774_v50, %v3973_v63  ;;  %v777_v33 = vsub.f32 1.0, %v2592_v13  ;;  %v779_v28 = vmul.f32 %v2592_v13, %v3255_v26 }
 0x263   :  { %2593 = vtanh.f32 %v775_v6 }
 0x270   :  { %v2594_v43 = vpop.eup %2593 }
 0x271   :  { %v778_v27 = vmul.f32 %v2594_v43, %v777_v33 }
 0x273   :  { %v3335_v24 = vadd.f32 %v779_v28, %v778_v27  ;;  %v3986_v27 = vld [vmem:[#allocation44_spill] sm:$0xff] }
 0x275   :  { %3974 = vst [vmem:[#allocation14_spill] sm:$0xff] %v3335_v24  ;;  %853 = vmatmul.mubr.f32.vlgmr.msra.gmra.mxu0 %v3335_v24  ;;  %2383 = vmatmul.mubr.f32.vlgmr.msra.gmra.mxu1 %v3335_v24 }
 0x276   :  { %958 = vmatpush1.msra.mxu0 %v2894_v47  ;;  %2386 = vmatpush3.msra.mxu1 %v3014_v23  ;;  %v3975_v47 = vld [vmem:[#allocation16_spill] sm:$0xff] }
 0x277   :  { %959 = vmatprep.subr.mxu0 %v2896_v48  ;;  %2387 = vmatprep.subr.mxu1 %v3958_v1  ;;  %v3976_v48 = vld [vmem:[#allocation21_spill] sm:$0xff] }
 0x278   :  { %960 = vmatpush1.msra.mxu0 %v2900_v49  ;;  %2388 = vmatpush3.msra.mxu1 %v3039_v30  ;;  %v3977_v49 = vld [vmem:[#allocation17_spill] sm:$0xff] }
 0x279   :  { %961 = vmatprep.subr.mxu0 %v2909_v52  ;;  %2389 = vmatprep.subr.mxu1 %v3958_v1  ;;  %v3978_v52 = vld [vmem:[#allocation19_spill] sm:$0xff] }
 0x27a   :  { %962 = vmatpush1.msra.mxu0 %v2912_v53  ;;  %2390 = vmatpush3.msra.mxu1 %v3045_v31  ;;  %v3979_v53 = vld [vmem:[#allocation22_spill] sm:$0xff] }
 0x27b   :  { %963 = vmatprep.subr.mxu0 %v2915_v54  ;;  %2391 = vmatprep.subr.mxu1 %v3958_v1  ;;  %v3980_v54 = vld [vmem:[#allocation13_spill] sm:$0xff] }
 0x27c   :  { %964 = vmatpush1.msra.mxu0 %v2919_v55  ;;  %2392 = vmatpush3.msra.mxu1 %v3052_v32  ;;  %v3981_v55 = vld [vmem:[#allocation18_spill] sm:$0xff] }
 0x27d   :  { %965 = vmatprep.subr.mxu0 %v2928_v58  ;;  %2393 = vmatprep.subr.mxu1 %v3958_v1  ;;  %vm1119_vm4 = vcmp.eq.s32.totalorder %v3981_v55, 3  ;;  %v3982_v58 = vmov 0   ;;  %vm1288_vm5 = vcmp.eq.s32.totalorder %v3981_v55, 4 }
 0x27e   :  { %966 = vmatpush1.msra.mxu0 %v2931_v59  ;;  %2394 = vmatpush3.msra.mxu1 %v3058_v34  ;;  %v1120_v59 = vsel %vm1119_vm4, 1, %v3982_v58 }
 0x27f   :  { %967 = vmatprep.subr.mxu0 %v2934_v60  ;;  %2395 = vmatprep.subr.mxu1 %v3958_v1 }
 0x280   :  { %968 = vmatpush1.msra.mxu0 %v2938_v61  ;;  %2396 = vmatpush3.msra.mxu1 %v3064_v35 }
 0x281   :  { %969 = vmatprep.subr.mxu0 %v2947_v2  ;;  %2397 = vmatprep.subr.mxu1 %v3958_v1  ;;  %v3983_v2 = vld [vmem:[#allocation41_spill] sm:$0xff] }
 0x282   :  { %970 = vmatpush1.msra.mxu0 %v2950_v3  ;;  %2398 = vmatpush3.msra.mxu1 %v3069_v36 }
 0x283   :  { %971 = vmatprep.subr.mxu0 %v2953_v4  ;;  %2399 = vmatprep.subr.mxu1 %v3958_v1 }
 0x284   :  { %972 = vmatpush1.msra.mxu0 %v2957_v5  ;;  %2400 = vmatpush3.msra.mxu1 %v3074_v37 }
 0x285   :  { %973 = vmatprep.subr.mxu0 %v2966_v8  ;;  %2401 = vmatprep.subr.mxu1 %v3958_v1 }
 0x286   :  { %974 = vmatpush1.msra.mxu0 %v2969_v9  ;;  %2402 = vmatpush3.msra.mxu1 %v3080_v38 }
 0x287   :  { %975 = vmatprep.subr.mxu0 %v2972_v10  ;;  %2403 = vmatprep.subr.mxu1 %v3958_v1 }
 0x288   :  { %976 = vmatpush1.msra.mxu0 %v2976_v11  ;;  %2404 = vmatpush3.msra.mxu1 %v3086_v39 }
 0x289   :  { %977 = vmatprep.subr.mxu0 %v2985_v14  ;;  %2405 = vmatprep.subr.mxu1 %v3958_v1 }
 0x28a   :  { %978 = vmatpush1.msra.mxu0 %v2988_v15  ;;  %2406 = vmatpush3.msra.mxu1 %v3092_v40 }
 0x28b   :  { %979 = vmatprep.subr.mxu0 %v2991_v16  ;;  %2407 = vmatprep.subr.mxu1 %v3958_v1 }
 0x28c   :  { %980 = vmatpush1.msra.mxu0 %v2995_v17  ;;  %2408 = vmatpush3.msra.mxu1 %v3098_v41 }
 0x28d   :  { %981 = vmatprep.subr.mxu0 %v3002_v19  ;;  %2409 = vmatprep.subr.mxu1 %v3958_v1 }
 0x28e   :  { %982 = vmatpush1.msra.mxu0 %v3005_v20  ;;  %2410 = vmatpush3.msra.mxu1 %v3104_v42 }
 0x28f   :  { %983 = vmatprep.subr.mxu0 %v3008_v21  ;;  %2411 = vmatprep.subr.mxu1 %v3958_v1 }
 0x290   :  { %984 = vmatpush1.msra.mxu0 %v3959_v22  ;;  %2412 = vmatpush3.msra.mxu1 %v3960_v46 }
 0x291   :  { %985 = vmatprep.subr.mxu0 %v3961_v44  ;;  %2413 = vmatprep.subr.mxu1 %v3958_v1 }
 0x292   :  { %986 = vmatpush1.msra.mxu0 %v3975_v47  ;;  %2414 = vmatpush3.msra.mxu1 %v3976_v48 }
 0x293   :  { %987 = vmatprep.subr.mxu0 %v3977_v49  ;;  %2415 = vmatprep.subr.mxu1 %v3958_v1 }
 0x294   :  { %988 = vmatpush1.msra.mxu0 %v3978_v52  ;;  %1021 = vmatprep.mubr.f32.mxu0 %v3958_v1 }
 0x295   :  { %2416 = vmatpush3.msra.mxu1 %v3979_v53  ;;  %2417 = vmatprep.mubr.msk.f32.mxu1 %vm2821_vm1, %v3958_v1 }
 0x296   :  { %1126 = vmatprep.subr.mxu0 %v3980_v54  ;;  %2420 = vmatprep.subr.mxu1 %v3958_v1 }
 0x297   :  { %1122 = vperm.xlu1 %2574, %v1120_v59  }
 0x335   :  { %v854_v60 = vpop.f32.mrf.mxu0  ;;  %v925_v61 = vpop.f32.mrf.mxu1 }
 0x336   :  { %v855_v3 = vadd.f32 %v854_v60, %v3983_v2  ;;  %v926_v13 = vadd.f32 %v925_v61, %v3252_v7  ;;  %v3423_v61 = vld [vmem:[#allocation4 + $0x158] sm:$0xff] }
 0x337   :  { %v856_v4 = vpop.f32.mrf.mxu0  ;;  %v2384_v56 = vpop.f32.mrf.mxu1 }
 0x338   :  { %v929_v57 = vadd.f32 %v855_v3, %v3984_v18  ;;  %v857_v51 = vadd.f32 %v856_v4, %v3236_v25  ;;  %v3419_v18 = vld [vmem:[#allocation4 + $0x168] sm:$0xff] }
 0x33a   :  { %v2064_v0 = vmul.f32 -1.442695, %v929_v57  ;;  %v936_v45 = vadd.f32 %v857_v51, %v3985_v12  ;;  %v3427_v57 = vld [vmem:[#allocation4 + $0x150] sm:$0xff]  ;;  %v3435_v51 = vld [vmem:[#allocation4 + $0x138] sm:$0xff]  ;;  %v3443_v12 = vld [vmem:[#allocation4 + $0x120] sm:$0xff] }
 0x33c   :  { %2595 = vpow2.f32 %v2064_v0  ;;  %v2065_v50 = vmul.f32 -1.442695, %v936_v45  ;;  %v3431_v0 = vld [vmem:[#allocation4 + $0x140] sm:$0xff]  ;;  %v3451_v45 = vld [vmem:[#allocation4 + $0x108] sm:$0xff] }
 0x33e   :  { %2597 = vpow2.f32 %v2065_v50  ;;  %v3459_v50 = vld [vmem:[#allocation4 + $0xf0] sm:$0xff] }
 0x349   :  { %v2596_v62 = vpop.eup %2595 }
 0x34a   :  { %v933_v29 = vadd.f32 1.0, %v2596_v62  ;;  %v3467_v62 = vld [vmem:[#allocation4 + $0xd8] sm:$0xff] }
 0x34b   :  { %v2598_v63 = vpop.eup %2597 }
 0x34c   :  { %2599 = vrcp.f32 %v933_v29  ;;  %v940_v6 = vadd.f32 1.0, %v2598_v63  ;;  %v3530_v29 = vld [vmem:[#allocation4 + $0x178] sm:$0xff]  ;;  %v3536_v63 = vld [vmem:[#allocation4 + $0x160] sm:$0xff] }
 0x34e   :  { %2601 = vrcp.f32 %v940_v6  ;;  %v3542_v6 = vld [vmem:[#allocation4 + $0x148] sm:$0xff] }
 0x359   :  { %v2600_v33 = vpop.eup %2599 }
 0x35a   :  { %v943_v43 = vmul.f32 %v2600_v33, %v926_v13  ;;  %v3548_v13 = vld [vmem:[#allocation4 + $0x130] sm:$0xff]  ;;  %v3554_v33 = vld [vmem:[#allocation4 + $0x118] sm:$0xff] }
 0x35b   :  { %v2602_v54 = vpop.eup %2601 }
 0x35c   :  { %v944_v28 = vadd.f32 %v943_v43, %v3986_v27  ;;  %v946_v59 = vsub.f32 1.0, %v2602_v54  ;;  %v948_v4 = vmul.f32 %v2602_v54, %v3335_v24  ;;  %v3560_v43 = vld [vmem:[#allocation4 + $0x100] sm:$0xff]  ;;  %v3566_v27 = vld [vmem:[#allocation4 + $0xe8] sm:$0xff]  ;;  %v3574_v54 = vld [vmem:[#allocation4 + $0xd0] sm:$0xff] }
 0x35e   :  { %2603 = vtanh.f32 %v944_v28  ;;  %v3571_v28 = vld [vmem:[#allocation4 + $0xc0] sm:$0xff] }
 0x36b   :  { %v2604_v60 = vpop.eup %2603 }
 0x36c   :  { %v947_v3 = vmul.f32 %v2604_v60, %v946_v59  ;;  %v3577_v59 = vld [vmem:[#allocation4 + $0xb0] sm:$0xff]  ;;  %v3581_v60 = vld [vmem:[#allocation4 + $0xa8] sm:$0xff] }
 0x36e   :  { %v3415_v56 = vadd.f32 %v948_v4, %v947_v3  ;;  %v3584_v3 = vld [vmem:[#allocation4 + $0xb8] sm:$0xff] }
 0x36f   :  { %v3587_v4 = vld [vmem:[#allocation4 + $0x98] sm:$0xff] }
 0x370   :  { %3987 = vst [vmem:[#allocation20_spill] sm:$0xff] %v3415_v56  ;;  %1022 = vmatmul.mubr.f32.vlgmr.msra.gmra.mxu0 %v3415_v56  ;;  %2418 = vmatmul.mubr.f32.vlgmr.msra.gmra.mxu1 %v3415_v56 }
 0x371   :  { %1127 = vmatpush1.msra.mxu0 %v3419_v18  ;;  %2421 = vmatpush3.msra.mxu1 %v3014_v23  ;;  %v3439_v23 = vld [vmem:[#allocation4 + $0x128] sm:$0xff] }
 0x372   :  { %1128 = vmatprep.subr.mxu0 %v3423_v61  ;;  %2422 = vmatprep.subr.mxu1 %v3958_v1 }
 0x373   :  { %1129 = vmatpush1.msra.mxu0 %v3427_v57  ;;  %2423 = vmatpush3.msra.mxu1 %v3039_v30  ;;  %v3447_v30 = vld [vmem:[#allocation4 + $0x110] sm:$0xff] }
 0x374   :  { %1130 = vmatprep.subr.mxu0 %v3431_v0  ;;  %2424 = vmatprep.subr.mxu1 %v3958_v1 }
 0x375   :  { %1131 = vmatpush1.msra.mxu0 %v3435_v51  ;;  %2425 = vmatpush3.msra.mxu1 %v3045_v31  ;;  %v3455_v31 = vld [vmem:[#allocation4 + $0xf8] sm:$0xff] }
 0x376   :  { %1132 = vmatprep.subr.mxu0 %v3439_v23  ;;  %2426 = vmatprep.subr.mxu1 %v3958_v1 }
 0x377   :  { %1133 = vmatpush1.msra.mxu0 %v3443_v12  ;;  %2427 = vmatpush3.msra.mxu1 %v3052_v32  ;;  %v3463_v32 = vld [vmem:[#allocation4 + $0xe0] sm:$0xff] }
 0x378   :  { %1134 = vmatprep.subr.mxu0 %v3447_v30  ;;  %2428 = vmatprep.subr.mxu1 %v3958_v1 }
 0x379   :  { %1135 = vmatpush1.msra.mxu0 %v3451_v45  ;;  %2429 = vmatpush3.msra.mxu1 %v3058_v34  ;;  %v3471_v34 = vld [vmem:[#allocation4 + $0xc8] sm:$0xff] }
 0x37a   :  { %1136 = vmatprep.subr.mxu0 %v3455_v31  ;;  %2430 = vmatprep.subr.mxu1 %v3958_v1 }
 0x37b   :  { %1137 = vmatpush1.msra.mxu0 %v3459_v50  ;;  %2431 = vmatpush3.msra.mxu1 %v3064_v35 }
 0x37c   :  { %1138 = vmatprep.subr.mxu0 %v3463_v32  ;;  %2432 = vmatprep.subr.mxu1 %v3958_v1 }
 0x37d   :  { %1139 = vmatpush1.msra.mxu0 %v3467_v62  ;;  %2433 = vmatpush3.msra.mxu1 %v3069_v36 }
 0x37e   :  { %1140 = vmatprep.subr.mxu0 %v3471_v34  ;;  %2434 = vmatprep.subr.mxu1 %v3958_v1 }
 0x37f   :  { %1141 = vmatpush1.msra.mxu0 %v2957_v5  ;;  %2435 = vmatpush3.msra.mxu1 %v3074_v37  ;;  %v3512_v5 = vld [vmem:[#allocation4 + $0x170] sm:$0xff] }
 0x380   :  { %1142 = vmatprep.subr.mxu0 %v2966_v8  ;;  %2436 = vmatprep.subr.mxu1 %v3958_v1  ;;  %3988 = vst [vmem:[#allocation15_spill] sm:$0xff] %v3512_v5  ;;  %v1289_v8 = vsel %vm1288_vm5, 1, %v3982_v58 }
 0x381   :  { %1143 = vmatpush1.msra.mxu0 %v2969_v9  ;;  %2437 = vmatpush3.msra.mxu1 %v3080_v38 }
 0x382   :  { %1144 = vmatprep.subr.mxu0 %v2972_v10  ;;  %2438 = vmatprep.subr.mxu1 %v3958_v1 }
 0x383   :  { %1145 = vmatpush1.msra.mxu0 %v2976_v11  ;;  %2439 = vmatpush3.msra.mxu1 %v3086_v39 }
 0x384   :  { %1146 = vmatprep.subr.mxu0 %v2985_v14  ;;  %2440 = vmatprep.subr.mxu1 %v3958_v1 }
 0x385   :  { %1147 = vmatpush1.msra.mxu0 %v2988_v15  ;;  %2441 = vmatpush3.msra.mxu1 %v3092_v40 }
 0x386   :  { %1148 = vmatprep.subr.mxu0 %v2991_v16  ;;  %2442 = vmatprep.subr.mxu1 %v3958_v1  ;;  %v3989_v16 = vld [vmem:[#allocation30_spill] sm:$0xff] }
 0x387   :  { %1149 = vmatpush1.msra.mxu0 %v2995_v17  ;;  %2443 = vmatpush3.msra.mxu1 %v3098_v41 }
 0x388   :  { %1150 = vmatprep.subr.mxu0 %v3002_v19  ;;  %2444 = vmatprep.subr.mxu1 %v3958_v1 }
 0x389   :  { %1151 = vmatpush1.msra.mxu0 %v3005_v20  ;;  %2445 = vmatpush3.msra.mxu1 %v3104_v42 }
 0x38a   :  { %1152 = vmatprep.subr.mxu0 %v3008_v21  ;;  %2446 = vmatprep.subr.mxu1 %v3958_v1  ;;  %v3990_v21 = vld [vmem:[#allocation31_spill] sm:$0xff] }
 0x38b   :  { %1153 = vmatpush1.msra.mxu0 %v3959_v22  ;;  %2447 = vmatpush3.msra.mxu1 %v3960_v46  ;;  %v3991_v46 = vld [vmem:[#allocation43_spill] sm:$0xff] }
 0x38c   :  { %1154 = vmatprep.subr.mxu0 %v3961_v44  ;;  %2448 = vmatprep.subr.mxu1 %v3958_v1 }
 0x38d   :  { %1155 = vmatpush1.msra.mxu0 %v3975_v47  ;;  %2449 = vmatpush3.msra.mxu1 %v3976_v48 }
 0x38e   :  { %1156 = vmatprep.subr.mxu0 %v3977_v49  ;;  %2450 = vmatprep.subr.mxu1 %v3958_v1 }
 0x38f   :  { %1157 = vmatpush1.msra.mxu0 %v3978_v52  ;;  %1190 = vmatprep.mubr.f32.mxu0 %v3958_v1 }
 0x390   :  { %2451 = vmatpush3.msra.mxu1 %v3979_v53  ;;  %2452 = vmatprep.mubr.msk.f32.mxu1 %vm2821_vm1, %v3958_v1 }
 0x391   :  { %1295 = vmatprep.subr.mxu0 %v3512_v5  ;;  %2455 = vmatprep.subr.mxu1 %v3958_v1 }
 0x392   :  { %1291 = vperm.xlu0 %2573, %v1289_v8   ;;  %v3591_v8 = vld [vmem:[#allocation4 + $0x90] sm:$0xff] }
 0x430   :  { %v1023_v9 = vpop.f32.mrf.mxu0  ;;  %v1094_v10 = vpop.f32.mrf.mxu1 }
 0x431   :  { %v1024_v11 = vadd.f32 %v1023_v9, %v3983_v2  ;;  %v1095_v41 = vadd.f32 %v1094_v10, %v3252_v7  ;;  %v3594_v9 = vld [vmem:[#allocation4 + $0xa0] sm:$0xff] }
 0x432   :  { %v1025_v14 = vpop.f32.mrf.mxu0  ;;  %v2419_v15 = vpop.f32.mrf.mxu1  ;;  %v3597_v10 = vld [vmem:[#allocation4 + $0x80] sm:$0xff] }
 0x433   :  { %v1098_v17 = vadd.f32 %v1024_v11, %v3989_v16  ;;  %v1026_v20 = vadd.f32 %v1025_v14, %v3236_v25  ;;  %v3601_v11 = vld [vmem:[#allocation4 + $0x78] sm:$0xff]  ;;  %v3604_v14 = vld [vmem:[#allocation4 + $0x88] sm:$0xff]  ;;  %v3611_v16 = vld [vmem:[#allocation4 + $0x60] sm:$0xff] }
 0x434   :  { %v3607_v15 = vld [vmem:[#allocation4 + $0x68] sm:$0xff] }
 0x435   :  { %v2066_v19 = vmul.f32 -1.442695, %v1098_v17  ;;  %v1105_v35 = vadd.f32 %v1026_v20, %v3990_v21  ;;  %v3614_v17 = vld [vmem:[#allocation4 + $0x70] sm:$0xff]  ;;  %v3621_v20 = vld [vmem:[#allocation4 + $0x48] sm:$0xff]  ;;  %v3624_v21 = vld [vmem:[#allocation4 + $0x58] sm:$0xff] }
 0x437   :  { %2605 = vpow2.f32 %v2066_v19  ;;  %v2067_v36 = vmul.f32 -1.442695, %v1105_v35  ;;  %v3617_v19 = vld [vmem:[#allocation4 + $0x50] sm:$0xff]  ;;  %v3627_v35 = vld [vmem:[#allocation4 + $0x38] sm:$0xff] }
 0x439   :  { %2607 = vpow2.f32 %v2067_v36  ;;  %v3631_v36 = vld [vmem:[#allocation4 + $0x30] sm:$0xff] }
 0x444   :  { %v2606_v37 = vpop.eup %2605 }
 0x445   :  { %v1102_v38 = vadd.f32 1.0, %v2606_v37  ;;  %v3634_v37 = vld [vmem:[#allocation4 + $0x40] sm:$0xff] }
 0x446   :  { %v2608_v39 = vpop.eup %2607 }
 0x447   :  { %2609 = vrcp.f32 %v1102_v38  ;;  %v1109_v40 = vadd.f32 1.0, %v2608_v39  ;;  %v3637_v38 = vld [vmem:[#allocation4 + $0x20] sm:$0xff]  ;;  %v3641_v39 = vld [vmem:[#allocation4 + $0x18] sm:$0xff] }
 0x448   :  { %3993 = vst [vmem:[#allocation27_spill] sm:$0xff] %v3641_v39 }
 0x449   :  { %2611 = vrcp.f32 %v1109_v40  ;;  %v3644_v40 = vld [vmem:[#allocation4 + $0x28] sm:$0xff] }
 0x44a   :  { %3994 = vst [vmem:[#allocation39_spill] sm:$0xff] %v3644_v40 }
 0x454   :  { %v2610_v42 = vpop.eup %2609 }
 0x455   :  { %v1112_v22 = vmul.f32 %v2610_v42, %v1095_v41  ;;  %v3647_v41 = vld [vmem:[#allocation4 + $0x8] sm:$0xff]  ;;  %v3651_v42 = vld [vmem:[#allocation4] sm:$0xff] }
 0x456   :  { %v2612_v47 = vpop.eup %2611  ;;  %3995 = vst [vmem:[#allocation16_spill] sm:$0xff] %v3647_v41  ;;  %3996 = vst [vmem:[#allocation21_spill] sm:$0xff] %v3651_v42 }
 0x457   :  { %v1113_v44 = vadd.f32 %v1112_v22, %v3991_v46  ;;  %v1115_v48 = vsub.f32 1.0, %v2612_v47  ;;  %v1117_v53 = vmul.f32 %v2612_v47, %v3415_v56  ;;  %v3655_v22 = vld [vmem:[#allocation4 + $0x10] sm:$0xff]  ;;  %v3665_v46 = vld [vmem:[%s3862_s0] sm:$0xff] }
 0x458   :  { %3997 = vst [vmem:[#allocation17_spill] sm:$0xff] %v3655_v22  ;;  %3998 = vst [vmem:[#allocation19_spill] sm:$0xff] %v3665_v46  ;;  %vm1457_vm6 = vcmp.eq.s32.totalorder %v3665_v46, 5  ;;  %v3999_v56 = vld [vmem:[#allocation32_spill] sm:$0xff] }
 0x459   :  { %2613 = vtanh.f32 %v1113_v44  ;;  %v1458_v44 = vsel %vm1457_vm6, 1, %v3982_v58 }
 0x45a   :  { %1460 = vperm.xlu1 %2574, %v1458_v44  }
 0x466   :  { %v2614_v49 = vpop.eup %2613 }
 0x467   :  { %v1116_v52 = vmul.f32 %v2614_v49, %v1115_v48 }
 0x469   :  { %v3525_v55 = vadd.f32 %v1117_v53, %v1116_v52 }
 0x46b   :  { %3992 = vst [vmem:[#allocation26_spill] sm:$0xff] %v3525_v55  ;;  %1191 = vmatmul.mubr.f32.vlgmr.msra.gmra.mxu0 %v3525_v55  ;;  %2453 = vmatmul.mubr.f32.vlgmr.msra.gmra.mxu1 %v3525_v55 }
 0x46c   :  { %1296 = vmatpush1.msra.mxu0 %v3419_v18  ;;  %2456 = vmatpush3.msra.mxu1 %v3530_v29 }
 0x46d   :  { %1297 = vmatprep.subr.mxu0 %v3423_v61  ;;  %2457 = vmatprep.subr.mxu1 %v3958_v1 }
 0x46e   :  { %1298 = vmatpush1.msra.mxu0 %v3427_v57  ;;  %2458 = vmatpush3.msra.mxu1 %v3536_v63 }
 0x46f   :  { %1299 = vmatprep.subr.mxu0 %v3431_v0  ;;  %2459 = vmatprep.subr.mxu1 %v3958_v1 }
 0x470   :  { %1300 = vmatpush1.msra.mxu0 %v3435_v51  ;;  %2460 = vmatpush3.msra.mxu1 %v3542_v6 }
 0x471   :  { %1301 = vmatprep.subr.mxu0 %v3439_v23  ;;  %2461 = vmatprep.subr.mxu1 %v3958_v1 }
 0x472   :  { %1302 = vmatpush1.msra.mxu0 %v3443_v12  ;;  %2462 = vmatpush3.msra.mxu1 %v3548_v13 }
 0x473   :  { %1303 = vmatprep.subr.mxu0 %v3447_v30  ;;  %2463 = vmatprep.subr.mxu1 %v3958_v1 }
 0x474   :  { %1304 = vmatpush1.msra.mxu0 %v3451_v45  ;;  %2464 = vmatpush3.msra.mxu1 %v3554_v33 }
 0x475   :  { %1305 = vmatprep.subr.mxu0 %v3455_v31  ;;  %2465 = vmatprep.subr.mxu1 %v3958_v1 }
 0x476   :  { %1306 = vmatpush1.msra.mxu0 %v3459_v50  ;;  %2466 = vmatpush3.msra.mxu1 %v3560_v43 }
 0x477   :  { %1307 = vmatprep.subr.mxu0 %v3463_v32  ;;  %2467 = vmatprep.subr.mxu1 %v3958_v1 }
 0x478   :  { %1308 = vmatpush1.msra.mxu0 %v3467_v62  ;;  %2468 = vmatpush3.msra.mxu1 %v3566_v27 }
 0x479   :  { %1309 = vmatprep.subr.mxu0 %v3471_v34  ;;  %2469 = vmatprep.subr.mxu1 %v3958_v1 }
 0x47a   :  { %1310 = vmatpush1.msra.mxu0 %v3571_v28  ;;  %2470 = vmatpush3.msra.mxu1 %v3574_v54 }
 0x47b   :  { %1311 = vmatprep.subr.mxu0 %v3577_v59  ;;  %2471 = vmatprep.subr.mxu1 %v3958_v1 }
 0x47c   :  { %1312 = vmatpush1.msra.mxu0 %v3581_v60  ;;  %2472 = vmatpush3.msra.mxu1 %v3584_v3 }
 0x47d   :  { %1313 = vmatprep.subr.mxu0 %v3587_v4  ;;  %2473 = vmatprep.subr.mxu1 %v3958_v1 }
 0x47e   :  { %1314 = vmatpush1.msra.mxu0 %v3591_v8  ;;  %2474 = vmatpush3.msra.mxu1 %v3594_v9 }
 0x47f   :  { %1315 = vmatprep.subr.mxu0 %v3597_v10  ;;  %2475 = vmatprep.subr.mxu1 %v3958_v1 }
 0x480   :  { %1316 = vmatpush1.msra.mxu0 %v3601_v11  ;;  %2476 = vmatpush3.msra.mxu1 %v3604_v14 }
 0x481   :  { %1317 = vmatprep.subr.mxu0 %v3607_v15  ;;  %2477 = vmatprep.subr.mxu1 %v3958_v1 }
 0x482   :  { %1318 = vmatpush1.msra.mxu0 %v3611_v16  ;;  %2478 = vmatpush3.msra.mxu1 %v3614_v17 }
 0x483   :  { %1319 = vmatprep.subr.mxu0 %v3617_v19  ;;  %2479 = vmatprep.subr.mxu1 %v3958_v1 }
 0x484   :  { %1320 = vmatpush1.msra.mxu0 %v3621_v20  ;;  %2480 = vmatpush3.msra.mxu1 %v3624_v21 }
 0x485   :  { %1321 = vmatprep.subr.mxu0 %v3627_v35  ;;  %2481 = vmatprep.subr.mxu1 %v3958_v1 }
 0x486   :  { %1322 = vmatpush1.msra.mxu0 %v3631_v36  ;;  %2482 = vmatpush3.msra.mxu1 %v3634_v37 }
 0x487   :  { %1323 = vmatprep.subr.mxu0 %v3637_v38  ;;  %2483 = vmatprep.subr.mxu1 %v3958_v1 }
 0x488   :  { %1324 = vmatpush1.msra.mxu0 %v3641_v39  ;;  %2484 = vmatpush3.msra.mxu1 %v3644_v40 }
 0x489   :  { %1325 = vmatprep.subr.mxu0 %v3647_v41  ;;  %2485 = vmatprep.subr.mxu1 %v3958_v1 }
 0x48a   :  { %1326 = vmatpush1.msra.mxu0 %v3651_v42  ;;  %1359 = vmatprep.mubr.f32.mxu0 %v3958_v1 }
 0x48b   :  { %2486 = vmatpush3.msra.mxu1 %v3655_v22  ;;  %2487 = vmatprep.mubr.msk.f32.mxu1 %vm2821_vm1, %v3958_v1  ;;  %v4000_v22 = vld [vmem:[#allocation33_spill] sm:$0xff] }
 0x48c   :  { %1464 = vmatprep.subr.mxu0 %v3512_v5  ;;  %2490 = vmatprep.subr.mxu1 %v3958_v1 }
 0x52b   :  { %v1192_v47 = vpop.f32.mrf.mxu0  ;;  %v1263_v48 = vpop.f32.mrf.mxu1 }
 0x52c   :  { %v1193_v49 = vadd.f32 %v1192_v47, %v3983_v2  ;;  %v1264_v39 = vadd.f32 %v1263_v48, %v3252_v7  ;;  %v4009_v48 = vmov 0  }
 0x52d   :  { %v1194_v52 = vpop.f32.mrf.mxu0  ;;  %v2454_v53 = vpop.f32.mrf.mxu1 }
 0x52e   :  { %v1267_v24 = vadd.f32 %v1193_v49, %v3999_v56  ;;  %v1195_v5 = vadd.f32 %v1194_v52, %v3236_v25  ;;  %v4001_v53 = vld [vmem:[#allocation46_spill] sm:$0xff] }
 0x530   :  { %v2068_v26 = vmul.f32 -1.442695, %v1267_v24  ;;  %v1274_v42 = vadd.f32 %v1195_v5, %v4000_v22  ;;  %v4007_v22 = vld [vmem:[#allocation15_spill] sm:$0xff] }
 0x532   :  { %2615 = vpow2.f32 %v2068_v26  ;;  %v2069_v41 = vmul.f32 -1.442695, %v1274_v42  ;;  %v4006_v42 = vld [vmem:[#allocation17_spill] sm:$0xff] }
 0x534   :  { %2617 = vpow2.f32 %v2069_v41 }
 0x53f   :  { %v2616_v46 = vpop.eup %2615 }
 0x540   :  { %v1271_v40 = vadd.f32 1.0, %v2616_v46  ;;  %v4008_v46 = vld [vmem:[#allocation19_spill] sm:$0xff] }
 0x541   :  { %v2618_v44 = vpop.eup %2617  ;;  %vm1626_vm7 = vcmp.eq.s32.totalorder %v4008_v46, 6 }
 0x542   :  { %2619 = vrcp.f32 %v1271_v40  ;;  %v1278_v58 = vadd.f32 1.0, %v2618_v44  ;;  %v4005_v40 = vld [vmem:[#allocation21_spill] sm:$0xff]  ;;  %v1627_v44 = vsel %vm1626_vm7, 1, %v4009_v48 }
 0x543   :  { %1629 = vperm.xlu0 %2573, %v1627_v44  }
 0x544   :  { %2621 = vrcp.f32 %v1278_v58  ;;  %v4002_v58 = vld [vmem:[#allocation27_spill] sm:$0xff] }
 0x54f   :  { %v2620_v47 = vpop.eup %2619 }
 0x550   :  { %v1281_v2 = vmul.f32 %v2620_v47, %v1264_v39  ;;  %v4004_v39 = vld [vmem:[#allocation16_spill] sm:$0xff] }
 0x551   :  { %v2622_v24 = vpop.eup %2621 }
 0x552   :  { %v1282_v56 = vadd.f32 %v1281_v2, %v4001_v53  ;;  %v1284_v49 = vsub.f32 1.0, %v2622_v24  ;;  %v1286_v5 = vmul.f32 %v2622_v24, %v3525_v55  ;;  %v4003_v2 = vld [vmem:[#allocation39_spill] sm:$0xff] }
 0x554   :  { %2623 = vtanh.f32 %v1282_v56  ;;  %v4010_v56 = vld [vmem:[#allocation41_spill] sm:$0xff] }
 0x561   :  { %v2624_v26 = vpop.eup %2623 }
 0x562   :  { %v1285_v52 = vmul.f32 %v2624_v26, %v1284_v49 }
 0x564   :  { %v3676_v41 = vadd.f32 %v1286_v5, %v1285_v52  ;;  %v4011_v52 = vld [vmem:[#allocation35_spill] sm:$0xff] }
 0x566   :  { %1360 = vmatmul.mubr.f32.vlgmr.msra.gmra.mxu0 %v3676_v41  ;;  %2488 = vmatmul.mubr.f32.vlgmr.msra.gmra.mxu1 %v3676_v41 }
 0x567   :  { %1465 = vmatpush1.msra.mxu0 %v3419_v18  ;;  %2491 = vmatpush3.msra.mxu1 %v3530_v29 }
 0x568   :  { %1466 = vmatprep.subr.mxu0 %v3423_v61  ;;  %2492 = vmatprep.subr.mxu1 %v3958_v1 }
 0x569   :  { %1467 = vmatpush1.msra.mxu0 %v3427_v57  ;;  %2493 = vmatpush3.msra.mxu1 %v3536_v63 }
 0x56a   :  { %1468 = vmatprep.subr.mxu0 %v3431_v0  ;;  %2494 = vmatprep.subr.mxu1 %v3958_v1 }
 0x56b   :  { %1469 = vmatpush1.msra.mxu0 %v3435_v51  ;;  %2495 = vmatpush3.msra.mxu1 %v3542_v6 }
 0x56c   :  { %1470 = vmatprep.subr.mxu0 %v3439_v23  ;;  %2496 = vmatprep.subr.mxu1 %v3958_v1 }
 0x56d   :  { %1471 = vmatpush1.msra.mxu0 %v3443_v12  ;;  %2497 = vmatpush3.msra.mxu1 %v3548_v13 }
 0x56e   :  { %1472 = vmatprep.subr.mxu0 %v3447_v30  ;;  %2498 = vmatprep.subr.mxu1 %v3958_v1 }
 0x56f   :  { %1473 = vmatpush1.msra.mxu0 %v3451_v45  ;;  %2499 = vmatpush3.msra.mxu1 %v3554_v33 }
 0x570   :  { %1474 = vmatprep.subr.mxu0 %v3455_v31  ;;  %2500 = vmatprep.subr.mxu1 %v3958_v1 }
 0x571   :  { %1475 = vmatpush1.msra.mxu0 %v3459_v50  ;;  %2501 = vmatpush3.msra.mxu1 %v3560_v43 }
 0x572   :  { %1476 = vmatprep.subr.mxu0 %v3463_v32  ;;  %2502 = vmatprep.subr.mxu1 %v3958_v1 }
 0x573   :  { %1477 = vmatpush1.msra.mxu0 %v3467_v62  ;;  %2503 = vmatpush3.msra.mxu1 %v3566_v27 }
 0x574   :  { %1478 = vmatprep.subr.mxu0 %v3471_v34  ;;  %2504 = vmatprep.subr.mxu1 %v3958_v1 }
 0x575   :  { %1479 = vmatpush1.msra.mxu0 %v3571_v28  ;;  %2505 = vmatpush3.msra.mxu1 %v3574_v54 }
 0x576   :  { %1480 = vmatprep.subr.mxu0 %v3577_v59  ;;  %2506 = vmatprep.subr.mxu1 %v3958_v1 }
 0x577   :  { %1481 = vmatpush1.msra.mxu0 %v3581_v60  ;;  %2507 = vmatpush3.msra.mxu1 %v3584_v3 }
 0x578   :  { %1482 = vmatprep.subr.mxu0 %v3587_v4  ;;  %2508 = vmatprep.subr.mxu1 %v3958_v1 }
 0x579   :  { %1483 = vmatpush1.msra.mxu0 %v3591_v8  ;;  %2509 = vmatpush3.msra.mxu1 %v3594_v9 }
 0x57a   :  { %1484 = vmatprep.subr.mxu0 %v3597_v10  ;;  %2510 = vmatprep.subr.mxu1 %v3958_v1 }
 0x57b   :  { %1485 = vmatpush1.msra.mxu0 %v3601_v11  ;;  %2511 = vmatpush3.msra.mxu1 %v3604_v14 }
 0x57c   :  { %1486 = vmatprep.subr.mxu0 %v3607_v15  ;;  %2512 = vmatprep.subr.mxu1 %v3958_v1 }
 0x57d   :  { %1487 = vmatpush1.msra.mxu0 %v3611_v16  ;;  %2513 = vmatpush3.msra.mxu1 %v3614_v17 }
 0x57e   :  { %1488 = vmatprep.subr.mxu0 %v3617_v19  ;;  %2514 = vmatprep.subr.mxu1 %v3958_v1 }
 0x57f   :  { %1489 = vmatpush1.msra.mxu0 %v3621_v20  ;;  %2515 = vmatpush3.msra.mxu1 %v3624_v21 }
 0x580   :  { %1490 = vmatprep.subr.mxu0 %v3627_v35  ;;  %2516 = vmatprep.subr.mxu1 %v3958_v1 }
 0x581   :  { %1491 = vmatpush1.msra.mxu0 %v3631_v36  ;;  %2517 = vmatpush3.msra.mxu1 %v3634_v37 }
 0x582   :  { %1492 = vmatprep.subr.mxu0 %v3637_v38  ;;  %2518 = vmatprep.subr.mxu1 %v3958_v1 }
 0x583   :  { %1493 = vmatpush1.msra.mxu0 %v4002_v58  ;;  %2519 = vmatpush3.msra.mxu1 %v4003_v2 }
 0x584   :  { %1494 = vmatprep.subr.mxu0 %v4004_v39  ;;  %2520 = vmatprep.subr.mxu1 %v3958_v1 }
 0x585   :  { %1495 = vmatpush1.msra.mxu0 %v4005_v40  ;;  %1528 = vmatprep.mubr.f32.mxu0 %v3958_v1 }
 0x586   :  { %2521 = vmatpush3.msra.mxu1 %v4006_v42  ;;  %2522 = vmatprep.mubr.msk.f32.mxu1 %vm2821_vm1, %v3958_v1 }
 0x587   :  { %1633 = vmatprep.subr.mxu0 %v4007_v22  ;;  %2525 = vmatprep.subr.mxu1 %v3958_v1  ;;  %v4012_v22 = vld [vmem:[#allocation36_spill] sm:$0xff] }
 0x626   :  { %v1361_v47 = vpop.f32.mrf.mxu0  ;;  %v1432_v53 = vpop.f32.mrf.mxu1 }
 0x627   :  { %v1362_v24 = vadd.f32 %v1361_v47, %v4010_v56  ;;  %v1433_v58 = vadd.f32 %v1432_v53, %v3252_v7  ;;  %v1851_v53 = vld [vmem:[#allocation7 + $0x188] sm:$0xff] }
 0x628   :  { %v1363_v49 = vpop.f32.mrf.mxu0  ;;  %v2489_v26 = vpop.f32.mrf.mxu1 }
 0x629   :  { %v1436_v5 = vadd.f32 %v1362_v24, %v4011_v52  ;;  %v1364_v42 = vadd.f32 %v1363_v49, %v3236_v25  ;;  %v4013_v26 = vld [vmem:[#allocation45_spill] sm:$0xff] }
 0x62b   :  { %v2070_v55 = vmul.f32 -1.442695, %v1436_v5  ;;  %v1443_v40 = vadd.f32 %v1364_v42, %v4012_v22  ;;  %v1855_v42 = vld [vmem:[#allocation7 + $0x1a8] sm:$0xff]  ;;  %v1850_v22 = vld [vmem:[#allocation7 + $0x180] sm:$0xff] }
 0x62d   :  { %2625 = vpow2.f32 %v2070_v55  ;;  %v2071_v39 = vmul.f32 -1.442695, %v1443_v40 }
 0x62f   :  { %2627 = vpow2.f32 %v2071_v39 }
 0x63a   :  { %v2626_v46 = vpop.eup %2625 }
 0x63b   :  { %v1440_v2 = vadd.f32 1.0, %v2626_v46  ;;  %v1857_v46 = vld [vmem:[#allocation7 + $0x1b8] sm:$0xff] }
 0x63c   :  { %v2628_v44 = vpop.eup %2627 }
 0x63d   :  { %2629 = vrcp.f32 %v1440_v2  ;;  %v1447_v48 = vadd.f32 1.0, %v2628_v44  ;;  %v1860_v2 = vld [vmem:[#allocation7 + $0x1d0] sm:$0xff] }
 0x63e   :  { %v1852_v44 = vld [vmem:[#allocation7 + $0x190] sm:$0xff] }
 0x63f   :  { %2631 = vrcp.f32 %v1447_v48  ;;  %v1856_v48 = vld [vmem:[#allocation7 + $0x1b0] sm:$0xff] }
 0x64a   :  { %v2630_v47 = vpop.eup %2629 }
 0x64b   :  { %v1450_v56 = vmul.f32 %v2630_v47, %v1433_v58  ;;  %v1858_v58 = vld [vmem:[#allocation7 + $0x1c0] sm:$0xff]  ;;  %v1847_v47 = vld [vmem:[#allocation7 + $0x168] sm:$0xff] }
 0x64c   :  { %v2632_v52 = vpop.eup %2631 }
 0x64d   :  { %v1451_v24 = vadd.f32 %v1450_v56, %v4013_v26  ;;  %v1453_v49 = vsub.f32 1.0, %v2632_v52  ;;  %v1455_v40 = vmul.f32 %v2632_v52, %v3676_v41  ;;  %v1853_v56 = vld [vmem:[#allocation7 + $0x198] sm:$0xff]  ;;  %v1848_v52 = vld [vmem:[#allocation7 + $0x170] sm:$0xff] }
 0x64e   :  { %v1849_v26 = vld [vmem:[#allocation7 + $0x178] sm:$0xff] }
 0x64f   :  { %2633 = vtanh.f32 %v1451_v24  ;;  %v1846_v24 = vld [vmem:[#allocation7 + $0x160] sm:$0xff] }
 0x65c   :  { %v2634_v55 = vpop.eup %2633 }
 0x65d   :  { %v1454_v5 = vmul.f32 %v2634_v55, %v1453_v49  ;;  %v1843_v49 = vld [vmem:[#allocation7 + $0x148] sm:$0xff]  ;;  %v1845_v55 = vld [vmem:[#allocation7 + $0x158] sm:$0xff] }
 0x65f   :  { %v3756_v39 = vadd.f32 %v1455_v40, %v1454_v5  ;;  %v1842_v5 = vld [vmem:[#allocation7 + $0x140] sm:$0xff]  ;;  %v1844_v40 = vld [vmem:[#allocation7 + $0x150] sm:$0xff] }
 0x661   :  { %1529 = vmatmul.mubr.f32.vlgmr.msra.gmra.mxu0 %v3756_v39  ;;  %2523 = vmatmul.mubr.f32.vlgmr.msra.gmra.mxu1 %v3756_v39 }
 0x662   :  { %1634 = vmatpush1.msra.mxu0 %v3419_v18  ;;  %2526 = vmatpush3.msra.mxu1 %v3530_v29  ;;  %v4014_v18 = vld [vmem:[#allocation27_spill] sm:$0xff]  ;;  %v4022_v29 = vld [vmem:[#allocation37_spill] sm:$0xff] }
 0x663   :  { %1635 = vmatprep.subr.mxu0 %v3423_v61  ;;  %2527 = vmatprep.subr.mxu1 %v3958_v1  ;;  %v4015_v61 = vld [vmem:[#allocation39_spill] sm:$0xff] }
 0x664   :  { %1636 = vmatpush1.msra.mxu0 %v3427_v57  ;;  %2528 = vmatpush3.msra.mxu1 %v3536_v63  ;;  %v4016_v57 = vld [vmem:[#allocation16_spill] sm:$0xff] }
 0x665   :  { %1637 = vmatprep.subr.mxu0 %v3431_v0  ;;  %2529 = vmatprep.subr.mxu1 %v3958_v1  ;;  %v4017_v0 = vld [vmem:[#allocation21_spill] sm:$0xff] }
 0x666   :  { %1638 = vmatpush1.msra.mxu0 %v3435_v51  ;;  %2530 = vmatpush3.msra.mxu1 %v3542_v6  ;;  %v4018_v51 = vld [vmem:[#allocation17_spill] sm:$0xff] }
 0x667   :  { %1639 = vmatprep.subr.mxu0 %v3439_v23  ;;  %2531 = vmatprep.subr.mxu1 %v3958_v1  ;;  %v4019_v23 = vld [vmem:[#allocation19_spill] sm:$0xff] }
 0x668   :  { %1640 = vmatpush1.msra.mxu0 %v3443_v12  ;;  %2532 = vmatpush3.msra.mxu1 %v3548_v13  ;;  %vm1795_vm8 = vcmp.eq.s32.totalorder %v4019_v23, 7  ;;  %v4020_v12 = vmov 0   ;;  %v1837_v23 = vld [vmem:[#allocation7 + $0x118] sm:$0xff] }
 0x669   :  { %1641 = vmatprep.subr.mxu0 %v3447_v30  ;;  %2533 = vmatprep.subr.mxu1 %v3958_v1  ;;  %v1796_v30 = vsel %vm1795_vm8, 1, %v4020_v12  ;;  %v1834_v12 = vld [vmem:[#allocation7 + $0x100] sm:$0xff] }
 0x66a   :  { %1642 = vmatpush1.msra.mxu0 %v3451_v45  ;;  %2534 = vmatpush3.msra.mxu1 %v3554_v33  ;;  %v4023_v33 = vld [vmem:[#allocation38_spill] sm:$0xff] }
 0x66b   :  { %1643 = vmatprep.subr.mxu0 %v3455_v31  ;;  %2535 = vmatprep.subr.mxu1 %v3958_v1 }
 0x66c   :  { %1644 = vmatpush1.msra.mxu0 %v3459_v50  ;;  %2536 = vmatpush3.msra.mxu1 %v3560_v43  ;;  %v4021_v50 = vld [vmem:[#allocation41_spill] sm:$0xff] }
 0x66d   :  { %1645 = vmatprep.subr.mxu0 %v3463_v32  ;;  %2537 = vmatprep.subr.mxu1 %v3958_v1 }
 0x66e   :  { %1646 = vmatpush1.msra.mxu0 %v3467_v62  ;;  %2538 = vmatpush3.msra.mxu1 %v3566_v27 }
 0x66f   :  { %1647 = vmatprep.subr.mxu0 %v3471_v34  ;;  %2539 = vmatprep.subr.mxu1 %v3958_v1 }
 0x670   :  { %1648 = vmatpush1.msra.mxu0 %v3571_v28  ;;  %2540 = vmatpush3.msra.mxu1 %v3574_v54 }
 0x671   :  { %1649 = vmatprep.subr.mxu0 %v3577_v59  ;;  %2541 = vmatprep.subr.mxu1 %v3958_v1 }
 0x672   :  { %1650 = vmatpush1.msra.mxu0 %v3581_v60  ;;  %2542 = vmatpush3.msra.mxu1 %v3584_v3 }
 0x673   :  { %1651 = vmatprep.subr.mxu0 %v3587_v4  ;;  %2543 = vmatprep.subr.mxu1 %v3958_v1 }
 0x674   :  { %1652 = vmatpush1.msra.mxu0 %v3591_v8  ;;  %2544 = vmatpush3.msra.mxu1 %v3594_v9  ;;  %v4024_v9 = vld [vmem:[#allocation48_spill] sm:$0xff] }
 0x675   :  { %1653 = vmatprep.subr.mxu0 %v3597_v10  ;;  %2545 = vmatprep.subr.mxu1 %v3958_v1 }
 0x676   :  { %1654 = vmatpush1.msra.mxu0 %v3601_v11  ;;  %2546 = vmatpush3.msra.mxu1 %v3604_v14 }
 0x677   :  { %1655 = vmatprep.subr.mxu0 %v3607_v15  ;;  %2547 = vmatprep.subr.mxu1 %v3958_v1 }
 0x678   :  { %1656 = vmatpush1.msra.mxu0 %v3611_v16  ;;  %2548 = vmatpush3.msra.mxu1 %v3614_v17 }
 0x679   :  { %1657 = vmatprep.subr.mxu0 %v3617_v19  ;;  %2549 = vmatprep.subr.mxu1 %v3958_v1 }
 0x67a   :  { %1658 = vmatpush1.msra.mxu0 %v3621_v20  ;;  %2550 = vmatpush3.msra.mxu1 %v3624_v21  ;;  %v1863_v20 = vld [vmem:[#allocation7 + $0x1e8] sm:$0xff]  ;;  %v1865_v21 = vld [vmem:[#allocation7 + $0x1f8] sm:$0xff] }
 0x67b   :  { %1659 = vmatprep.subr.mxu0 %v3627_v35  ;;  %2551 = vmatprep.subr.mxu1 %v3958_v1  ;;  %v1862_v35 = vld [vmem:[#allocation7 + $0x1e0] sm:$0xff] }
 0x67c   :  { %1660 = vmatpush1.msra.mxu0 %v3631_v36  ;;  %2552 = vmatpush3.msra.mxu1 %v3634_v37  ;;  %v1864_v36 = vld [vmem:[#allocation7 + $0x1f0] sm:$0xff]  ;;  %v1859_v37 = vld [vmem:[#allocation7 + $0x1c8] sm:$0xff] }
 0x67d   :  { %1661 = vmatprep.subr.mxu0 %v3637_v38  ;;  %2553 = vmatprep.subr.mxu1 %v3958_v1  ;;  %v1861_v38 = vld [vmem:[#allocation7 + $0x1d8] sm:$0xff] }
 0x67e   :  { %1662 = vmatpush1.msra.mxu0 %v4014_v18  ;;  %2554 = vmatpush3.msra.mxu1 %v4015_v61  ;;  %v1839_v18 = vld [vmem:[#allocation7 + $0x128] sm:$0xff]  ;;  %v1841_v61 = vld [vmem:[#allocation7 + $0x138] sm:$0xff] }
 0x67f   :  { %1663 = vmatprep.subr.mxu0 %v4016_v57  ;;  %2555 = vmatprep.subr.mxu1 %v3958_v1  ;;  %v1838_v57 = vld [vmem:[#allocation7 + $0x120] sm:$0xff] }
 0x680   :  { %1664 = vmatpush1.msra.mxu0 %v4017_v0  ;;  %1697 = vmatprep.mubr.f32.mxu0 %v3958_v1  ;;  %v1840_v0 = vld [vmem:[#allocation7 + $0x130] sm:$0xff] }
 0x681   :  { %2556 = vmatpush3.msra.mxu1 %v4018_v51  ;;  %2557 = vmatprep.mubr.msk.f32.mxu1 %vm2821_vm1, %v3958_v1  ;;  %v1835_v51 = vld [vmem:[#allocation7 + $0x108] sm:$0xff] }
 0x682   :  { %1798 = vperm.xlu1 %2574, %v1796_v30   ;;  %1888 = vmatprep.subr.mxu0 %v1863_v20  ;;  %v1836_v30 = vld [vmem:[#allocation7 + $0x110] sm:$0xff]  ;;  %v1806_v20 = vld [vmem:[#allocation7 + $0x20] sm:$0xff] }
 0x683   :  { %1959 = vmatprep.subr.mxu1 %v1865_v21  ;;  %v1808_v21 = vld [vmem:[#allocation7 + $0x30] sm:$0xff] }
 0x721   :  { %v1530_v45 = vpop.f32.mrf.mxu0  ;;  %v1601_v31 = vpop.f32.mrf.mxu1 }
 0x722   :  { %v1531_v32 = vadd.f32 %v1530_v45, %v4021_v50  ;;  %v1602_v3 = vadd.f32 %v1601_v31, %v3252_v7  ;;  %v1831_v45 = vld [vmem:[#allocation7 + $0xe8] sm:$0xff]  ;;  %v1833_v31 = vld [vmem:[#allocation7 + $0xf8] sm:$0xff] }
 0x723   :  { %v1532_v62 = vpop.f32.mrf.mxu0  ;;  %v2524_v34 = vpop.f32.mrf.mxu1 }
 0x724   :  { %v1605_v63 = vadd.f32 %v1531_v32, %v4022_v29  ;;  %v1533_v13 = vadd.f32 %v1532_v62, %v3236_v25  ;;  %v1830_v32 = vld [vmem:[#allocation7 + $0xe0] sm:$0xff]  ;;  %v1832_v62 = vld [vmem:[#allocation7 + $0xf0] sm:$0xff]  ;;  %v1827_v34 = vld [vmem:[#allocation7 + $0xc8] sm:$0xff] }
 0x725   :  { %v1829_v29 = vld [vmem:[#allocation7 + $0xd8] sm:$0xff] }
 0x726   :  { %v2072_v6 = vmul.f32 -1.442695, %v1605_v63  ;;  %v1612_v43 = vadd.f32 %v1533_v13, %v4023_v33  ;;  %v1826_v63 = vld [vmem:[#allocation7 + $0xc0] sm:$0xff]  ;;  %v1823_v13 = vld [vmem:[#allocation7 + $0xa8] sm:$0xff]  ;;  %v1825_v33 = vld [vmem:[#allocation7 + $0xb8] sm:$0xff] }
 0x728   :  { %2635 = vpow2.f32 %v2072_v6  ;;  %v2073_v27 = vmul.f32 -1.442695, %v1612_v43  ;;  %v1828_v6 = vld [vmem:[#allocation7 + $0xd0] sm:$0xff]  ;;  %v1822_v43 = vld [vmem:[#allocation7 + $0xa0] sm:$0xff] }
 0x72a   :  { %2637 = vpow2.f32 %v2073_v27  ;;  %v1824_v27 = vld [vmem:[#allocation7 + $0xb0] sm:$0xff] }
 0x735   :  { %v2636_v28 = vpop.eup %2635 }
 0x736   :  { %v1609_v54 = vadd.f32 1.0, %v2636_v28  ;;  %v1819_v28 = vld [vmem:[#allocation7 + $0x88] sm:$0xff] }
 0x737   :  { %v2638_v59 = vpop.eup %2637 }
 0x738   :  { %2639 = vrcp.f32 %v1609_v54  ;;  %v1616_v60 = vadd.f32 1.0, %v2638_v59  ;;  %v1821_v54 = vld [vmem:[#allocation7 + $0x98] sm:$0xff]  ;;  %v1818_v59 = vld [vmem:[#allocation7 + $0x80] sm:$0xff] }
 0x73a   :  { %2641 = vrcp.f32 %v1616_v60  ;;  %v1820_v60 = vld [vmem:[#allocation7 + $0x90] sm:$0xff] }
 0x745   :  { %v2640_v4 = vpop.eup %2639 }
 0x746   :  { %v1619_v8 = vmul.f32 %v2640_v4, %v1602_v3  ;;  %v1815_v3 = vld [vmem:[#allocation7 + $0x68] sm:$0xff]  ;;  %v1817_v4 = vld [vmem:[#allocation7 + $0x78] sm:$0xff] }
 0x747   :  { %v2642_v11 = vpop.eup %2641 }
 0x748   :  { %v1620_v10 = vadd.f32 %v1619_v8, %v4024_v9  ;;  %v1622_v14 = vsub.f32 1.0, %v2642_v11  ;;  %v1624_v17 = vmul.f32 %v2642_v11, %v3756_v39  ;;  %v1814_v8 = vld [vmem:[#allocation7 + $0x60] sm:$0xff]  ;;  %v1816_v9 = vld [vmem:[#allocation7 + $0x70] sm:$0xff]  ;;  %v1813_v11 = vld [vmem:[#allocation7 + $0x58] sm:$0xff] }
 0x74a   :  { %2643 = vtanh.f32 %v1620_v10  ;;  %v1811_v10 = vld [vmem:[#allocation7 + $0x48] sm:$0xff] }
 0x757   :  { %v2644_v15 = vpop.eup %2643 }
 0x758   :  { %v1623_v16 = vmul.f32 %v2644_v15, %v1622_v14  ;;  %v1810_v14 = vld [vmem:[#allocation7 + $0x40] sm:$0xff]  ;;  %v1812_v15 = vld [vmem:[#allocation7 + $0x50] sm:$0xff] }
 0x75a   :  { %v3834_v19 = vadd.f32 %v1624_v17, %v1623_v16  ;;  %v1807_v16 = vld [vmem:[#allocation7 + $0x28] sm:$0xff]  ;;  %v1809_v17 = vld [vmem:[#allocation7 + $0x38] sm:$0xff] }
 0x75c   :  { %1698 = vmatmul.mubr.f32.vlgmr.msra.gmra.mxu0 %v3834_v19  ;;  %2558 = vmatmul.mubr.f32.vlgmr.msra.gmra.mxu1 %v3834_v19 }
 0x75d   :  { %1952 = vmatprep.mubr.f32.mxu0 %v3958_v1  ;;  %2023 = vmatprep.mubr.f32.mxu1 %v3958_v1  ;;  %v1854_v1 = vld [vmem:[#allocation7 + $0x1a0] sm:$0xff] }
 0x75e   :  { %1889 = vmatpush1.msra.mxu0 %v1862_v35  ;;  %1960 = vmatpush1.msra.mxu1 %v1864_v36  ;;  %v1803_v35 = vld [vmem:[#allocation7 + $0x8] sm:$0xff]  ;;  %v1805_v36 = vld [vmem:[#allocation7 + $0x18] sm:$0xff] }
 0x75f   :  { %1890 = vmatprep.subr.mxu0 %v1859_v37  ;;  %1961 = vmatprep.subr.mxu1 %v1861_v38  ;;  %v1802_v37 = vld [vmem:[#allocation7] sm:$0xff]  ;;  %v1804_v38 = vld [vmem:[#allocation7 + $0x10] sm:$0xff] }
 0x760   :  { %1891 = vmatpush1.msra.mxu0 %v1858_v58  ;;  %1962 = vmatpush1.msra.mxu1 %v1860_v2 }
 0x761   :  { %1892 = vmatprep.subr.mxu0 %v1855_v42  ;;  %1963 = vmatprep.subr.mxu1 %v1857_v46 }
 0x762   :  { %1893 = vmatpush1.msra.mxu0 %v1854_v1  ;;  %1964 = vmatpush1.msra.mxu1 %v1856_v48  ;;  %v4025_v48 = vld [vmem:[#allocation40_spill] sm:$0xff] }
 0x763   :  { %1894 = vmatprep.subr.mxu0 %v1851_v53  ;;  %1965 = vmatprep.subr.mxu1 %v1853_v56 }
 0x764   :  { %1895 = vmatpush1.msra.mxu0 %v1850_v22  ;;  %1966 = vmatpush1.msra.mxu1 %v1852_v44  ;;  %v4026_v44 = vld [vmem:[#allocation42_spill] sm:$0xff] }
 0x765   :  { %1896 = vmatprep.subr.mxu0 %v1847_v47  ;;  %1967 = vmatprep.subr.mxu1 %v1849_v26 }
 0x766   :  { %1897 = vmatpush1.msra.mxu0 %v1846_v24  ;;  %1968 = vmatpush1.msra.mxu1 %v1848_v52 }
 0x767   :  { %1898 = vmatprep.subr.mxu0 %v1843_v49  ;;  %1969 = vmatprep.subr.mxu1 %v1845_v55 }
 0x768   :  { %1899 = vmatpush1.msra.mxu0 %v1842_v5  ;;  %1970 = vmatpush1.msra.mxu1 %v1844_v40 }
 0x769   :  { %1900 = vmatprep.subr.mxu0 %v1839_v18  ;;  %1971 = vmatprep.subr.mxu1 %v1841_v61  ;;  %v4027_v18 = vld [vmem:[#allocation47_spill] sm:$0xff] }
 0x76a   :  { %1901 = vmatpush1.msra.mxu0 %v1838_v57  ;;  %1972 = vmatpush1.msra.mxu1 %v1840_v0  ;;  %v616_v57 = vpop.permute.xlu0 %615 }
 0x76b   :  { %1902 = vmatprep.subr.mxu0 %v1835_v51  ;;  %1973 = vmatprep.subr.mxu1 %v1837_v23  ;;  %vm617_vm9 = vcmp.eq.s32.totalorder %v616_v57, 1 }
 0x76c   :  { %1903 = vmatpush1.msra.mxu0 %v1834_v12  ;;  %1974 = vmatpush1.msra.mxu1 %v1836_v30 }
 0x76d   :  { %1904 = vmatprep.subr.mxu0 %v1831_v45  ;;  %1975 = vmatprep.subr.mxu1 %v1833_v31  ;;  %v4028_v45 = vld [vmem:[#allocation49_spill] sm:$0xff] }
 0x76e   :  { %1905 = vmatpush1.msra.mxu0 %v1830_v32  ;;  %1976 = vmatpush1.msra.mxu1 %v1832_v62  ;;  %v785_v0 = vpop.permute.xlu0 %784  ;;  %v618_v31 = vsel %vm617_vm9, %v4028_v45, 0.0  ;;  %v4029_v32 = vld [vmem:[#allocation14_spill] sm:$0xff] }
 0x76f   :  { %1906 = vmatprep.subr.mxu0 %v1827_v34  ;;  %1977 = vmatprep.subr.mxu1 %v1829_v29  ;;  %vm786_vm10 = vcmp.eq.s32.totalorder %v785_v0, 1 }
 0x770   :  { %1907 = vmatpush1.msra.mxu0 %v1826_v63  ;;  %1978 = vmatpush1.msra.mxu1 %v1828_v6  ;;  %v787_v62 = vsel %vm786_vm10, %v4029_v32, %v618_v31  ;;  %v4030_v63 = vld [vmem:[#allocation20_spill] sm:$0xff] }
 0x771   :  { %1908 = vmatprep.subr.mxu0 %v1823_v13  ;;  %1979 = vmatprep.subr.mxu1 %v1825_v33  ;;  %v4031_v13 = vld [vmem:[#allocation26_spill] sm:$0xff] }
 0x772   :  { %1909 = vmatpush1.msra.mxu0 %v1822_v43  ;;  %1980 = vmatpush1.msra.mxu1 %v1824_v27  ;;  %v1292_v23 = vpop.permute.xlu0 %1291 }
 0x773   :  { %1910 = vmatprep.subr.mxu0 %v1819_v28  ;;  %1981 = vmatprep.subr.mxu1 %v1821_v54  ;;  %vm1293_vm13 = vcmp.eq.s32.totalorder %v1292_v23, 1 }
 0x774   :  { %1911 = vmatpush1.msra.mxu0 %v1818_v59  ;;  %1982 = vmatpush1.msra.mxu1 %v1820_v60 }
 0x775   :  { %1912 = vmatprep.subr.mxu0 %v1815_v3  ;;  %1983 = vmatprep.subr.mxu1 %v1817_v4 }
 0x776   :  { %1913 = vmatpush1.msra.mxu0 %v1814_v8  ;;  %1984 = vmatpush1.msra.mxu1 %v1816_v9  ;;  %v2822_v8 = vmov 1983009808  }
 0x777   :  { %1914 = vmatprep.subr.mxu0 %v1811_v10  ;;  %1985 = vmatprep.subr.mxu1 %v1813_v11  ;;  %v2037_v9 = vunpack.c.l.s4 %v2822_v8  ;;  %v4032_v10 = vld [vmem:[#allocation23_spill] sm:$0xff] }
 0x778   :  { %1915 = vmatpush1.msra.mxu0 %v1810_v14  ;;  %1986 = vmatpush1.msra.mxu1 %v1812_v15  ;;  %v1882_v11 = vsub.s32 3, %v4032_v10  ;;  %v1866_v14 = vld [vmem:[#allocation9] sm:$0xf] }
 0x779   :  { %1916 = vmatprep.subr.mxu0 %v1807_v16  ;;  %1987 = vmatprep.subr.mxu1 %v1809_v17  ;;  %v2038_v15 = vunpack.c.0.s8 %v2037_v9  ;;  %v4033_v16 = vld [vmem:[#allocation24_spill] sm:$0xff] }
 0x77a   :  { %1917 = vmatpush1.msra.mxu0 %v1806_v20  ;;  %1988 = vmatpush1.msra.mxu1 %v1808_v21  ;;  %v1871_v17 = vrot.slane %v1866_v14, %v4033_v16  ;;  %v4034_v20 = vld [vmem:[#allocation34_spill] sm:$0xff] }
 0x77b   :  { %1918 = vmatprep.subr.mxu0 %v1803_v35  ;;  %1989 = vmatprep.subr.mxu1 %v1805_v36  ;;  %v1879_v21 = vrot.slane %v1866_v14, %v4034_v20 }
 0x77c   :  { %1919 = vmatpush1.msra.mxu0 %v1802_v37  ;;  %1990 = vmatpush1.msra.mxu1 %v1804_v38  ;;  %v2041_v38 = vsub.s32 %v2038_v15, %v4032_v10 }
 0x81c   :  { %v1699_v58 = vpop.f32.mrf.mxu0  ;;  %v1770_v2 = vpop.f32.mrf.mxu1 }
 0x81d   :  { %v1700_v42 = vadd.f32 %v1699_v58, %v4021_v50  ;;  %v1771_v5 = vadd.f32 %v1770_v2, %v3252_v7  ;;  %v1630_v7 = vpop.permute.xlu0 %1629 }
 0x81e   :  { %v1701_v46 = vpop.f32.mrf.mxu0  ;;  %v2559_v1 = vpop.f32.mrf.mxu1  ;;  %vm1631_vm15 = vcmp.eq.s32.totalorder %v1630_v7, 1 }
 0x81f   :  { %v1774_v53 = vadd.f32 %v1700_v42, %v4025_v48  ;;  %v1702_v22 = vadd.f32 %v1701_v46, %v3236_v25  ;;  %v954_v25 = vpop.permute.xlu1 %953 }
 0x820   :  { %vm955_vm11 = vcmp.eq.s32.totalorder %v954_v25, 1 }
 0x821   :  { %v2074_v56 = vmul.f32 -1.442695, %v1774_v53  ;;  %v1781_v47 = vadd.f32 %v1702_v22, %v4026_v44  ;;  %v956_v6 = vsel %vm955_vm11, %v4030_v63, %v787_v62 }
 0x823   :  { %2645 = vpow2.f32 %v2074_v56  ;;  %v2075_v26 = vmul.f32 -1.442695, %v1781_v47  ;;  %v1123_v51 = vpop.permute.xlu1 %1122 }
 0x824   :  { %vm1124_vm12 = vcmp.eq.s32.totalorder %v1123_v51, 1 }
 0x825   :  { %2647 = vpow2.f32 %v2075_v26  ;;  %v1125_v33 = vsel %vm1124_vm12, %v4031_v13, %v956_v6 }
 0x826   :  { %v1294_v54 = vsel %vm1293_vm13, %v3676_v41, %v1125_v33  ;;  %v4035_v41 = vld [vmem:[#allocation25_spill] sm:$0xff] }
 0x827   :  { %v1461_v30 = vpop.permute.xlu1 %1460  ;;  %v1875_v35 = vrot.slane %v1866_v14, %v4035_v41 }
 0x828   :  { %vm1462_vm14 = vcmp.eq.s32.totalorder %v1461_v30, 1 }
 0x829   :  { %v1463_v59 = vsel %vm1462_vm14, %v3756_v39, %v1294_v54  ;;  %v1883_v39 = vrot.slane %v1866_v14, %v1882_v11 }
 0x82a   :  { %v1632_v3 = vsel %vm1631_vm15, %v3834_v19, %v1463_v59 }
 0x82b   :  { %v1799_v43 = vpop.permute.xlu1 %1798 }
 0x82c   :  { %vm1800_vm0 = vcmp.eq.s32.totalorder %v1799_v43, 1 }
 0x830   :  { %v2646_v24 = vpop.eup %2645 }
 0x831   :  { %v1778_v52 = vadd.f32 1.0, %v2646_v24 }
 0x832   :  { %v2648_v49 = vpop.eup %2647 }
 0x833   :  { %2649 = vrcp.f32 %v1778_v52  ;;  %v1785_v55 = vadd.f32 1.0, %v2648_v49 }
 0x835   :  { %2651 = vrcp.f32 %v1785_v55 }
 0x840   :  { %v2650_v50 = vpop.eup %2649 }
 0x841   :  { %v1788_v40 = vmul.f32 %v2650_v50, %v1771_v5 }
 0x842   :  { %v2652_v12 = vpop.eup %2651 }
 0x843   :  { %v1789_v61 = vadd.f32 %v1788_v40, %v4027_v18  ;;  %v1791_v34 = vsub.f32 1.0, %v2652_v12  ;;  %v1793_v28 = vmul.f32 %v2652_v12, %v3834_v19 }
 0x845   :  { %2653 = vtanh.f32 %v1789_v61 }
 0x852   :  { %v2654_v29 = vpop.eup %2653 }
 0x853   :  { %v1792_v27 = vmul.f32 %v2654_v29, %v1791_v34 }
 0x855   :  { %v1794_v60 = vadd.f32 %v1793_v28, %v1792_v27 }
 0x857   :  { %v1801_v4 = vsel %vm1800_vm0, %v1794_v60, %v1632_v3 }
 0x858   :  { %1953 = vmatmul.mubr.f32.vlgmr.msra.gmra.mxu0 %v1801_v4  ;;  %2024 = vmatmul.mubr.f32.vlgmr.msra.gmra.mxu1 %v1801_v4 }
 0x918   :  { %v1954_v36 = vpop.f32.mrf.mxu0  ;;  %v2025_v37 = vpop.f32.mrf.mxu1 }
 0x919   :  { %v1955_v2 = vadd.f32 %v1954_v36, %v1871_v17  ;;  %v2026_v42 = vadd.f32 %v2025_v37, %v1879_v21 }
 0x91a   :  { %v1956_v19 = vpop.f32.mrf.mxu0  ;;  %v2027_v58 = vpop.f32.mrf.mxu1 }
 0x91b   :  { %v1957_v46 = vadd.f32 %v1956_v19, %v1875_v35  ;;  %v2028_v1 = vadd.f32 %v2027_v58, %v1883_v39 }
 0x91d   :  { %v2034_v48 = vcombine.low %v1955_v2, %v1957_v46  ;;  %v2035_v53 = vcombine.low %v2026_v42, %v2028_v1 }
 0x91f   :  { %v2042_v56 = vrot.slane %v2034_v48, %v2041_v38  ;;  %v2049_v22 = vrot.slane %v2035_v53, %v2041_v38 }
 0x921   :  { %v2050_v44 = vcombine.low %v2042_v56, %v2049_v22 }
 0x923   :  { %2052 = vst [vmem:[%s3870_s8] sm:$0xff] %v2050_v44 }
 0x924   :  { %2057 = vsyncpa [#allocation3], 1 }
 0x925   :  { %2058 = vsyncpa [#allocation5], 1 }
 0x926   :  { %2059 = vsyncpa [#allocation8], 1 }

// kernel: ac_model_forward.3
= control target key start
LH: loop header
LB: loop body
LE: loop exit
PB: predicated region body
PF: predicated region fallthrough
CT: control target
= control target key end

     0   :  { %s8196_s6 = smov 1   ;;  %s8197_s10 = smov 2   ;;  %s9413_s0 = inlined_call_operand.smem [shape: u32[31], index: -1, kind: input, shape index: {}] }
   0x1   :  { %s8266_s5 = sld [smem:[%s9413_s0]]   ;;  %s8198_s14 = smov 3  }
   0x2   :  { %s8271_s9 = sld [smem:[%s9413_s0 + %s8196_s6]]   ;;  %s8199_s18 = smov 4  }
   0x3   :  { %s8276_s13 = sld [smem:[%s9413_s0 + %s8197_s10]]   ;;  %s8200_s22 = smov 5  }
   0x4   :  { %s8281_s17 = sld [smem:[%s9413_s0 + %s8198_s14]]   ;;  %s8201_s26 = smov 6  }
   0x5   :  { %s8286_s21 = sld [smem:[%s9413_s0 + %s8199_s18]]   ;;  %s8202_s30 = smov 7  }
   0x6   :  { %s8291_s25 = sld [smem:[%s9413_s0 + %s8200_s22]]   ;;  %s8203_s4 = smov 8  }
   0x7   :  { %9421 = sst [smem:[#allocation37_spill]] %s8266_s5  ;;  %s8204_s10 = smov 9  }
   0x8   :  { %9422 = sst [smem:[#allocation38_spill]] %s8271_s9  ;;  %s8205_s15 = smov 10  }
   0x9   :  { %9423 = sst [smem:[#allocation39_spill]] %s8276_s13  ;;  %s8206_s20 = smov 11  }
   0xa   :  { %9424 = sst [smem:[#allocation40_spill]] %s8281_s17  ;;  %s8208_s1 = smov 13  }
   0xb   :  { %9425 = sst [smem:[#allocation41_spill]] %s8286_s21  ;;  %s8209_s7 = smov 14  }
   0xc   :  { %9426 = sst [smem:[#allocation42_spill]] %s8291_s25  ;;  %s8211_s22 = smov 16  }
   0xd   :  { %s8296_s29 = sld [smem:[%s9413_s0 + %s8201_s26]]   ;;  %s8207_s26 = smov 12  }
   0xe   :  { %s8301_s3 = sld [smem:[%s9413_s0 + %s8202_s30]]   ;;  %s8212_s28 = smov 17  }
   0xf   :  { %s8306_s8 = sld [smem:[%s9413_s0 + %s8203_s4]]  }
  0x10   :  { %s8311_s14 = sld [smem:[%s9413_s0 + %s8204_s10]]  }
  0x11   :  { %s8316_s19 = sld [smem:[%s9413_s0 + %s8205_s15]]   ;;  %s8210_s15 = smov 15  }
  0x12   :  { %s8321_s24 = sld [smem:[%s9413_s0 + %s8206_s20]]  }
  0x13   :  { %s8326_s30 = sld [smem:[%s9413_s0 + %s8207_s26]]  }
  0x14   :  { %s8331_s6 = sld [smem:[%s9413_s0 + %s8208_s1]]  }
  0x15   :  { %9427 = sst [smem:[#allocation43_spill]] %s8306_s8 }
  0x16   :  { %s8336_s12 = sld [smem:[%s9413_s0 + %s8209_s7]]   ;;  %s8213_s7 = smov 18  }
  0x17   :  { %s8341_s20 = sld [smem:[%s9413_s0 + %s8210_s15]]   ;;  %s8214_s15 = smov 19  }
  0x18   :  { %9428 = sst [smem:[#allocation44_spill]] %s8321_s24 }
  0x19   :  { %s8346_s27 = sld [smem:[%s9413_s0 + %s8211_s22]]   ;;  %s8215_s22 = smov 20  }
  0x1a   :  { %9429 = sst [smem:[#allocation45_spill]] %s8331_s6 }
  0x1b   :  { %s8351_s4 = sld [smem:[%s9413_s0 + %s8212_s28]]   ;;  %s8216_s28 = smov 21  }
  0x1c   :  { %s8356_s13 = sld [smem:[%s9413_s0 + %s8213_s7]]   ;;  %s8217_s7 = smov 22  }
  0x1d   :  { %s8361_s8 = sld [smem:[%s9413_s0 + %s8214_s15]]   ;;  %s8218_s15 = smov 23  }
  0x1e   :  { %s8366_s9 = sld [smem:[%s9413_s0 + %s8215_s22]]   ;;  %s8219_s22 = smov 24  }
  0x1f   :  { %s8371_s6 = sld [smem:[%s9413_s0 + %s8216_s28]]   ;;  %s8220_s28 = smov 25  }
  0x20   :  { %s8376_s21 = sld [smem:[%s9413_s0 + %s8217_s7]]   ;;  %s8221_s7 = smov 26  }
  0x21   :  { %s8381_s24 = sld [smem:[%s9413_s0 + %s8218_s15]]   ;;  %s8222_s15 = smov 27  }
  0x22   :  { %s8386_s25 = sld [smem:[%s9413_s0 + %s8219_s22]]   ;;  %s8223_s22 = smov 28  }
  0x23   :  { %s8406_s17 = sld [smem:[%s9413_s0 + %s8223_s22]]  }
  0x25   :  { %9430 = sst [smem:[#allocation46_spill]] %s8371_s6 }
  0x26   :  { %9431 = sst [smem:[#allocation47_spill]] %s8376_s21 }
  0x27   :  { %9432 = sst [smem:[#allocation48_spill]] %s8381_s24 }
  0x28   :  { %s8391_s6 = sld [smem:[%s9413_s0 + %s8220_s28]]   ;;  %s8224_s28 = smov 29  }
  0x29   :  { %s8396_s21 = sld [smem:[%s9413_s0 + %s8221_s7]]   ;;  %s8225_s7 = smov 30  }
  0x2a   :  { %s8401_s24 = sld [smem:[%s9413_s0 + %s8222_s15]]  }
  0x2b   :  { %s8411_s5 = sld [smem:[%s9413_s0 + %s8224_s28]]  }
  0x2f   :  { %9433 = sst [smem:[#allocation49_spill]] %s8396_s21 }
  0x30   :  { %s8416_s21 = sld [smem:[%s9413_s0 + %s8225_s7]]  }
  0x31   :  { %67 = vsyncpa [#allocation3], 0 }
  0x32   :  { %68 = vsyncpa [#allocation5], 0 }
  0x33   :  { %69 = vsyncpa [#allocation8], 0 }
  0x34   :  { %70 = vsyncpa [#allocation11], 0 }
  0x35   :  { %71 = vsyncpa [#allocation14], 0 }
  0x36   :  { %72 = vsyncpa [#allocation17], 0 }
  0x37   :  { %73 = vsyncpa [#allocation20], 0 }
  0x38   :  { %74 = vsyncpa [#allocation23], 0 }
  0x39   :  { %75 = vsyncpa [#allocation26], 0  ;;  %s8226_s15 = smov [#allocation4]   ;;  %s8227_s18 = smov [#allocation7]  }
  0x3a   :  { %s104_s16 = sshll.u32 %s8226_s15, 4  ;;  %s128_s22 = sshll.u32 %s8227_s18, 4  ;;  %s105_s16 = int_to_ptr.vmem [resolvable:$true] %s104_s16  ;;  %s129_s22 = int_to_ptr.vmem [resolvable:$true] %s128_s22 }
  0x3b   :  { %s7846_s23 = scalar_lea.vmem %s105_s16, 32  ;;  %p7851_p1 = scmp.lt.s32.totalorder %s105_s16, %s105_s16 }
  0x3c   :  { %p7847_p0 = scmp.ne.s32.totalorder %s105_s16, %s7846_s23  ;;  %p7852_p2 = scmp.lt.s32.totalorder %s7846_s23, %s7846_s23 }
  0x3e   :  { %p7853_p3 = por %p7852_p2, %p7851_p1 }
  0x40   :  { %p7854_p4 = pnand %p7853_p3, %p7847_p0 }
  0x42   :  { %7857 = shalt.err (!%p7854_p4)
}
  0x43   :  { %107 = dma.hbm_to_vmem [thread:$0]  %s8301_s3, 32, %s105_s16, [#allocation5]  }
  0x44   :  { %s7866_s0 = scalar_lea.vmem %s129_s22, 16  ;;  %s7870_s26 = scalar_lea.vmem %s129_s22, 32 }
  0x45   :  { %p7867_p5 = scmp.ne.s32.totalorder %s129_s22, %s7866_s0  ;;  %p7871_p6 = scmp.lt.s32.totalorder %s129_s22, %s129_s22 }
  0x46   :  { %p7872_p7 = scmp.lt.s32.totalorder %s7870_s26, %s7866_s0 }
  0x48   :  { %p7873_p8 = por %p7872_p7, %p7871_p6 }
  0x4a   :  { %p7874_p9 = pnand %p7873_p8, %p7867_p5 }
  0x4c   :  { %7877 = shalt.err (!%p7874_p9)
}
  0x4d   :  { %131 = dma.hbm_to_vmem [thread:$0]  %s8316_s19, 16, %s129_s22, [#allocation8]  }
  0x4e   :  { %s8228_s28 = smov [#allocation10]   ;;  %s8229_s2 = smov [#allocation13]  }
  0x4f   :  { %s152_s1 = sshll.u32 %s8228_s28, 4  ;;  %s174_s7 = sshll.u32 %s8229_s2, 4  ;;  %s153_s1 = int_to_ptr.vmem [resolvable:$true] %s152_s1  ;;  %s175_s7 = int_to_ptr.vmem [resolvable:$true] %s174_s7 }
  0x50   :  { %s7886_s10 = scalar_lea.vmem %s153_s1, 16  ;;  %s7890_s11 = scalar_lea.vmem %s153_s1, 32 }
  0x51   :  { %p7887_p10 = scmp.ne.s32.totalorder %s153_s1, %s7886_s10  ;;  %p7891_p11 = scmp.lt.s32.totalorder %s153_s1, %s153_s1 }
  0x52   :  { %p7892_p12 = scmp.lt.s32.totalorder %s7890_s11, %s7886_s10 }
  0x54   :  { %p7893_p13 = por %p7892_p12, %p7891_p11 }
  0x56   :  { %p7894_p0 = pnand %p7893_p13, %p7887_p10 }
  0x58   :  { %7897 = shalt.err (!%p7894_p0)
}
  0x59   :  { %155 = dma.hbm_to_vmem [thread:$0]  %s8336_s12, 16, %s153_s1, [#allocation11]  }
  0x5a   :  { %s7906_s3 = scalar_lea.vmem %s175_s7, 16  ;;  %s7910_s15 = scalar_lea.vmem %s175_s7, 32 }
  0x5b   :  { %p7907_p1 = scmp.ne.s32.totalorder %s175_s7, %s7906_s3  ;;  %p7911_p2 = scmp.lt.s32.totalorder %s175_s7, %s175_s7 }
  0x5c   :  { %p7912_p3 = scmp.lt.s32.totalorder %s7910_s15, %s7906_s3 }
  0x5e   :  { %p7913_p4 = por %p7912_p3, %p7911_p2 }
  0x60   :  { %p7914_p5 = pnand %p7913_p4, %p7907_p1 }
  0x62   :  { %7917 = shalt.err (!%p7914_p5)
}
  0x63   :  { %177 = dma.hbm_to_vmem [thread:$0]  %s8346_s27, 16, %s175_s7, [#allocation14]  }
  0x64   :  { %s8230_s19 = smov [#allocation16]   ;;  %s8231_s18 = smov [#allocation19]  }
  0x65   :  { %s196_s16 = sshll.u32 %s8230_s19, 4  ;;  %s218_s22 = sshll.u32 %s8231_s18, 4  ;;  %s197_s16 = int_to_ptr.vmem [resolvable:$true] %s196_s16  ;;  %s219_s22 = int_to_ptr.vmem [resolvable:$true] %s218_s22 }
  0x66   :  { %s7926_s23 = scalar_lea.vmem %s197_s16, 16  ;;  %s7930_s0 = scalar_lea.vmem %s197_s16, 32 }
  0x67   :  { %p7927_p6 = scmp.ne.s32.totalorder %s197_s16, %s7926_s23  ;;  %p7931_p7 = scmp.lt.s32.totalorder %s197_s16, %s197_s16 }
  0x68   :  { %p7932_p8 = scmp.lt.s32.totalorder %s7930_s0, %s7926_s23 }
  0x6a   :  { %p7933_p9 = por %p7932_p8, %p7931_p7 }
  0x6c   :  { %p7934_p10 = pnand %p7933_p9, %p7927_p6 }
  0x6e   :  { %7937 = shalt.err (!%p7934_p10)
}
  0x6f   :  { %199 = dma.hbm_to_vmem [thread:$0]  %s8356_s13, 16, %s197_s16, [#allocation17]  }
  0x70   :  { %s7946_s12 = scalar_lea.vmem %s219_s22, 16  ;;  %s7950_s26 = scalar_lea.vmem %s219_s22, 32 }
  0x71   :  { %p7947_p11 = scmp.ne.s32.totalorder %s219_s22, %s7946_s12  ;;  %p7951_p12 = scmp.lt.s32.totalorder %s219_s22, %s219_s22 }
  0x72   :  { %p7952_p13 = scmp.lt.s32.totalorder %s7950_s26, %s7946_s12 }
  0x74   :  { %p7953_p0 = por %p7952_p13, %p7951_p12 }
  0x76   :  { %p7954_p1 = pnand %p7953_p0, %p7947_p11 }
  0x78   :  { %7957 = shalt.err (!%p7954_p1)
}
  0x79   :  { %221 = dma.hbm_to_vmem [thread:$0]  %s8366_s9, 16, %s219_s22, [#allocation20]  }
  0x7a   :  { %s8232_s27 = smov [#allocation22]  }
  0x7b   :  { %s243_s28 = sshll.u32 %s8232_s27, 4  ;;  %s244_s28 = int_to_ptr.vmem [resolvable:$true] %s243_s28 }
  0x7c   :  { %s7966_s1 = scalar_lea.vmem %s244_s28, 2048  ;;  %p7971_p3 = scmp.lt.s32.totalorder %s244_s28, %s244_s28 }
  0x7d   :  { %p7967_p2 = scmp.ne.s32.totalorder %s244_s28, %s7966_s1  ;;  %p7972_p4 = scmp.lt.s32.totalorder %s7966_s1, %s7966_s1 }
  0x7f   :  { %p7973_p5 = por %p7972_p4, %p7971_p3 }
  0x81   :  { %p7974_p6 = pnand %p7973_p5, %p7967_p2 }
  0x83   :  { %7977 = shalt.err (!%p7974_p6)
}
  0x84   :  { %s8233_s13 = smov 128   ;;  %s8234_s2 = smov 8  }
  0x85   :  { %249 = dma.hbm_to_vmem [thread:$0]  %s8391_s6, 2048, %s244_s28, [#allocation23], %s8233_s13, %s8233_s13, %s8234_s2  }
  0x86   :  { %s8235_s7 = smov [#allocation25]   ;;  %s8236_s11 = smov [#allocation2]  }
  0x87   :  { %s265_s10 = sshll.u32 %s8235_s7, 4  ;;  %s94_s3 = sshll.u32 %s8236_s11, 4  ;;  %s266_s10 = int_to_ptr.vmem [resolvable:$true] %s265_s10  ;;  %s95_s3 = int_to_ptr.vmem [resolvable:$true] %s94_s3 }
  0x88   :  { %s7986_s9 = scalar_lea.vmem %s266_s10, 2048  ;;  %p7991_p8 = scmp.lt.s32.totalorder %s266_s10, %s266_s10 }
  0x89   :  { %p7987_p7 = scmp.ne.s32.totalorder %s266_s10, %s7986_s9  ;;  %p7992_p9 = scmp.lt.s32.totalorder %s7986_s9, %s7986_s9 }
  0x8b   :  { %p7993_p10 = por %p7992_p9, %p7991_p8 }
  0x8d   :  { %p7994_p11 = pnand %p7993_p10, %p7987_p7 }
  0x8f   :  { %7997 = shalt.err (!%p7994_p11)
}
  0x90   :  { %271 = dma.hbm_to_vmem [thread:$0]  %s8401_s24, 2048, %s266_s10, [#allocation26], %s8233_s13, %s8233_s13, %s8234_s2  }
  0x91   :  { %s8006_s15 = scalar_lea.vmem %s95_s3, 128  ;;  %p8011_p13 = scmp.lt.s32.totalorder %s95_s3, %s95_s3 }
  0x92   :  { %p8007_p12 = scmp.ne.s32.totalorder %s95_s3, %s8006_s15  ;;  %p8012_p0 = scmp.lt.s32.totalorder %s8006_s15, %s8006_s15 }
  0x94   :  { %p8013_p1 = por %p8012_p0, %p8011_p13 }
  0x96   :  { %p8014_p2 = pnand %p8013_p1, %p8007_p12 }
  0x98   :  { %8017 = shalt.err (!%p8014_p2)
}
  0x99   :  { %97 = dma.hbm_to_vmem [thread:$0]  %s8296_s29, 128, %s95_s3, [#allocation3]  }
  0x9a   :  { %s8237_s6 = smov [#allocation6]  }
  0x9b   :  { %s115_s19 = sshll.u32 %s8237_s6, 4  ;;  %s116_s19 = int_to_ptr.vmem [resolvable:$true] %s115_s19 }
  0x9c   :  { %s8026_s16 = scalar_lea.vmem %s116_s19, 128  ;;  %p8031_p4 = scmp.lt.s32.totalorder %s116_s19, %s116_s19 }
  0x9d   :  { %p8027_p3 = scmp.ne.s32.totalorder %s116_s19, %s8026_s16  ;;  %p8032_p5 = scmp.lt.s32.totalorder %s8026_s16, %s8026_s16 }
  0x9f   :  { %p8033_p6 = por %p8032_p5, %p8031_p4 }
  0xa1   :  { %p8034_p7 = pnand %p8033_p6, %p8027_p3 }
  0xa3   :  { %8037 = shalt.err (!%p8034_p7)
}
  0xa4   :  { %s8238_s24 = smov 64   ;;  %s8239_s18 = smov 4  }
  0xa5   :  { %121 = dma.hbm_to_vmem [thread:$0]  %s8311_s14, 128, %s116_s19, [#allocation5], %s8238_s24, %s8238_s24, %s8239_s18  }
  0xa6   :  { %s8240_s22 = smov [#allocation9]   ;;  %s8241_s29 = smov [#allocation12]  }
  0xa7   :  { %s140_s23 = sshll.u32 %s8240_s22, 4  ;;  %s161_s0 = sshll.u32 %s8241_s29, 4  ;;  %s141_s23 = int_to_ptr.vmem [resolvable:$true] %s140_s23  ;;  %s162_s0 = int_to_ptr.vmem [resolvable:$true] %s161_s0 }
  0xa8   :  { %s8046_s12 = scalar_lea.vmem %s141_s23, 16  ;;  %s8050_s26 = scalar_lea.vmem %s141_s23, 32 }
  0xa9   :  { %p8047_p8 = scmp.ne.s32.totalorder %s141_s23, %s8046_s12  ;;  %p8051_p9 = scmp.lt.s32.totalorder %s141_s23, %s141_s23 }
  0xaa   :  { %p8052_p10 = scmp.lt.s32.totalorder %s8050_s26, %s8046_s12 }
  0xac   :  { %p8053_p11 = por %p8052_p10, %p8051_p9 }
  0xae   :  { %p8054_p12 = pnand %p8053_p11, %p8047_p8 }
  0xb0   :  { %8057 = shalt.err (!%p8054_p12)
}
  0xb1   :  { %143 = dma.hbm_to_vmem [thread:$0]  %s8326_s30, 16, %s141_s23, [#allocation8]  }
  0xb2   :  { %s8066_s27 = scalar_lea.vmem %s162_s0, 9216  ;;  %p8071_p0 = scmp.lt.s32.totalorder %s162_s0, %s162_s0 }
  0xb3   :  { %p8067_p13 = scmp.ne.s32.totalorder %s162_s0, %s8066_s27  ;;  %p8072_p1 = scmp.lt.s32.totalorder %s8066_s27, %s8066_s27 }
  0xb5   :  { %p8073_p2 = por %p8072_p1, %p8071_p0 }
  0xb7   :  { %p8074_p3 = pnand %p8073_p2, %p8067_p13 }
  0xb9   :  { %8077 = shalt.err (!%p8074_p3)
}
  0xba   :  { %167 = dma.hbm_to_vmem [thread:$0]  %s8341_s20, 9216, %s162_s0, [#allocation11], %s8238_s24, %s8238_s24, %s8239_s18  }
  0xbb   :  { %s8242_s14 = smov [#allocation15]   ;;  %s8243_s1 = smov [#allocation18]  }
  0xbc   :  { %s183_s28 = sshll.u32 %s8242_s14, 4  ;;  %s205_s13 = sshll.u32 %s8243_s1, 4  ;;  %s184_s28 = int_to_ptr.vmem [resolvable:$true] %s183_s28  ;;  %s206_s13 = int_to_ptr.vmem [resolvable:$true] %s205_s13 }
  0xbd   :  { %s8086_s2 = scalar_lea.vmem %s184_s28, 9216  ;;  %p8091_p5 = scmp.lt.s32.totalorder %s184_s28, %s184_s28 }
  0xbe   :  { %p8087_p4 = scmp.ne.s32.totalorder %s184_s28, %s8086_s2  ;;  %p8092_p6 = scmp.lt.s32.totalorder %s8086_s2, %s8086_s2 }
  0xc0   :  { %p8093_p7 = por %p8092_p6, %p8091_p5 }
  0xc2   :  { %p8094_p8 = pnand %p8093_p7, %p8087_p4 }
  0xc4   :  { %8097 = shalt.err (!%p8094_p8)
}
  0xc5   :  { %189 = dma.hbm_to_vmem [thread:$0]  %s8351_s4, 9216, %s184_s28, [#allocation14], %s8238_s24, %s8238_s24, %s8239_s18  }
  0xc6   :  { %s8106_s30 = scalar_lea.vmem %s206_s13, 9216  ;;  %p8111_p10 = scmp.lt.s32.totalorder %s206_s13, %s206_s13 }
  0xc7   :  { %p8107_p9 = scmp.ne.s32.totalorder %s206_s13, %s8106_s30  ;;  %p8112_p11 = scmp.lt.s32.totalorder %s8106_s30, %s8106_s30 }
  0xc9   :  { %p8113_p12 = por %p8112_p11, %p8111_p10 }
  0xcb   :  { %p8114_p13 = pnand %p8113_p12, %p8107_p9 }
  0xcd   :  { %8117 = shalt.err (!%p8114_p13)
}
  0xce   :  { %211 = dma.hbm_to_vmem [thread:$0]  %s8361_s8, 9216, %s206_s13, [#allocation17], %s8238_s24, %s8238_s24, %s8239_s18  }
  0xcf   :  { %s8244_s20 = smov [#allocation21]   ;;  %s8245_s10 = smov [#allocation24]  }
  0xd0   :  { %s234_s7 = sshll.u32 %s8244_s20, 4  ;;  %s256_s11 = sshll.u32 %s8245_s10, 4  ;;  %s235_s7 = int_to_ptr.vmem [resolvable:$true] %s234_s7  ;;  %s257_s11 = int_to_ptr.vmem [resolvable:$true] %s256_s11 }
  0xd1   :  { %s8126_s3 = scalar_lea.vmem %s235_s7, 16  ;;  %s8130_s4 = scalar_lea.vmem %s235_s7, 32 }
  0xd2   :  { %p8127_p0 = scmp.ne.s32.totalorder %s235_s7, %s8126_s3  ;;  %p8131_p1 = scmp.lt.s32.totalorder %s235_s7, %s235_s7 }
  0xd3   :  { %p8132_p2 = scmp.lt.s32.totalorder %s8130_s4, %s8126_s3 }
  0xd5   :  { %p8133_p3 = por %p8132_p2, %p8131_p1 }
  0xd7   :  { %p8134_p4 = pnand %p8133_p3, %p8127_p0 }
  0xd9   :  { %8137 = shalt.err (!%p8134_p4)
}
  0xda   :  { %237 = dma.hbm_to_vmem [thread:$0]  %s8386_s25, 16, %s235_s7, [#allocation20]  }
  0xdb   :  { %s8146_s9 = scalar_lea.vmem %s257_s11, 16  ;;  %s8150_s15 = scalar_lea.vmem %s257_s11, 32 }
  0xdc   :  { %p8147_p5 = scmp.ne.s32.totalorder %s257_s11, %s8146_s9  ;;  %p8151_p6 = scmp.lt.s32.totalorder %s257_s11, %s257_s11 }
  0xdd   :  { %p8152_p7 = scmp.lt.s32.totalorder %s8150_s15, %s8146_s9 }
  0xdf   :  { %p8153_p8 = por %p8152_p7, %p8151_p6 }
  0xe1   :  { %p8154_p9 = pnand %p8153_p8, %p8147_p5 }
  0xe3   :  { %8157 = shalt.err (!%p8154_p9)
}
  0xe4   :  { %s9434_s8 = sld [smem:[#allocation49_spill]]  ;;  %s8246_s6 = smov [#allocation27]  }
  0xe5   :  { %s278_s19 = sshll.u32 %s8246_s6, 4  ;;  %s279_s19 = int_to_ptr.vmem [resolvable:$true] %s278_s19 }
  0xe6   :  { %s8166_s16 = scalar_lea.vmem %s279_s19, 16  ;;  %s8170_s24 = scalar_lea.vmem %s279_s19, 32 }
  0xe7   :  { %p8167_p10 = scmp.ne.s32.totalorder %s279_s19, %s8166_s16  ;;  %p8171_p11 = scmp.lt.s32.totalorder %s279_s19, %s279_s19 }
  0xe8   :  { %p8172_p12 = scmp.lt.s32.totalorder %s8170_s24, %s8166_s16 }
  0xea   :  { %259 = dma.hbm_to_vmem [thread:$0]  %s9434_s8, 16, %s257_s11, [#allocation23]  }
  0xeb   :  { %p8173_p13 = por %p8172_p12, %p8171_p11 }
  0xed   :  { %p8174_p0 = pnand %p8173_p13, %p8167_p10 }
  0xef   :  { %8177 = shalt.err (!%p8174_p0)
}
  0xf0   :  { %281 = dma.hbm_to_vmem [thread:$0]  %s8406_s17, 16, %s279_s19, [#allocation26]  }
  0xf1   :  { %8178 = dma.done.wait [#allocation3], 128  }
  0xf2   :  { %8179 = vsyncadd [#allocation3], 4294967168 }
  0xf3   :  { %8180 = dma.done.wait [#allocation5], 160  }
  0xf4   :  { %8181 = vsyncadd [#allocation5], 4294967136 }
  0xf5   :  { %8182 = dma.done.wait [#allocation8], 32  }
  0xf6   :  { %8183 = vsyncadd [#allocation8], 4294967264 }
  0xf7   :  { %8184 = dma.done.wait [#allocation11], 9232  }
  0xf8   :  { %8185 = vsyncadd [#allocation11], 4294958064 }
  0xf9   :  { %8186 = dma.done.wait [#allocation14], 9232  }
  0xfa   :  { %8187 = vsyncadd [#allocation14], 4294958064 }
  0xfb   :  { %8188 = dma.done.wait [#allocation17], 9232  }
  0xfc   :  { %8189 = vsyncadd [#allocation17], 4294958064 }
  0xfd   :  { %8190 = dma.done.wait [#allocation20], 32  }
  0xfe   :  { %8191 = vsyncadd [#allocation20], 4294967264 }
  0xff   :  { %8192 = dma.done.wait [#allocation23], 2064  }
 0x100   :  { %8193 = vsyncadd [#allocation23], 4294965232 }
 0x101   :  { %8194 = dma.done.wait [#allocation26], 2064  }
 0x102   :  { %8195 = vsyncadd [#allocation26], 4294965232  ;;  %s9435_s25 = sld [smem:[#allocation37_spill]]  ;;  %vm429_vm0 = vcmask 1045504   ;;  %vm404_vm1 = vcmask 97280   ;;  %v8247_v10 = vmov 0   ;;  %v562_v41 = vlaneseq }
 0x103   :  { %v7448_v0 = vld [vmem:[#allocation6] sm:$0x3f]   ;;  %s9436_s17 = sld [smem:[#allocation40_spill]]  ;;  %7418 = vset.pattern.permute.xlu1 %v8247_v10  ;;  %v8248_v13 = vmov 3   ;;  %v8249_v15 = vmov 2   ;;  %v8250_v17 = vmov 1  }
 0x104   :  { %7354 = vmatprep.subr.msk.bf16.mxu0 %vm429_vm0, %v7448_v0  ;;  %v431_v2 = vsel %vm429_vm0, %v7448_v0, 0  ;;  %s9437_s18 = sld [smem:[#allocation42_spill]]  ;;  %7417 = vset.pattern.permute.xlu0 %v8250_v17  ;;  %v8251_v19 = vmov 5   ;;  %v8252_v21 = vmov 7   ;;  %v8253_v24 = vmov 6  }
 0x105   :  { %7078 = vmatpush3.bf16.msra.mxu0 %v431_v2  ;;  %s9438_s22 = sld [smem:[#allocation44_spill]]  ;;  %v8254_v30 = vmov 8   ;;  %v8531_v34 = vld [vmem:[#allocation7] ss:$0 sm:$0xff]  ;;  %v8546_v47 = vshrl.u32 %v562_v41, 7  ;;  %vm8256_vm7 = vmmov 0  }
 0x106   :  { %s9439_s23 = sld [smem:[#allocation41_spill]]  ;;  %vm1817_vm8 = vcmask 261120   ;;  %vm3553_vm9 = vcmask 1041408   ;;  %vm3549_vm10 = vcmask 15360   ;;  %vm5339_vm11 = vcmask 64512  }
 0x107   :  { %vm564_vm2 = vcmp.lt.s32.totalorder %v8546_v47, 7  ;;  %vm792_vm3 = vcmp.lt.s32.totalorder %v8546_v47, 3  ;;  %vm761_vm4 = vcmp.lt.s32.totalorder %v8546_v47, 4  ;;  %vm823_vm5 = vcmp.lt.s32.totalorder %v8546_v47, 1  ;;  %s9440_s29 = sld [smem:[#allocation45_spill]] }
 0x108   :  { %v7449_v1 = vld [vmem:[%s9435_s25] sm:$0xff]   ;;  %v7450_v3 = vld [vmem:[%s9435_s25 + $0x8] sm:$0xff]   ;;  %v7451_v4 = vld [vmem:[%s9435_s25 + $0x10] sm:$0xff]   ;;  %vm726_vm6 = vcmp.lt.s32.totalorder %v8546_v47, 5  ;;  %s9441_s0 = sld [smem:[#allocation38_spill]] }
 0x109   :  { %7079 = vmatprep.mubr.msk.bf16.mxu0 %vm404_vm1, %v7449_v1  ;;  %v7452_v5 = vld [vmem:[%s9435_s25 + $0x18] sm:$0xff]   ;;  %v7453_v6 = vld [vmem:[%s9435_s25 + $0x20] sm:$0xff]   ;;  %v7454_v7 = vld [vmem:[%s9435_s25 + $0x28] sm:$0xff]   ;;  %s9442_s12 = sld [smem:[#allocation43_spill]] }
 0x10a   :  { %7080 = vmatmul.mubr.msk.bf16.vlgmr.msra.gmra.mxu0 %vm404_vm1, %v7450_v3  ;;  %v7455_v8 = vld [vmem:[%s9435_s25 + $0x30] sm:$0xff]   ;;  %v7456_v9 = vld [vmem:[%s9435_s25 + $0x38] sm:$0xff]   ;;  %v8465_v11 = vld [vmem:[%s9436_s17] sm:$0xff]  ;;  %s9443_s26 = sld [smem:[#allocation46_spill]] }
 0x10b   :  { %7083 = vmatprep.mubr.msk.bf16.mxu0 %vm404_vm1, %v7451_v4  ;;  %733 = vperm.xlu1 %7418, %v8465_v11   ;;  %v8469_v12 = vld [vmem:[%s9436_s17 + $0x8] sm:$0xff]  ;;  %v629_v14 = vld [vmem:[%s9437_s18] sm:$0xff]  ;;  %v8478_v16 = vld [vmem:[%s9436_s17 + $0x10] sm:$0xff]  ;;  %s9444_s27 = sld [smem:[#allocation39_spill]] }
 0x10c   :  { %7127 = vmatprep.mubr.f32.mxu1 %v629_v14  ;;  %767 = vperm.xlu0 %7417, %v8465_v11   ;;  %v8484_v18 = vld [vmem:[%s9436_s17 + $0x18] sm:$0xff]  ;;  %v7461_v23 = vld [vmem:[%s9438_s22 + $0x70] sm:$0xff]   ;;  %v7465_v26 = vld [vmem:[%s9438_s22 + $0x68] sm:$0xff]   ;;  %s9445_s14 = sld [smem:[#allocation48_spill]] }
 0x10d   :  { %v7457_v20 = vld [vmem:[%s9438_s22 + $0x78] sm:$0xff]   ;;  %v7463_v25 = vld [vmem:[%s9438_s22 + $0x30] sm:$0xff]   ;;  %v7467_v27 = vld [vmem:[%s9438_s22 + $0x28] sm:$0xff]   ;;  %s9446_s28 = sld [smem:[#allocation47_spill]] }
 0x10e   :  { %6509 = vmatprep.subr.bf16.mxu0 %v7457_v20  ;;  %v7459_v22 = vld [vmem:[%s9438_s22 + $0x38] sm:$0xff]   ;;  %v7469_v28 = vld [vmem:[%s9438_s22 + $0x60] sm:$0xff]  }
 0x10f   :  { %738 = vperm.xlu1 %7418, %v8469_v12   ;;  %6510 = vmatpush3.bf16.msra.mxu0 %v7459_v22  ;;  %v7471_v32 = vld [vmem:[%s9438_s22 + $0x20] sm:$0xff]   ;;  %v7473_v33 = vld [vmem:[%s9438_s22 + $0x58] sm:$0xff]  }
 0x110   :  { %771 = vperm.xlu0 %7417, %v8469_v12   ;;  %6511 = vmatprep.subr.bf16.mxu0 %v7461_v23  ;;  %v7475_v40 = vld [vmem:[%s9438_s22 + $0x18] sm:$0xff]  }
 0x112   :  { %7084 = vmatmul.mubr.msk.bf16.gmra.mxu0 %vm404_vm1, %v7452_v5 }
 0x113   :  { %7087 = vmatprep.mubr.msk.bf16.mxu0 %vm404_vm1, %v7453_v6  ;;  %7420 = vset.pattern.permute.xlu1 %v8248_v13 }
 0x114   :  { %833 = vperm.xlu1 %7420, %v8469_v12   ;;  %7419 = vset.pattern.permute.xlu0 %v8248_v13 }
 0x115   :  { %829 = vperm.xlu0 %7419, %v8465_v11   ;;  %6512 = vmatpush3.bf16.msra.mxu0 %v7463_v25 }
 0x116   :  { %6513 = vmatprep.subr.bf16.mxu0 %v7465_v26 }
 0x118   :  { %7421 = vset.pattern.permute.xlu1 %v8249_v15 }
 0x119   :  { %798 = vperm.xlu1 %7421, %v8465_v11   ;;  %7422 = vset.pattern.permute.xlu0 %v8249_v15 }
 0x11a   :  { %7088 = vmatmul.mubr.msk.bf16.gmra.mxu0 %vm404_vm1, %v7454_v7  ;;  %802 = vperm.xlu0 %7422, %v8469_v12  }
 0x11b   :  { %7091 = vmatprep.mubr.msk.bf16.mxu0 %vm404_vm1, %v7455_v8  ;;  %6514 = vmatpush3.bf16.msra.mxu0 %v7467_v27 }
 0x11c   :  { %6515 = vmatprep.subr.bf16.mxu0 %v7469_v28 }
 0x11d   :  { %7423 = vset.pattern.permute.xlu1 %v8250_v17 }
 0x11e   :  { %775 = vperm.xlu1 %7423, %v8478_v16   ;;  %7424 = vset.pattern.permute.xlu0 %v8247_v10 }
 0x11f   :  { %743 = vperm.xlu0 %7424, %v8478_v16   ;;  %6516 = vmatpush3.bf16.msra.mxu0 %v7471_v32 }
 0x120   :  { %6517 = vmatprep.subr.bf16.mxu0 %v7473_v33 }
 0x122   :  { %7092 = vmatmul.mubr.msk.bf16.gmra.mxu0 %vm404_vm1, %v7456_v9  ;;  %779 = vperm.xlu1 %7423, %v8484_v18  }
 0x123   :  { %7427 = vset.pattern.permute.xlu0 %v8251_v19  ;;  %6518 = vmatpush3.bf16.msra.mxu0 %v7475_v40 }
 0x124   :  { %865 = vperm.xlu0 %7427, %v8469_v12  }
 0x126   :  { %7425 = vset.pattern.permute.xlu1 %v8247_v10 }
 0x127   :  { %748 = vperm.xlu1 %7425, %v8484_v18  }
 0x128   :  { %7429 = vset.pattern.permute.xlu0 %v8249_v15 }
 0x129   :  { %806 = vperm.xlu0 %7429, %v8478_v16  }
 0x12b   :  { %7426 = vset.pattern.permute.xlu1 %v8251_v19 }
 0x12c   :  { %861 = vperm.xlu1 %7426, %v8465_v11  }
 0x12d   :  { %7433 = vset.pattern.permute.xlu0 %v8251_v19 }
 0x12e   :  { %869 = vperm.xlu0 %7433, %v8478_v16  }
 0x130   :  { %7428 = vset.pattern.permute.xlu1 %v8248_v13 }
 0x131   :  { %837 = vperm.xlu1 %7428, %v8478_v16  }
 0x132   :  { %7434 = vset.pattern.permute.xlu0 %v8252_v21 }
 0x133   :  { %909 = vperm.xlu0 %7434, %v8469_v12  }
 0x135   :  { %841 = vperm.xlu1 %7428, %v8484_v18  }
 0x137   :  { %917 = vperm.xlu0 %7434, %v8484_v18  }
 0x139   :  { %7430 = vset.pattern.permute.xlu1 %v8249_v15 }
 0x13a   :  { %810 = vperm.xlu1 %7430, %v8484_v18  }
 0x13b   :  { %7438 = vset.pattern.permute.xlu0 %v8254_v30 }
 0x13c   :  { %927 = vperm.xlu0 %7438, %v8465_v11  }
 0x13e   :  { %7431 = vset.pattern.permute.xlu1 %v8252_v21 }
 0x13f   :  { %905 = vperm.xlu1 %7431, %v8465_v11  }
 0x140   :  { %939 = vperm.xlu0 %7438, %v8484_v18  }
 0x143   :  { %7432 = vset.pattern.permute.xlu1 %v8253_v24 }
 0x144   :  { %883 = vperm.xlu1 %7432, %v8465_v11   ;;  %7441 = vset.pattern.permute.xlu0 %v8247_v10 }
 0x148   :  { %887 = vperm.xlu1 %7432, %v8469_v12  }
 0x14c   :  { %7435 = vset.pattern.permute.xlu1 %v8251_v19 }
 0x14d   :  { %873 = vperm.xlu1 %7435, %v8484_v18  }
 0x151   :  { %7436 = vset.pattern.permute.xlu1 %v8252_v21 }
 0x152   :  { %913 = vperm.xlu1 %7436, %v8478_v16  }
 0x156   :  { %7437 = vset.pattern.permute.xlu1 %v8253_v24 }
 0x157   :  { %891 = vperm.xlu1 %7437, %v8478_v16  }
 0x15b   :  { %895 = vperm.xlu1 %7437, %v8484_v18  }
 0x15f   :  { %7439 = vset.pattern.permute.xlu1 %v8254_v30 }
 0x160   :  { %931 = vperm.xlu1 %7439, %v8469_v12  }
 0x164   :  { %935 = vperm.xlu1 %7439, %v8478_v16  }
 0x168   :  { %7440 = vset.pattern.permute.xlu1 %v8250_v17 }
 0x1ca   :  { %v7081_v29 = vpop.f32.mrf.mxu0 }
 0x1cb   :  { %v476_v37 = vadd.f32 %v7081_v29, %v8531_v34 }
 0x1cc   :  { %v467_v31 = vpop.f32.mrf.mxu0 }
 0x1cd   :  { %v468_v38 = vadd.f32 %v8531_v34, %v467_v31  ;;  %v8540_v43 = vmax.f32 %v476_v37, 0.0 }
 0x1ce   :  { %v7082_v35 = vpop.f32.mrf.mxu0 }
 0x1cf   :  { %v8542_v44 = vmax.f32 %v468_v38, 0.0  ;;  %v479_v46 = vadd.f32 %v7082_v35, %v8531_v34  ;;  %v548_v50 = vrot.slane %v8540_v43, 1 }
 0x1d0   :  { %v470_v36 = vpop.f32.mrf.mxu0 }
 0x1d1   :  { %v471_v48 = vadd.f32 %v8531_v34, %v470_v36  ;;  %v546_v51 = vrot.slane %v8542_v44, 1  ;;  %v8554_v55 = vmax.f32 %v479_v46, 0.0 }
 0x1d2   :  { %v7085_v39 = vpop.f32.mrf.mxu0 }
 0x1d3   :  { %v492_v52 = vadd.f32 %v7085_v39, %v8531_v34  ;;  %v8556_v56 = vmax.f32 %v471_v48, 0.0  ;;  %v549_v4 = vrot.slane %v8554_v55, 1 }
 0x1d4   :  { %v483_v42 = vpop.f32.mrf.mxu0 }
 0x1d5   :  { %v484_v53 = vadd.f32 %v8531_v34, %v483_v42  ;;  %v8561_v60 = vmax.f32 %v492_v52, 0.0  ;;  %v547_v7 = vrot.slane %v8556_v56, 1 }
 0x1d6   :  { %v7086_v45 = vpop.f32.mrf.mxu0 }
 0x1d7   :  { %v495_v57 = vadd.f32 %v7086_v45, %v8531_v34  ;;  %v8563_v61 = vmax.f32 %v484_v53, 0.0  ;;  %v552_v8 = vrot.slane %v8561_v60, 1 }
 0x1d8   :  { %v486_v49 = vpop.f32.mrf.mxu0 }
 0x1d9   :  { %v487_v58 = vadd.f32 %v8531_v34, %v486_v49  ;;  %v8566_v0 = vmax.f32 %v495_v57, 0.0  ;;  %v550_v10 = vrot.slane %v8563_v61, 1 }
 0x1da   :  { %v7089_v54 = vpop.f32.mrf.mxu0 }
 0x1db   :  { %v508_v62 = vadd.f32 %v7089_v54, %v8531_v34  ;;  %v8568_v1 = vmax.f32 %v487_v58, 0.0  ;;  %v553_v18 = vrot.slane %v8566_v0, 1 }
 0x1dc   :  { %v499_v59 = vpop.f32.mrf.mxu0 }
 0x1dd   :  { %v500_v2 = vadd.f32 %v8531_v34, %v499_v59  ;;  %v8574_v5 = vmax.f32 %v508_v62, 0.0  ;;  %v551_v12 = vrot.slane %v8568_v1, 1  ;;  %v8613_v62 = vsel %vm564_vm2, %v546_v51, %v547_v7 }
 0x1de   :  { %v7090_v63 = vpop.f32.mrf.mxu0 }
 0x1df   :  { %v511_v6 = vadd.f32 %v7090_v63, %v8531_v34  ;;  %v8580_v11 = vmax.f32 %v500_v2, 0.0  ;;  %v556_v23 = vrot.slane %v8574_v5, 1 }
 0x1e0   :  { %v502_v3 = vpop.f32.mrf.mxu0 }
 0x1e1   :  { %v503_v14 = vadd.f32 %v8531_v34, %v502_v3  ;;  %v541_v25 = vmax.f32 %v511_v6, 0.0  ;;  %v554_v28 = vrot.slane %v8580_v11, 1 }
 0x1e2   :  { %v7093_v9 = vpop.f32.mrf.mxu0 }
 0x1e3   :  { %v524_v20 = vadd.f32 %v7093_v9, %v8531_v34  ;;  %v539_v29 = vmax.f32 %v503_v14, 0.0  ;;  %v557_v36 = vrot.slane %v541_v25, 1 }
 0x1e4   :  { %v515_v22 = vpop.f32.mrf.mxu0 }
 0x1e5   :  { %v516_v26 = vadd.f32 %v8531_v34, %v515_v22  ;;  %v544_v31 = vmax.f32 %v524_v20, 0.0  ;;  %v555_v38 = vrot.slane %v539_v29, 1  ;;  %v569_v6 = vsel %vm564_vm2, %v556_v23, %v557_v36 }
 0x1e6   :  { %v7094_v27 = vpop.f32.mrf.mxu0 }
 0x1e7   :  { %v542_v32 = vmax.f32 %v516_v26, 0.0  ;;  %v527_v33 = vadd.f32 %v7094_v27, %v8531_v34  ;;  %v560_v40 = vrot.slane %v544_v31, 1  ;;  %v570_v9 = vsel %vm564_vm2, %v555_v38, %v556_v23 }
 0x1e8   :  { %v518_v35 = vpop.f32.mrf.mxu0  ;;  %v571_v22 = vsel %vm564_vm2, %v554_v28, %v555_v38  ;;  %v590_v26 = vmax.f32 %v539_v29, %v570_v9  ;;  %v574_v38 = vsel %vm564_vm2, %v551_v12, %v552_v8 }
 0x1e9   :  { %v519_v16 = vadd.f32 %v8531_v34, %v518_v35  ;;  %v545_v37 = vmax.f32 %v527_v33, 0.0  ;;  %v558_v42 = vrot.slane %v542_v32, 1  ;;  %v589_v23 = vmax.f32 %v8580_v11, %v571_v22 }
 0x1eb   :  { %v543_v39 = vmax.f32 %v519_v16, 0.0  ;;  %v561_v41 = vrot.slane %v545_v37, 1  ;;  %v568_v54 = vsel %vm564_vm2, %v557_v36, %v558_v42 }
 0x1ec   :  { %v592_v63 = vmax.f32 %v541_v25, %v568_v54 }
 0x1ed   :  { %v559_v45 = vrot.slane %v543_v39, 1  ;;  %v565_v46 = vsel %vm564_vm2, %v560_v40, %v561_v41  ;;  %v580_v48 = vsel %vm564_vm2, %v561_v41, %v546_v51  ;;  %v591_v51 = vmax.f32 %v8574_v5, %v569_v6 }
 0x1ee   :  { %v595_v49 = vmax.f32 %v544_v31, %v565_v46  ;;  %v596_v53 = vmax.f32 %v545_v37, %v580_v48  ;;  %v608_v27 = vmax.f32 %v592_v63, %v542_v32  ;;  %v632_v63 = vld [vmem:[%s9437_s18 + $0x18] sm:$0xff] }
 0x1ef   :  { %v566_v17 = vsel %vm564_vm2, %v559_v45, %v560_v40  ;;  %v567_v34 = vsel %vm564_vm2, %v558_v42, %v559_v45  ;;  %v607_v36 = vmax.f32 %v591_v51, %v541_v25  ;;  %v605_v25 = vmax.f32 %v589_v23, %v539_v29  ;;  %v7477_v51 = vld [vmem:[%s9438_s22 + $0x50] sm:$0xff]   ;;  %v7482_v23 = vld [vmem:[%s9438_s22 + $0xc8] sm:$0xff]  }
 0x1f0   :  { %v594_v52 = vmax.f32 %v543_v39, %v566_v17  ;;  %v611_v57 = vmax.f32 %v595_v49, %v545_v37  ;;  %v593_v58 = vmax.f32 %v542_v32, %v567_v34  ;;  %v612_v59 = vmax.f32 %v596_v53, %v8542_v44  ;;  %6519 = vmatprep.subr.bf16.mxu0 %v7477_v51 }
 0x1f1   :  { %v624_v37 = vmax.f32 %v608_v27, %v567_v34  ;;  %v606_v32 = vmax.f32 %v590_v26, %v8574_v5  ;;  %v575_v5 = vsel %vm564_vm2, %v550_v10, %v551_v12  ;;  %v586_v40 = vmax.f32 %v8568_v1, %v574_v38  ;;  %v7478_v26 = vld [vmem:[%s9438_s22 + $0xd0] sm:$0xff]  }
 0x1f2   :  { %v628_v2 = vmax.f32 %v612_v59, %v8613_v62  ;;  %v610_v3 = vmax.f32 %v594_v52, %v544_v31  ;;  %v609_v14 = vmax.f32 %v593_v58, %v543_v39  ;;  %v627_v20 = vmax.f32 %v611_v57, %v580_v48  ;;  %v7458_v58 = vld [vmem:[%s9438_s22 + $0xf8] sm:$0xff]   ;;  %v630_v59 = vld [vmem:[%s9437_s18 + $0x8] sm:$0xff]  ;;  %v7479_v27 = vld [vmem:[%s9438_s22 + $0x10] sm:$0xff]  }
 0x1f3   :  { %v572_v31 = vsel %vm564_vm2, %v553_v18, %v554_v28  ;;  %v573_v28 = vsel %vm564_vm2, %v552_v8, %v553_v18  ;;  %v623_v39 = vmax.f32 %v607_v36, %v568_v54  ;;  %v622_v8 = vmax.f32 %v606_v32, %v569_v6  ;;  %v7468_v6 = vld [vmem:[%s9438_s22 + $0xa8] sm:$0xff]   ;;  %6520 = vmatpush3.bf16.msra.mxu0 %v7479_v27  ;;  %v7485_v36 = vld [vmem:[%s9438_s22 + $0x40] sm:$0xff]  }
 0x1f4   :  { %7095 = vmatprep.subr.mxu1 %v628_v2  ;;  %v626_v33 = vmax.f32 %v610_v3, %v565_v46  ;;  %v625_v35 = vmax.f32 %v609_v14, %v566_v17  ;;  %v588_v16 = vmax.f32 %v8566_v0, %v572_v31  ;;  %v587_v18 = vmax.f32 %v8561_v60, %v573_v28  ;;  %v7466_v3 = vld [vmem:[%s9438_s22 + $0xe8] sm:$0xff]   ;;  %v7472_v14 = vld [vmem:[%s9438_s22 + $0xa0] sm:$0xff]  }
 0x1f5   :  { %7096 = vmatpush3.msra.mxu1 %v628_v2  ;;  %v576_v29 = vsel %vm564_vm2, %v549_v4, %v550_v10  ;;  %v585_v42 = vmax.f32 %v8563_v61, %v575_v5  ;;  %v621_v12 = vmax.f32 %v605_v25, %v570_v9  ;;  %v602_v48 = vmax.f32 %v586_v40, %v8561_v60  ;;  %v7464_v2 = vld [vmem:[%s9438_s22 + $0xb0] sm:$0xff]   ;;  %v7470_v9 = vld [vmem:[%s9438_s22 + $0xe0] sm:$0xff]   ;;  %v7490_v25 = vld [vmem:[%s9438_s22 + $0x1f8] sm:$0xff]  }
 0x1f6   :  { %7097 = vmatprep.subr.mxu1 %v627_v20  ;;  %v604_v41 = vmax.f32 %v588_v16, %v8580_v11  ;;  %v584_v45 = vmax.f32 %v8554_v55, %v576_v29  ;;  %v603_v46 = vmax.f32 %v587_v18, %v8566_v0  ;;  %v577_v10 = vsel %vm564_vm2, %v548_v50, %v549_v4  ;;  %v7484_v16 = vld [vmem:[%s9438_s22 + $0x88] sm:$0xff]   ;;  %v7487_v32 = vld [vmem:[%s9438_s22] sm:$0xff]  }
 0x1f7   :  { %7098 = vmatpush3.msra.mxu1 %v627_v20  ;;  %v578_v49 = vsel %vm564_vm2, %v547_v7, %v548_v50  ;;  %v601_v0 = vmax.f32 %v585_v42, %v8568_v1  ;;  %v583_v60 = vmax.f32 %v8540_v43, %v577_v10  ;;  %v618_v4 = vmax.f32 %v602_v48, %v573_v28  ;;  %v7474_v20 = vld [vmem:[%s9438_s22 + $0xd8] sm:$0xff]   ;;  %v7488_v28 = vld [vmem:[%s9438_s22 + $0x80] sm:$0xff]  }
 0x1f8   :  { %7099 = vmatprep.subr.mxu1 %v626_v33  ;;  %v620_v11 = vmax.f32 %v604_v41, %v571_v22  ;;  %v619_v17 = vmax.f32 %v603_v46, %v572_v31  ;;  %v582_v34 = vmax.f32 %v8556_v56, %v578_v49  ;;  %v600_v52 = vmax.f32 %v584_v45, %v8563_v61  ;;  %v7476_v22 = vld [vmem:[%s9438_s22 + $0x98] sm:$0xff]   ;;  %v7481_v31 = vld [vmem:[%s9438_s22 + $0x48] sm:$0xff]  }
 0x1f9   :  { %7100 = vmatpush3.msra.mxu1 %v626_v33  ;;  %v581_v53 = vmax.f32 %v8542_v44, %v8613_v62  ;;  %v617_v50 = vmax.f32 %v601_v0, %v574_v38  ;;  %v599_v1 = vmax.f32 %v583_v60, %v8554_v55  ;;  %v631_v62 = vld [vmem:[%s9437_s18 + $0x10] sm:$0xff]  ;;  %6521 = vmatprep.subr.bf16.mxu0 %v7481_v31  ;;  %v7489_v38 = vld [vmem:[%s9438_s22 + $0x178] sm:$0xff]  }
 0x1fa   :  { %7101 = vmatprep.subr.mxu1 %v625_v35  ;;  %v616_v7 = vmax.f32 %v600_v52, %v575_v5  ;;  %v598_v54 = vmax.f32 %v582_v34, %v8540_v43  ;;  %v7460_v43 = vld [vmem:[%s9438_s22 + $0xb8] sm:$0xff]   ;;  %v7480_v33 = vld [vmem:[%s9438_s22 + $0x90] sm:$0xff]  }
 0x1fb   :  { %7102 = vmatpush3.msra.mxu1 %v625_v35  ;;  %v597_v61 = vmax.f32 %v581_v53, %v8556_v56  ;;  %v615_v57 = vmax.f32 %v599_v1, %v576_v29  ;;  %v7462_v56 = vld [vmem:[%s9438_s22 + $0xf0] sm:$0xff]   ;;  %v7483_v35 = vld [vmem:[%s9438_s22 + $0x8] sm:$0xff]  }
 0x1fc   :  { %7103 = vmatprep.subr.mxu1 %v624_v37  ;;  %v614_v44 = vmax.f32 %v598_v54, %v577_v10  ;;  %6522 = vmatpush3.bf16.msra.mxu0 %v7483_v35 }
 0x1fd   :  { %7104 = vmatpush3.msra.mxu1 %v624_v37  ;;  %v613_v55 = vmax.f32 %v597_v61, %v578_v49  ;;  %v7486_v37 = vld [vmem:[%s9438_s22 + $0xc0] sm:$0xff]   ;;  %6523 = vmatprep.subr.bf16.mxu0 %v7485_v36 }
 0x1fe   :  { %7105 = vmatprep.subr.mxu1 %v623_v39 }
 0x1ff   :  { %7106 = vmatpush3.msra.mxu1 %v623_v39  ;;  %v734_v39 = vpop.permute.xlu1 %733 }
 0x200   :  { %7107 = vmatprep.subr.mxu1 %v622_v8  ;;  %6524 = vmatpush3.bf16.msra.mxu0 %v7487_v32 }
 0x201   :  { %7108 = vmatpush3.msra.mxu1 %v622_v8  ;;  %6565 = vmatprep.subr.bf16.mxu0 %v7489_v38  ;;  %v768_v8 = vpop.permute.xlu0 %767 }
 0x202   :  { %7109 = vmatprep.subr.mxu1 %v621_v12 }
 0x203   :  { %7110 = vmatpush3.msra.mxu1 %v621_v12  ;;  %v739_v5 = vpop.permute.xlu1 %738 }
 0x204   :  { %7111 = vmatprep.subr.mxu1 %v620_v11 }
 0x205   :  { %7112 = vmatpush3.msra.mxu1 %v620_v11  ;;  %v772_v42 = vpop.permute.xlu0 %771 }
 0x206   :  { %7113 = vmatprep.subr.mxu1 %v619_v17 }
 0x207   :  { %7114 = vmatpush3.msra.mxu1 %v619_v17  ;;  %v834_v18 = vpop.permute.xlu1 %833 }
 0x208   :  { %7115 = vmatprep.subr.mxu1 %v618_v4 }
 0x209   :  { %7116 = vmatpush3.msra.mxu1 %v618_v4  ;;  %v830_v45 = vpop.permute.xlu0 %829 }
 0x20a   :  { %7117 = vmatprep.subr.mxu1 %v617_v50 }
 0x20b   :  { %7118 = vmatpush3.msra.mxu1 %v617_v50  ;;  %v799_v40 = vpop.permute.xlu1 %798 }
 0x20c   :  { %7119 = vmatprep.subr.mxu1 %v616_v7 }
 0x20d   :  { %7120 = vmatpush3.msra.mxu1 %v616_v7  ;;  %v803_v11 = vpop.permute.xlu0 %802 }
 0x20e   :  { %7121 = vmatprep.subr.mxu1 %v615_v57 }
 0x20f   :  { %7122 = vmatpush3.msra.mxu1 %v615_v57  ;;  %v8709_v41 = vpop.permute.xlu1 %775 }
 0x210   :  { %7123 = vmatprep.subr.mxu1 %v614_v44 }
 0x211   :  { %7124 = vmatpush3.msra.mxu1 %v614_v44  ;;  %v8719_v10 = vpop.permute.xlu0 %743 }
 0x212   :  { %7125 = vmatprep.subr.mxu1 %v613_v55 }
 0x213   :  { %7126 = vmatpush3.msra.mxu1 %v613_v55  ;;  %v8711_v29 = vpop.permute.xlu1 %779 }
 0x214   :  { %7128 = vmatmul.mubr.f32.vlgmr.msra.gmra.mxu1 %v630_v59  ;;  %6537 = vmatprep.subr.bf16.mxu1 %v7458_v58 }
 0x215   :  { %7130 = vmatprep.mubr.f32.mxu1 %v631_v62  ;;  %6538 = vmatpush3.bf16.msra.mxu1 %v7460_v43  ;;  %v8725_v17 = vpop.permute.xlu0 %865 }
 0x216   :  { %6539 = vmatprep.subr.bf16.mxu1 %v7462_v56 }
 0x217   :  { %v8713_v12 = vpop.permute.xlu1 %748 }
 0x218   :  { %7131 = vmatmul.mubr.f32.gmra.mxu1 %v632_v63 }
 0x219   :  { %6540 = vmatpush3.bf16.msra.mxu1 %v7464_v2  ;;  %v8759_v62 = vpop.permute.xlu0 %806 }
 0x21a   :  { %6541 = vmatprep.subr.bf16.mxu1 %v7466_v3 }
 0x21b   :  { %v8715_v46 = vpop.permute.xlu1 %861 }
 0x21d   :  { %6542 = vmatpush3.bf16.msra.mxu1 %v7468_v6 }
 0x21e   :  { %6543 = vmatprep.subr.bf16.mxu1 %v7470_v9 }
 0x21f   :  { %v8717_v48 = vpop.permute.xlu1 %837 }
 0x221   :  { %6544 = vmatpush3.bf16.msra.mxu1 %v7472_v14 }
 0x222   :  { %6545 = vmatprep.subr.bf16.mxu1 %v7474_v20 }
 0x223   :  { %v8721_v49 = vpop.permute.xlu1 %841 }
 0x225   :  { %6546 = vmatpush3.bf16.msra.mxu1 %v7476_v22 }
 0x226   :  { %6547 = vmatprep.subr.bf16.mxu1 %v7478_v26 }
 0x227   :  { %v8727_v60 = vpop.permute.xlu1 %810 }
 0x229   :  { %6548 = vmatpush3.bf16.msra.mxu1 %v7480_v33 }
 0x22a   :  { %6549 = vmatprep.subr.bf16.mxu1 %v7482_v23 }
 0x22b   :  { %v8771_v6 = vpop.permute.xlu1 %905 }
 0x22d   :  { %6550 = vmatpush3.bf16.msra.mxu1 %v7484_v16 }
 0x22e   :  { %6551 = vmatprep.subr.bf16.mxu1 %v7486_v37 }
 0x231   :  { %6552 = vmatpush3.bf16.msra.mxu1 %v7488_v28 }
 0x232   :  { %6593 = vmatprep.subr.bf16.mxu1 %v7490_v25 }
 0x2d4   :  { %v8723_v0 = vpop.f32.mrf.mxu1 }
 0x2d5   :  { %v789_v53 = vrot.slane %v8723_v0, 5  ;;  %v758_v1 = vrot.slane %v8723_v0, 4  ;;  %v820_v59 = vrot.slane %v8723_v0, 7  ;;  %v723_v56 = vrot.slane %v8723_v0, 3 }
 0x2d6   :  { %v8729_v34 = vpop.f32.mrf.mxu1  ;;  %v853_v16 = vrot.slane %v8723_v0, 1 }
 0x2d7   :  { %v788_v52 = vrot.slane %v8729_v34, 5  ;;  %v757_v4 = vrot.slane %v8729_v34, 4  ;;  %v819_v7 = vrot.slane %v8729_v34, 7  ;;  %v722_v54 = vrot.slane %v8729_v34, 3 }
 0x2d8   :  { %v8736_v50 = vpop.f32.mrf.mxu1  ;;  %v852_v35 = vrot.slane %v8729_v34, 1 }
 0x2d9   :  { %v791_v61 = vrot.slane %v8736_v50, 5  ;;  %v760_v57 = vrot.slane %v8736_v50, 4  ;;  %v8749_v44 = vsel %vm792_vm3, %v788_v52, %v789_v53  ;;  %v8755_v58 = vsel %vm761_vm4, %v757_v4, %v758_v1 }
 0x2da   :  { %v8751_v55 = vpop.f32.mrf.mxu1  ;;  %v822_v43 = vrot.slane %v8736_v50, 7  ;;  %v725_v63 = vrot.slane %v8736_v50, 3  ;;  %v783_v20 = vmul.f32 %v772_v42, %v8755_v58  ;;  %v826_v22 = vsel %vm823_vm5, %v819_v7, %v820_v59 }
 0x2db   :  { %v8765_v2 = vsel %vm792_vm3, %v791_v61, %v788_v52  ;;  %v8769_v3 = vsel %vm761_vm4, %v760_v57, %v757_v4  ;;  %v814_v51 = vmul.f32 %v803_v11, %v8749_v44  ;;  %v790_v26 = vrot.slane %v8751_v55, 5  ;;  %v7491_v11 = vld [vmem:[%s9438_s22 + $0x138] sm:$0xff]   ;;  %v8811_v4 = vpop.permute.xlu1 %883 }
 0x2dc   :  { %v813_v9 = vmul.f32 %v799_v40, %v8765_v2  ;;  %v782_v14 = vmul.f32 %v768_v8, %v8769_v3  ;;  %v827_v27 = vsel %vm823_vm5, %v822_v43, %v819_v7  ;;  %v8784_v33 = vsel %vm726_vm6, %v722_v54, %v723_v56  ;;  %v8797_v8 = vpop.permute.xlu0 %869  ;;  %v7492_v52 = vld [vmem:[%s9438_s22 + $0x1b8] sm:$0xff]  }
 0x2dd   :  { %v845_v23 = vmul.f32 %v834_v18, %v826_v22  ;;  %v844_v37 = vmul.f32 %v830_v45, %v827_v27  ;;  %v8790_v32 = vsel %vm726_vm6, %v725_v63, %v722_v54  ;;  %v759_v28 = vrot.slane %v8751_v55, 4 }
 0x2de   :  { %v786_v31 = vpack.c.bf16 %v783_v20, %v782_v14  ;;  %v817_v36 = vpack.c.bf16 %v814_v51, %v813_v9  ;;  %v751_v38 = vmul.f32 %v734_v39, %v8790_v32  ;;  %v752_v25 = vmul.f32 %v739_v5, %v8784_v33  ;;  %v7493_v14 = vld [vmem:[%s9438_s22 + $0x170] sm:$0xff]  }
 0x2df   :  { %v821_v18 = vrot.slane %v8751_v55, 7  ;;  %v724_v40 = vrot.slane %v8751_v55, 3  ;;  %v8801_v42 = vsel %vm792_vm3, %v790_v26, %v791_v61  ;;  %v848_v45 = vpack.c.bf16 %v845_v23, %v844_v37  ;;  %v7494_v20 = vld [vmem:[%s9438_s22 + $0x1f0] sm:$0xff]   ;;  %v7498_v23 = vld [vmem:[%s9438_s22 + $0x1e8] sm:$0xff]  }
 0x2e0   :  { %1563 = vmatprep.mubr.bf16.mxu0 %v786_v31  ;;  %v8807_v39 = vsel %vm761_vm4, %v759_v28, %v760_v57  ;;  %v763_v5 = vsel %vm761_vm4, %v758_v1, %v759_v28  ;;  %v755_v7 = vpack.c.bf16 %v752_v25, %v751_v38  ;;  %v7496_v51 = vld [vmem:[%s9438_s22 + $0x1b0] sm:$0xff]   ;;  %v7497_v31 = vld [vmem:[%s9438_s22 + $0x168] sm:$0xff]  }
 0x2e1   :  { %v784_v54 = vmul.f32 %v8709_v41, %v763_v5  ;;  %v785_v9 = vmul.f32 %v8711_v29, %v8807_v39  ;;  %v824_v61 = vsel %vm823_vm5, %v821_v18, %v822_v43  ;;  %1612 = vmatprep.mubr.bf16.mxu1 %v848_v45  ;;  %v825_v57 = vsel %vm823_vm5, %v820_v59, %v821_v18  ;;  %v7499_v38 = vld [vmem:[%s9438_s22 + $0x128] sm:$0xff]   ;;  %v7501_v45 = vld [vmem:[%s9438_s22 + $0x160] sm:$0xff]  }
 0x2e2   :  { %v847_v1 = vmul.f32 %v8721_v49, %v824_v61  ;;  %v8825_v22 = vsel %vm726_vm6, %v724_v40, %v725_v63  ;;  %v8829_v41 = vsel %vm726_vm6, %v723_v56, %v724_v40  ;;  %v816_v29 = vmul.f32 %v8727_v60, %v8801_v42  ;;  %1564 = vmatmul.mubr.bf16.vlgmr.msra.gmra.mxu0 %v755_v7  ;;  %v7495_v63 = vld [vmem:[%s9438_s22 + $0x130] sm:$0xff]   ;;  %v7500_v25 = vld [vmem:[%s9438_s22 + $0x1a8] sm:$0xff]   ;;  %v7504_v7 = vld [vmem:[%s9438_s22 + $0x1a0] sm:$0xff]  }
 0x2e3   :  { %1613 = vmatmul.mubr.bf16.vlgmr.msra.gmra.mxu1 %v817_v36  ;;  %v787_v43 = vpack.c.bf16 %v785_v9, %v784_v54  ;;  %v846_v59 = vmul.f32 %v8717_v48, %v825_v57  ;;  %v854_v49 = vrot.slane %v8751_v55, 1  ;;  %6566 = vmatpush3.bf16.msra.mxu0 %v7491_v11  ;;  %v753_v56 = vmul.f32 %v8719_v10, %v8829_v41  ;;  %v910_v10 = vpop.permute.xlu0 %909  ;;  %v7508_v9 = vld [vmem:[%s9438_s22 + $0x198] sm:$0xff]   ;;  %v7509_v61 = vld [vmem:[%s9438_s22 + $0x150] sm:$0xff]  }
 0x2e4   :  { %6594 = vmatpush3.bf16.msra.mxu1 %v7492_v52  ;;  %v754_v27 = vmul.f32 %v8713_v12, %v8825_v22  ;;  %v8845_v60 = vsel %vm792_vm3, %v789_v53, %v790_v26  ;;  %6567 = vmatprep.subr.bf16.mxu0 %v7493_v14  ;;  %v858_v53 = vsel %vm564_vm2, %v852_v35, %v853_v16  ;;  %v8859_v26 = vpop.permute.xlu1 %887  ;;  %v7510_v14 = vld [vmem:[%s9438_s22 + $0x1d0] sm:$0xff]  }
 0x2e5   :  { %1571 = vmatprep.mubr.bf16.mxu0 %v787_v43  ;;  %v849_v48 = vpack.c.bf16 %v847_v1, %v846_v59  ;;  %v815_v36 = vmul.f32 %v8759_v62, %v8845_v60  ;;  %v857_v12 = vsel %vm564_vm2, %v853_v16, %v854_v49  ;;  %6595 = vmatprep.subr.bf16.mxu1 %v7494_v20  ;;  %v7511_v1 = vld [vmem:[%s9438_s22 + $0x110] sm:$0xff]   ;;  %v7514_v43 = vld [vmem:[%s9438_s22 + $0x1c8] sm:$0xff]  }
 0x2e6   :  { %v877_v37 = vmul.f32 %v8725_v17, %v857_v12  ;;  %v921_v62 = vmul.f32 %v910_v10, %v763_v5  ;;  %v756_v28 = vpack.c.bf16 %v754_v27, %v753_v56  ;;  %v876_v16 = vmul.f32 %v8715_v46, %v858_v53  ;;  %v7502_v17 = vld [vmem:[%s9438_s22 + $0x1e0] sm:$0xff]   ;;  %v7505_v46 = vld [vmem:[%s9438_s22 + $0x158] sm:$0xff]   ;;  %v7512_v20 = vld [vmem:[%s9438_s22 + $0x190] sm:$0xff]  }
 0x2e7   :  { %1620 = vmatprep.mubr.bf16.mxu1 %v849_v48  ;;  %6568 = vmatpush3.bf16.msra.mxu0 %v7495_v63  ;;  %v818_v18 = vpack.c.bf16 %v816_v29, %v815_v36  ;;  %v920_v40 = vmul.f32 %v8771_v6, %v8755_v58  ;;  %v7503_v5 = vld [vmem:[%s9438_s22 + $0x120] sm:$0xff]   ;;  %v7506_v58 = vld [vmem:[%s9438_s22 + $0x1d8] sm:$0xff]   ;;  %v7513_v29 = vld [vmem:[%s9438_s22 + $0x148] sm:$0xff]   ;;  %v855_v48 = vrot.slane %v8736_v50, 1  ;;  %v899_v12 = vmul.f32 %v8859_v26, %v8829_v41 }
 0x2e8   :  { %6596 = vmatpush3.bf16.msra.mxu1 %v7496_v51  ;;  %6569 = vmatprep.subr.bf16.mxu0 %v7497_v31  ;;  %v880_v11 = vpack.c.bf16 %v877_v37, %v876_v16  ;;  %v874_v54 = vpop.permute.xlu1 %873  ;;  %v7507_v6 = vld [vmem:[%s9438_s22 + $0x118] sm:$0xff]   ;;  %v7515_v59 = vld [vmem:[%s9438_s22 + $0x108] sm:$0xff]   ;;  %v7517_v56 = vld [vmem:[%s9438_s22 + $0x140] sm:$0xff]  }
 0x2e9   :  { %6597 = vmatprep.subr.bf16.mxu1 %v7498_v23  ;;  %v924_v52 = vpack.c.bf16 %v921_v62, %v920_v40  ;;  %v7516_v63 = vld [vmem:[%s9438_s22 + $0x188] sm:$0xff]   ;;  %v7518_v27 = vld [vmem:[%s9438_s22 + $0x1c0] sm:$0xff]   ;;  %v856_v31 = vsel %vm564_vm2, %v854_v49, %v855_v48  ;;  %v7521_v10 = vld [vmem:[%s9438_s22 + $0x238] sm:$0xff]   ;;  %v859_v53 = vsel %vm564_vm2, %v855_v48, %v852_v35  ;;  %v918_v62 = vpop.permute.xlu0 %917 }
 0x2ea   :  { %1572 = vmatmul.mubr.bf16.gmra.mxu0 %v756_v28  ;;  %v7519_v23 = vld [vmem:[%s9438_s22 + $0x100] sm:$0xff]   ;;  %v878_v37 = vmul.f32 %v8797_v8, %v856_v31  ;;  %v879_v41 = vmul.f32 %v874_v54, %v859_v53  ;;  %v923_v26 = vmul.f32 %v918_v62, %v8769_v3  ;;  %v7522_v16 = vld [vmem:[%s9438_s22 + $0x230] sm:$0xff]  }
 0x2eb   :  { %1621 = vmatmul.mubr.bf16.gmra.mxu1 %v818_v18  ;;  %6570 = vmatpush3.bf16.msra.mxu0 %v7499_v38  ;;  %v7520_v36 = vld [vmem:[%s9438_s22 + $0x180] sm:$0xff]   ;;  %v898_v38 = vmul.f32 %v8811_v4, %v8784_v33  ;;  %v7523_v4 = vld [vmem:[%s9438_s22 + $0x228] sm:$0xff]  }
 0x2ec   :  { %6598 = vmatpush3.bf16.msra.mxu1 %v7500_v25  ;;  %1661 = vmatprep.mubr.bf16.mxu0 %v880_v11  ;;  %v914_v57 = vpop.permute.xlu1 %913  ;;  %v850_v25 = vpack.c.bf16 %v8723_v0, %v8729_v34  ;;  %v881_v35 = vpack.c.bf16 %v879_v41, %v878_v37 }
 0x2ed   :  { %1710 = vmatprep.mubr.bf16.mxu1 %v924_v52  ;;  %6571 = vmatprep.subr.bf16.mxu0 %v7501_v45  ;;  %v922_v49 = vmul.f32 %v914_v57, %v8807_v39  ;;  %v902_v18 = vpack.c.bf16 %v899_v12, %v898_v38  ;;  %v928_v0 = vpop.permute.xlu0 %927  ;;  %v851_v45 = vpack.c.bf16 %v8736_v50, %v8751_v55  ;;  %v7528_v50 = vld [vmem:[%s9438_s22 + $0x200] sm:$0xff]  }
 0x2ee   :  { %6599 = vmatprep.subr.bf16.mxu1 %v7502_v17  ;;  %v942_v40 = vmul.f32 %v928_v0, %v8749_v44  ;;  %v7527_v44 = vld [vmem:[%s9438_s22 + $0x208] sm:$0xff]   ;;  %v7541_v57 = vld [vmem:[%s9440_s29 + $0x60] sm:$0xff]  }
 0x2ef   :  { %6572 = vmatpush3.bf16.msra.mxu0 %v7503_v5  ;;  %v925_v8 = vpack.c.bf16 %v923_v26, %v922_v49 }
 0x2f0   :  { %6600 = vmatpush3.bf16.msra.mxu1 %v7504_v7  ;;  %6573 = vmatprep.subr.bf16.mxu0 %v7505_v46  ;;  %v892_v51 = vpop.permute.xlu1 %891  ;;  %v8255_v46 = vmov 0.0  }
 0x2f1   :  { %6601 = vmatprep.subr.bf16.mxu1 %v7506_v58  ;;  %v900_v39 = vmul.f32 %v892_v51, %v8825_v22  ;;  %v7524_v22 = vld [vmem:[%s9438_s22 + $0x220] sm:$0xff]   ;;  %v940_v52 = vpop.permute.xlu0 %939 }
 0x2f2   :  { %v945_v7 = vmul.f32 %v940_v52, %v8765_v2  ;;  %v1893_v58 = vld [vmem:[%s9439_s23] sm:$0xff]  ;;  %v7533_v2 = vld [vmem:[%s9440_s29 + $0x70] sm:$0xff]  }
 0x2f3   :  { %6574 = vmatpush3.bf16.msra.mxu0 %v7507_v6  ;;  %v7529_v6 = vld [vmem:[%s9440_s29 + $0x78] sm:$0xff]   ;;  %1904 = vperm.xlu1 %7440, %v1893_v58  }
 0x2f4   :  { %6602 = vmatpush3.bf16.msra.mxu1 %v7508_v9  ;;  %6575 = vmatprep.subr.bf16.mxu0 %v7509_v61  ;;  %v896_v28 = vpop.permute.xlu1 %895  ;;  %v7535_v9 = vld [vmem:[%s9440_s29 + $0x30] sm:$0xff]   ;;  %v7537_v61 = vld [vmem:[%s9440_s29 + $0x68] sm:$0xff]  }
 0x2f5   :  { %6603 = vmatprep.subr.bf16.mxu1 %v7510_v14  ;;  %v901_v34 = vmul.f32 %v896_v28, %v8790_v32  ;;  %v7526_v32 = vld [vmem:[%s9438_s22 + $0x210] sm:$0xff]   ;;  %1897 = vperm.xlu0 %7441, %v1893_v58   ;;  %v7539_v14 = vld [vmem:[%s9440_s29 + $0x28] sm:$0xff]  }
 0x2f7   :  { %6576 = vmatpush3.bf16.msra.mxu0 %v7511_v1  ;;  %v903_v17 = vpack.c.bf16 %v901_v34, %v900_v39  ;;  %7442 = vset.pattern.permute.xlu1 %v8248_v13  ;;  %v7543_v13 = vld [vmem:[%s9440_s29 + $0x20] sm:$0xff]   ;;  %v7547_v1 = vld [vmem:[%s9440_s29 + $0x18] sm:$0xff]   ;;  %v6100_v39 = vld [vmem:[#allocation9] ss:$0 sm:$0xff] }
 0x2f8   :  { %6604 = vmatpush3.bf16.msra.mxu1 %v7512_v20  ;;  %6577 = vmatprep.subr.bf16.mxu0 %v7513_v29  ;;  %v932_v33 = vpop.permute.xlu1 %931  ;;  %v7549_v20 = vld [vmem:[%s9440_s29 + $0x50] sm:$0xff]  }
 0x2f9   :  { %6605 = vmatprep.subr.bf16.mxu1 %v7514_v43  ;;  %v943_v3 = vmul.f32 %v932_v33, %v8845_v60  ;;  %v7525_v60 = vld [vmem:[%s9438_s22 + $0x218] sm:$0xff]   ;;  %7444 = vset.pattern.permute.xlu0 %v8251_v19 }
 0x2fa   :  { %1917 = vperm.xlu1 %7442, %v1893_v58   ;;  %1925 = vperm.xlu0 %7444, %v1893_v58   ;;  %v7545_v19 = vld [vmem:[%s9440_s29 + $0x58] sm:$0xff]  }
 0x2fb   :  { %6578 = vmatpush3.bf16.msra.mxu0 %v7515_v59  ;;  %v946_v11 = vpack.c.bf16 %v943_v3, %v942_v40 }
 0x2fc   :  { %6606 = vmatpush3.bf16.msra.mxu1 %v7516_v63  ;;  %6579 = vmatprep.subr.bf16.mxu0 %v7517_v56  ;;  %v936_v55 = vpop.permute.xlu1 %935 }
 0x2fd   :  { %6607 = vmatprep.subr.bf16.mxu1 %v7518_v27  ;;  %v944_v5 = vmul.f32 %v936_v55, %v8801_v42  ;;  %v7531_v42 = vld [vmem:[%s9440_s29 + $0x38] sm:$0xff]  }
 0x2fe   :  { %7443 = vset.pattern.permute.xlu1 %v8249_v15  ;;  %7447 = vset.pattern.permute.xlu0 %v8254_v30  ;;  %v7551_v15 = vld [vmem:[%s9440_s29 + $0x10] sm:$0xff]   ;;  %v7553_v30 = vld [vmem:[%s9440_s29 + $0x48] sm:$0xff]  }
 0x2ff   :  { %6580 = vmatpush3.bf16.msra.mxu0 %v7519_v23  ;;  %v947_v54 = vpack.c.bf16 %v945_v7, %v944_v5  ;;  %1911 = vperm.xlu1 %7443, %v1893_v58  }
 0x300   :  { %6608 = vmatpush3.bf16.msra.mxu1 %v7520_v36  ;;  %7133 = vmatprep.subr.bf16.mxu0 %v7521_v10 }
 0x301   :  { %6636 = vmatprep.subr.bf16.mxu1 %v7529_v6  ;;  %1945 = vperm.xlu0 %7447, %v1893_v58  }
 0x302   :  { %1662 = vmatmul.mubr.bf16.vlgmr.msra.gmra.mxu0 %v850_v25 }
 0x303   :  { %1711 = vmatmul.mubr.bf16.vlgmr.msra.gmra.mxu1 %v902_v18  ;;  %1669 = vmatprep.mubr.bf16.mxu0 %v881_v35 }
 0x304   :  { %1718 = vmatprep.mubr.bf16.mxu1 %v925_v8  ;;  %7134 = vmatpush3.bf16.msra.mxu0 %v7521_v10 }
 0x305   :  { %7135 = vmatprep.subr.bf16.mxu0 %v7522_v16  ;;  %6637 = vmatpush3.bf16.msra.mxu1 %v7531_v42 }
 0x306   :  { %6638 = vmatprep.subr.bf16.mxu1 %v7533_v2  ;;  %7445 = vset.pattern.permute.xlu1 %v8252_v21 }
 0x307   :  { %1938 = vperm.xlu1 %7445, %v1893_v58  }
 0x308   :  { %7136 = vmatpush3.bf16.msra.mxu0 %v7522_v16 }
 0x309   :  { %7137 = vmatprep.subr.bf16.mxu0 %v7523_v4  ;;  %6639 = vmatpush3.bf16.msra.mxu1 %v7535_v9 }
 0x30a   :  { %1670 = vmatmul.mubr.bf16.gmra.mxu0 %v851_v45  ;;  %6640 = vmatprep.subr.bf16.mxu1 %v7537_v61 }
 0x30b   :  { %1719 = vmatmul.mubr.bf16.gmra.mxu1 %v903_v17  ;;  %7149 = vmatprep.mubr.bf16.mxu0 %v946_v11 }
 0x30c   :  { %7138 = vmatpush3.bf16.msra.mxu0 %v7523_v4  ;;  %7446 = vset.pattern.permute.xlu1 %v8253_v24 }
 0x30d   :  { %7139 = vmatprep.subr.bf16.mxu0 %v7524_v22  ;;  %6641 = vmatpush3.bf16.msra.mxu1 %v7539_v14 }
 0x30e   :  { %6642 = vmatprep.subr.bf16.mxu1 %v7541_v57  ;;  %1931 = vperm.xlu1 %7446, %v1893_v58  }
 0x310   :  { %7140 = vmatpush3.bf16.msra.mxu0 %v7524_v22 }
 0x311   :  { %7141 = vmatprep.subr.bf16.mxu0 %v7525_v60  ;;  %6643 = vmatpush3.bf16.msra.mxu1 %v7543_v13 }
 0x312   :  { %6644 = vmatprep.subr.bf16.mxu1 %v7545_v19 }
 0x314   :  { %7142 = vmatpush3.bf16.msra.mxu0 %v7525_v60 }
 0x315   :  { %7143 = vmatprep.subr.bf16.mxu0 %v7526_v32  ;;  %6645 = vmatpush3.bf16.msra.mxu1 %v7547_v1 }
 0x316   :  { %6646 = vmatprep.subr.bf16.mxu1 %v7549_v20 }
 0x318   :  { %7144 = vmatpush3.bf16.msra.mxu0 %v7526_v32 }
 0x319   :  { %7145 = vmatprep.subr.bf16.mxu0 %v7527_v44  ;;  %6647 = vmatpush3.bf16.msra.mxu1 %v7551_v15 }
 0x31a   :  { %6648 = vmatprep.subr.bf16.mxu1 %v7553_v30 }
 0x31c   :  { %7146 = vmatpush3.bf16.msra.mxu0 %v7527_v44 }
 0x31d   :  { %7147 = vmatprep.subr.bf16.mxu0 %v7528_v50 }
 0x320   :  { %7148 = vmatpush3.bf16.msra.mxu0 %v7528_v50 }
 0x321   :  { %7153 = vmatprep.subr.mxu0 %v8255_v46 }
 0x323   :  { %7150 = vmatmul.mubr.bf16.vlgmr.msra.gmra.mxu0 %v947_v54 }
 0x324   :  { %7161 = vmatprep.mubr.msk.f32.mxu0 %vm8256_vm7, %v8255_v46 }
 0x3a2   :  { %v6525_v29 = vpop.f32.mrf.mxu0 }
 0x3a3   :  { %v6553_v43 = vpop.f32.mrf.mxu1 }
 0x3a4   :  { %v6526_v59 = vpop.f32.mrf.mxu0 }
 0x3a5   :  { %v6554_v63 = vpop.f32.mrf.mxu1  ;;  %v6527_v16 = vadd.f32 %v6526_v59, %v6525_v29 }
 0x3a6   :  { %v6528_v51 = vpop.f32.mrf.mxu0  ;;  %v6555_v22 = vadd.f32 %v6554_v63, %v6553_v43 }
 0x3a7   :  { %v6556_v21 = vpop.f32.mrf.mxu1  ;;  %v1566_v34 = vadd.f32 %v6527_v16, %v6100_v39 }
 0x3a8   :  { %v6529_v56 = vpop.f32.mrf.mxu0 }
 0x3a9   :  { %v6557_v27 = vpop.f32.mrf.mxu1  ;;  %v6530_v40 = vadd.f32 %v6529_v56, %v6528_v51  ;;  %v1615_v55 = vadd.f32 %v6555_v22, %v1566_v34 }
 0x3aa   :  { %v6531_v48 = vpop.f32.mrf.mxu0  ;;  %v6558_v6 = vadd.f32 %v6557_v27, %v6556_v21 }
 0x3ab   :  { %v6559_v31 = vpop.f32.mrf.mxu1  ;;  %v1569_v52 = vadd.f32 %v6530_v40, %v6100_v39 }
 0x3ac   :  { %v6532_v23 = vpop.f32.mrf.mxu0 }
 0x3ad   :  { %v6560_v36 = vpop.f32.mrf.mxu1  ;;  %v6533_v8 = vadd.f32 %v6532_v23, %v6531_v48  ;;  %v1618_v14 = vadd.f32 %v6558_v6, %v1569_v52 }
 0x3ae   :  { %v6534_v24 = vpop.f32.mrf.mxu0  ;;  %v6561_v17 = vadd.f32 %v6560_v36, %v6559_v31 }
 0x3af   :  { %v6562_v12 = vpop.f32.mrf.mxu1  ;;  %v1574_v3 = vadd.f32 %v6533_v8, %v6100_v39 }
 0x3b0   :  { %v6535_v10 = vpop.f32.mrf.mxu0 }
 0x3b1   :  { %v6563_v37 = vpop.f32.mrf.mxu1  ;;  %v6536_v0 = vadd.f32 %v6535_v10, %v6534_v24  ;;  %v1623_v44 = vadd.f32 %v6561_v17, %v1574_v3 }
 0x3b2   :  { %v6564_v7 = vadd.f32 %v6563_v37, %v6562_v12 }
 0x3b3   :  { %v1577_v50 = vadd.f32 %v6536_v0, %v6100_v39 }
 0x3b5   :  { %v1626_v9 = vadd.f32 %v6564_v7, %v1577_v50 }
 0x3c2   :  { %v6581_v53 = vpop.f32.mrf.mxu0 }
 0x3c3   :  { %v6609_v62 = vpop.f32.mrf.mxu1 }
 0x3c4   :  { %v6582_v49 = vpop.f32.mrf.mxu0 }
 0x3c5   :  { %v6610_v38 = vpop.f32.mrf.mxu1  ;;  %v6583_v60 = vadd.f32 %v6582_v49, %v6581_v53 }
 0x3c6   :  { %v6584_v28 = vpop.f32.mrf.mxu0  ;;  %v6611_v57 = vadd.f32 %v6610_v38, %v6609_v62 }
 0x3c7   :  { %v6612_v26 = vpop.f32.mrf.mxu1  ;;  %v1664_v42 = vadd.f32 %v6583_v60, %v1615_v55 }
 0x3c8   :  { %v6585_v41 = vpop.f32.mrf.mxu0 }
 0x3c9   :  { %v6613_v18 = vpop.f32.mrf.mxu1  ;;  %v6586_v2 = vadd.f32 %v6585_v41, %v6584_v28  ;;  %v1713_v30 = vadd.f32 %v6611_v57, %v1664_v42  ;;  %v7530_v42 = vld [vmem:[%s9440_s29 + $0xf8] sm:$0xff]   ;;  %v7536_v57 = vld [vmem:[%s9440_s29 + $0xb0] sm:$0xff]  }
 0x3ca   :  { %v6587_v25 = vpop.f32.mrf.mxu0  ;;  %v6614_v63 = vadd.f32 %v6613_v18, %v6612_v26 }
 0x3cb   :  { %v6615_v33 = vpop.f32.mrf.mxu1  ;;  %v1667_v15 = vadd.f32 %v6586_v2, %v1618_v14  ;;  %v7534_v14 = vld [vmem:[%s9440_s29 + $0xf0] sm:$0xff]  }
 0x3cc   :  { %v6588_v35 = vpop.f32.mrf.mxu0 }
 0x3cd   :  { %v6616_v45 = vpop.f32.mrf.mxu1  ;;  %v6589_v11 = vadd.f32 %v6588_v35, %v6587_v25  ;;  %v1716_v21 = vadd.f32 %v6614_v63, %v1667_v15  ;;  %v7546_v15 = vld [vmem:[%s9440_s29 + $0xd8] sm:$0xff]   ;;  %v7555_v63 = vld [vmem:[%s9440_s29 + $0x8] sm:$0xff]  }
 0x3ce   :  { %v6590_v4 = vpop.f32.mrf.mxu0  ;;  %v6617_v61 = vadd.f32 %v6616_v45, %v6615_v33  ;;  %6649 = vmatpush3.bf16.msra.mxu1 %v7555_v63  ;;  %v7591_v63 = vld [vmem:[%s9440_s29 + $0x100] sm:$0xff]  }
 0x3cf   :  { %v6618_v5 = vpop.f32.mrf.mxu1  ;;  %v1672_v54 = vadd.f32 %v6589_v11, %v1623_v44 }
 0x3d0   :  { %v6591_v32 = vpop.f32.mrf.mxu0 }
 0x3d1   :  { %v6592_v58 = vadd.f32 %v6591_v32, %v6590_v4  ;;  %v6619_v13 = vpop.f32.mrf.mxu1  ;;  %v1721_v1 = vadd.f32 %v6617_v61, %v1672_v54  ;;  %v7532_v61 = vld [vmem:[%s9440_s29 + $0xb8] sm:$0xff]  }
 0x3d2   :  { %v6620_v29 = vadd.f32 %v6619_v13, %v6618_v5  ;;  %v7538_v13 = vld [vmem:[%s9440_s29 + $0xe8] sm:$0xff]  }
 0x3d3   :  { %v1675_v19 = vadd.f32 %v6592_v58, %v1626_v9  ;;  %v1816_v9 = vld [vmem:[#allocation2] sm:$0xff] }
 0x3d5   :  { %v1724_v56 = vadd.f32 %v6620_v29, %v1675_v19  ;;  %v7540_v19 = vld [vmem:[%s9440_s29 + $0xa8] sm:$0xff]   ;;  %v7550_v29 = vld [vmem:[%s9440_s29 + $0xd0] sm:$0xff]  }
 0x3e3   :  { %v7151_v20 = vpop.f32.mrf.mxu0 }
 0x3e4   :  { %v1770_v43 = vadd.f32 %v7151_v20, %v1721_v1  ;;  %v7542_v1 = vld [vmem:[%s9440_s29 + $0xe0] sm:$0xff]  }
 0x3e5   :  { %v1761_v59 = vpop.f32.mrf.mxu0  ;;  %v7544_v20 = vld [vmem:[%s9440_s29 + $0xa0] sm:$0xff]  }
 0x3e6   :  { %v1762_v51 = vadd.f32 %v1761_v59, %v1713_v30  ;;  %v1778_v27 = vmax.f32 %v1770_v43, 0.0  ;;  %v7548_v30 = vld [vmem:[%s9440_s29 + $0x98] sm:$0xff]   ;;  %v7552_v43 = vld [vmem:[%s9440_s29 + $0x90] sm:$0xff]   ;;  %v7554_v59 = vld [vmem:[%s9440_s29 + $0xc8] sm:$0xff]  }
 0x3e7   :  { %v7152_v48 = vpop.f32.mrf.mxu0 }
 0x3e8   :  { %v1776_v31 = vmax.f32 %v1762_v51, 0.0  ;;  %v1773_v23 = vadd.f32 %v7152_v48, %v1724_v56  ;;  %v1782_v53 = vrot.slane %v1778_v27, 1  ;;  %v1794_v28 = vrot.slane %v1778_v27, 4  ;;  %v7556_v51 = vld [vmem:[%s9440_s29 + $0x88] sm:$0xff]   ;;  %v7557_v56 = vld [vmem:[%s9440_s29 + $0x40] sm:$0xff]  }
 0x3e9   :  { %v1764_v36 = vpop.f32.mrf.mxu0  ;;  %v1806_v34 = vrot.slane %v1778_v27, 5  ;;  %v7558_v48 = vld [vmem:[%s9440_s29 + $0xc0] sm:$0xff]   ;;  %6650 = vmatprep.subr.bf16.mxu1 %v7557_v56 }
 0x3ea   :  { %v1765_v24 = vadd.f32 %v1764_v36, %v1716_v21  ;;  %v1779_v12 = vmax.f32 %v1773_v23, 0.0  ;;  %v1780_v37 = vrot.slane %v1776_v31, 1  ;;  %v1792_v38 = vrot.slane %v1776_v31, 4  ;;  %v7559_v21 = vld [vmem:[%s9440_s29] sm:$0xff]   ;;  %v7562_v23 = vld [vmem:[%s9440_s29 + $0x1f8] sm:$0xff]   ;;  %v8992_v36 = vpop.permute.xlu1 %1904 }
 0x3eb   :  { %v1804_v39 = vrot.slane %v1776_v31, 5  ;;  %6651 = vmatpush3.bf16.msra.mxu1 %v7559_v21 }
 0x3ec   :  { %v1777_v10 = vmax.f32 %v1765_v24, 0.0  ;;  %v1783_v49 = vrot.slane %v1779_v12, 1  ;;  %v1795_v62 = vrot.slane %v1779_v12, 4  ;;  %v1807_v25 = vrot.slane %v1779_v12, 5 }
 0x3ee   :  { %v1781_v41 = vrot.slane %v1777_v10, 1  ;;  %v1787_v26 = vsel %vm564_vm2, %v1783_v49, %v1780_v37  ;;  %v1793_v18 = vrot.slane %v1777_v10, 4  ;;  %v1784_v35 = vsel %vm564_vm2, %v1782_v53, %v1783_v49  ;;  %v8994_v24 = vpop.permute.xlu1 %1917 }
 0x3ef   :  { %v1791_v8 = vmax.f32 %v1779_v12, %v1787_v26  ;;  %v1790_v33 = vmax.f32 %v1778_v27, %v1784_v35  ;;  %v1799_v3 = vsel %vm761_vm4, %v1795_v62, %v1792_v38  ;;  %v1796_v0 = vsel %vm761_vm4, %v1794_v28, %v1795_v62  ;;  %v7560_v27 = vld [vmem:[%s9440_s29 + $0x80] sm:$0xff]  }
 0x3f0   :  { %v1785_v16 = vsel %vm564_vm2, %v1781_v41, %v1782_v53  ;;  %v1786_v17 = vsel %vm564_vm2, %v1780_v37, %v1781_v41  ;;  %v1805_v11 = vrot.slane %v1777_v10, 5  ;;  %v1811_v22 = vsel %vm792_vm3, %v1807_v25, %v1804_v39 }
 0x3f1   :  { %v1789_v4 = vmax.f32 %v1777_v10, %v1785_v16  ;;  %v1803_v40 = vmax.f32 %v1791_v8, %v1799_v3  ;;  %v1802_v45 = vmax.f32 %v1790_v33, %v1796_v0  ;;  %v1797_v60 = vsel %vm761_vm4, %v1793_v18, %v1794_v28  ;;  %v8998_v10 = vpop.permute.xlu0 %1897  ;;  %v7563_v0 = vld [vmem:[%s9440_s29 + $0x138] sm:$0xff]  }
 0x3f2   :  { %v1788_v32 = vmax.f32 %v1776_v31, %v1786_v17  ;;  %v1808_v55 = vsel %vm792_vm3, %v1806_v34, %v1807_v25  ;;  %v1798_v52 = vsel %vm761_vm4, %v1792_v38, %v1793_v18  ;;  %v1809_v54 = vsel %vm792_vm3, %v1805_v11, %v1806_v34  ;;  %v7561_v31 = vld [vmem:[%s9440_s29 + $0x178] sm:$0xff]   ;;  %v8996_v12 = vpop.permute.xlu1 %1911  ;;  %v7565_v17 = vld [vmem:[%s9440_s29 + $0x170] sm:$0xff]  }
 0x3f3   :  { %v1815_v44 = vmax.f32 %v1803_v40, %v1811_v22  ;;  %v1801_v50 = vmax.f32 %v1789_v4, %v1797_v60  ;;  %v1814_v5 = vmax.f32 %v1802_v45, %v1808_v55  ;;  %v1810_v6 = vsel %vm792_vm3, %v1804_v39, %v1805_v11  ;;  %6680 = vmatprep.subr.bf16.mxu1 %v7561_v31  ;;  %v7564_v34 = vld [vmem:[%s9440_s29 + $0x1b8] sm:$0xff]   ;;  %v7566_v11 = vld [vmem:[%s9440_s29 + $0x1f0] sm:$0xff]   ;;  %v7570_v55 = vld [vmem:[%s9440_s29 + $0x1e8] sm:$0xff]  }
 0x3f4   :  { %v1800_v7 = vmax.f32 %v1788_v32, %v1798_v52  ;;  %v7567_v32 = vld [vmem:[%s9440_s29 + $0x130] sm:$0xff]   ;;  %v7571_v52 = vld [vmem:[%s9440_s29 + $0x128] sm:$0xff]  }
 0x3f5   :  { %7154 = vmatpush3.msra.mxu0 %v1815_v44  ;;  %v1813_v58 = vmax.f32 %v1801_v50, %v1809_v54  ;;  %v9009_v25 = vpop.permute.xlu0 %1925  ;;  %v7568_v44 = vld [vmem:[%s9440_s29 + $0x1b0] sm:$0xff]   ;;  %v7569_v50 = vld [vmem:[%s9440_s29 + $0x168] sm:$0xff]   ;;  %v7574_v54 = vld [vmem:[%s9440_s29 + $0x1e0] sm:$0xff]  }
 0x3f6   :  { %7155 = vmatprep.subr.mxu0 %v8255_v46  ;;  %v1812_v2 = vmax.f32 %v1800_v7, %v1810_v6  ;;  %v9007_v26 = vpop.permute.xlu1 %1938  ;;  %v7573_v7 = vld [vmem:[%s9440_s29 + $0x160] sm:$0xff]   ;;  %v7594_v31 = vld [vmem:[%s9440_s29 + $0x230] sm:$0xff]  }
 0x3f7   :  { %7156 = vmatpush3.msra.mxu0 %v1814_v5  ;;  %v7572_v5 = vld [vmem:[%s9440_s29 + $0x1a8] sm:$0xff]   ;;  %v7576_v6 = vld [vmem:[%s9440_s29 + $0x1a0] sm:$0xff]  }
 0x3f8   :  { %7157 = vmatprep.subr.mxu0 %v8255_v46 }
 0x3f9   :  { %7158 = vmatpush3.msra.mxu0 %v1813_v58  ;;  %v7575_v58 = vld [vmem:[%s9440_s29 + $0x120] sm:$0xff]  }
 0x3fa   :  { %7159 = vmatprep.subr.mxu0 %v8255_v46 }
 0x3fb   :  { %7160 = vmatpush3.msra.mxu0 %v1812_v2  ;;  %v7578_v2 = vld [vmem:[%s9440_s29 + $0x1d8] sm:$0xff]  }
 0x3fc   :  { %7162 = vmatmul.mubr.msk.f32.vlgmr.msra.gmra.mxu0 %vm1817_vm8, %v1816_v9  ;;  %6658 = vmatprep.subr.bf16.mxu0 %v7530_v42  ;;  %v7577_v42 = vld [vmem:[%s9440_s29 + $0x158] sm:$0xff]  }
 0x3fd   :  { %6659 = vmatpush3.bf16.msra.mxu0 %v7532_v61  ;;  %v7579_v9 = vld [vmem:[%s9440_s29 + $0x118] sm:$0xff]  }
 0x3fe   :  { %6660 = vmatprep.subr.bf16.mxu0 %v7534_v14  ;;  %v7580_v61 = vld [vmem:[%s9440_s29 + $0x198] sm:$0xff]   ;;  %v7581_v14 = vld [vmem:[%s9440_s29 + $0x150] sm:$0xff]  }
 0x401   :  { %6661 = vmatpush3.bf16.msra.mxu0 %v7536_v57  ;;  %v7582_v57 = vld [vmem:[%s9440_s29 + $0x1d0] sm:$0xff]  }
 0x402   :  { %6662 = vmatprep.subr.bf16.mxu0 %v7538_v13  ;;  %v7583_v13 = vld [vmem:[%s9440_s29 + $0x110] sm:$0xff]  }
 0x405   :  { %6663 = vmatpush3.bf16.msra.mxu0 %v7540_v19  ;;  %v7584_v19 = vld [vmem:[%s9440_s29 + $0x190] sm:$0xff]  }
 0x406   :  { %6664 = vmatprep.subr.bf16.mxu0 %v7542_v1  ;;  %v7585_v1 = vld [vmem:[%s9440_s29 + $0x148] sm:$0xff]  }
 0x409   :  { %6665 = vmatpush3.bf16.msra.mxu0 %v7544_v20  ;;  %v7586_v20 = vld [vmem:[%s9440_s29 + $0x1c8] sm:$0xff]  }
 0x40a   :  { %6666 = vmatprep.subr.bf16.mxu0 %v7546_v15  ;;  %v7587_v15 = vld [vmem:[%s9440_s29 + $0x108] sm:$0xff]  }
 0x40d   :  { %6667 = vmatpush3.bf16.msra.mxu0 %v7548_v30  ;;  %v7588_v30 = vld [vmem:[%s9440_s29 + $0x188] sm:$0xff]  }
 0x40e   :  { %6668 = vmatprep.subr.bf16.mxu0 %v7550_v29  ;;  %v7589_v29 = vld [vmem:[%s9440_s29 + $0x140] sm:$0xff]  }
 0x411   :  { %6669 = vmatpush3.bf16.msra.mxu0 %v7552_v43  ;;  %v7590_v43 = vld [vmem:[%s9440_s29 + $0x1c0] sm:$0xff]  }
 0x412   :  { %6670 = vmatprep.subr.bf16.mxu0 %v7554_v59  ;;  %v9047_v59 = vpop.permute.xlu1 %1931 }
 0x415   :  { %6671 = vmatpush3.bf16.msra.mxu0 %v7556_v51  ;;  %v7592_v51 = vld [vmem:[%s9440_s29 + $0x180] sm:$0xff]  }
 0x416   :  { %6672 = vmatprep.subr.bf16.mxu0 %v7558_v48  ;;  %v7593_v48 = vld [vmem:[%s9440_s29 + $0x238] sm:$0xff]  }
 0x419   :  { %6673 = vmatpush3.bf16.msra.mxu0 %v7560_v27 }
 0x41a   :  { %6702 = vmatprep.subr.bf16.mxu0 %v7562_v23  ;;  %v7595_v23 = vld [vmem:[%s9440_s29 + $0x228] sm:$0xff]  }
 0x4bc   :  { %v9000_v53 = vpop.f32.mrf.mxu0 }
 0x4bd   :  { %v1923_v37 = vrot.slane %v9000_v53, 1  ;;  %v1902_v49 = vrot.slane %v9000_v53, 6  ;;  %v1909_v62 = vrot.slane %v9000_v53, 7  ;;  %v1894_v38 = vrot.slane %v9000_v53, 5 }
 0x4be   :  { %v7163_v28 = vpop.f32.mrf.mxu0  ;;  %v1936_v41 = vrot.slane %v9000_v53, 2  ;;  %v1922_v27 = vpack.c.bf16 %v9000_v53, %v9000_v53 }
 0x4bf   :  { %v1907_v18 = vmul.f32 %v8992_v36, %v1902_v49  ;;  %v1920_v35 = vmul.f32 %v8994_v24, %v1909_v62  ;;  %v1900_v8 = vmul.f32 %v8998_v10, %v1894_v38  ;;  %v1914_v16 = vmul.f32 %v8996_v12, %v1909_v62  ;;  %v7597_v49 = vld [vmem:[%s9440_s29 + $0x218] sm:$0xff]   ;;  %v7598_v62 = vld [vmem:[%s9440_s29 + $0x210] sm:$0xff]   ;;  %v7599_v28 = vld [vmem:[%s9440_s29 + $0x208] sm:$0xff]  }
 0x4c0   :  { %v1928_v33 = vmul.f32 %v9009_v25, %v1923_v37  ;;  %v1941_v39 = vmul.f32 %v9007_v26, %v1936_v41  ;;  %v1934_v56 = vmul.f32 %v9047_v59, %v1923_v37  ;;  %v7596_v37 = vld [vmem:[%s9440_s29 + $0x220] sm:$0xff]   ;;  %v1943_v38 = vrot.slane %v9000_v53, 3  ;;  %v9073_v41 = vpop.permute.xlu0 %1945  ;;  %v7607_v53 = vld [vmem:[#allocation12 + $0x30] sm:$0xff]  }
 0x4c1   :  { %v1908_v4 = vpack.c.bf16 %v1907_v18, %v1907_v18  ;;  %v1921_v3 = vpack.c.bf16 %v1920_v35, %v1920_v35  ;;  %v1901_v40 = vpack.c.bf16 %v1900_v8, %v1900_v8  ;;  %v1915_v45 = vpack.c.bf16 %v1914_v16, %v1914_v16  ;;  %v7600_v18 = vld [vmem:[%s9440_s29 + $0x200] sm:$0xff]   ;;  %v7601_v16 = vld [vmem:[#allocation12 + $0x78] sm:$0xff]  }
 0x4c2   :  { %v1929_v22 = vpack.c.bf16 %v1928_v33, %v1928_v33  ;;  %v1942_v60 = vpack.c.bf16 %v1941_v39, %v1941_v39  ;;  %v1935_v21 = vpack.c.bf16 %v1934_v56, %v1934_v56  ;;  %v1948_v35 = vmul.f32 %v9073_v41, %v1943_v38  ;;  %v7602_v33 = vld [vmem:[#allocation12 + $0xf8] sm:$0xff]  }
 0x4c3   :  { %2565 = vmatprep.mubr.bf16.mxu1 %v1908_v4  ;;  %2605 = vmatprep.mubr.bf16.mxu0 %v1921_v3  ;;  %v7603_v39 = vld [vmem:[#allocation12 + $0x38] sm:$0xff]   ;;  %v7605_v3 = vld [vmem:[#allocation12 + $0x70] sm:$0xff]  }
 0x4c4   :  { %2566 = vmatmul.mubr.bf16.vlgmr.msra.gmra.mxu1 %v1901_v40  ;;  %2606 = vmatmul.mubr.bf16.vlgmr.msra.gmra.mxu0 %v1915_v45  ;;  %v1949_v8 = vpack.c.bf16 %v1948_v35, %v1948_v35  ;;  %v7604_v4 = vld [vmem:[#allocation12 + $0xb8] sm:$0xff]   ;;  %v7609_v40 = vld [vmem:[#allocation12 + $0x68] sm:$0xff]  }
 0x4c5   :  { %6681 = vmatpush3.bf16.msra.mxu1 %v7563_v0  ;;  %6703 = vmatpush3.bf16.msra.mxu0 %v7564_v34  ;;  %v7606_v0 = vld [vmem:[#allocation12 + $0xf0] sm:$0xff]   ;;  %v7610_v45 = vld [vmem:[#allocation12 + $0xe8] sm:$0xff]  }
 0x4c6   :  { %2645 = vmatprep.mubr.bf16.mxu1 %v1929_v22  ;;  %2685 = vmatprep.mubr.bf16.mxu0 %v1942_v60  ;;  %v7608_v34 = vld [vmem:[#allocation12 + $0xb0] sm:$0xff]   ;;  %v7613_v22 = vld [vmem:[#allocation12 + $0x60] sm:$0xff]  }
 0x4c7   :  { %6682 = vmatprep.subr.bf16.mxu1 %v7565_v17  ;;  %6704 = vmatprep.subr.bf16.mxu0 %v7566_v11  ;;  %v7611_v17 = vld [vmem:[#allocation12 + $0x28] sm:$0xff]   ;;  %v7614_v60 = vld [vmem:[#allocation12 + $0xe0] sm:$0xff]  }
 0x4c8   :  { %v7612_v11 = vld [vmem:[#allocation12 + $0xa8] sm:$0xff]  }
 0x4c9   :  { %6683 = vmatpush3.bf16.msra.mxu1 %v7567_v32  ;;  %6705 = vmatpush3.bf16.msra.mxu0 %v7568_v44  ;;  %v7615_v32 = vld [vmem:[#allocation12 + $0x20] sm:$0xff]  }
 0x4ca   :  { %6684 = vmatprep.subr.bf16.mxu1 %v7569_v50  ;;  %6706 = vmatprep.subr.bf16.mxu0 %v7570_v55  ;;  %v7616_v44 = vld [vmem:[#allocation12 + $0xa0] sm:$0xff]   ;;  %v7617_v50 = vld [vmem:[#allocation12 + $0x58] sm:$0xff]  }
 0x4cb   :  { %v7618_v55 = vld [vmem:[#allocation12 + $0xd8] sm:$0xff]  }
 0x4cd   :  { %6685 = vmatpush3.bf16.msra.mxu1 %v7571_v52  ;;  %6707 = vmatpush3.bf16.msra.mxu0 %v7572_v5  ;;  %v7619_v52 = vld [vmem:[#allocation12 + $0x18] sm:$0xff]  }
 0x4ce   :  { %6686 = vmatprep.subr.bf16.mxu1 %v7573_v7  ;;  %6708 = vmatprep.subr.bf16.mxu0 %v7574_v54  ;;  %v7620_v5 = vld [vmem:[#allocation12 + $0x98] sm:$0xff]   ;;  %v7621_v7 = vld [vmem:[#allocation12 + $0x50] sm:$0xff]  }
 0x4cf   :  { %v7622_v54 = vld [vmem:[#allocation12 + $0xd0] sm:$0xff]  }
 0x4d1   :  { %6687 = vmatpush3.bf16.msra.mxu1 %v7575_v58  ;;  %6709 = vmatpush3.bf16.msra.mxu0 %v7576_v6  ;;  %v7623_v58 = vld [vmem:[#allocation12 + $0x10] sm:$0xff]  }
 0x4d2   :  { %6688 = vmatprep.subr.bf16.mxu1 %v7577_v42  ;;  %6710 = vmatprep.subr.bf16.mxu0 %v7578_v2  ;;  %v7624_v6 = vld [vmem:[#allocation12 + $0x90] sm:$0xff]   ;;  %v7625_v42 = vld [vmem:[#allocation12 + $0x48] sm:$0xff]  }
 0x4d3   :  { %v7626_v2 = vld [vmem:[#allocation12 + $0xc8] sm:$0xff]  }
 0x4d5   :  { %6689 = vmatpush3.bf16.msra.mxu1 %v7579_v9  ;;  %6711 = vmatpush3.bf16.msra.mxu0 %v7580_v61  ;;  %v7627_v9 = vld [vmem:[#allocation12 + $0x8] sm:$0xff]  }
 0x4d6   :  { %6690 = vmatprep.subr.bf16.mxu1 %v7581_v14  ;;  %6712 = vmatprep.subr.bf16.mxu0 %v7582_v57  ;;  %v7628_v61 = vld [vmem:[#allocation12 + $0x88] sm:$0xff]   ;;  %v7629_v14 = vld [vmem:[#allocation12 + $0x40] sm:$0xff]  }
 0x4d7   :  { %v7630_v57 = vld [vmem:[#allocation12 + $0xc0] sm:$0xff]  }
 0x4d9   :  { %6691 = vmatpush3.bf16.msra.mxu1 %v7583_v13  ;;  %6713 = vmatpush3.bf16.msra.mxu0 %v7584_v19  ;;  %v7631_v13 = vld [vmem:[#allocation12] sm:$0xff]  }
 0x4da   :  { %6692 = vmatprep.subr.bf16.mxu1 %v7585_v1  ;;  %6714 = vmatprep.subr.bf16.mxu0 %v7586_v20  ;;  %v7632_v19 = vld [vmem:[#allocation12 + $0x80] sm:$0xff]   ;;  %v7633_v1 = vld [vmem:[#allocation12 + $0x178] sm:$0xff]  }
 0x4db   :  { %v7634_v20 = vld [vmem:[#allocation12 + $0x1f8] sm:$0xff]  }
 0x4dd   :  { %6693 = vmatpush3.bf16.msra.mxu1 %v7587_v15  ;;  %6715 = vmatpush3.bf16.msra.mxu0 %v7588_v30 }
 0x4de   :  { %6694 = vmatprep.subr.bf16.mxu1 %v7589_v29  ;;  %6716 = vmatprep.subr.bf16.mxu0 %v7590_v43 }
 0x4e1   :  { %6695 = vmatpush3.bf16.msra.mxu1 %v7591_v63  ;;  %6717 = vmatpush3.bf16.msra.mxu0 %v7592_v51 }
 0x4e2   :  { %7164 = vmatprep.subr.bf16.mxu1 %v8255_v46  ;;  %6733 = vmatprep.subr.bf16.mxu0 %v7601_v16 }
 0x4e4   :  { %2646 = vmatmul.mubr.bf16.vlgmr.msra.gmra.mxu1 %v1922_v27  ;;  %2686 = vmatmul.mubr.bf16.vlgmr.msra.gmra.mxu0 %v1935_v21 }
 0x4e5   :  { %7165 = vmatpush3.bf16.msra.mxu1 %v7593_v48  ;;  %7180 = vmatprep.mubr.msk.bf16.mxu1 %vm8256_vm7, %v8255_v46 }
 0x4e6   :  { %7166 = vmatprep.subr.bf16.mxu1 %v8255_v46  ;;  %6734 = vmatpush3.bf16.msra.mxu0 %v7603_v39 }
 0x4e7   :  { %6735 = vmatprep.subr.bf16.mxu0 %v7605_v3 }
 0x4e9   :  { %7167 = vmatpush3.bf16.msra.mxu1 %v7594_v31 }
 0x4ea   :  { %7168 = vmatprep.subr.bf16.mxu1 %v8255_v46  ;;  %6736 = vmatpush3.bf16.msra.mxu0 %v7607_v53 }
 0x4eb   :  { %6737 = vmatprep.subr.bf16.mxu0 %v7609_v40 }
 0x4ed   :  { %7169 = vmatpush3.bf16.msra.mxu1 %v7595_v23 }
 0x4ee   :  { %7170 = vmatprep.subr.bf16.mxu1 %v8255_v46  ;;  %6738 = vmatpush3.bf16.msra.mxu0 %v7611_v17 }
 0x4ef   :  { %6739 = vmatprep.subr.bf16.mxu0 %v7613_v22 }
 0x4f1   :  { %7171 = vmatpush3.bf16.msra.mxu1 %v7596_v37 }
 0x4f2   :  { %7172 = vmatprep.subr.bf16.mxu1 %v8255_v46  ;;  %6740 = vmatpush3.bf16.msra.mxu0 %v7615_v32 }
 0x4f3   :  { %6741 = vmatprep.subr.bf16.mxu0 %v7617_v50 }
 0x4f5   :  { %7173 = vmatpush3.bf16.msra.mxu1 %v7597_v49 }
 0x4f6   :  { %7174 = vmatprep.subr.bf16.mxu1 %v8255_v46  ;;  %6742 = vmatpush3.bf16.msra.mxu0 %v7619_v52 }
 0x4f7   :  { %6743 = vmatprep.subr.bf16.mxu0 %v7621_v7 }
 0x4f9   :  { %7175 = vmatpush3.bf16.msra.mxu1 %v7598_v62 }
 0x4fa   :  { %7176 = vmatprep.subr.bf16.mxu1 %v8255_v46  ;;  %6744 = vmatpush3.bf16.msra.mxu0 %v7623_v58 }
 0x4fb   :  { %6745 = vmatprep.subr.bf16.mxu0 %v7625_v42 }
 0x4fd   :  { %7177 = vmatpush3.bf16.msra.mxu1 %v7599_v28 }
 0x4fe   :  { %7178 = vmatprep.subr.bf16.mxu1 %v8255_v46  ;;  %6746 = vmatpush3.bf16.msra.mxu0 %v7627_v9  ;;  %v7635_v9 = vld [vmem:[#allocation12 + $0x138] sm:$0xff]  }
 0x4ff   :  { %6747 = vmatprep.subr.bf16.mxu0 %v7629_v14  ;;  %v7637_v14 = vld [vmem:[#allocation12 + $0x170] sm:$0xff]  }
 0x501   :  { %7179 = vmatpush3.bf16.msra.mxu1 %v7600_v18  ;;  %v6174_v18 = vld [vmem:[#allocation10] ss:$0 sm:$0xff] }
 0x502   :  { %6755 = vmatprep.subr.bf16.mxu1 %v7602_v33  ;;  %6748 = vmatpush3.bf16.msra.mxu0 %v7631_v13 }
 0x503   :  { %6777 = vmatprep.subr.bf16.mxu0 %v7633_v1  ;;  %v7639_v1 = vld [vmem:[#allocation12 + $0x130] sm:$0xff]  }
 0x504   :  { %7181 = vmatmul.mubr.bf16.vlgmr.msra.gmra.mxu1 %v1949_v8 }
 0x505   :  { %6756 = vmatpush3.bf16.msra.mxu1 %v7604_v4 }
 0x506   :  { %6757 = vmatprep.subr.bf16.mxu1 %v7606_v0 }
 0x509   :  { %6758 = vmatpush3.bf16.msra.mxu1 %v7608_v34 }
 0x50a   :  { %6759 = vmatprep.subr.bf16.mxu1 %v7610_v45 }
 0x50d   :  { %6760 = vmatpush3.bf16.msra.mxu1 %v7612_v11 }
 0x50e   :  { %6761 = vmatprep.subr.bf16.mxu1 %v7614_v60 }
 0x511   :  { %6762 = vmatpush3.bf16.msra.mxu1 %v7616_v44 }
 0x512   :  { %6763 = vmatprep.subr.bf16.mxu1 %v7618_v55 }
 0x515   :  { %6764 = vmatpush3.bf16.msra.mxu1 %v7620_v5 }
 0x516   :  { %6765 = vmatprep.subr.bf16.mxu1 %v7622_v54 }
 0x519   :  { %6766 = vmatpush3.bf16.msra.mxu1 %v7624_v6 }
 0x51a   :  { %6767 = vmatprep.subr.bf16.mxu1 %v7626_v2 }
 0x51d   :  { %6768 = vmatpush3.bf16.msra.mxu1 %v7628_v61  ;;  %v7636_v61 = vld [vmem:[#allocation12 + $0x1b8] sm:$0xff]  }
 0x51e   :  { %6769 = vmatprep.subr.bf16.mxu1 %v7630_v57  ;;  %v7638_v57 = vld [vmem:[#allocation12 + $0x1f0] sm:$0xff]  }
 0x521   :  { %6770 = vmatpush3.bf16.msra.mxu1 %v7632_v19 }
 0x522   :  { %6799 = vmatprep.subr.bf16.mxu1 %v7634_v20  ;;  %v7640_v20 = vld [vmem:[#allocation12 + $0x1b0] sm:$0xff]  }
 0x584   :  { %v6652_v15 = vpop.f32.mrf.mxu1  ;;  %v6674_v30 = vpop.f32.mrf.mxu0 }
 0x586   :  { %v6653_v29 = vpop.f32.mrf.mxu1  ;;  %v6675_v43 = vpop.f32.mrf.mxu0 }
 0x587   :  { %v6654_v38 = vadd.f32 %v6653_v29, %v6652_v15  ;;  %v6676_v8 = vadd.f32 %v6675_v43, %v6674_v30  ;;  %v7641_v15 = vld [vmem:[#allocation12 + $0x168] sm:$0xff]  }
 0x588   :  { %v6655_v63 = vpop.f32.mrf.mxu1  ;;  %v6677_v51 = vpop.f32.mrf.mxu0  ;;  %v7642_v30 = vld [vmem:[#allocation12 + $0x1e8] sm:$0xff]  }
 0x589   :  { %v2568_v35 = vadd.f32 %v6654_v38, %v6174_v18  ;;  %v7643_v29 = vld [vmem:[#allocation12 + $0x128] sm:$0xff]   ;;  %v7645_v63 = vld [vmem:[#allocation12 + $0x160] sm:$0xff]  }
 0x58a   :  { %v6656_v56 = vpop.f32.mrf.mxu1  ;;  %v6678_v48 = vpop.f32.mrf.mxu0  ;;  %v7644_v43 = vld [vmem:[#allocation12 + $0x1a8] sm:$0xff]   ;;  %v7646_v51 = vld [vmem:[#allocation12 + $0x1e0] sm:$0xff]  }
 0x58b   :  { %v2608_v33 = vadd.f32 %v6676_v8, %v2568_v35  ;;  %v7647_v56 = vld [vmem:[#allocation12 + $0x120] sm:$0xff]   ;;  %v7657_v38 = vld [vmem:[#allocation12 + $0x148] sm:$0xff]  }
 0x58c   :  { %v7648_v48 = vld [vmem:[#allocation12 + $0x1a0] sm:$0xff]   ;;  %v7658_v18 = vld [vmem:[#allocation12 + $0x1c8] sm:$0xff]  }
 0x58d   :  { %v7659_v35 = vld [vmem:[#allocation12 + $0x108] sm:$0xff]  }
 0x58e   :  { %v7660_v8 = vld [vmem:[#allocation12 + $0x188] sm:$0xff]  }
 0x5a4   :  { %v6696_v21 = vpop.f32.mrf.mxu1  ;;  %v6718_v27 = vpop.f32.mrf.mxu0 }
 0x5a6   :  { %v6697_v31 = vpop.f32.mrf.mxu1  ;;  %v6719_v23 = vpop.f32.mrf.mxu0 }
 0x5a7   :  { %v6698_v16 = vadd.f32 %v6697_v31, %v6696_v21  ;;  %v6720_v4 = vadd.f32 %v6719_v23, %v6718_v27  ;;  %v7649_v21 = vld [vmem:[#allocation12 + $0x158] sm:$0xff]  }
 0x5a8   :  { %v6699_v37 = vpop.f32.mrf.mxu1  ;;  %v6721_v49 = vpop.f32.mrf.mxu0  ;;  %v7650_v27 = vld [vmem:[#allocation12 + $0x1d8] sm:$0xff]  }
 0x5a9   :  { %v2648_v39 = vadd.f32 %v6698_v16, %v2608_v33  ;;  %v7651_v31 = vld [vmem:[#allocation12 + $0x118] sm:$0xff]   ;;  %v7653_v37 = vld [vmem:[#allocation12 + $0x150] sm:$0xff]   ;;  %v7661_v16 = vld [vmem:[#allocation12 + $0x140] sm:$0xff]  }
 0x5aa   :  { %v6700_v62 = vpop.f32.mrf.mxu1  ;;  %v6722_v28 = vpop.f32.mrf.mxu0  ;;  %v7652_v23 = vld [vmem:[#allocation12 + $0x198] sm:$0xff]   ;;  %v7654_v49 = vld [vmem:[#allocation12 + $0x1d0] sm:$0xff]   ;;  %v7662_v33 = vld [vmem:[#allocation12 + $0x1c0] sm:$0xff]  }
 0x5ab   :  { %v2688_v3 = vadd.f32 %v6720_v4, %v2648_v39  ;;  %v7655_v62 = vld [vmem:[#allocation12 + $0x110] sm:$0xff]   ;;  %v7663_v39 = vld [vmem:[#allocation12 + $0x100] sm:$0xff]  }
 0x5ac   :  { %v7656_v28 = vld [vmem:[#allocation12 + $0x190] sm:$0xff]   ;;  %v7664_v4 = vld [vmem:[#allocation12 + $0x180] sm:$0xff]  }
 0x5c4   :  { %v2727_v0 = vpop.f32.mrf.mxu1 }
 0x5c5   :  { %v2728_v53 = vadd.f32 %v2727_v0, %v2688_v3  ;;  %v7665_v0 = vld [vmem:[#allocation12 + $0x238] sm:$0xff]  }
 0x5c6   :  { %v7182_v34 = vpop.f32.mrf.mxu1 }
 0x5c7   :  { %v9078_v40 = vmax.f32 %v2728_v53, 0.0 }
 0x5c8   :  { %v2730_v45 = vpop.f32.mrf.mxu1 }
 0x5c9   :  { %v2737_v17 = vrot.slane %v9078_v40, 6  ;;  %v2740_v11 = vrot.slane %v9078_v40, 7  ;;  %v2734_v22 = vrot.slane %v9078_v40, 5  ;;  %v2746_v60 = vrot.slane %v9078_v40, 1  ;;  %v7666_v45 = vld [vmem:[#allocation12 + $0x230] sm:$0xff]  }
 0x5ca   :  { %v7183_v32 = vpop.f32.mrf.mxu1  ;;  %v2751_v44 = vrot.slane %v9078_v40, 2  ;;  %v2745_v53 = vpack.c.bf16 %v9078_v40, %v9078_v40 }
 0x5cb   :  { %v2738_v50 = vmul.f32 %v2737_v17, %v8992_v36  ;;  %v2743_v55 = vmul.f32 %v2740_v11, %v8994_v24  ;;  %v2735_v52 = vmul.f32 %v2734_v22, %v8998_v10  ;;  %v2741_v5 = vmul.f32 %v2740_v11, %v8996_v12  ;;  %v7667_v17 = vld [vmem:[#allocation12 + $0x228] sm:$0xff]   ;;  %v7668_v11 = vld [vmem:[#allocation12 + $0x220] sm:$0xff]   ;;  %v7669_v32 = vld [vmem:[#allocation12 + $0x218] sm:$0xff]  }
 0x5cc   :  { %v2747_v7 = vmul.f32 %v2746_v60, %v9009_v25  ;;  %v2752_v54 = vmul.f32 %v2751_v44, %v9007_v26  ;;  %v2749_v3 = vmul.f32 %v2746_v60, %v9047_v59  ;;  %v8257_v22 = vmov 1983009808  }
 0x5cd   :  { %v2739_v58 = vpack.c.bf16 %v2738_v50, %v2738_v50  ;;  %v2744_v6 = vpack.c.bf16 %v2743_v55, %v2743_v55  ;;  %v2736_v42 = vpack.c.bf16 %v2735_v52, %v2735_v52  ;;  %v2742_v2 = vpack.c.bf16 %v2741_v5, %v2741_v5  ;;  %v7670_v50 = vld [vmem:[#allocation12 + $0x210] sm:$0xff]   ;;  %v9110_v52 = vld [vmem:[%s9441_s0] sm:$0xff] }
 0x5ce   :  { %v2748_v13 = vpack.c.bf16 %v2747_v7, %v2747_v7  ;;  %v2753_v19 = vpack.c.bf16 %v2752_v54, %v2752_v54  ;;  %v2750_v34 = vpack.c.bf16 %v2749_v3, %v2749_v3  ;;  %v3542_v60 = vunpack.c.l.s4 %v8257_v22  ;;  %v7671_v5 = vld [vmem:[#allocation12 + $0x208] sm:$0xff]   ;;  %v7705_v3 = vld [vmem:[#allocation15 + $0x178] sm:$0xff]  }
 0x5cf   :  { %3372 = vmatprep.mubr.bf16.mxu0 %v2739_v58  ;;  %3412 = vmatprep.mubr.bf16.mxu1 %v2744_v6  ;;  %v2754_v7 = vrot.slane %v9078_v40, 3  ;;  %v7672_v58 = vld [vmem:[#allocation12 + $0x200] sm:$0xff]   ;;  %v9122_v40 = vld [vmem:[%s9442_s12] sm:$0xff] }
 0x5d0   :  { %3373 = vmatmul.mubr.bf16.vlgmr.msra.gmra.mxu0 %v2736_v42  ;;  %3413 = vmatmul.mubr.bf16.vlgmr.msra.gmra.mxu1 %v2742_v2  ;;  %v3543_v44 = vunpack.c.0.s8 %v3542_v60 }
 0x5d1   :  { %6778 = vmatpush3.bf16.msra.mxu0 %v7635_v9  ;;  %6800 = vmatpush3.bf16.msra.mxu1 %v7636_v61  ;;  %v2755_v6 = vmul.f32 %v2754_v7, %v9073_v41  ;;  %v7673_v9 = vld [vmem:[#allocation15 + $0x78] sm:$0xff]  }
 0x5d2   :  { %3452 = vmatprep.mubr.bf16.mxu0 %v2748_v13  ;;  %3492 = vmatprep.mubr.bf16.mxu1 %v2753_v19  ;;  %v9107_v55 = vsub.s32 %v3543_v44, %v8546_v47  ;;  %v7674_v61 = vld [vmem:[#allocation15 + $0xf8] sm:$0xff]   ;;  %v7677_v13 = vld [vmem:[#allocation15 + $0x70] sm:$0xff]  }
 0x5d3   :  { %6779 = vmatprep.subr.bf16.mxu0 %v7637_v14  ;;  %6801 = vmatprep.subr.bf16.mxu1 %v7638_v57  ;;  %v2756_v2 = vpack.c.bf16 %v2755_v6, %v2755_v6  ;;  %v7675_v14 = vld [vmem:[#allocation15 + $0x38] sm:$0xff]   ;;  %v7678_v19 = vld [vmem:[#allocation15 + $0xf0] sm:$0xff]  }
 0x5d4   :  { %v3547_v54 = vrot.slane %v9110_v52, %v9107_v55  ;;  %v7676_v57 = vld [vmem:[#allocation15 + $0xb8] sm:$0xff]  }
 0x5d5   :  { %6780 = vmatpush3.bf16.msra.mxu0 %v7639_v1  ;;  %6802 = vmatpush3.bf16.msra.mxu1 %v7640_v20  ;;  %v7679_v1 = vld [vmem:[#allocation15 + $0x30] sm:$0xff]  }
 0x5d6   :  { %6781 = vmatprep.subr.bf16.mxu0 %v7641_v15  ;;  %6803 = vmatprep.subr.bf16.mxu1 %v7642_v30  ;;  %v3548_v42 = vcombine.high %v3547_v54, %v3547_v54  ;;  %v7680_v20 = vld [vmem:[#allocation15 + $0xb0] sm:$0xff]   ;;  %v7681_v15 = vld [vmem:[#allocation15 + $0x68] sm:$0xff]  }
 0x5d7   :  { %v7682_v30 = vld [vmem:[#allocation15 + $0xe8] sm:$0xff]  }
 0x5d9   :  { %6782 = vmatpush3.bf16.msra.mxu0 %v7643_v29  ;;  %6804 = vmatpush3.bf16.msra.mxu1 %v7644_v43  ;;  %v7683_v29 = vld [vmem:[#allocation15 + $0x28] sm:$0xff]  }
 0x5da   :  { %6783 = vmatprep.subr.bf16.mxu0 %v7645_v63  ;;  %6805 = vmatprep.subr.bf16.mxu1 %v7646_v51  ;;  %v7684_v43 = vld [vmem:[#allocation15 + $0xa8] sm:$0xff]   ;;  %v7685_v63 = vld [vmem:[#allocation15 + $0x60] sm:$0xff]  }
 0x5db   :  { %v7686_v51 = vld [vmem:[#allocation15 + $0xe0] sm:$0xff]  }
 0x5dd   :  { %6784 = vmatpush3.bf16.msra.mxu0 %v7647_v56  ;;  %6806 = vmatpush3.bf16.msra.mxu1 %v7648_v48  ;;  %v7687_v56 = vld [vmem:[#allocation15 + $0x20] sm:$0xff]  }
 0x5de   :  { %6785 = vmatprep.subr.bf16.mxu0 %v7649_v21  ;;  %6807 = vmatprep.subr.bf16.mxu1 %v7650_v27  ;;  %v7688_v48 = vld [vmem:[#allocation15 + $0xa0] sm:$0xff]   ;;  %v7689_v21 = vld [vmem:[#allocation15 + $0x58] sm:$0xff]  }
 0x5df   :  { %v7690_v27 = vld [vmem:[#allocation15 + $0xd8] sm:$0xff]  }
 0x5e1   :  { %6786 = vmatpush3.bf16.msra.mxu0 %v7651_v31  ;;  %6808 = vmatpush3.bf16.msra.mxu1 %v7652_v23  ;;  %v7691_v31 = vld [vmem:[#allocation15 + $0x18] sm:$0xff]  }
 0x5e2   :  { %6787 = vmatprep.subr.bf16.mxu0 %v7653_v37  ;;  %6809 = vmatprep.subr.bf16.mxu1 %v7654_v49  ;;  %v7692_v23 = vld [vmem:[#allocation15 + $0x98] sm:$0xff]   ;;  %v7693_v37 = vld [vmem:[#allocation15 + $0x50] sm:$0xff]  }
 0x5e3   :  { %v7694_v49 = vld [vmem:[#allocation15 + $0xd0] sm:$0xff]  }
 0x5e5   :  { %6788 = vmatpush3.bf16.msra.mxu0 %v7655_v62  ;;  %6810 = vmatpush3.bf16.msra.mxu1 %v7656_v28  ;;  %v7695_v62 = vld [vmem:[#allocation15 + $0x10] sm:$0xff]  }
 0x5e6   :  { %6789 = vmatprep.subr.bf16.mxu0 %v7657_v38  ;;  %6811 = vmatprep.subr.bf16.mxu1 %v7658_v18  ;;  %v7696_v28 = vld [vmem:[#allocation15 + $0x90] sm:$0xff]   ;;  %v7697_v38 = vld [vmem:[#allocation15 + $0x48] sm:$0xff]  }
 0x5e7   :  { %v7698_v18 = vld [vmem:[#allocation15 + $0xc8] sm:$0xff]  }
 0x5e9   :  { %6790 = vmatpush3.bf16.msra.mxu0 %v7659_v35  ;;  %6812 = vmatpush3.bf16.msra.mxu1 %v7660_v8  ;;  %v7699_v35 = vld [vmem:[#allocation15 + $0x8] sm:$0xff]  }
 0x5ea   :  { %6791 = vmatprep.subr.bf16.mxu0 %v7661_v16  ;;  %6813 = vmatprep.subr.bf16.mxu1 %v7662_v33  ;;  %v7700_v8 = vld [vmem:[#allocation15 + $0x88] sm:$0xff]   ;;  %v7701_v16 = vld [vmem:[#allocation15 + $0x40] sm:$0xff]  }
 0x5eb   :  { %v7702_v33 = vld [vmem:[#allocation15 + $0xc0] sm:$0xff]  }
 0x5ed   :  { %6792 = vmatpush3.bf16.msra.mxu0 %v7663_v39  ;;  %6814 = vmatpush3.bf16.msra.mxu1 %v7664_v4  ;;  %v7703_v39 = vld [vmem:[#allocation15] sm:$0xff]  }
 0x5ee   :  { %7184 = vmatprep.subr.bf16.mxu0 %v8255_v46  ;;  %6830 = vmatprep.subr.bf16.mxu1 %v7673_v9  ;;  %v7704_v4 = vld [vmem:[#allocation15 + $0x80] sm:$0xff]   ;;  %v6247_v9 = vld [vmem:[#allocation13] ss:$0 sm:$0xff] }
 0x5f0   :  { %3453 = vmatmul.mubr.bf16.vlgmr.msra.gmra.mxu0 %v2745_v53  ;;  %3493 = vmatmul.mubr.bf16.vlgmr.msra.gmra.mxu1 %v2750_v34 }
 0x5f1   :  { %7185 = vmatpush3.bf16.msra.mxu0 %v7665_v0  ;;  %7200 = vmatprep.mubr.msk.bf16.mxu0 %vm8256_vm7, %v8255_v46  ;;  %v7706_v0 = vld [vmem:[#allocation15 + $0x1f8] sm:$0xff]  }
 0x5f2   :  { %7186 = vmatprep.subr.bf16.mxu0 %v8255_v46  ;;  %6831 = vmatpush3.bf16.msra.mxu1 %v7675_v14 }
 0x5f3   :  { %6832 = vmatprep.subr.bf16.mxu1 %v7677_v13 }
 0x5f5   :  { %7187 = vmatpush3.bf16.msra.mxu0 %v7666_v45 }
 0x5f6   :  { %7188 = vmatprep.subr.bf16.mxu0 %v8255_v46  ;;  %6833 = vmatpush3.bf16.msra.mxu1 %v7679_v1 }
 0x5f7   :  { %6834 = vmatprep.subr.bf16.mxu1 %v7681_v15 }
 0x5f9   :  { %7189 = vmatpush3.bf16.msra.mxu0 %v7667_v17 }
 0x5fa   :  { %7190 = vmatprep.subr.bf16.mxu0 %v8255_v46  ;;  %6835 = vmatpush3.bf16.msra.mxu1 %v7683_v29 }
 0x5fb   :  { %6836 = vmatprep.subr.bf16.mxu1 %v7685_v63 }
 0x5fd   :  { %7191 = vmatpush3.bf16.msra.mxu0 %v7668_v11 }
 0x5fe   :  { %7192 = vmatprep.subr.bf16.mxu0 %v8255_v46  ;;  %6837 = vmatpush3.bf16.msra.mxu1 %v7687_v56 }
 0x5ff   :  { %6838 = vmatprep.subr.bf16.mxu1 %v7689_v21 }
 0x601   :  { %7193 = vmatpush3.bf16.msra.mxu0 %v7669_v32 }
 0x602   :  { %7194 = vmatprep.subr.bf16.mxu0 %v8255_v46  ;;  %6839 = vmatpush3.bf16.msra.mxu1 %v7691_v31 }
 0x603   :  { %6840 = vmatprep.subr.bf16.mxu1 %v7693_v37 }
 0x605   :  { %7195 = vmatpush3.bf16.msra.mxu0 %v7670_v50 }
 0x606   :  { %7196 = vmatprep.subr.bf16.mxu0 %v8255_v46  ;;  %6841 = vmatpush3.bf16.msra.mxu1 %v7695_v62 }
 0x607   :  { %6842 = vmatprep.subr.bf16.mxu1 %v7697_v38 }
 0x609   :  { %7197 = vmatpush3.bf16.msra.mxu0 %v7671_v5 }
 0x60a   :  { %7198 = vmatprep.subr.bf16.mxu0 %v8255_v46  ;;  %6843 = vmatpush3.bf16.msra.mxu1 %v7699_v35 }
 0x60b   :  { %6844 = vmatprep.subr.bf16.mxu1 %v7701_v16 }
 0x60d   :  { %7199 = vmatpush3.bf16.msra.mxu0 %v7672_v58 }
 0x60e   :  { %6320 = vmatprep.subr.msk.mxu0 %vm3553_vm9, %v3548_v42  ;;  %6845 = vmatpush3.bf16.msra.mxu1 %v7703_v39 }
 0x60f   :  { %6874 = vmatprep.subr.bf16.mxu1 %v7705_v3 }
 0x610   :  { %7201 = vmatmul.mubr.bf16.vlgmr.msra.gmra.mxu0 %v2756_v2 }
 0x611   :  { %6321 = vmatpush1.msk.msra.mxu0 %vm3553_vm9, %v3547_v54  ;;  %3622 = vmatprep.mubr.f32.mxu0 %v8255_v46 }
 0x612   :  { %6852 = vmatprep.subr.bf16.mxu0 %v7674_v61 }
 0x618   :  { %6322 = vmatmul.mubr.msk.f32.vlgmr.msra.gmra.mxu0 %vm3549_vm10, %v9122_v40 }
 0x619   :  { %6853 = vmatpush3.bf16.msra.mxu0 %v7676_v57 }
 0x61a   :  { %6854 = vmatprep.subr.bf16.mxu0 %v7678_v19 }
 0x61d   :  { %6855 = vmatpush3.bf16.msra.mxu0 %v7680_v20 }
 0x61e   :  { %6856 = vmatprep.subr.bf16.mxu0 %v7682_v30 }
 0x621   :  { %6857 = vmatpush3.bf16.msra.mxu0 %v7684_v43 }
 0x622   :  { %6858 = vmatprep.subr.bf16.mxu0 %v7686_v51 }
 0x625   :  { %6859 = vmatpush3.bf16.msra.mxu0 %v7688_v48 }
 0x626   :  { %6860 = vmatprep.subr.bf16.mxu0 %v7690_v27 }
 0x629   :  { %6861 = vmatpush3.bf16.msra.mxu0 %v7692_v23 }
 0x62a   :  { %6862 = vmatprep.subr.bf16.mxu0 %v7694_v49 }
 0x62d   :  { %6863 = vmatpush3.bf16.msra.mxu0 %v7696_v28 }
 0x62e   :  { %6864 = vmatprep.subr.bf16.mxu0 %v7698_v18 }
 0x631   :  { %6865 = vmatpush3.bf16.msra.mxu0 %v7700_v8 }
 0x632   :  { %6866 = vmatprep.subr.bf16.mxu0 %v7702_v33 }
 0x635   :  { %6867 = vmatpush3.bf16.msra.mxu0 %v7704_v4 }
 0x636   :  { %6896 = vmatprep.subr.bf16.mxu0 %v7706_v0  ;;  %v7707_v0 = vld [vmem:[#allocation15 + $0x138] sm:$0xff]  }
 0x690   :  { %v6749_v53 = vpop.f32.mrf.mxu0  ;;  %v6771_v34 = vpop.f32.mrf.mxu1 }
 0x692   :  { %v6750_v45 = vpop.f32.mrf.mxu0  ;;  %v6772_v17 = vpop.f32.mrf.mxu1 }
 0x693   :  { %v6751_v2 = vadd.f32 %v6750_v45, %v6749_v53  ;;  %v6773_v14 = vadd.f32 %v6772_v17, %v6771_v34  ;;  %v7708_v53 = vld [vmem:[#allocation15 + $0x1b8] sm:$0xff]   ;;  %v7709_v34 = vld [vmem:[#allocation15 + $0x170] sm:$0xff]  }
 0x694   :  { %v6752_v11 = vpop.f32.mrf.mxu0  ;;  %v6774_v22 = vpop.f32.mrf.mxu1  ;;  %v7710_v45 = vld [vmem:[#allocation15 + $0x1f0] sm:$0xff]  }
 0x695   :  { %v3375_v61 = vadd.f32 %v6751_v2, %v6247_v9  ;;  %v7711_v22 = vld [vmem:[#allocation15 + $0x130] sm:$0xff]   ;;  %v7722_v2 = vld [vmem:[#allocation15 + $0x1d8] sm:$0xff]  }
 0x696   :  { %v6753_v60 = vpop.f32.mrf.mxu0  ;;  %v6775_v32 = vpop.f32.mrf.mxu1  ;;  %v7723_v9 = vld [vmem:[#allocation15 + $0x118] sm:$0xff]  }
 0x697   :  { %v3415_v13 = vadd.f32 %v6773_v14, %v3375_v61  ;;  %v7712_v60 = vld [vmem:[#allocation15 + $0x1b0] sm:$0xff]   ;;  %v7713_v32 = vld [vmem:[#allocation15 + $0x168] sm:$0xff]   ;;  %v7724_v61 = vld [vmem:[#allocation15 + $0x198] sm:$0xff]  }
 0x698   :  { %v7725_v14 = vld [vmem:[#allocation15 + $0x150] sm:$0xff]  }
 0x6b0   :  { %v6793_v44 = vpop.f32.mrf.mxu0  ;;  %v6815_v50 = vpop.f32.mrf.mxu1 }
 0x6b2   :  { %v6794_v5 = vpop.f32.mrf.mxu0  ;;  %v6816_v7 = vpop.f32.mrf.mxu1 }
 0x6b3   :  { %v6795_v57 = vadd.f32 %v6794_v5, %v6793_v44  ;;  %v6817_v15 = vadd.f32 %v6816_v7, %v6815_v50  ;;  %v7714_v44 = vld [vmem:[#allocation15 + $0x1e8] sm:$0xff]   ;;  %v7717_v7 = vld [vmem:[#allocation15 + $0x160] sm:$0xff]  }
 0x6b4   :  { %v6796_v54 = vpop.f32.mrf.mxu0  ;;  %v6818_v58 = vpop.f32.mrf.mxu1  ;;  %v7715_v50 = vld [vmem:[#allocation15 + $0x128] sm:$0xff]  }
 0x6b5   :  { %v3455_v1 = vadd.f32 %v6795_v57, %v3415_v13  ;;  %v7716_v5 = vld [vmem:[#allocation15 + $0x1a8] sm:$0xff]   ;;  %v7718_v54 = vld [vmem:[#allocation15 + $0x1e0] sm:$0xff]   ;;  %v7726_v57 = vld [vmem:[#allocation15 + $0x1d0] sm:$0xff]  }
 0x6b6   :  { %v6797_v6 = vpop.f32.mrf.mxu0  ;;  %v6819_v42 = vpop.f32.mrf.mxu1  ;;  %v7719_v58 = vld [vmem:[#allocation15 + $0x120] sm:$0xff]   ;;  %v7727_v13 = vld [vmem:[#allocation15 + $0x110] sm:$0xff]  }
 0x6b7   :  { %v3495_v29 = vadd.f32 %v6817_v15, %v3455_v1  ;;  %v7720_v6 = vld [vmem:[#allocation15 + $0x1a0] sm:$0xff]   ;;  %v7721_v42 = vld [vmem:[#allocation15 + $0x158] sm:$0xff]   ;;  %v7729_v1 = vld [vmem:[#allocation15 + $0x148] sm:$0xff]  }
 0x6b8   :  { %v7731_v15 = vld [vmem:[#allocation15 + $0x108] sm:$0xff]  }
 0x6d0   :  { %v3534_v19 = vpop.f32.mrf.mxu0 }
 0x6d1   :  { %v3535_v63 = vadd.f32 %v3534_v19, %v3495_v29  ;;  %v7728_v19 = vld [vmem:[#allocation15 + $0x190] sm:$0xff]   ;;  %v7733_v29 = vld [vmem:[#allocation15 + $0x140] sm:$0xff]  }
 0x6d2   :  { %v7202_v20 = vpop.f32.mrf.mxu0 }
 0x6d3   :  { %v7730_v20 = vld [vmem:[#allocation15 + $0x1c8] sm:$0xff]  }
 0x6d4   :  { %v3537_v30 = vpop.f32.mrf.mxu0 }
 0x6d5   :  { %v7732_v30 = vld [vmem:[#allocation15 + $0x188] sm:$0xff]  }
 0x6d6   :  { %v7203_v43 = vpop.f32.mrf.mxu0 }
 0x6d7   :  { %v7734_v43 = vld [vmem:[#allocation15 + $0x1c0] sm:$0xff]  }
 0x6d8   :  { %v3624_v51 = vpop.f32.mrf.mxu0 }
 0x6d9   :  { %v3629_v56 = vmul.f32 %v3624_v51, %v3535_v63  ;;  %v7735_v63 = vld [vmem:[#allocation15 + $0x100] sm:$0xff]  }
 0x6da   :  { %v3626_v48 = vpop.f32.mrf.mxu0  ;;  %v7736_v51 = vld [vmem:[#allocation15 + $0x180] sm:$0xff]  }
 0x6db   :  { %v3630_v21 = vadd.f32 %v3629_v56, %v3626_v48  ;;  %v7737_v48 = vld [vmem:[#allocation15 + $0x238] sm:$0xff]  }
 0x6dd   :  { %v9126_v27 = vmax.f32 %v3630_v21, 0.0 }
 0x6df   :  { %v3635_v31 = vrot.slane %v9126_v27, 6  ;;  %v3638_v23 = vrot.slane %v9126_v27, 7  ;;  %v3632_v37 = vrot.slane %v9126_v27, 5  ;;  %v3644_v49 = vrot.slane %v9126_v27, 1 }
 0x6e0   :  { %v3649_v62 = vrot.slane %v9126_v27, 2  ;;  %v3643_v21 = vpack.c.bf16 %v9126_v27, %v9126_v27 }
 0x6e1   :  { %v3636_v28 = vmul.f32 %v3635_v31, %v8992_v36  ;;  %v3641_v38 = vmul.f32 %v3638_v23, %v8994_v24  ;;  %v3633_v18 = vmul.f32 %v3632_v37, %v8998_v10  ;;  %v3639_v35 = vmul.f32 %v3638_v23, %v8996_v12  ;;  %v7738_v23 = vld [vmem:[#allocation15 + $0x230] sm:$0xff]   ;;  %v7739_v37 = vld [vmem:[#allocation15 + $0x228] sm:$0xff]  }
 0x6e2   :  { %v3645_v8 = vmul.f32 %v3644_v49, %v9009_v25  ;;  %v3650_v16 = vmul.f32 %v3649_v62, %v9007_v26  ;;  %v3647_v56 = vmul.f32 %v3644_v49, %v9047_v59  ;;  %v7740_v49 = vld [vmem:[#allocation15 + $0x220] sm:$0xff]   ;;  %v7741_v62 = vld [vmem:[#allocation15 + $0x218] sm:$0xff]  }
 0x6e3   :  { %v3637_v33 = vpack.c.bf16 %v3636_v28, %v3636_v28  ;;  %v3642_v39 = vpack.c.bf16 %v3641_v38, %v3641_v38  ;;  %v3634_v4 = vpack.c.bf16 %v3633_v18, %v3633_v18  ;;  %v3640_v3 = vpack.c.bf16 %v3639_v35, %v3639_v35  ;;  %v7742_v28 = vld [vmem:[#allocation15 + $0x210] sm:$0xff]   ;;  %v7743_v38 = vld [vmem:[#allocation15 + $0x208] sm:$0xff]   ;;  %v7744_v35 = vld [vmem:[#allocation15 + $0x200] sm:$0xff]  }
 0x6e4   :  { %v3646_v17 = vpack.c.bf16 %v3645_v8, %v3645_v8  ;;  %v3651_v11 = vpack.c.bf16 %v3650_v16, %v3650_v16  ;;  %v3648_v31 = vpack.c.bf16 %v3647_v56, %v3647_v56  ;;  %v3652_v18 = vrot.slane %v9126_v27, 3  ;;  %v7751_v27 = vld [vmem:[#allocation18 + $0x30] sm:$0xff]  }
 0x6e5   :  { %4270 = vmatprep.mubr.bf16.mxu1 %v3637_v33  ;;  %4310 = vmatprep.mubr.bf16.mxu0 %v3642_v39  ;;  %v7745_v33 = vld [vmem:[#allocation18 + $0x78] sm:$0xff]  }
 0x6e6   :  { %4271 = vmatmul.mubr.bf16.vlgmr.msra.gmra.mxu1 %v3634_v4  ;;  %4311 = vmatmul.mubr.bf16.vlgmr.msra.gmra.mxu0 %v3640_v3  ;;  %v3653_v8 = vmul.f32 %v3652_v18, %v9073_v41  ;;  %v7746_v39 = vld [vmem:[#allocation18 + $0xf8] sm:$0xff]  }
 0x6e7   :  { %6875 = vmatpush3.bf16.msra.mxu1 %v7707_v0  ;;  %6897 = vmatpush3.bf16.msra.mxu0 %v7708_v53  ;;  %v7747_v4 = vld [vmem:[#allocation18 + $0x38] sm:$0xff]   ;;  %v7749_v0 = vld [vmem:[#allocation18 + $0x70] sm:$0xff]  }
 0x6e8   :  { %4350 = vmatprep.mubr.bf16.mxu1 %v3646_v17  ;;  %4390 = vmatprep.mubr.bf16.mxu0 %v3651_v11  ;;  %v3654_v16 = vpack.c.bf16 %v3653_v8, %v3653_v8  ;;  %v7748_v3 = vld [vmem:[#allocation18 + $0xb8] sm:$0xff]   ;;  %v7750_v53 = vld [vmem:[#allocation18 + $0xf0] sm:$0xff]   ;;  %v7754_v17 = vld [vmem:[#allocation18 + $0xe8] sm:$0xff]  }
 0x6e9   :  { %6876 = vmatprep.subr.bf16.mxu1 %v7709_v34  ;;  %6898 = vmatprep.subr.bf16.mxu0 %v7710_v45  ;;  %v7752_v34 = vld [vmem:[#allocation18 + $0xb0] sm:$0xff]   ;;  %v7753_v45 = vld [vmem:[#allocation18 + $0x68] sm:$0xff]  }
 0x6ea   :  { %v7755_v11 = vld [vmem:[#allocation18 + $0x28] sm:$0xff]  }
 0x6eb   :  { %6877 = vmatpush3.bf16.msra.mxu1 %v7711_v22  ;;  %6899 = vmatpush3.bf16.msra.mxu0 %v7712_v60  ;;  %v7756_v22 = vld [vmem:[#allocation18 + $0xa8] sm:$0xff]   ;;  %v7757_v60 = vld [vmem:[#allocation18 + $0x60] sm:$0xff]  }
 0x6ec   :  { %6878 = vmatprep.subr.bf16.mxu1 %v7713_v32  ;;  %6900 = vmatprep.subr.bf16.mxu0 %v7714_v44  ;;  %v7758_v32 = vld [vmem:[#allocation18 + $0xe0] sm:$0xff]  }
 0x6ed   :  { %v7759_v44 = vld [vmem:[#allocation18 + $0x20] sm:$0xff]  }
 0x6ef   :  { %6879 = vmatpush3.bf16.msra.mxu1 %v7715_v50  ;;  %6901 = vmatpush3.bf16.msra.mxu0 %v7716_v5  ;;  %v7760_v50 = vld [vmem:[#allocation18 + $0xa0] sm:$0xff]   ;;  %v7761_v5 = vld [vmem:[#allocation18 + $0x58] sm:$0xff]  }
 0x6f0   :  { %6880 = vmatprep.subr.bf16.mxu1 %v7717_v7  ;;  %6902 = vmatprep.subr.bf16.mxu0 %v7718_v54  ;;  %v7762_v7 = vld [vmem:[#allocation18 + $0xd8] sm:$0xff]  }
 0x6f1   :  { %v7763_v54 = vld [vmem:[#allocation18 + $0x18] sm:$0xff]  }
 0x6f3   :  { %6881 = vmatpush3.bf16.msra.mxu1 %v7719_v58  ;;  %6903 = vmatpush3.bf16.msra.mxu0 %v7720_v6  ;;  %v7764_v58 = vld [vmem:[#allocation18 + $0x98] sm:$0xff]   ;;  %v7765_v6 = vld [vmem:[#allocation18 + $0x50] sm:$0xff]  }
 0x6f4   :  { %6882 = vmatprep.subr.bf16.mxu1 %v7721_v42  ;;  %6904 = vmatprep.subr.bf16.mxu0 %v7722_v2  ;;  %v7766_v42 = vld [vmem:[#allocation18 + $0xd0] sm:$0xff]  }
 0x6f5   :  { %v7767_v2 = vld [vmem:[#allocation18 + $0x10] sm:$0xff]  }
 0x6f7   :  { %6883 = vmatpush3.bf16.msra.mxu1 %v7723_v9  ;;  %6905 = vmatpush3.bf16.msra.mxu0 %v7724_v61  ;;  %v7768_v9 = vld [vmem:[#allocation18 + $0x90] sm:$0xff]   ;;  %v7769_v61 = vld [vmem:[#allocation18 + $0x48] sm:$0xff]  }
 0x6f8   :  { %6884 = vmatprep.subr.bf16.mxu1 %v7725_v14  ;;  %6906 = vmatprep.subr.bf16.mxu0 %v7726_v57  ;;  %v7770_v14 = vld [vmem:[#allocation18 + $0xc8] sm:$0xff]  }
 0x6f9   :  { %v7771_v57 = vld [vmem:[#allocation18 + $0x8] sm:$0xff]  }
 0x6fb   :  { %6885 = vmatpush3.bf16.msra.mxu1 %v7727_v13  ;;  %6907 = vmatpush3.bf16.msra.mxu0 %v7728_v19  ;;  %v7772_v13 = vld [vmem:[#allocation18 + $0x88] sm:$0xff]   ;;  %v7773_v19 = vld [vmem:[#allocation18 + $0x40] sm:$0xff]  }
 0x6fc   :  { %6886 = vmatprep.subr.bf16.mxu1 %v7729_v1  ;;  %6908 = vmatprep.subr.bf16.mxu0 %v7730_v20  ;;  %v7774_v1 = vld [vmem:[#allocation18 + $0xc0] sm:$0xff]  }
 0x6fd   :  { %v7775_v20 = vld [vmem:[#allocation18] sm:$0xff]  }
 0x6ff   :  { %6887 = vmatpush3.bf16.msra.mxu1 %v7731_v15  ;;  %6909 = vmatpush3.bf16.msra.mxu0 %v7732_v30  ;;  %v7776_v15 = vld [vmem:[#allocation18 + $0x80] sm:$0xff]   ;;  %v7777_v30 = vld [vmem:[#allocation18 + $0x178] sm:$0xff]  }
 0x700   :  { %6888 = vmatprep.subr.bf16.mxu1 %v7733_v29  ;;  %6910 = vmatprep.subr.bf16.mxu0 %v7734_v43  ;;  %v7778_v29 = vld [vmem:[#allocation18 + $0x1f8] sm:$0xff]  }
 0x703   :  { %6889 = vmatpush3.bf16.msra.mxu1 %v7735_v63  ;;  %6911 = vmatpush3.bf16.msra.mxu0 %v7736_v51 }
 0x704   :  { %7204 = vmatprep.subr.bf16.mxu1 %v8255_v46  ;;  %6927 = vmatprep.subr.bf16.mxu0 %v7745_v33  ;;  %v6323_v33 = vld [vmem:[#allocation16] ss:$0 sm:$0xff] }
 0x706   :  { %4351 = vmatmul.mubr.bf16.vlgmr.msra.gmra.mxu1 %v3643_v21  ;;  %4391 = vmatmul.mubr.bf16.vlgmr.msra.gmra.mxu0 %v3648_v31 }
 0x707   :  { %7205 = vmatpush3.bf16.msra.mxu1 %v7737_v48  ;;  %7220 = vmatprep.mubr.msk.bf16.mxu1 %vm8256_vm7, %v8255_v46 }
 0x708   :  { %7206 = vmatprep.subr.bf16.mxu1 %v8255_v46  ;;  %6928 = vmatpush3.bf16.msra.mxu0 %v7747_v4 }
 0x709   :  { %6929 = vmatprep.subr.bf16.mxu0 %v7749_v0 }
 0x70b   :  { %7207 = vmatpush3.bf16.msra.mxu1 %v7738_v23 }
 0x70c   :  { %7208 = vmatprep.subr.bf16.mxu1 %v8255_v46  ;;  %6930 = vmatpush3.bf16.msra.mxu0 %v7751_v27 }
 0x70d   :  { %6931 = vmatprep.subr.bf16.mxu0 %v7753_v45 }
 0x70f   :  { %7209 = vmatpush3.bf16.msra.mxu1 %v7739_v37 }
 0x710   :  { %7210 = vmatprep.subr.bf16.mxu1 %v8255_v46  ;;  %6932 = vmatpush3.bf16.msra.mxu0 %v7755_v11 }
 0x711   :  { %6933 = vmatprep.subr.bf16.mxu0 %v7757_v60 }
 0x713   :  { %7211 = vmatpush3.bf16.msra.mxu1 %v7740_v49 }
 0x714   :  { %7212 = vmatprep.subr.bf16.mxu1 %v8255_v46  ;;  %6934 = vmatpush3.bf16.msra.mxu0 %v7759_v44 }
 0x715   :  { %6935 = vmatprep.subr.bf16.mxu0 %v7761_v5 }
 0x717   :  { %7213 = vmatpush3.bf16.msra.mxu1 %v7741_v62 }
 0x718   :  { %7214 = vmatprep.subr.bf16.mxu1 %v8255_v46  ;;  %6936 = vmatpush3.bf16.msra.mxu0 %v7763_v54 }
 0x719   :  { %6937 = vmatprep.subr.bf16.mxu0 %v7765_v6 }
 0x71b   :  { %7215 = vmatpush3.bf16.msra.mxu1 %v7742_v28 }
 0x71c   :  { %7216 = vmatprep.subr.bf16.mxu1 %v8255_v46  ;;  %6938 = vmatpush3.bf16.msra.mxu0 %v7767_v2 }
 0x71d   :  { %6939 = vmatprep.subr.bf16.mxu0 %v7769_v61 }
 0x71f   :  { %7217 = vmatpush3.bf16.msra.mxu1 %v7743_v38 }
 0x720   :  { %7218 = vmatprep.subr.bf16.mxu1 %v8255_v46  ;;  %6940 = vmatpush3.bf16.msra.mxu0 %v7771_v57 }
 0x721   :  { %6941 = vmatprep.subr.bf16.mxu0 %v7773_v19 }
 0x723   :  { %7219 = vmatpush3.bf16.msra.mxu1 %v7744_v35 }
 0x724   :  { %6949 = vmatprep.subr.bf16.mxu1 %v7746_v39  ;;  %6942 = vmatpush3.bf16.msra.mxu0 %v7775_v20  ;;  %v7780_v20 = vld [vmem:[#allocation18 + $0x1b8] sm:$0xff]  }
 0x725   :  { %6971 = vmatprep.subr.bf16.mxu0 %v7777_v30  ;;  %v7786_v30 = vld [vmem:[#allocation18 + $0x1e8] sm:$0xff]  }
 0x726   :  { %7221 = vmatmul.mubr.bf16.vlgmr.msra.gmra.mxu1 %v3654_v16 }
 0x727   :  { %6950 = vmatpush3.bf16.msra.mxu1 %v7748_v3 }
 0x728   :  { %6951 = vmatprep.subr.bf16.mxu1 %v7750_v53 }
 0x72b   :  { %6952 = vmatpush3.bf16.msra.mxu1 %v7752_v34 }
 0x72c   :  { %6953 = vmatprep.subr.bf16.mxu1 %v7754_v17 }
 0x72f   :  { %6954 = vmatpush3.bf16.msra.mxu1 %v7756_v22 }
 0x730   :  { %6955 = vmatprep.subr.bf16.mxu1 %v7758_v32 }
 0x733   :  { %6956 = vmatpush3.bf16.msra.mxu1 %v7760_v50 }
 0x734   :  { %6957 = vmatprep.subr.bf16.mxu1 %v7762_v7 }
 0x737   :  { %6958 = vmatpush3.bf16.msra.mxu1 %v7764_v58 }
 0x738   :  { %6959 = vmatprep.subr.bf16.mxu1 %v7766_v42 }
 0x73b   :  { %6960 = vmatpush3.bf16.msra.mxu1 %v7768_v9 }
 0x73c   :  { %6961 = vmatprep.subr.bf16.mxu1 %v7770_v14 }
 0x73f   :  { %6962 = vmatpush3.bf16.msra.mxu1 %v7772_v13 }
 0x740   :  { %6963 = vmatprep.subr.bf16.mxu1 %v7774_v1  ;;  %v7779_v1 = vld [vmem:[#allocation18 + $0x138] sm:$0xff]  }
 0x743   :  { %6964 = vmatpush3.bf16.msra.mxu1 %v7776_v15  ;;  %v7783_v15 = vld [vmem:[#allocation18 + $0x130] sm:$0xff]  }
 0x744   :  { %6993 = vmatprep.subr.bf16.mxu1 %v7778_v29  ;;  %v7787_v29 = vld [vmem:[#allocation18 + $0x128] sm:$0xff]  }
 0x7a6   :  { %v6846_v43 = vpop.f32.mrf.mxu1  ;;  %v6868_v63 = vpop.f32.mrf.mxu0 }
 0x7a8   :  { %v6847_v51 = vpop.f32.mrf.mxu1  ;;  %v6869_v56 = vpop.f32.mrf.mxu0 }
 0x7a9   :  { %v6848_v16 = vadd.f32 %v6847_v51, %v6846_v43  ;;  %v6870_v4 = vadd.f32 %v6869_v56, %v6868_v63  ;;  %v7788_v43 = vld [vmem:[#allocation18 + $0x1a8] sm:$0xff]   ;;  %v7789_v63 = vld [vmem:[#allocation18 + $0x160] sm:$0xff]  }
 0x7aa   :  { %v6849_v48 = vpop.f32.mrf.mxu1  ;;  %v6871_v21 = vpop.f32.mrf.mxu0  ;;  %v7790_v51 = vld [vmem:[#allocation18 + $0x1e0] sm:$0xff]  }
 0x7ab   :  { %v4273_v39 = vadd.f32 %v6848_v16, %v6323_v33  ;;  %v7791_v56 = vld [vmem:[#allocation18 + $0x120] sm:$0xff]   ;;  %v7793_v21 = vld [vmem:[#allocation18 + $0x158] sm:$0xff]   ;;  %v7804_v16 = vld [vmem:[#allocation18 + $0x188] sm:$0xff]  }
 0x7ac   :  { %v6850_v31 = vpop.f32.mrf.mxu1  ;;  %v6872_v23 = vpop.f32.mrf.mxu0  ;;  %v7792_v48 = vld [vmem:[#allocation18 + $0x1a0] sm:$0xff]  }
 0x7ad   :  { %v4313_v0 = vadd.f32 %v6870_v4, %v4273_v39  ;;  %v7794_v31 = vld [vmem:[#allocation18 + $0x1d8] sm:$0xff]   ;;  %v7805_v33 = vld [vmem:[#allocation18 + $0x140] sm:$0xff]  }
 0x7ae   :  { %v7795_v23 = vld [vmem:[#allocation18 + $0x118] sm:$0xff]   ;;  %v7806_v39 = vld [vmem:[#allocation18 + $0x1c0] sm:$0xff]  }
 0x7af   :  { %v7807_v4 = vld [vmem:[#allocation18 + $0x100] sm:$0xff]  }
 0x7c6   :  { %v6890_v37 = vpop.f32.mrf.mxu1  ;;  %v6912_v49 = vpop.f32.mrf.mxu0 }
 0x7c8   :  { %v6891_v62 = vpop.f32.mrf.mxu1  ;;  %v6913_v28 = vpop.f32.mrf.mxu0 }
 0x7c9   :  { %v6892_v3 = vadd.f32 %v6891_v62, %v6890_v37  ;;  %v6914_v27 = vadd.f32 %v6913_v28, %v6912_v49  ;;  %v7796_v37 = vld [vmem:[#allocation18 + $0x198] sm:$0xff]   ;;  %v7797_v49 = vld [vmem:[#allocation18 + $0x150] sm:$0xff]  }
 0x7ca   :  { %v6893_v38 = vpop.f32.mrf.mxu1  ;;  %v6915_v18 = vpop.f32.mrf.mxu0  ;;  %v7798_v62 = vld [vmem:[#allocation18 + $0x1d0] sm:$0xff]  }
 0x7cb   :  { %v4353_v53 = vadd.f32 %v6892_v3, %v4313_v0  ;;  %v7799_v28 = vld [vmem:[#allocation18 + $0x110] sm:$0xff]   ;;  %v7801_v18 = vld [vmem:[#allocation18 + $0x148] sm:$0xff]   ;;  %v7808_v3 = vld [vmem:[#allocation18 + $0x180] sm:$0xff]  }
 0x7cc   :  { %v6894_v35 = vpop.f32.mrf.mxu1  ;;  %v6916_v8 = vpop.f32.mrf.mxu0  ;;  %v7800_v38 = vld [vmem:[#allocation18 + $0x190] sm:$0xff]  }
 0x7cd   :  { %v4393_v34 = vadd.f32 %v6914_v27, %v4353_v53  ;;  %v7802_v35 = vld [vmem:[#allocation18 + $0x1c8] sm:$0xff]   ;;  %v7809_v53 = vld [vmem:[#allocation18 + $0x238] sm:$0xff]  }
 0x7ce   :  { %v7803_v8 = vld [vmem:[#allocation18 + $0x108] sm:$0xff]  }
 0x7e6   :  { %v4432_v45 = vpop.f32.mrf.mxu1 }
 0x7e7   :  { %v4433_v17 = vadd.f32 %v4432_v45, %v4393_v34  ;;  %v7810_v45 = vld [vmem:[#allocation18 + $0x230] sm:$0xff]  }
 0x7e8   :  { %v7222_v11 = vpop.f32.mrf.mxu1 }
 0x7e9   :  { %v9158_v22 = vmax.f32 %v4433_v17, 0.0  ;;  %v7812_v17 = vld [vmem:[#allocation18 + $0x220] sm:$0xff]   ;;  %v7813_v11 = vld [vmem:[#allocation18 + $0x218] sm:$0xff]  }
 0x7ea   :  { %v4435_v60 = vpop.f32.mrf.mxu1 }
 0x7eb   :  { %v4442_v32 = vrot.slane %v9158_v22, 6  ;;  %v4445_v44 = vrot.slane %v9158_v22, 7  ;;  %v4439_v50 = vrot.slane %v9158_v22, 5  ;;  %v4451_v5 = vrot.slane %v9158_v22, 1  ;;  %v7814_v60 = vld [vmem:[#allocation18 + $0x210] sm:$0xff]  }
 0x7ec   :  { %v7223_v7 = vpop.f32.mrf.mxu1  ;;  %v4456_v54 = vrot.slane %v9158_v22, 2  ;;  %v4450_v27 = vpack.c.bf16 %v9158_v22, %v9158_v22 }
 0x7ed   :  { %v4443_v58 = vmul.f32 %v4442_v32, %v8992_v36  ;;  %v4448_v6 = vmul.f32 %v4445_v44, %v8994_v24  ;;  %v4440_v42 = vmul.f32 %v4439_v50, %v8998_v10  ;;  %v4446_v2 = vmul.f32 %v4445_v44, %v8996_v12  ;;  %v7781_v36 = vld [vmem:[#allocation18 + $0x170] sm:$0xff]   ;;  %v7815_v44 = vld [vmem:[#allocation18 + $0x208] sm:$0xff]   ;;  %v7816_v7 = vld [vmem:[#allocation18 + $0x200] sm:$0xff]  }
 0x7ee   :  { %v4452_v9 = vmul.f32 %v4451_v5, %v9009_v25  ;;  %v4457_v61 = vmul.f32 %v4456_v54, %v9007_v26  ;;  %v7782_v24 = vld [vmem:[#allocation18 + $0x1f0] sm:$0xff]   ;;  %v7785_v26 = vld [vmem:[#allocation18 + $0x168] sm:$0xff]   ;;  %v4454_v0 = vmul.f32 %v4451_v5, %v9047_v59  ;;  %v5245_v32 = vcombine.high %v9110_v52, %v9110_v52 }
 0x7ef   :  { %v4444_v14 = vpack.c.bf16 %v4443_v58, %v4443_v58  ;;  %v4449_v57 = vpack.c.bf16 %v4448_v6, %v4448_v6  ;;  %v4441_v13 = vpack.c.bf16 %v4440_v42, %v4440_v42  ;;  %v4447_v19 = vpack.c.bf16 %v4446_v2, %v4446_v2  ;;  %v7784_v25 = vld [vmem:[#allocation18 + $0x1b0] sm:$0xff]   ;;  %v7811_v59 = vld [vmem:[#allocation18 + $0x228] sm:$0xff]  }
 0x7f0   :  { %v4453_v10 = vpack.c.bf16 %v4452_v9, %v4452_v9  ;;  %v4458_v12 = vpack.c.bf16 %v4457_v61, %v4457_v61  ;;  %v4455_v34 = vpack.c.bf16 %v4454_v0, %v4454_v0  ;;  %v4459_v50 = vrot.slane %v9158_v22, 3  ;;  %v5475_v22 = vld [vmem:[%s9443_s26 + $0x1e0] sm:$0xff]  ;;  %v5472_v6 = vld [vmem:[%s9443_s26 + $0x1c8] sm:$0xff] }
 0x7f1   :  { %5077 = vmatprep.mubr.bf16.mxu0 %v4444_v14  ;;  %5117 = vmatprep.mubr.bf16.mxu1 %v4449_v57  ;;  %v5252_v5 = vrot.slane %v5245_v32, %v9107_v55  ;;  %v5471_v42 = vld [vmem:[%s9443_s26 + $0x1c0] sm:$0xff]  ;;  %v5468_v2 = vld [vmem:[%s9443_s26 + $0x1a8] sm:$0xff] }
 0x7f2   :  { %5078 = vmatmul.mubr.bf16.vlgmr.msra.gmra.mxu0 %v4441_v13  ;;  %5118 = vmatmul.mubr.bf16.vlgmr.msra.gmra.mxu1 %v4447_v19  ;;  %v4460_v54 = vmul.f32 %v4459_v50, %v9073_v41  ;;  %v5476_v41 = vld [vmem:[%s9443_s26 + $0x1e8] sm:$0xff]  ;;  %v5467_v9 = vld [vmem:[%s9443_s26 + $0x1a0] sm:$0xff] }
 0x7f3   :  { %6972 = vmatpush3.bf16.msra.mxu0 %v7779_v1  ;;  %6994 = vmatpush3.bf16.msra.mxu1 %v7780_v20  ;;  %v5253_v58 = vcombine.high %v5252_v5, %v5252_v5  ;;  %v5463_v61 = vld [vmem:[%s9443_s26 + $0x180] sm:$0xff]  ;;  %v5460_v14 = vld [vmem:[%s9443_s26 + $0x168] sm:$0xff] }
 0x7f4   :  { %5157 = vmatprep.mubr.bf16.mxu0 %v4453_v10  ;;  %5197 = vmatprep.mubr.bf16.mxu1 %v4458_v12  ;;  %v4461_v52 = vpack.c.bf16 %v4460_v54, %v4460_v54  ;;  %v5459_v57 = vld [vmem:[%s9443_s26 + $0x160] sm:$0xff]  ;;  %v5456_v13 = vld [vmem:[%s9443_s26 + $0x148] sm:$0xff] }
 0x7f5   :  { %6973 = vmatprep.subr.bf16.mxu0 %v7781_v36  ;;  %6995 = vmatprep.subr.bf16.mxu1 %v7782_v24  ;;  %v5455_v19 = vld [vmem:[%s9443_s26 + $0x140] sm:$0xff]  ;;  %v5452_v1 = vld [vmem:[%s9443_s26 + $0x128] sm:$0xff] }
 0x7f6   :  { %v5451_v20 = vld [vmem:[%s9443_s26 + $0x120] sm:$0xff]  ;;  %v5448_v36 = vld [vmem:[%s9443_s26 + $0x108] sm:$0xff] }
 0x7f7   :  { %6974 = vmatpush3.bf16.msra.mxu0 %v7783_v15  ;;  %6996 = vmatpush3.bf16.msra.mxu1 %v7784_v25  ;;  %v5447_v24 = vld [vmem:[%s9443_s26 + $0x100] sm:$0xff]  ;;  %v5444_v10 = vld [vmem:[%s9443_s26 + $0xe8] sm:$0xff] }
 0x7f8   :  { %6975 = vmatprep.subr.bf16.mxu0 %v7785_v26  ;;  %6997 = vmatprep.subr.bf16.mxu1 %v7786_v30  ;;  %v5443_v12 = vld [vmem:[%s9443_s26 + $0xe0] sm:$0xff]  ;;  %v5440_v15 = vld [vmem:[%s9443_s26 + $0xc8] sm:$0xff] }
 0x7f9   :  { %v5439_v25 = vld [vmem:[%s9443_s26 + $0xc0] sm:$0xff]  ;;  %v5436_v26 = vld [vmem:[%s9443_s26 + $0xa8] sm:$0xff] }
 0x7fa   :  { %v5435_v30 = vld [vmem:[%s9443_s26 + $0xa0] sm:$0xff]  ;;  %v5520_v0 = vld [vmem:[%s9443_s26 + $0x348] sm:$0xff] }
 0x7fb   :  { %6976 = vmatpush3.bf16.msra.mxu0 %v7787_v29  ;;  %6998 = vmatpush3.bf16.msra.mxu1 %v7788_v43  ;;  %v5432_v29 = vld [vmem:[%s9443_s26 + $0x88] sm:$0xff]  ;;  %v5431_v43 = vld [vmem:[%s9443_s26 + $0x80] sm:$0xff] }
 0x7fc   :  { %6977 = vmatprep.subr.bf16.mxu0 %v7789_v63  ;;  %6999 = vmatprep.subr.bf16.mxu1 %v7790_v51  ;;  %v5428_v63 = vld [vmem:[%s9443_s26 + $0x68] sm:$0xff]  ;;  %v5427_v51 = vld [vmem:[%s9443_s26 + $0x60] sm:$0xff] }
 0x7fd   :  { %v5511_v32 = vld [vmem:[%s9443_s26 + $0x300] sm:$0xff]  ;;  %v5504_v54 = vld [vmem:[%s9443_s26 + $0x2c8] sm:$0xff] }
 0x7ff   :  { %6978 = vmatpush3.bf16.msra.mxu0 %v7791_v56  ;;  %7000 = vmatpush3.bf16.msra.mxu1 %v7792_v48  ;;  %v5424_v56 = vld [vmem:[%s9443_s26 + $0x48] sm:$0xff]  ;;  %v5423_v48 = vld [vmem:[%s9443_s26 + $0x40] sm:$0xff] }
 0x800   :  { %6979 = vmatprep.subr.bf16.mxu0 %v7793_v21  ;;  %7001 = vmatprep.subr.bf16.mxu1 %v7794_v31  ;;  %v5420_v21 = vld [vmem:[%s9443_s26 + $0x28] sm:$0xff]  ;;  %v5419_v31 = vld [vmem:[%s9443_s26 + $0x20] sm:$0xff] }
 0x803   :  { %6980 = vmatpush3.bf16.msra.mxu0 %v7795_v23  ;;  %7002 = vmatpush3.bf16.msra.mxu1 %v7796_v37  ;;  %v5416_v23 = vld [vmem:[%s9443_s26 + $0x8] sm:$0xff]  ;;  %v5415_v37 = vld [vmem:[%s9443_s26] sm:$0xff] }
 0x804   :  { %6981 = vmatprep.subr.bf16.mxu0 %v7797_v49  ;;  %7003 = vmatprep.subr.bf16.mxu1 %v7798_v62  ;;  %v5540_v49 = vld [vmem:[%s9443_s26 + $0x3e8] sm:$0xff]  ;;  %v5539_v62 = vld [vmem:[%s9443_s26 + $0x3e0] sm:$0xff] }
 0x807   :  { %6982 = vmatpush3.bf16.msra.mxu0 %v7799_v28  ;;  %7004 = vmatpush3.bf16.msra.mxu1 %v7800_v38  ;;  %v5536_v28 = vld [vmem:[%s9443_s26 + $0x3c8] sm:$0xff]  ;;  %v5535_v38 = vld [vmem:[%s9443_s26 + $0x3c0] sm:$0xff] }
 0x808   :  { %6983 = vmatprep.subr.bf16.mxu0 %v7801_v18  ;;  %7005 = vmatprep.subr.bf16.mxu1 %v7802_v35  ;;  %v5532_v18 = vld [vmem:[%s9443_s26 + $0x3a8] sm:$0xff]  ;;  %v5531_v35 = vld [vmem:[%s9443_s26 + $0x3a0] sm:$0xff] }
 0x80b   :  { %6984 = vmatpush3.bf16.msra.mxu0 %v7803_v8  ;;  %7006 = vmatpush3.bf16.msra.mxu1 %v7804_v16  ;;  %v5528_v8 = vld [vmem:[%s9443_s26 + $0x388] sm:$0xff]  ;;  %v5527_v16 = vld [vmem:[%s9443_s26 + $0x380] sm:$0xff] }
 0x80c   :  { %6985 = vmatprep.subr.bf16.mxu0 %v7805_v33  ;;  %7007 = vmatprep.subr.bf16.mxu1 %v7806_v39  ;;  %v5524_v33 = vld [vmem:[%s9443_s26 + $0x368] sm:$0xff]  ;;  %v5523_v39 = vld [vmem:[%s9443_s26 + $0x360] sm:$0xff] }
 0x80f   :  { %6986 = vmatpush3.bf16.msra.mxu0 %v7807_v4  ;;  %7008 = vmatpush3.bf16.msra.mxu1 %v7808_v3 }
 0x810   :  { %7224 = vmatprep.subr.bf16.mxu0 %v8255_v46  ;;  %5565 = vmatprep.subr.mxu1 %v5476_v41  ;;  %v5499_v41 = vld [vmem:[%s9443_s26 + $0x2a0] sm:$0xff] }
 0x812   :  { %5158 = vmatmul.mubr.bf16.vlgmr.msra.gmra.mxu0 %v4450_v27  ;;  %5198 = vmatmul.mubr.bf16.vlgmr.msra.gmra.mxu1 %v4455_v34 }
 0x813   :  { %7225 = vmatpush3.bf16.msra.mxu0 %v7809_v53  ;;  %7240 = vmatprep.mubr.msk.bf16.mxu0 %vm8256_vm7, %v8255_v46  ;;  %v5519_v53 = vld [vmem:[%s9443_s26 + $0x340] sm:$0xff] }
 0x814   :  { %7226 = vmatprep.subr.bf16.mxu0 %v8255_v46  ;;  %5566 = vmatpush1.msra.mxu1 %v5475_v22  ;;  %v5496_v22 = vld [vmem:[%s9443_s26 + $0x288] sm:$0xff] }
 0x815   :  { %5567 = vmatprep.subr.mxu1 %v5472_v6  ;;  %v5495_v6 = vld [vmem:[%s9443_s26 + $0x280] sm:$0xff] }
 0x816   :  { %5568 = vmatpush1.msra.mxu1 %v5471_v42  ;;  %v5492_v42 = vld [vmem:[%s9443_s26 + $0x268] sm:$0xff] }
 0x817   :  { %7227 = vmatpush3.bf16.msra.mxu0 %v7810_v45  ;;  %5569 = vmatprep.subr.mxu1 %v5468_v2  ;;  %v5516_v45 = vld [vmem:[%s9443_s26 + $0x328] sm:$0xff]  ;;  %v5491_v2 = vld [vmem:[%s9443_s26 + $0x260] sm:$0xff] }
 0x818   :  { %7228 = vmatprep.subr.bf16.mxu0 %v8255_v46  ;;  %5570 = vmatpush1.msra.mxu1 %v5467_v9  ;;  %v5488_v9 = vld [vmem:[%s9443_s26 + $0x248] sm:$0xff] }
 0x81b   :  { %7229 = vmatpush3.bf16.msra.mxu0 %v7811_v59  ;;  %v5515_v59 = vld [vmem:[%s9443_s26 + $0x320] sm:$0xff] }
 0x81c   :  { %7230 = vmatprep.subr.bf16.mxu0 %v8255_v46 }
 0x81f   :  { %7231 = vmatpush3.bf16.msra.mxu0 %v7812_v17 }
 0x820   :  { %7232 = vmatprep.subr.bf16.mxu0 %v8255_v46 }
 0x823   :  { %7233 = vmatpush3.bf16.msra.mxu0 %v7813_v11 }
 0x824   :  { %7234 = vmatprep.subr.bf16.mxu0 %v8255_v46 }
 0x827   :  { %7235 = vmatpush3.bf16.msra.mxu0 %v7814_v60  ;;  %v5512_v60 = vld [vmem:[%s9443_s26 + $0x308] sm:$0xff] }
 0x828   :  { %7236 = vmatprep.subr.bf16.mxu0 %v8255_v46 }
 0x82b   :  { %7237 = vmatpush3.bf16.msra.mxu0 %v7815_v44 }
 0x82c   :  { %7238 = vmatprep.subr.bf16.mxu0 %v8255_v46 }
 0x82f   :  { %7239 = vmatpush3.bf16.msra.mxu0 %v7816_v7  ;;  %v5507_v7 = vld [vmem:[%s9443_s26 + $0x2e0] sm:$0xff] }
 0x830   :  { %6469 = vmatprep.subr.msk.mxu0 %vm3553_vm9, %v5253_v58  ;;  %v5503_v58 = vld [vmem:[%s9443_s26 + $0x2c0] sm:$0xff] }
 0x832   :  { %7241 = vmatmul.mubr.bf16.vlgmr.msra.gmra.mxu0 %v4461_v52  ;;  %v5500_v52 = vld [vmem:[%s9443_s26 + $0x2a8] sm:$0xff] }
 0x833   :  { %6470 = vmatpush1.msk.msra.mxu0 %vm3553_vm9, %v5252_v5  ;;  %5322 = vmatprep.mubr.f32.mxu0 %v8255_v46  ;;  %v5508_v5 = vld [vmem:[%s9443_s26 + $0x2e8] sm:$0xff] }
 0x834   :  { %7244 = vmatprep.subr.mxu0 %v8255_v46 }
 0x83a   :  { %6471 = vmatmul.mubr.msk.f32.vlgmr.msra.gmra.mxu0 %vm3549_vm10, %v9122_v40  ;;  %v5464_v40 = vld [vmem:[%s9443_s26 + $0x188] sm:$0xff] }
 0x83b   :  { %7246 = vmatprep.mubr.msk.f32.mxu0 %vm8256_vm7, %v8255_v46  ;;  %5571 = vmatprep.subr.mxu1 %v5464_v40  ;;  %v5487_v40 = vld [vmem:[%s9443_s26 + $0x240] sm:$0xff] }
 0x83c   :  { %5572 = vmatpush1.msra.mxu1 %v5463_v61  ;;  %v5484_v61 = vld [vmem:[%s9443_s26 + $0x228] sm:$0xff] }
 0x83d   :  { %5573 = vmatprep.subr.mxu1 %v5460_v14 }
 0x83e   :  { %5574 = vmatpush1.msra.mxu1 %v5459_v57 }
 0x83f   :  { %5575 = vmatprep.subr.mxu1 %v5456_v13 }
 0x840   :  { %5576 = vmatpush1.msra.mxu1 %v5455_v19 }
 0x841   :  { %5577 = vmatprep.subr.mxu1 %v5452_v1 }
 0x842   :  { %5578 = vmatpush1.msra.mxu1 %v5451_v20 }
 0x843   :  { %5579 = vmatprep.subr.mxu1 %v5448_v36 }
 0x844   :  { %5580 = vmatpush1.msra.mxu1 %v5447_v24 }
 0x845   :  { %5581 = vmatprep.subr.mxu1 %v5444_v10 }
 0x846   :  { %5582 = vmatpush1.msra.mxu1 %v5443_v12  ;;  %v6396_v12 = vld [vmem:[#allocation19] ss:$0 sm:$0xff] }
 0x847   :  { %5583 = vmatprep.subr.mxu1 %v5440_v15 }
 0x848   :  { %5584 = vmatpush1.msra.mxu1 %v5439_v25 }
 0x849   :  { %5585 = vmatprep.subr.mxu1 %v5436_v26 }
 0x84a   :  { %5586 = vmatpush1.msra.mxu1 %v5435_v30 }
 0x84b   :  { %5587 = vmatprep.subr.mxu1 %v5432_v29 }
 0x84c   :  { %5588 = vmatpush1.msra.mxu1 %v5431_v43 }
 0x84d   :  { %5589 = vmatprep.subr.mxu1 %v5428_v63 }
 0x84e   :  { %5590 = vmatpush1.msra.mxu1 %v5427_v51 }
 0x84f   :  { %5591 = vmatprep.subr.mxu1 %v5424_v56 }
 0x850   :  { %5592 = vmatpush1.msra.mxu1 %v5423_v48 }
 0x851   :  { %5593 = vmatprep.subr.mxu1 %v5420_v21 }
 0x852   :  { %5594 = vmatpush1.msra.mxu1 %v5419_v31 }
 0x853   :  { %5595 = vmatprep.subr.mxu1 %v5416_v23 }
 0x854   :  { %5596 = vmatpush1.msra.mxu1 %v5415_v37 }
 0x855   :  { %5597 = vmatprep.subr.mxu1 %v5540_v49 }
 0x856   :  { %5598 = vmatpush2.msra.mxu1 %v5539_v62 }
 0x857   :  { %5599 = vmatprep.subr.mxu1 %v5536_v28 }
 0x858   :  { %5600 = vmatpush2.msra.mxu1 %v5535_v38 }
 0x859   :  { %5601 = vmatprep.subr.mxu1 %v5532_v18 }
 0x85a   :  { %5602 = vmatpush2.msra.mxu1 %v5531_v35 }
 0x85b   :  { %5603 = vmatprep.subr.mxu1 %v5528_v8 }
 0x85c   :  { %5604 = vmatpush2.msra.mxu1 %v5527_v16 }
 0x85d   :  { %5605 = vmatprep.subr.mxu1 %v5524_v33 }
 0x85e   :  { %5606 = vmatpush2.msra.mxu1 %v5523_v39  ;;  %v5338_v39 = vld [vmem:[#allocation4] sm:$0x3] }
 0x85f   :  { %5607 = vmatprep.subr.mxu1 %v5520_v0  ;;  %v5474_v0 = vld [vmem:[%s9443_s26 + $0x1d8] sm:$0xff] }
 0x860   :  { %5608 = vmatpush2.msra.mxu1 %v5519_v53  ;;  %v5473_v53 = vld [vmem:[%s9443_s26 + $0x1d0] sm:$0xff] }
 0x861   :  { %5609 = vmatprep.subr.mxu1 %v5516_v45  ;;  %v5466_v45 = vld [vmem:[%s9443_s26 + $0x198] sm:$0xff] }
 0x862   :  { %5610 = vmatpush2.msra.mxu1 %v5515_v59  ;;  %v5465_v59 = vld [vmem:[%s9443_s26 + $0x190] sm:$0xff] }
 0x863   :  { %5611 = vmatprep.subr.mxu1 %v5512_v60  ;;  %v5458_v60 = vld [vmem:[%s9443_s26 + $0x158] sm:$0xff] }
 0x864   :  { %5612 = vmatpush2.msra.mxu1 %v5511_v32  ;;  %v5457_v32 = vld [vmem:[%s9443_s26 + $0x150] sm:$0xff] }
 0x865   :  { %5613 = vmatprep.subr.mxu1 %v5508_v5  ;;  %v5450_v5 = vld [vmem:[%s9443_s26 + $0x118] sm:$0xff] }
 0x866   :  { %5614 = vmatpush2.msra.mxu1 %v5507_v7  ;;  %v5449_v7 = vld [vmem:[%s9443_s26 + $0x110] sm:$0xff] }
 0x867   :  { %5615 = vmatprep.subr.mxu1 %v5504_v54  ;;  %v5446_v54 = vld [vmem:[%s9443_s26 + $0xf8] sm:$0xff] }
 0x868   :  { %5616 = vmatpush2.msra.mxu1 %v5503_v58  ;;  %v5445_v58 = vld [vmem:[%s9443_s26 + $0xf0] sm:$0xff] }
 0x869   :  { %5617 = vmatprep.subr.mxu1 %v5500_v52  ;;  %v5442_v52 = vld [vmem:[%s9443_s26 + $0xd8] sm:$0xff] }
 0x86a   :  { %5618 = vmatpush2.msra.mxu1 %v5499_v41  ;;  %v5441_v41 = vld [vmem:[%s9443_s26 + $0xd0] sm:$0xff] }
 0x86b   :  { %5619 = vmatprep.subr.mxu1 %v5496_v22  ;;  %v5438_v22 = vld [vmem:[%s9443_s26 + $0xb8] sm:$0xff] }
 0x86c   :  { %5620 = vmatpush2.msra.mxu1 %v5495_v6  ;;  %v5437_v6 = vld [vmem:[%s9443_s26 + $0xb0] sm:$0xff] }
 0x86d   :  { %5621 = vmatprep.subr.mxu1 %v5492_v42  ;;  %v5434_v42 = vld [vmem:[%s9443_s26 + $0x98] sm:$0xff] }
 0x86e   :  { %5622 = vmatpush2.msra.mxu1 %v5491_v2  ;;  %v5433_v2 = vld [vmem:[%s9443_s26 + $0x90] sm:$0xff] }
 0x86f   :  { %5623 = vmatprep.subr.mxu1 %v5488_v9  ;;  %v5430_v9 = vld [vmem:[%s9443_s26 + $0x78] sm:$0xff] }
 0x870   :  { %5624 = vmatpush2.msra.mxu1 %v5487_v40  ;;  %v5429_v40 = vld [vmem:[%s9443_s26 + $0x70] sm:$0xff] }
 0x871   :  { %5625 = vmatprep.subr.mxu1 %v5484_v61  ;;  %v5426_v61 = vld [vmem:[%s9443_s26 + $0x58] sm:$0xff] }
 0x8b2   :  { %v6943_v4 = vpop.f32.mrf.mxu0  ;;  %v6965_v3 = vpop.f32.mrf.mxu1 }
 0x8b4   :  { %v6944_v27 = vpop.f32.mrf.mxu0  ;;  %v6966_v34 = vpop.f32.mrf.mxu1 }
 0x8b5   :  { %v6945_v10 = vadd.f32 %v6944_v27, %v6943_v4  ;;  %v6967_v25 = vadd.f32 %v6966_v34, %v6965_v3  ;;  %v5478_v4 = vld [vmem:[%s9443_s26 + $0x1f8] sm:$0xff]  ;;  %v5477_v3 = vld [vmem:[%s9443_s26 + $0x1f0] sm:$0xff] }
 0x8b6   :  { %v6946_v17 = vpop.f32.mrf.mxu0  ;;  %v6968_v11 = vpop.f32.mrf.mxu1  ;;  %v5470_v27 = vld [vmem:[%s9443_s26 + $0x1b8] sm:$0xff]  ;;  %v5469_v34 = vld [vmem:[%s9443_s26 + $0x1b0] sm:$0xff] }
 0x8b7   :  { %v5080_v15 = vadd.f32 %v6945_v10, %v6396_v12  ;;  %v5462_v17 = vld [vmem:[%s9443_s26 + $0x178] sm:$0xff]  ;;  %v5461_v11 = vld [vmem:[%s9443_s26 + $0x170] sm:$0xff] }
 0x8b8   :  { %v6947_v44 = vpop.f32.mrf.mxu0  ;;  %v6969_v50 = vpop.f32.mrf.mxu1  ;;  %v5537_v10 = vld [vmem:[%s9443_s26 + $0x3d0] sm:$0xff]  ;;  %v5534_v12 = vld [vmem:[%s9443_s26 + $0x3b8] sm:$0xff] }
 0x8b9   :  { %v5120_v30 = vadd.f32 %v6967_v25, %v5080_v15  ;;  %v5454_v44 = vld [vmem:[%s9443_s26 + $0x138] sm:$0xff]  ;;  %v5453_v50 = vld [vmem:[%s9443_s26 + $0x130] sm:$0xff] }
 0x8ba   :  { %v5533_v15 = vld [vmem:[%s9443_s26 + $0x3b0] sm:$0xff]  ;;  %v5530_v25 = vld [vmem:[%s9443_s26 + $0x398] sm:$0xff] }
 0x8d2   :  { %v6987_v14 = vpop.f32.mrf.mxu0  ;;  %v7009_v57 = vpop.f32.mrf.mxu1 }
 0x8d4   :  { %v6988_v13 = vpop.f32.mrf.mxu0  ;;  %v7010_v19 = vpop.f32.mrf.mxu1 }
 0x8d5   :  { %v6989_v26 = vadd.f32 %v6988_v13, %v6987_v14  ;;  %v7011_v51 = vadd.f32 %v7010_v19, %v7009_v57  ;;  %v5425_v14 = vld [vmem:[%s9443_s26 + $0x50] sm:$0xff]  ;;  %v5422_v57 = vld [vmem:[%s9443_s26 + $0x38] sm:$0xff] }
 0x8d6   :  { %v6990_v1 = vpop.f32.mrf.mxu0  ;;  %v7012_v20 = vpop.f32.mrf.mxu1  ;;  %v5421_v13 = vld [vmem:[%s9443_s26 + $0x30] sm:$0xff]  ;;  %v5418_v19 = vld [vmem:[%s9443_s26 + $0x18] sm:$0xff] }
 0x8d7   :  { %v5160_v43 = vadd.f32 %v6989_v26, %v5120_v30  ;;  %v5417_v1 = vld [vmem:[%s9443_s26 + $0x10] sm:$0xff]  ;;  %v5542_v20 = vld [vmem:[%s9443_s26 + $0x3f8] sm:$0xff] }
 0x8d8   :  { %v6991_v36 = vpop.f32.mrf.mxu0  ;;  %v7013_v24 = vpop.f32.mrf.mxu1  ;;  %v5529_v26 = vld [vmem:[%s9443_s26 + $0x390] sm:$0xff]  ;;  %v5526_v30 = vld [vmem:[%s9443_s26 + $0x378] sm:$0xff] }
 0x8d9   :  { %v5200_v48 = vadd.f32 %v7011_v51, %v5160_v43  ;;  %v5541_v36 = vld [vmem:[%s9443_s26 + $0x3f0] sm:$0xff]  ;;  %v5538_v24 = vld [vmem:[%s9443_s26 + $0x3d8] sm:$0xff] }
 0x8da   :  { %v5522_v43 = vld [vmem:[%s9443_s26 + $0x358] sm:$0xff] }
 0x8db   :  { %v5518_v51 = vld [vmem:[%s9443_s26 + $0x338] sm:$0xff] }
 0x8f2   :  { %v5239_v29 = vpop.f32.mrf.mxu0 }
 0x8f3   :  { %v5240_v31 = vadd.f32 %v5239_v29, %v5200_v48  ;;  %v5525_v29 = vld [vmem:[%s9443_s26 + $0x370] sm:$0xff]  ;;  %v5514_v48 = vld [vmem:[%s9443_s26 + $0x318] sm:$0xff] }
 0x8f4   :  { %v7242_v63 = vpop.f32.mrf.mxu0 }
 0x8f5   :  { %v5521_v63 = vld [vmem:[%s9443_s26 + $0x350] sm:$0xff] }
 0x8f6   :  { %v5242_v56 = vpop.f32.mrf.mxu0 }
 0x8f7   :  { %v5517_v56 = vld [vmem:[%s9443_s26 + $0x330] sm:$0xff] }
 0x8f8   :  { %v7243_v21 = vpop.f32.mrf.mxu0 }
 0x8f9   :  { %v5513_v21 = vld [vmem:[%s9443_s26 + $0x310] sm:$0xff] }
 0x8fa   :  { %v5324_v23 = vpop.f32.mrf.mxu0 }
 0x8fb   :  { %v5329_v37 = vmul.f32 %v5324_v23, %v5240_v31  ;;  %v5510_v31 = vld [vmem:[%s9443_s26 + $0x2f8] sm:$0xff]  ;;  %v5509_v23 = vld [vmem:[%s9443_s26 + $0x2f0] sm:$0xff] }
 0x8fc   :  { %v5326_v49 = vpop.f32.mrf.mxu0 }
 0x8fd   :  { %v5330_v62 = vadd.f32 %v5329_v37, %v5326_v49  ;;  %v5506_v37 = vld [vmem:[%s9443_s26 + $0x2d8] sm:$0xff]  ;;  %v5505_v49 = vld [vmem:[%s9443_s26 + $0x2d0] sm:$0xff] }
 0x8ff   :  { %v5331_v28 = vmax.f32 %v5330_v62, 0.0  ;;  %v5502_v62 = vld [vmem:[%s9443_s26 + $0x2b8] sm:$0xff] }
 0x901   :  { %v5332_v38 = vrot.slane %v5331_v28, 1  ;;  %v5334_v35 = vrot.slane %v5331_v28, 2  ;;  %v5336_v8 = vrot.slane %v5331_v28, 3 }
 0x903   :  { %v5333_v18 = vmax.f32 %v5331_v28, %v5332_v38  ;;  %v5501_v28 = vld [vmem:[%s9443_s26 + $0x2b0] sm:$0xff]  ;;  %v5498_v38 = vld [vmem:[%s9443_s26 + $0x298] sm:$0xff] }
 0x905   :  { %v5335_v16 = vmax.f32 %v5333_v18, %v5334_v35  ;;  %v5497_v18 = vld [vmem:[%s9443_s26 + $0x290] sm:$0xff]  ;;  %v5494_v35 = vld [vmem:[%s9443_s26 + $0x278] sm:$0xff] }
 0x907   :  { %v5337_v33 = vmax.f32 %v5335_v16, %v5336_v8  ;;  %v5493_v8 = vld [vmem:[%s9443_s26 + $0x270] sm:$0xff]  ;;  %v5490_v16 = vld [vmem:[%s9443_s26 + $0x258] sm:$0xff] }
 0x909   :  { %7245 = vmatpush3.msra.mxu0 %v5337_v33  ;;  %v5489_v33 = vld [vmem:[%s9443_s26 + $0x250] sm:$0xff] }
 0x90a   :  { %7247 = vmatmul.mubr.msk.f32.vlgmr.msra.gmra.mxu0 %vm5339_vm11, %v5338_v39  ;;  %5636 = vmatprep.subr.mxu0 %v5478_v4  ;;  %v5483_v39 = vld [vmem:[%s9443_s26 + $0x220] sm:$0xff]  ;;  %v5486_v4 = vld [vmem:[%s9443_s26 + $0x238] sm:$0xff] }
 0x90b   :  { %5637 = vmatpush1.msra.mxu0 %v5477_v3  ;;  %v5480_v3 = vld [vmem:[%s9443_s26 + $0x208] sm:$0xff]  ;;  %5626 = vmatpush2.msra.mxu1 %v5483_v39 }
 0x90c   :  { %5638 = vmatprep.subr.mxu0 %v5474_v0  ;;  %v5485_v0 = vld [vmem:[%s9443_s26 + $0x230] sm:$0xff]  ;;  %5627 = vmatprep.subr.mxu1 %v5480_v3 }
 0x90d   :  { %5639 = vmatpush1.msra.mxu0 %v5473_v53  ;;  %v5479_v53 = vld [vmem:[%s9443_s26 + $0x200] sm:$0xff] }
 0x90e   :  { %5640 = vmatprep.subr.mxu0 %v5470_v27  ;;  %v9328_v27 = vld [vmem:[%s9444_s27] sm:$0xf]  ;;  %5628 = vmatpush2.msra.mxu1 %v5479_v53 }
 0x90f   :  { %5641 = vmatpush1.msra.mxu0 %v5469_v34  ;;  %v5482_v34 = vld [vmem:[%s9443_s26 + $0x218] sm:$0xff]  ;;  %5629 = vmatprep.mubr.f32.mxu1 %v9328_v27 }
 0x910   :  { %5642 = vmatprep.subr.mxu0 %v5466_v45  ;;  %v5481_v45 = vld [vmem:[%s9443_s26 + $0x210] sm:$0xff]  ;;  %5700 = vmatprep.mubr.f32.mxu0 %v9328_v27 }
 0x911   :  { %5643 = vmatpush1.msra.mxu0 %v5465_v59  ;;  %7249 = vmatprep.subr.mxu1 %v8255_v46 }
 0x912   :  { %5644 = vmatprep.subr.mxu0 %v5462_v17 }
 0x913   :  { %5645 = vmatpush1.msra.mxu0 %v5461_v11 }
 0x914   :  { %5646 = vmatprep.subr.mxu0 %v5458_v60  ;;  %v5768_v60 = vld [vmem:[%s9445_s14 + $0x78] sm:$0xff] }
 0x915   :  { %5647 = vmatpush1.msra.mxu0 %v5457_v32  ;;  %v5767_v32 = vld [vmem:[%s9445_s14 + $0x70] sm:$0xff] }
 0x916   :  { %5648 = vmatprep.subr.mxu0 %v5454_v44  ;;  %v5766_v44 = vld [vmem:[%s9445_s14 + $0x68] sm:$0xff] }
 0x917   :  { %5649 = vmatpush1.msra.mxu0 %v5453_v50  ;;  %v5765_v50 = vld [vmem:[%s9445_s14 + $0x60] sm:$0xff] }
 0x918   :  { %5650 = vmatprep.subr.mxu0 %v5450_v5  ;;  %v5764_v5 = vld [vmem:[%s9445_s14 + $0x58] sm:$0xff] }
 0x919   :  { %5651 = vmatpush1.msra.mxu0 %v5449_v7  ;;  %v5763_v7 = vld [vmem:[%s9445_s14 + $0x50] sm:$0xff] }
 0x91a   :  { %5652 = vmatprep.subr.mxu0 %v5446_v54  ;;  %v5762_v54 = vld [vmem:[%s9445_s14 + $0x48] sm:$0xff] }
 0x91b   :  { %5653 = vmatpush1.msra.mxu0 %v5445_v58  ;;  %v5761_v58 = vld [vmem:[%s9445_s14 + $0x40] sm:$0xff] }
 0x91c   :  { %5654 = vmatprep.subr.mxu0 %v5442_v52  ;;  %v5760_v52 = vld [vmem:[%s9445_s14 + $0x38] sm:$0xff] }
 0x91d   :  { %5655 = vmatpush1.msra.mxu0 %v5441_v41  ;;  %v5759_v41 = vld [vmem:[%s9445_s14 + $0x30] sm:$0xff] }
 0x91e   :  { %5656 = vmatprep.subr.mxu0 %v5438_v22  ;;  %v5758_v22 = vld [vmem:[%s9445_s14 + $0x28] sm:$0xff] }
 0x91f   :  { %5657 = vmatpush1.msra.mxu0 %v5437_v6  ;;  %v5757_v6 = vld [vmem:[%s9445_s14 + $0x20] sm:$0xff] }
 0x920   :  { %5658 = vmatprep.subr.mxu0 %v5434_v42  ;;  %v5756_v42 = vld [vmem:[%s9445_s14 + $0x18] sm:$0xff] }
 0x921   :  { %5659 = vmatpush1.msra.mxu0 %v5433_v2  ;;  %v5755_v2 = vld [vmem:[%s9445_s14 + $0x10] sm:$0xff] }
 0x922   :  { %5660 = vmatprep.subr.mxu0 %v5430_v9  ;;  %v5754_v9 = vld [vmem:[%s9445_s14 + $0x8] sm:$0xff] }
 0x923   :  { %5661 = vmatpush1.msra.mxu0 %v5429_v40  ;;  %v5753_v40 = vld [vmem:[%s9445_s14] sm:$0xff] }
 0x924   :  { %5662 = vmatprep.subr.mxu0 %v5426_v61  ;;  %v5862_v61 = vld [vmem:[#allocation22 + $0x78] sm:$0xff] }
 0x925   :  { %5663 = vmatpush1.msra.mxu0 %v5425_v14  ;;  %v5861_v14 = vld [vmem:[#allocation22 + $0x70] sm:$0xff] }
 0x926   :  { %5664 = vmatprep.subr.mxu0 %v5422_v57  ;;  %v5860_v57 = vld [vmem:[#allocation22 + $0x68] sm:$0xff] }
 0x927   :  { %5665 = vmatpush1.msra.mxu0 %v5421_v13  ;;  %v5859_v13 = vld [vmem:[#allocation22 + $0x60] sm:$0xff] }
 0x928   :  { %5666 = vmatprep.subr.mxu0 %v5418_v19  ;;  %v5858_v19 = vld [vmem:[#allocation22 + $0x58] sm:$0xff] }
 0x929   :  { %5667 = vmatpush1.msra.mxu0 %v5417_v1  ;;  %v5857_v1 = vld [vmem:[#allocation22 + $0x50] sm:$0xff] }
 0x92a   :  { %5668 = vmatprep.subr.mxu0 %v5542_v20  ;;  %v5856_v20 = vld [vmem:[#allocation22 + $0x48] sm:$0xff] }
 0x92b   :  { %5669 = vmatpush2.msra.mxu0 %v5541_v36  ;;  %v5547_v36 = vsub.s32 0, %v8546_v47 }
 0x92c   :  { %5670 = vmatprep.subr.mxu0 %v5538_v24  ;;  %v5543_v24 = vld [vmem:[%s9446_s28] sm:$0xf] }
 0x92d   :  { %5671 = vmatpush2.msra.mxu0 %v5537_v10  ;;  %v5551_v10 = vsub.s32 1, %v8546_v47 }
 0x92e   :  { %5672 = vmatprep.subr.mxu0 %v5534_v12  ;;  %v5548_v12 = vrot.slane %v5543_v24, %v5547_v36  ;;  %v5945_v36 = vld [vmem:[#allocation25 + $0x20] sm:$0xff] }
 0x92f   :  { %5673 = vmatpush2.msra.mxu0 %v5533_v15  ;;  %v5552_v15 = vrot.slane %v5543_v24, %v5551_v10  ;;  %v5943_v10 = vld [vmem:[#allocation25 + $0x10] sm:$0xff] }
 0x930   :  { %5674 = vmatprep.subr.mxu0 %v5530_v25 }
 0x931   :  { %5675 = vmatpush2.msra.mxu0 %v5529_v26 }
 0x932   :  { %5676 = vmatprep.subr.mxu0 %v5526_v30 }
 0x933   :  { %5677 = vmatpush2.msra.mxu0 %v5525_v29 }
 0x934   :  { %5678 = vmatprep.subr.mxu0 %v5522_v43 }
 0x935   :  { %5679 = vmatpush2.msra.mxu0 %v5521_v63  ;;  %v5559_v63 = vsub.s32 3, %v8546_v47 }
 0x936   :  { %5680 = vmatprep.subr.mxu0 %v5518_v51 }
 0x937   :  { %5681 = vmatpush2.msra.mxu0 %v5517_v56 }
 0x938   :  { %5682 = vmatprep.subr.mxu0 %v5514_v48  ;;  %v5560_v48 = vrot.slane %v5543_v24, %v5559_v63  ;;  %v6479_v63 = vld [vmem:[#allocation27] ss:$0 sm:$0xff] }
 0x939   :  { %5683 = vmatpush2.msra.mxu0 %v5513_v21 }
 0x93a   :  { %5684 = vmatprep.subr.mxu0 %v5510_v31  ;;  %v5555_v31 = vsub.s32 2, %v8546_v47 }
 0x93b   :  { %5685 = vmatpush2.msra.mxu0 %v5509_v23 }
 0x93c   :  { %5686 = vmatprep.subr.mxu0 %v5506_v37  ;;  %v5556_v37 = vrot.slane %v5543_v24, %v5555_v31  ;;  %v5944_v24 = vld [vmem:[#allocation25 + $0x18] sm:$0xff] }
 0x93d   :  { %5687 = vmatpush2.msra.mxu0 %v5505_v49 }
 0x93e   :  { %5688 = vmatprep.subr.mxu0 %v5502_v62 }
 0x93f   :  { %5689 = vmatpush2.msra.mxu0 %v5501_v28 }
 0x940   :  { %5690 = vmatprep.subr.mxu0 %v5498_v38 }
 0x941   :  { %5691 = vmatpush2.msra.mxu0 %v5497_v18 }
 0x942   :  { %5692 = vmatprep.subr.mxu0 %v5494_v35 }
 0x943   :  { %5693 = vmatpush2.msra.mxu0 %v5493_v8  ;;  %v5733_v8 = vrot.slane %v9328_v27, %v9107_v55  ;;  %v5855_v55 = vld [vmem:[#allocation22 + $0x40] sm:$0xff]  ;;  %v5854_v27 = vld [vmem:[#allocation22 + $0x38] sm:$0xff] }
 0x944   :  { %5694 = vmatprep.subr.mxu0 %v5490_v16 }
 0x945   :  { %5695 = vmatpush2.msra.mxu0 %v5489_v33  ;;  %v5734_v33 = vcombine.high %v5733_v8, %v5733_v8 }
 0x946   :  { %5696 = vmatprep.subr.mxu0 %v5486_v4 }
 0x947   :  { %5697 = vmatpush2.msra.mxu0 %v5485_v0 }
 0x948   :  { %5698 = vmatprep.subr.mxu0 %v5482_v34 }
 0x949   :  { %5699 = vmatpush2.msra.mxu0 %v5481_v45 }
 0x94a   :  { %7284 = vmatprep.subr.mxu0 %v8255_v46 }
 0x9ca   :  { %v5409_v59 = vpop.f32.mrf.mxu0 }
 0x9cb   :  { %v5413_v17 = vmax.f32 %v5409_v59, 0.0 }
 0x9cc   :  { %v7248_v11 = vpop.f32.mrf.mxu0 }
 0x9cd   :  { %5630 = vmatmul.mubr.f32.vlgmr.msra.gmra.mxu1 %v5413_v17  ;;  %5701 = vmatmul.mubr.f32.vlgmr.msra.gmra.mxu0 %v5413_v17 }
 0x9ce   :  { %7281 = vmatprep.mubr.msk.f32.mxu1 %vm8256_vm7, %v8255_v46  ;;  %7316 = vmatprep.mubr.msk.f32.mxu0 %vm8256_vm7, %v8255_v46 }
 0x9cf   :  { %7250 = vmatpush3.msra.mxu1 %v5768_v60  ;;  %7285 = vmatpush3.msra.mxu0 %v5862_v61  ;;  %v5853_v60 = vld [vmem:[#allocation22 + $0x30] sm:$0xff] }
 0x9d0   :  { %7251 = vmatprep.subr.mxu1 %v8255_v46  ;;  %7286 = vmatprep.subr.mxu0 %v8255_v46 }
 0x9d1   :  { %7252 = vmatpush3.msra.mxu1 %v5767_v32  ;;  %7287 = vmatpush3.msra.mxu0 %v5861_v14  ;;  %v5852_v32 = vld [vmem:[#allocation22 + $0x28] sm:$0xff] }
 0x9d2   :  { %7253 = vmatprep.subr.mxu1 %v8255_v46  ;;  %7288 = vmatprep.subr.mxu0 %v8255_v46 }
 0x9d3   :  { %7254 = vmatpush3.msra.mxu1 %v5766_v44  ;;  %7289 = vmatpush3.msra.mxu0 %v5860_v57  ;;  %v5851_v44 = vld [vmem:[#allocation22 + $0x20] sm:$0xff] }
 0x9d4   :  { %7255 = vmatprep.subr.mxu1 %v8255_v46  ;;  %7290 = vmatprep.subr.mxu0 %v8255_v46 }
 0x9d5   :  { %7256 = vmatpush3.msra.mxu1 %v5765_v50  ;;  %7291 = vmatpush3.msra.mxu0 %v5859_v13  ;;  %v5850_v50 = vld [vmem:[#allocation22 + $0x18] sm:$0xff]  ;;  %v5949_v13 = vld [vmem:[#allocation25 + $0x40] sm:$0xff] }
 0x9d6   :  { %7257 = vmatprep.subr.mxu1 %v8255_v46  ;;  %7292 = vmatprep.subr.mxu0 %v8255_v46 }
 0x9d7   :  { %7258 = vmatpush3.msra.mxu1 %v5764_v5  ;;  %7293 = vmatpush3.msra.mxu0 %v5858_v19  ;;  %v5849_v5 = vld [vmem:[#allocation22 + $0x10] sm:$0xff]  ;;  %v5948_v19 = vld [vmem:[#allocation25 + $0x38] sm:$0xff] }
 0x9d8   :  { %7259 = vmatprep.subr.mxu1 %v8255_v46  ;;  %7294 = vmatprep.subr.mxu0 %v8255_v46 }
 0x9d9   :  { %7260 = vmatpush3.msra.mxu1 %v5763_v7  ;;  %7295 = vmatpush3.msra.mxu0 %v5857_v1  ;;  %v5848_v7 = vld [vmem:[#allocation22 + $0x8] sm:$0xff]  ;;  %v5947_v1 = vld [vmem:[#allocation25 + $0x30] sm:$0xff] }
 0x9da   :  { %7261 = vmatprep.subr.mxu1 %v8255_v46  ;;  %7296 = vmatprep.subr.mxu0 %v8255_v46 }
 0x9db   :  { %7262 = vmatpush3.msra.mxu1 %v5762_v54  ;;  %7297 = vmatpush3.msra.mxu0 %v5856_v20  ;;  %v5847_v54 = vld [vmem:[#allocation22] sm:$0xff]  ;;  %v5946_v20 = vld [vmem:[#allocation25 + $0x28] sm:$0xff] }
 0x9dc   :  { %7263 = vmatprep.subr.mxu1 %v8255_v46  ;;  %7298 = vmatprep.subr.mxu0 %v8255_v46 }
 0x9dd   :  { %7264 = vmatpush3.msra.mxu1 %v5761_v58  ;;  %7299 = vmatpush3.msra.mxu0 %v5855_v55  ;;  %v5956_v58 = vld [vmem:[#allocation25 + $0x78] sm:$0xff] }
 0x9de   :  { %7265 = vmatprep.subr.mxu1 %v8255_v46  ;;  %7300 = vmatprep.subr.mxu0 %v8255_v46 }
 0x9df   :  { %7266 = vmatpush3.msra.mxu1 %v5760_v52  ;;  %7301 = vmatpush3.msra.mxu0 %v5854_v27  ;;  %v5955_v52 = vld [vmem:[#allocation25 + $0x70] sm:$0xff] }
 0x9e0   :  { %7267 = vmatprep.subr.mxu1 %v8255_v46  ;;  %7302 = vmatprep.subr.mxu0 %v8255_v46 }
 0x9e1   :  { %7268 = vmatpush3.msra.mxu1 %v5759_v41  ;;  %7303 = vmatpush3.msra.mxu0 %v5853_v60  ;;  %v5954_v41 = vld [vmem:[#allocation25 + $0x68] sm:$0xff] }
 0x9e2   :  { %7269 = vmatprep.subr.mxu1 %v8255_v46  ;;  %7304 = vmatprep.subr.mxu0 %v8255_v46 }
 0x9e3   :  { %7270 = vmatpush3.msra.mxu1 %v5758_v22  ;;  %7305 = vmatpush3.msra.mxu0 %v5852_v32  ;;  %v5953_v22 = vld [vmem:[#allocation25 + $0x60] sm:$0xff] }
 0x9e4   :  { %7271 = vmatprep.subr.mxu1 %v8255_v46  ;;  %7306 = vmatprep.subr.mxu0 %v8255_v46 }
 0x9e5   :  { %7272 = vmatpush3.msra.mxu1 %v5757_v6  ;;  %7307 = vmatpush3.msra.mxu0 %v5851_v44  ;;  %v5952_v6 = vld [vmem:[#allocation25 + $0x58] sm:$0xff] }
 0x9e6   :  { %7273 = vmatprep.subr.mxu1 %v8255_v46  ;;  %7308 = vmatprep.subr.mxu0 %v8255_v46 }
 0x9e7   :  { %7274 = vmatpush3.msra.mxu1 %v5756_v42  ;;  %7309 = vmatpush3.msra.mxu0 %v5850_v50  ;;  %v5951_v42 = vld [vmem:[#allocation25 + $0x50] sm:$0xff] }
 0x9e8   :  { %7275 = vmatprep.subr.mxu1 %v8255_v46  ;;  %7310 = vmatprep.subr.mxu0 %v8255_v46 }
 0x9e9   :  { %7276 = vmatpush3.msra.mxu1 %v5755_v2  ;;  %7311 = vmatpush3.msra.mxu0 %v5849_v5  ;;  %v5950_v2 = vld [vmem:[#allocation25 + $0x48] sm:$0xff] }
 0x9ea   :  { %7277 = vmatprep.subr.mxu1 %v8255_v46  ;;  %7312 = vmatprep.subr.mxu0 %v8255_v46 }
 0x9eb   :  { %7278 = vmatpush3.msra.mxu1 %v5754_v9  ;;  %7313 = vmatpush3.msra.mxu0 %v5848_v7  ;;  %v6477_v9 = vld [vmem:[#allocation21] ss:$0 sm:$0xff] }
 0x9ec   :  { %7279 = vmatprep.subr.mxu1 %v8255_v46  ;;  %7314 = vmatprep.subr.mxu0 %v8255_v46 }
 0x9ed   :  { %7280 = vmatpush3.msra.mxu1 %v5753_v40  ;;  %7315 = vmatpush3.msra.mxu0 %v5847_v54 }
 0x9ee   :  { %7319 = vmatprep.subr.mxu1 %v8255_v46 }
 0xa8d   :  { %v5631_v25 = vpop.f32.mrf.mxu1  ;;  %v5702_v51 = vpop.f32.mrf.mxu0 }
 0xa8e   :  { %v5632_v26 = vadd.f32 %v5631_v25, %v5548_v12  ;;  %v5703_v28 = vadd.f32 %v5702_v51, %v5556_v37  ;;  %v5942_v12 = vld [vmem:[#allocation25 + $0x8] sm:$0xff]  ;;  %v6478_v25 = vld [vmem:[#allocation24] ss:$0 sm:$0xff] }
 0xa8f   :  { %v5633_v30 = vpop.f32.mrf.mxu1  ;;  %v5704_v21 = vpop.f32.mrf.mxu0 }
 0xa90   :  { %v6473_v29 = vmul.f32 -1.442695, %v5632_v26  ;;  %v5634_v43 = vadd.f32 %v5633_v30, %v5552_v15  ;;  %v5705_v23 = vadd.f32 %v5704_v21, %v5560_v48  ;;  %v5941_v15 = vld [vmem:[#allocation25] sm:$0xff] }
 0xa92   :  { %7818 = vpow2.f32 %v6473_v29  ;;  %v6474_v56 = vmul.f32 -1.442695, %v5634_v43  ;;  %v6475_v49 = vmul.f32 -1.442695, %v5705_v23 }
 0xa94   :  { %7820 = vpow2.f32 %v6474_v56 }
 0xa95   :  { %7822 = vpow2.f32 %v6475_v49 }
 0xa9f   :  { %v7819_v62 = vpop.eup %7818 }
 0xaa0   :  { %v5710_v38 = vadd.f32 1.0, %v7819_v62 }
 0xaa1   :  { %v7821_v18 = vpop.eup %7820 }
 0xaa2   :  { %7824 = vrcp.f32 %v5710_v38  ;;  %v5716_v35 = vadd.f32 1.0, %v7821_v18  ;;  %v7823_v16 = vpop.eup %7822 }
 0xaa3   :  { %7826 = vtanh.f32 %v5703_v28  ;;  %v5723_v3 = vadd.f32 1.0, %v7823_v16 }
 0xaa4   :  { %7828 = vrcp.f32 %v5716_v35 }
 0xaa5   :  { %7830 = vrcp.f32 %v5723_v3 }
 0xaaf   :  { %v7825_v39 = vpop.eup %7824 }
 0xab0   :  { %v7827_v47 = vpop.eup %7826 }
 0xab1   :  { %v7829_v4 = vpop.eup %7828  ;;  %v5737_v53 = vmul.f32 %v7827_v47, %v7825_v39 }
 0xab2   :  { %v5736_v0 = vmul.f32 %v7829_v4, %v5734_v33  ;;  %v7831_v45 = vpop.eup %7830 }
 0xab4   :  { %v5738_v34 = vadd.f32 %v5737_v53, %v5736_v0 }
 0xab6   :  { %7832 = vtanh.f32 %v5738_v34 }
 0xac3   :  { %v7833_v59 = vpop.eup %7832 }
 0xac4   :  { %v5740_v17 = vmul.f32 %v7833_v59, %v7831_v45 }
 0xac6   :  { %v5743_v11 = vcombine.low %v5740_v17, %v5738_v34  ;;  %7282 = vmatmul.mubr.f32.vlgmr.msra.gmra.mxu1 %v5740_v17 }
 0xac7   :  { %7351 = vmatprep.mubr.msk.f32.mxu1 %vm8256_vm7, %v8255_v46  ;;  %7320 = vmatpush3.msra.mxu1 %v5956_v58 }
 0xac8   :  { %6476 = vst.sshfl [vmem:[%s8411_s5] sm:$0x33 pattern:$0x76325410] %v5743_v11  ;;  %7321 = vmatprep.subr.mxu1 %v8255_v46 }
 0xac9   :  { %7322 = vmatpush3.msra.mxu1 %v5955_v52 }
 0xaca   :  { %7323 = vmatprep.subr.mxu1 %v8255_v46 }
 0xacb   :  { %7324 = vmatpush3.msra.mxu1 %v5954_v41 }
 0xacc   :  { %7325 = vmatprep.subr.mxu1 %v8255_v46 }
 0xacd   :  { %7326 = vmatpush3.msra.mxu1 %v5953_v22 }
 0xace   :  { %7327 = vmatprep.subr.mxu1 %v8255_v46 }
 0xacf   :  { %7328 = vmatpush3.msra.mxu1 %v5952_v6 }
 0xad0   :  { %7329 = vmatprep.subr.mxu1 %v8255_v46 }
 0xad1   :  { %7330 = vmatpush3.msra.mxu1 %v5951_v42 }
 0xad2   :  { %7331 = vmatprep.subr.mxu1 %v8255_v46 }
 0xad3   :  { %7332 = vmatpush3.msra.mxu1 %v5950_v2 }
 0xad4   :  { %7333 = vmatprep.subr.mxu1 %v8255_v46 }
 0xad5   :  { %7334 = vmatpush3.msra.mxu1 %v5949_v13 }
 0xad6   :  { %7335 = vmatprep.subr.mxu1 %v8255_v46 }
 0xad7   :  { %7336 = vmatpush3.msra.mxu1 %v5948_v19 }
 0xad8   :  { %7337 = vmatprep.subr.mxu1 %v8255_v46 }
 0xad9   :  { %7338 = vmatpush3.msra.mxu1 %v5947_v1 }
 0xada   :  { %7339 = vmatprep.subr.mxu1 %v8255_v46 }
 0xadb   :  { %7340 = vmatpush3.msra.mxu1 %v5946_v20 }
 0xadc   :  { %7341 = vmatprep.subr.mxu1 %v8255_v46 }
 0xadd   :  { %7342 = vmatpush3.msra.mxu1 %v5945_v36 }
 0xade   :  { %7343 = vmatprep.subr.mxu1 %v8255_v46 }
 0xadf   :  { %7344 = vmatpush3.msra.mxu1 %v5944_v24 }
 0xae0   :  { %7345 = vmatprep.subr.mxu1 %v8255_v46 }
 0xae1   :  { %7346 = vmatpush3.msra.mxu1 %v5943_v10 }
 0xae2   :  { %7347 = vmatprep.subr.mxu1 %v8255_v46 }
 0xae3   :  { %7348 = vmatpush3.msra.mxu1 %v5942_v12 }
 0xae4   :  { %7349 = vmatprep.subr.mxu1 %v8255_v46 }
 0xae5   :  { %7350 = vmatpush3.msra.mxu1 %v5941_v15 }
 0xb86   :  { %v5842_v40 = vpop.f32.mrf.mxu1 }
 0xb87   :  { %v5843_v61 = vadd.f32 %v6477_v9, %v5842_v40 }
 0xb88   :  { %v7283_v14 = vpop.f32.mrf.mxu1 }
 0xb89   :  { %7834 = vtanh.f32 %v5843_v61 }
 0xb96   :  { %v7835_v57 = vpop.eup %7834 }
 0xb97   :  { %7317 = vmatmul.mubr.f32.vlgmr.msra.gmra.mxu0 %v7835_v57 }
 0xc57   :  { %v5936_v26 = vpop.f32.mrf.mxu0 }
 0xc58   :  { %v5937_v30 = vadd.f32 %v6478_v25, %v5936_v26 }
 0xc59   :  { %v7318_v29 = vpop.f32.mrf.mxu0 }
 0xc5a   :  { %7836 = vtanh.f32 %v5937_v30 }
 0xc67   :  { %v7837_v43 = vpop.eup %7836 }
 0xc68   :  { %7352 = vmatmul.mubr.f32.vlgmr.msra.gmra.mxu1 %v7837_v43 }
 0xd28   :  { %v6030_v51 = vpop.f32.mrf.mxu1 }
 0xd29   :  { %v6031_v56 = vadd.f32 %v6479_v63, %v6030_v51 }
 0xd2a   :  { %v7353_v48 = vpop.f32.mrf.mxu1 }
 0xd2b   :  { %6034 = vst [vmem:[%s8416_s21] sm:$0x3] %v6031_v56 }
 0xd2c   :  { %6043 = vsyncpa [#allocation3], 1 }
 0xd2d   :  { %6044 = vsyncpa [#allocation5], 1 }
 0xd2e   :  { %6045 = vsyncpa [#allocation8], 1 }
 0xd2f   :  { %6046 = vsyncpa [#allocation11], 1 }
 0xd30   :  { %6047 = vsyncpa [#allocation14], 1 }
 0xd31   :  { %6048 = vsyncpa [#allocation17], 1 }
 0xd32   :  { %6049 = vsyncpa [#allocation20], 1 }
 0xd33   :  { %6050 = vsyncpa [#allocation23], 1 }
 0xd34   :  { %6051 = vsyncpa [#allocation26], 1 }

</bundles_post_ra>
